<compile_context>
chip_gen: v7x
topology: tpu7x:2x2x1
jax: 0.10.0
libtpu: 0.0.40
codegen_flags: <defaults>
</compile_context>

<pallas_src>
import jax
import jax.numpy as jnp
from jax import lax
from jax.experimental import pallas as pl
from jax.experimental.pallas import tpu as pltpu

# Keep kernel-internal and reference matmuls at full f32 precision so the numerical
# check below is meaningful.  (Production: drop this and use bf16 MXU inputs.)
jax.config.update("jax_default_matmul_precision", "highest")

_EPS = 1e-5


def _make_kernel(history, horizon, hidden_dim, batch):
    H = hidden_dim
    inv_h = 1.0 / float(H)

    def kernel(xg_ref, weh_ref, eg_ref, ebeta_ref,
               wd_ref, bd_ref, dg_ref, dbeta_ref,
               wt_ref, bt_ref, p_ref, o_ref):
        f32 = jnp.float32

        # ---- hoisted ONCE: weight loads and pre-broadcast (B, *) bias/affine params ----
        weh = weh_ref[...]                                   # (H, 4H)
        wd = wd_ref[...]                                     # (H, 4H)
        wt = wt_ref[...]                                     # (H, T*nf)
        p_avg = p_ref[...]                                   # (4H, 4H) block-mean matrix
        eg = jnp.broadcast_to(eg_ref[...], (batch, H))
        ebeta = jnp.broadcast_to(ebeta_ref[...], (batch, H))
        dg = jnp.broadcast_to(dg_ref[...], (batch, H))
        dbeta = jnp.broadcast_to(dbeta_ref[...], (batch, H))
        bd = jnp.broadcast_to(bd_ref[...], (batch, 4 * H))
        bt = jnp.broadcast_to(bt_ref[...], (batch, wt_ref.shape[1]))

        def cell(gates, c, gamma, beta):
            # GroupNorm(4 groups, affine=False) on the 4H gate vector.
            # Single-pass stats (var = E[x^2] - E[x]^2); per-gate mean + block broadcast
            # ride the MXU via p_avg -> zero cross-lane XLU reductions for the gates.
            mu = jnp.dot(gates, p_avg, preferred_element_type=f32)            # (B, 4H)
            msq = jnp.dot(gates * gates, p_avg, preferred_element_type=f32)   # (B, 4H)
            gn = (gates - mu) * lax.rsqrt(msq - mu * mu + _EPS)
            # sigmoid(i, f, o) via ONE full-width EUP tanh; tanh(g) on its quarter.
            sig = 0.5 * jnp.tanh(0.5 * gn) + 0.5
            i_s = sig[:, 0 * H:1 * H]
            f_s = sig[:, 1 * H:2 * H]
            o_s = sig[:, 2 * H:3 * H]
            g_t = jnp.tanh(gn[:, 3 * H:4 * H])
            c_new = f_s * c + i_s * g_t
            # output_norm: GroupNorm(1 group over H, affine=True), single-pass stats.
            m1 = jnp.sum(c_new, axis=1, keepdims=True) * inv_h
            m2 = jnp.sum(c_new * c_new, axis=1, keepdims=True) * inv_h
            cn = (c_new - m1) * lax.rsqrt(m2 - m1 * m1 + _EPS) * gamma + beta
            h_new = o_s * jnp.tanh(cn)
            return h_new, c_new

        h0 = jnp.zeros((batch, H), f32)
        c0 = jnp.zeros((batch, H), f32)

        def enc_body(t, carry):
            h, c = carry
            # x-side gates (to_latent + x-part of the gate matmul + enc bias) were
            # precomputed in the wrapper -> only h @ Weh remains on the serial path.
            gates = xg_ref[t] + jnp.dot(h, weh, preferred_element_type=f32)
            return cell(gates, c, eg, ebeta)

        h, c = lax.fori_loop(0, history, enc_body, (h0, c0), unroll=True)

        def dec_body(t, carry):
            h, c = carry
            gates = jnp.dot(h, wd, preferred_element_type=f32) + bd
            h, c = cell(gates, c, dg, dbeta)
            # Fused TailEnsemble: one lane-dense (B, T*nf) matmul + bias, unmasked store.
            y = jnp.dot(h, wt, preferred_element_type=f32) + bt
            o_ref[t] = y.astype(o_ref.dtype)
            return h, c

        lax.fori_loop(0, horizon, dec_body, (h, c), unroll=True)

    return kernel


def enc_dec_lstm_forward(x, params, *, future_pred=1):
    """x: (B, history, n_feat) -> (B, num_tails, future_pred, n_feat)."""
    B, history, nf = x.shape
    H = params["to_latent_w"].shape[0]
    T = params["tail_w"].shape[0]
    horizon = int(future_pred)
    f32 = jnp.float32
    B_pad = ((B + 7) // 8) * 8          # pad batch to the f32 sublane multiple

    # --- one-time weight relayout: torch (out, in) -> (in, out) so every in-kernel
    #     matmul is x @ W feeding the MXU directly (no in-kernel transposes) ---
    wl = params["to_latent_w"].T.astype(f32)                   # (nf, H)
    bl = params["to_latent_b"].astype(f32)                     # (H,)
    enc_w = params["enc_w"]                                    # (4H, 2H) torch layout
    wez = enc_w[:, :H].T.astype(f32)                           # (H, 4H)  x-part columns
    weh = enc_w[:, H:].T.astype(f32)                           # (H, 4H)  h-part columns
    be = params["enc_b"].astype(f32)                           # (4H,)
    eg = params["enc_gamma"].reshape(1, H).astype(f32)
    ebeta = params["enc_beta"].reshape(1, H).astype(f32)
    wd = params["dec_w"].T.astype(f32)                         # (H, 4H)
    bd = params["dec_b"].reshape(1, 4 * H).astype(f32)
    dg = params["dec_gamma"].reshape(1, H).astype(f32)
    dbeta = params["dec_beta"].reshape(1, H).astype(f32)
    # Fused tails: (T, nf, H) -> (H, T*nf); output lane j = tail*nf + feat.
    wt = params["tail_w"].reshape(T * nf, H).T.astype(f32)     # (H, T*nf)
    bt = params["tail_b"].reshape(1, T * nf).astype(f32)

    # --- hoist the input-side matmul chain off the serial path (one batched matmul):
    #     x_gates[t] = (x[:, t] @ Wl + bl) @ Wez + be  for all history steps at once ---
    z = jnp.einsum("btf,fh->bth", x.astype(f32), wl) + bl       # (B, history, H)
    xg = jnp.einsum("bth,hg->btg", z, wez) + be                 # (B, history, 4H)
    xg = jnp.transpose(xg, (1, 0, 2))                           # (history, B, 4H)
    xg = jnp.pad(xg, ((0, 0), (0, B_pad - B), (0, 0)))          # (history, B_pad, 4H)

    # Constant block-diagonal averaging matrix: per-gate mean + broadcast in one MXU op.
    gid = jnp.arange(4 * H) // H
    p_avg = (gid[:, None] == gid[None, :]).astype(f32) / float(H)   # (4H, 4H)

    args = (xg, weh, eg, ebeta, wd, bd, dg, dbeta, wt, bt, p_avg)
    out = pl.pallas_call(
        _make_kernel(history, horizon, H, B_pad),
        out_shape=jax.ShapeDtypeStruct((horizon, B_pad, T * nf), jnp.float32),
        # Single invocation (no grid): everything lives as whole-array VMEM blocks.
        in_specs=[pl.BlockSpec(memory_space=pltpu.MemorySpace.VMEM)] * len(args),
        out_specs=pl.BlockSpec(memory_space=pltpu.MemorySpace.VMEM),
    )(*args)

    # (horizon, B_pad, T*nf) -> (B, T, horizon, nf): only touches the tiny final output.
    out = out[:, :B, :].reshape(horizon, B, T, nf)
    return jnp.transpose(out, (1, 2, 0, 3))


# ---------------------------------------------------------------------------
# Parameter init (torch layouts) and pure-JAX reference for validation.
# ---------------------------------------------------------------------------
def init_params(key, input_dim, hidden_dim, num_tails, T_max=5):
    H = hidden_dim
    ks = jax.random.split(key, 10)

    def linear_init(k, fan_in, w_shape, b_shape):
        kw, kb = jax.random.split(k)
        bound = 1.0 / float(fan_in) ** 0.5
        return (jax.random.uniform(kw, w_shape, jnp.float32, -bound, bound),
                jax.random.uniform(kb, b_shape, jnp.float32, -bound, bound))

    def chrono_bias(k):
        # https://arxiv.org/pdf/1804.11188.pdf : b_f = log U(1, T_max-1), b_i = -b_f
        bf = jnp.log(jax.random.uniform(k, (H,), jnp.float32, 1.0, float(T_max - 1)))
        return jnp.concatenate([-bf, bf, jnp.zeros((2 * H,), jnp.float32)])

    to_latent_w, to_latent_b = linear_init(ks[0], input_dim, (H, input_dim), (H,))
    enc_w, _ = linear_init(ks[1], 2 * H, (4 * H, 2 * H), (4 * H,))
    dec_w, _ = linear_init(ks[2], H, (4 * H, H), (4 * H,))
    tail_w, tail_b = linear_init(ks[3], H, (num_tails, input_dim, H),
                                 (num_tails, input_dim))
    return dict(
        to_latent_w=to_latent_w, to_latent_b=to_latent_b,
        enc_w=enc_w, enc_b=chrono_bias(ks[4]),
        enc_gamma=1.0 + 0.1 * jax.random.normal(ks[5], (H,), jnp.float32),
        enc_beta=0.1 * jax.random.normal(ks[6], (H,), jnp.float32),
        dec_w=dec_w, dec_b=chrono_bias(ks[7]),
        dec_gamma=1.0 + 0.1 * jax.random.normal(ks[8], (H,), jnp.float32),
        dec_beta=0.1 * jax.random.normal(ks[9], (H,), jnp.float32),
        tail_w=tail_w, tail_b=tail_b,
    )


def ref_forward(x, p, future_pred):
    """Pure-JAX mirror of the PyTorch EncDecLSTM.forward (num_layers=1, no FiLM)."""
    B, history, nf = x.shape
    H = p["to_latent_w"].shape[0]
    T = p["tail_w"].shape[0]

    def sigmoid(v):
        return 1.0 / (1.0 + jnp.exp(-v))

    def gn(v, groups):
        Bv, C = v.shape
        vv = v.reshape(Bv, groups, C // groups)
        mu = jnp.mean(vv, axis=-1, keepdims=True)
        var = jnp.mean(jnp.square(vv - mu), axis=-1, keepdims=True)
        return ((vv - mu) * lax.rsqrt(var + _EPS)).reshape(Bv, C)

    def cell(z_in, h, c, w, b, gamma, beta):
        zz = jnp.concatenate([z_in, h], axis=1) if z_in is not None else h
        g = gn(zz @ w.T + b, 4)
        i, f, o, gg = jnp.split(g, 4, axis=1)
        c = sigmoid(f) * c + sigmoid(i) * jnp.tanh(gg)
        cn = gn(c, 1) * gamma + beta
        h = sigmoid(o) * jnp.tanh(cn)
        return h, c

    h = jnp.zeros((B, H), jnp.float32)
    c = jnp.zeros((B, H), jnp.float32)
    for t in range(history):
        z = x[:, t] @ p["to_latent_w"].T + p["to_latent_b"]
        h, c = cell(z, h, c, p["enc_w"], p["enc_b"], p["enc_gamma"], p["enc_beta"])
        # z = z + h   # only feeds layer i+1; num_layers == 1 here
    outs = []
    for _ in range(future_pred):
        h, c = cell(None, h, c, p["dec_w"], p["dec_b"], p["dec_gamma"], p["dec_beta"])
        y = jnp.stack([h @ p["tail_w"][k].T + p["tail_b"][k] for k in range(T)], axis=1)
        outs.append(y)                                   # (B, T, nf)
    return jnp.stack(outs, axis=2)                       # (B, T, future_pred, nf)


if __name__ == "__main__":
    B, N_FEAT, HIDDEN, NUM_TAILS = 2, 8, 32, 16          # NUM_TAILS*N_FEAT = 128 lanes
    HISTORY, FUTURE = 8, 4

    key = jax.random.PRNGKey(0)
    kx, kp = jax.random.split(key)
    x = jax.random.normal(kx, (B, HISTORY, N_FEAT), jnp.float32)
    params = init_params(kp, N_FEAT, HIDDEN, NUM_TAILS, T_max=5)

    out = enc_dec_lstm_forward(x, params, future_pred=FUTURE)
    out = jax.block_until_ready(out)

    ref = ref_forward(x, params, FUTURE)
    assert out.shape == (B, NUM_TAILS, FUTURE, N_FEAT), out.shape
    max_err = float(jnp.max(jnp.abs(out - ref)))
    assert jnp.allclose(out, ref, atol=1e-3, rtol=1e-3), max_err

    print("KERNEL_OK")
</pallas_src>

<mosaic_0001>
module attributes {stable_mosaic.version = 11 : i64} {
  func.func @kernel(%arg0: memref<8x8x128xf32, #tpu.memory_space<vmem>>, %arg1: memref<32x128xf32, #tpu.memory_space<vmem>>, %arg2: memref<1x32xf32, #tpu.memory_space<vmem>>, %arg3: memref<1x32xf32, #tpu.memory_space<vmem>>, %arg4: memref<32x128xf32, #tpu.memory_space<vmem>>, %arg5: memref<1x128xf32, #tpu.memory_space<vmem>>, %arg6: memref<1x32xf32, #tpu.memory_space<vmem>>, %arg7: memref<1x32xf32, #tpu.memory_space<vmem>>, %arg8: memref<32x128xf32, #tpu.memory_space<vmem>>, %arg9: memref<1x128xf32, #tpu.memory_space<vmem>>, %arg10: memref<128x128xf32, #tpu.memory_space<vmem>>, %arg11: memref<4x8x128xf32, #tpu.memory_space<vmem>>) attributes {dimension_semantics = [], scalar_prefetch = 0 : i64, scratch_operands = 0 : i64, tpu.core_type = #tpu.core_type<tc>} {
    %c0 = arith.constant 0 : index
    %c0_0 = arith.constant 0 : index
    %0 = vector.load %arg1[%c0, %c0_0] : memref<32x128xf32, #tpu.memory_space<vmem>>, vector<32x128xf32>
    %c0_1 = arith.constant 0 : index
    %c0_2 = arith.constant 0 : index
    %1 = vector.load %arg4[%c0_1, %c0_2] : memref<32x128xf32, #tpu.memory_space<vmem>>, vector<32x128xf32>
    %c0_3 = arith.constant 0 : index
    %c0_4 = arith.constant 0 : index
    %2 = vector.load %arg8[%c0_3, %c0_4] : memref<32x128xf32, #tpu.memory_space<vmem>>, vector<32x128xf32>
    %c0_5 = arith.constant 0 : index
    %c0_6 = arith.constant 0 : index
    %3 = vector.load %arg10[%c0_5, %c0_6] : memref<128x128xf32, #tpu.memory_space<vmem>>, vector<128x128xf32>
    %c0_7 = arith.constant 0 : index
    %c0_8 = arith.constant 0 : index
    %4 = vector.load %arg2[%c0_7, %c0_8] : memref<1x32xf32, #tpu.memory_space<vmem>>, vector<1x32xf32>
    %5 = vector.shape_cast %4 : vector<1x32xf32> to vector<1x32xf32>
    %6 = vector.broadcast %5 : vector<1x32xf32> to vector<8x32xf32>
    %c0_9 = arith.constant 0 : index
    %c0_10 = arith.constant 0 : index
    %7 = vector.load %arg3[%c0_9, %c0_10] : memref<1x32xf32, #tpu.memory_space<vmem>>, vector<1x32xf32>
    %8 = vector.shape_cast %7 : vector<1x32xf32> to vector<1x32xf32>
    %9 = vector.broadcast %8 : vector<1x32xf32> to vector<8x32xf32>
    %c0_11 = arith.constant 0 : index
    %c0_12 = arith.constant 0 : index
    %10 = vector.load %arg6[%c0_11, %c0_12] : memref<1x32xf32, #tpu.memory_space<vmem>>, vector<1x32xf32>
    %11 = vector.shape_cast %10 : vector<1x32xf32> to vector<1x32xf32>
    %12 = vector.broadcast %11 : vector<1x32xf32> to vector<8x32xf32>
    %c0_13 = arith.constant 0 : index
    %c0_14 = arith.constant 0 : index
    %13 = vector.load %arg7[%c0_13, %c0_14] : memref<1x32xf32, #tpu.memory_space<vmem>>, vector<1x32xf32>
    %14 = vector.shape_cast %13 : vector<1x32xf32> to vector<1x32xf32>
    %15 = vector.broadcast %14 : vector<1x32xf32> to vector<8x32xf32>
    %c0_15 = arith.constant 0 : index
    %c0_16 = arith.constant 0 : index
    %16 = vector.load %arg5[%c0_15, %c0_16] : memref<1x128xf32, #tpu.memory_space<vmem>>, vector<1x128xf32>
    %17 = vector.shape_cast %16 : vector<1x128xf32> to vector<1x128xf32>
    %18 = vector.broadcast %17 : vector<1x128xf32> to vector<8x128xf32>
    %c0_17 = arith.constant 0 : index
    %c0_18 = arith.constant 0 : index
    %19 = vector.load %arg9[%c0_17, %c0_18] : memref<1x128xf32, #tpu.memory_space<vmem>>, vector<1x128xf32>
    %20 = vector.shape_cast %19 : vector<1x128xf32> to vector<1x128xf32>
    %21 = vector.broadcast %20 : vector<1x128xf32> to vector<8x128xf32>
    %cst = arith.constant 0.000000e+00 : f32
    %22 = vector.broadcast %cst : f32 to vector<8x32xf32>
    %cst_19 = arith.constant 0.000000e+00 : f32
    %23 = vector.broadcast %cst_19 : f32 to vector<8x32xf32>
    %c0_i32 = arith.constant 0 : i32
    %24 = arith.index_cast %c0_i32 : i32 to index
    %c0_20 = arith.constant 0 : index
    %c0_21 = arith.constant 0 : index
    %25 = vector.load %arg0[%24, %c0_20, %c0_21] : memref<8x8x128xf32, #tpu.memory_space<vmem>>, vector<1x8x128xf32>
    %26 = vector.shape_cast %25 : vector<1x8x128xf32> to vector<8x128xf32>
    %cst_22 = arith.constant dense<0.000000e+00> : vector<8x128xf32>
    %27 = tpu.matmul %22, %0, %cst_22 {dimension_numbers = #tpu.dot_dimension_numbers<[1], [0], [0], [1], [0, 0, 1, 1], [], []>, precision = #tpu.contract_precision<fp32>} : vector<8x32xf32>, vector<32x128xf32>, vector<8x128xf32> -> vector<8x128xf32>
    %28 = arith.addf %26, %27 : vector<8x128xf32>
    %cst_23 = arith.constant dense<0.000000e+00> : vector<8x128xf32>
    %29 = tpu.matmul %28, %3, %cst_23 {dimension_numbers = #tpu.dot_dimension_numbers<[1], [0], [0], [1], [0, 0, 1, 1], [], []>, precision = #tpu.contract_precision<fp32>} : vector<8x128xf32>, vector<128x128xf32>, vector<8x128xf32> -> vector<8x128xf32>
    %30 = arith.mulf %28, %28 : vector<8x128xf32>
    %cst_24 = arith.constant dense<0.000000e+00> : vector<8x128xf32>
    %31 = tpu.matmul %30, %3, %cst_24 {dimension_numbers = #tpu.dot_dimension_numbers<[1], [0], [0], [1], [0, 0, 1, 1], [], []>, precision = #tpu.contract_precision<fp32>} : vector<8x128xf32>, vector<128x128xf32>, vector<8x128xf32> -> vector<8x128xf32>
    %32 = arith.subf %28, %29 : vector<8x128xf32>
    %33 = arith.mulf %29, %29 : vector<8x128xf32>
    %34 = arith.subf %31, %33 : vector<8x128xf32>
    %cst_25 = arith.constant 9.99999974E-6 : f32
    %35 = vector.broadcast %cst_25 : f32 to vector<8x128xf32>
    %36 = arith.addf %34, %35 : vector<8x128xf32>
    %37 = math.rsqrt %36 : vector<8x128xf32>
    %38 = arith.mulf %32, %37 : vector<8x128xf32>
    %cst_26 = arith.constant 5.000000e-01 : f32
    %39 = vector.broadcast %cst_26 : f32 to vector<8x128xf32>
    %40 = arith.mulf %39, %38 : vector<8x128xf32>
    %41 = math.tanh %40 : vector<8x128xf32>
    %cst_27 = arith.constant 5.000000e-01 : f32
    %42 = vector.broadcast %cst_27 : f32 to vector<8x128xf32>
    %43 = arith.mulf %42, %41 : vector<8x128xf32>
    %cst_28 = arith.constant 5.000000e-01 : f32
    %44 = vector.broadcast %cst_28 : f32 to vector<8x128xf32>
    %45 = arith.addf %43, %44 : vector<8x128xf32>
    %46 = vector.extract_strided_slice %45 {offsets = [0, 0], sizes = [8, 32], strides = [1, 1]} : vector<8x128xf32> to vector<8x32xf32>
    %47 = vector.extract_strided_slice %45 {offsets = [0, 32], sizes = [8, 32], strides = [1, 1]} : vector<8x128xf32> to vector<8x32xf32>
    %48 = vector.extract_strided_slice %45 {offsets = [0, 64], sizes = [8, 32], strides = [1, 1]} : vector<8x128xf32> to vector<8x32xf32>
    %49 = vector.extract_strided_slice %38 {offsets = [0, 96], sizes = [8, 32], strides = [1, 1]} : vector<8x128xf32> to vector<8x32xf32>
    %50 = math.tanh %49 : vector<8x32xf32>
    %51 = arith.mulf %47, %23 : vector<8x32xf32>
    %52 = arith.mulf %46, %50 : vector<8x32xf32>
    %53 = arith.addf %51, %52 : vector<8x32xf32>
    %cst_29 = arith.constant dense<0.000000e+00> : vector<8xf32>
    %54 = vector.multi_reduction <add>, %53, %cst_29 [1] : vector<8x32xf32> to vector<8xf32>
    %55 = vector.shape_cast %54 : vector<8xf32> to vector<8x1xf32>
    %cst_30 = arith.constant 3.125000e-02 : f32
    %56 = vector.broadcast %cst_30 : f32 to vector<8x1xf32>
    %57 = arith.mulf %55, %56 : vector<8x1xf32>
    %58 = arith.mulf %53, %53 : vector<8x32xf32>
    %cst_31 = arith.constant dense<0.000000e+00> : vector<8xf32>
    %59 = vector.multi_reduction <add>, %58, %cst_31 [1] : vector<8x32xf32> to vector<8xf32>
    %60 = vector.shape_cast %59 : vector<8xf32> to vector<8x1xf32>
    %cst_32 = arith.constant 3.125000e-02 : f32
    %61 = vector.broadcast %cst_32 : f32 to vector<8x1xf32>
    %62 = arith.mulf %60, %61 : vector<8x1xf32>
    %63 = vector.broadcast %57 : vector<8x1xf32> to vector<8x32xf32>
    %64 = arith.subf %53, %63 : vector<8x32xf32>
    %65 = arith.mulf %57, %57 : vector<8x1xf32>
    %66 = arith.subf %62, %65 : vector<8x1xf32>
    %cst_33 = arith.constant 9.99999974E-6 : f32
    %67 = vector.broadcast %cst_33 : f32 to vector<8x1xf32>
    %68 = arith.addf %66, %67 : vector<8x1xf32>
    %69 = math.rsqrt %68 : vector<8x1xf32>
    %70 = vector.broadcast %69 : vector<8x1xf32> to vector<8x32xf32>
    %71 = arith.mulf %64, %70 : vector<8x32xf32>
    %72 = arith.mulf %71, %6 : vector<8x32xf32>
    %73 = arith.addf %72, %9 : vector<8x32xf32>
    %74 = math.tanh %73 : vector<8x32xf32>
    %75 = arith.mulf %48, %74 : vector<8x32xf32>
    %c1_i32 = arith.constant 1 : i32
    %76 = arith.index_cast %c1_i32 : i32 to index
    %c0_34 = arith.constant 0 : index
    %c0_35 = arith.constant 0 : index
    %77 = vector.load %arg0[%76, %c0_34, %c0_35] : memref<8x8x128xf32, #tpu.memory_space<vmem>>, vector<1x8x128xf32>
    %78 = vector.shape_cast %77 : vector<1x8x128xf32> to vector<8x128xf32>
    %cst_36 = arith.constant dense<0.000000e+00> : vector<8x128xf32>
    %79 = tpu.matmul %75, %0, %cst_36 {dimension_numbers = #tpu.dot_dimension_numbers<[1], [0], [0], [1], [0, 0, 1, 1], [], []>, precision = #tpu.contract_precision<fp32>} : vector<8x32xf32>, vector<32x128xf32>, vector<8x128xf32> -> vector<8x128xf32>
    %80 = arith.addf %78, %79 : vector<8x128xf32>
    %cst_37 = arith.constant dense<0.000000e+00> : vector<8x128xf32>
    %81 = tpu.matmul %80, %3, %cst_37 {dimension_numbers = #tpu.dot_dimension_numbers<[1], [0], [0], [1], [0, 0, 1, 1], [], []>, precision = #tpu.contract_precision<fp32>} : vector<8x128xf32>, vector<128x128xf32>, vector<8x128xf32> -> vector<8x128xf32>
    %82 = arith.mulf %80, %80 : vector<8x128xf32>
    %cst_38 = arith.constant dense<0.000000e+00> : vector<8x128xf32>
    %83 = tpu.matmul %82, %3, %cst_38 {dimension_numbers = #tpu.dot_dimension_numbers<[1], [0], [0], [1], [0, 0, 1, 1], [], []>, precision = #tpu.contract_precision<fp32>} : vector<8x128xf32>, vector<128x128xf32>, vector<8x128xf32> -> vector<8x128xf32>
    %84 = arith.subf %80, %81 : vector<8x128xf32>
    %85 = arith.mulf %81, %81 : vector<8x128xf32>
    %86 = arith.subf %83, %85 : vector<8x128xf32>
    %cst_39 = arith.constant 9.99999974E-6 : f32
    %87 = vector.broadcast %cst_39 : f32 to vector<8x128xf32>
    %88 = arith.addf %86, %87 : vector<8x128xf32>
    %89 = math.rsqrt %88 : vector<8x128xf32>
    %90 = arith.mulf %84, %89 : vector<8x128xf32>
    %cst_40 = arith.constant 5.000000e-01 : f32
    %91 = vector.broadcast %cst_40 : f32 to vector<8x128xf32>
    %92 = arith.mulf %91, %90 : vector<8x128xf32>
    %93 = math.tanh %92 : vector<8x128xf32>
    %cst_41 = arith.constant 5.000000e-01 : f32
    %94 = vector.broadcast %cst_41 : f32 to vector<8x128xf32>
    %95 = arith.mulf %94, %93 : vector<8x128xf32>
    %cst_42 = arith.constant 5.000000e-01 : f32
    %96 = vector.broadcast %cst_42 : f32 to vector<8x128xf32>
    %97 = arith.addf %95, %96 : vector<8x128xf32>
    %98 = vector.extract_strided_slice %97 {offsets = [0, 0], sizes = [8, 32], strides = [1, 1]} : vector<8x128xf32> to vector<8x32xf32>
    %99 = vector.extract_strided_slice %97 {offsets = [0, 32], sizes = [8, 32], strides = [1, 1]} : vector<8x128xf32> to vector<8x32xf32>
    %100 = vector.extract_strided_slice %97 {offsets = [0, 64], sizes = [8, 32], strides = [1, 1]} : vector<8x128xf32> to vector<8x32xf32>
    %101 = vector.extract_strided_slice %90 {offsets = [0, 96], sizes = [8, 32], strides = [1, 1]} : vector<8x128xf32> to vector<8x32xf32>
    %102 = math.tanh %101 : vector<8x32xf32>
    %103 = arith.mulf %99, %53 : vector<8x32xf32>
    %104 = arith.mulf %98, %102 : vector<8x32xf32>
    %105 = arith.addf %103, %104 : vector<8x32xf32>
    %cst_43 = arith.constant dense<0.000000e+00> : vector<8xf32>
    %106 = vector.multi_reduction <add>, %105, %cst_43 [1] : vector<8x32xf32> to vector<8xf32>
    %107 = vector.shape_cast %106 : vector<8xf32> to vector<8x1xf32>
    %cst_44 = arith.constant 3.125000e-02 : f32
    %108 = vector.broadcast %cst_44 : f32 to vector<8x1xf32>
    %109 = arith.mulf %107, %108 : vector<8x1xf32>
    %110 = arith.mulf %105, %105 : vector<8x32xf32>
    %cst_45 = arith.constant dense<0.000000e+00> : vector<8xf32>
    %111 = vector.multi_reduction <add>, %110, %cst_45 [1] : vector<8x32xf32> to vector<8xf32>
    %112 = vector.shape_cast %111 : vector<8xf32> to vector<8x1xf32>
    %cst_46 = arith.constant 3.125000e-02 : f32
    %113 = vector.broadcast %cst_46 : f32 to vector<8x1xf32>
    %114 = arith.mulf %112, %113 : vector<8x1xf32>
    %115 = vector.broadcast %109 : vector<8x1xf32> to vector<8x32xf32>
    %116 = arith.subf %105, %115 : vector<8x32xf32>
    %117 = arith.mulf %109, %109 : vector<8x1xf32>
    %118 = arith.subf %114, %117 : vector<8x1xf32>
    %cst_47 = arith.constant 9.99999974E-6 : f32
    %119 = vector.broadcast %cst_47 : f32 to vector<8x1xf32>
    %120 = arith.addf %118, %119 : vector<8x1xf32>
    %121 = math.rsqrt %120 : vector<8x1xf32>
    %122 = vector.broadcast %121 : vector<8x1xf32> to vector<8x32xf32>
    %123 = arith.mulf %116, %122 : vector<8x32xf32>
    %124 = arith.mulf %123, %6 : vector<8x32xf32>
    %125 = arith.addf %124, %9 : vector<8x32xf32>
    %126 = math.tanh %125 : vector<8x32xf32>
    %127 = arith.mulf %100, %126 : vector<8x32xf32>
    %c2_i32 = arith.constant 2 : i32
    %128 = arith.index_cast %c2_i32 : i32 to index
    %c0_48 = arith.constant 0 : index
    %c0_49 = arith.constant 0 : index
    %129 = vector.load %arg0[%128, %c0_48, %c0_49] : memref<8x8x128xf32, #tpu.memory_space<vmem>>, vector<1x8x128xf32>
    %130 = vector.shape_cast %129 : vector<1x8x128xf32> to vector<8x128xf32>
    %cst_50 = arith.constant dense<0.000000e+00> : vector<8x128xf32>
    %131 = tpu.matmul %127, %0, %cst_50 {dimension_numbers = #tpu.dot_dimension_numbers<[1], [0], [0], [1], [0, 0, 1, 1], [], []>, precision = #tpu.contract_precision<fp32>} : vector<8x32xf32>, vector<32x128xf32>, vector<8x128xf32> -> vector<8x128xf32>
    %132 = arith.addf %130, %131 : vector<8x128xf32>
    %cst_51 = arith.constant dense<0.000000e+00> : vector<8x128xf32>
    %133 = tpu.matmul %132, %3, %cst_51 {dimension_numbers = #tpu.dot_dimension_numbers<[1], [0], [0], [1], [0, 0, 1, 1], [], []>, precision = #tpu.contract_precision<fp32>} : vector<8x128xf32>, vector<128x128xf32>, vector<8x128xf32> -> vector<8x128xf32>
    %134 = arith.mulf %132, %132 : vector<8x128xf32>
    %cst_52 = arith.constant dense<0.000000e+00> : vector<8x128xf32>
    %135 = tpu.matmul %134, %3, %cst_52 {dimension_numbers = #tpu.dot_dimension_numbers<[1], [0], [0], [1], [0, 0, 1, 1], [], []>, precision = #tpu.contract_precision<fp32>} : vector<8x128xf32>, vector<128x128xf32>, vector<8x128xf32> -> vector<8x128xf32>
    %136 = arith.subf %132, %133 : vector<8x128xf32>
    %137 = arith.mulf %133, %133 : vector<8x128xf32>
    %138 = arith.subf %135, %137 : vector<8x128xf32>
    %cst_53 = arith.constant 9.99999974E-6 : f32
    %139 = vector.broadcast %cst_53 : f32 to vector<8x128xf32>
    %140 = arith.addf %138, %139 : vector<8x128xf32>
    %141 = math.rsqrt %140 : vector<8x128xf32>
    %142 = arith.mulf %136, %141 : vector<8x128xf32>
    %cst_54 = arith.constant 5.000000e-01 : f32
    %143 = vector.broadcast %cst_54 : f32 to vector<8x128xf32>
    %144 = arith.mulf %143, %142 : vector<8x128xf32>
    %145 = math.tanh %144 : vector<8x128xf32>
    %cst_55 = arith.constant 5.000000e-01 : f32
    %146 = vector.broadcast %cst_55 : f32 to vector<8x128xf32>
    %147 = arith.mulf %146, %145 : vector<8x128xf32>
    %cst_56 = arith.constant 5.000000e-01 : f32
    %148 = vector.broadcast %cst_56 : f32 to vector<8x128xf32>
    %149 = arith.addf %147, %148 : vector<8x128xf32>
    %150 = vector.extract_strided_slice %149 {offsets = [0, 0], sizes = [8, 32], strides = [1, 1]} : vector<8x128xf32> to vector<8x32xf32>
    %151 = vector.extract_strided_slice %149 {offsets = [0, 32], sizes = [8, 32], strides = [1, 1]} : vector<8x128xf32> to vector<8x32xf32>
    %152 = vector.extract_strided_slice %149 {offsets = [0, 64], sizes = [8, 32], strides = [1, 1]} : vector<8x128xf32> to vector<8x32xf32>
    %153 = vector.extract_strided_slice %142 {offsets = [0, 96], sizes = [8, 32], strides = [1, 1]} : vector<8x128xf32> to vector<8x32xf32>
    %154 = math.tanh %153 : vector<8x32xf32>
    %155 = arith.mulf %151, %105 : vector<8x32xf32>
    %156 = arith.mulf %150, %154 : vector<8x32xf32>
    %157 = arith.addf %155, %156 : vector<8x32xf32>
    %cst_57 = arith.constant dense<0.000000e+00> : vector<8xf32>
    %158 = vector.multi_reduction <add>, %157, %cst_57 [1] : vector<8x32xf32> to vector<8xf32>
    %159 = vector.shape_cast %158 : vector<8xf32> to vector<8x1xf32>
    %cst_58 = arith.constant 3.125000e-02 : f32
    %160 = vector.broadcast %cst_58 : f32 to vector<8x1xf32>
    %161 = arith.mulf %159, %160 : vector<8x1xf32>
    %162 = arith.mulf %157, %157 : vector<8x32xf32>
    %cst_59 = arith.constant dense<0.000000e+00> : vector<8xf32>
    %163 = vector.multi_reduction <add>, %162, %cst_59 [1] : vector<8x32xf32> to vector<8xf32>
    %164 = vector.shape_cast %163 : vector<8xf32> to vector<8x1xf32>
    %cst_60 = arith.constant 3.125000e-02 : f32
    %165 = vector.broadcast %cst_60 : f32 to vector<8x1xf32>
    %166 = arith.mulf %164, %165 : vector<8x1xf32>
    %167 = vector.broadcast %161 : vector<8x1xf32> to vector<8x32xf32>
    %168 = arith.subf %157, %167 : vector<8x32xf32>
    %169 = arith.mulf %161, %161 : vector<8x1xf32>
    %170 = arith.subf %166, %169 : vector<8x1xf32>
    %cst_61 = arith.constant 9.99999974E-6 : f32
    %171 = vector.broadcast %cst_61 : f32 to vector<8x1xf32>
    %172 = arith.addf %170, %171 : vector<8x1xf32>
    %173 = math.rsqrt %172 : vector<8x1xf32>
    %174 = vector.broadcast %173 : vector<8x1xf32> to vector<8x32xf32>
    %175 = arith.mulf %168, %174 : vector<8x32xf32>
    %176 = arith.mulf %175, %6 : vector<8x32xf32>
    %177 = arith.addf %176, %9 : vector<8x32xf32>
    %178 = math.tanh %177 : vector<8x32xf32>
    %179 = arith.mulf %152, %178 : vector<8x32xf32>
    %c3_i32 = arith.constant 3 : i32
    %180 = arith.index_cast %c3_i32 : i32 to index
    %c0_62 = arith.constant 0 : index
    %c0_63 = arith.constant 0 : index
    %181 = vector.load %arg0[%180, %c0_62, %c0_63] : memref<8x8x128xf32, #tpu.memory_space<vmem>>, vector<1x8x128xf32>
    %182 = vector.shape_cast %181 : vector<1x8x128xf32> to vector<8x128xf32>
    %cst_64 = arith.constant dense<0.000000e+00> : vector<8x128xf32>
    %183 = tpu.matmul %179, %0, %cst_64 {dimension_numbers = #tpu.dot_dimension_numbers<[1], [0], [0], [1], [0, 0, 1, 1], [], []>, precision = #tpu.contract_precision<fp32>} : vector<8x32xf32>, vector<32x128xf32>, vector<8x128xf32> -> vector<8x128xf32>
    %184 = arith.addf %182, %183 : vector<8x128xf32>
    %cst_65 = arith.constant dense<0.000000e+00> : vector<8x128xf32>
    %185 = tpu.matmul %184, %3, %cst_65 {dimension_numbers = #tpu.dot_dimension_numbers<[1], [0], [0], [1], [0, 0, 1, 1], [], []>, precision = #tpu.contract_precision<fp32>} : vector<8x128xf32>, vector<128x128xf32>, vector<8x128xf32> -> vector<8x128xf32>
    %186 = arith.mulf %184, %184 : vector<8x128xf32>
    %cst_66 = arith.constant dense<0.000000e+00> : vector<8x128xf32>
    %187 = tpu.matmul %186, %3, %cst_66 {dimension_numbers = #tpu.dot_dimension_numbers<[1], [0], [0], [1], [0, 0, 1, 1], [], []>, precision = #tpu.contract_precision<fp32>} : vector<8x128xf32>, vector<128x128xf32>, vector<8x128xf32> -> vector<8x128xf32>
    %188 = arith.subf %184, %185 : vector<8x128xf32>
    %189 = arith.mulf %185, %185 : vector<8x128xf32>
    %190 = arith.subf %187, %189 : vector<8x128xf32>
    %cst_67 = arith.constant 9.99999974E-6 : f32
    %191 = vector.broadcast %cst_67 : f32 to vector<8x128xf32>
    %192 = arith.addf %190, %191 : vector<8x128xf32>
    %193 = math.rsqrt %192 : vector<8x128xf32>
    %194 = arith.mulf %188, %193 : vector<8x128xf32>
    %cst_68 = arith.constant 5.000000e-01 : f32
    %195 = vector.broadcast %cst_68 : f32 to vector<8x128xf32>
    %196 = arith.mulf %195, %194 : vector<8x128xf32>
    %197 = math.tanh %196 : vector<8x128xf32>
    %cst_69 = arith.constant 5.000000e-01 : f32
    %198 = vector.broadcast %cst_69 : f32 to vector<8x128xf32>
    %199 = arith.mulf %198, %197 : vector<8x128xf32>
    %cst_70 = arith.constant 5.000000e-01 : f32
    %200 = vector.broadcast %cst_70 : f32 to vector<8x128xf32>
    %201 = arith.addf %199, %200 : vector<8x128xf32>
    %202 = vector.extract_strided_slice %201 {offsets = [0, 0], sizes = [8, 32], strides = [1, 1]} : vector<8x128xf32> to vector<8x32xf32>
    %203 = vector.extract_strided_slice %201 {offsets = [0, 32], sizes = [8, 32], strides = [1, 1]} : vector<8x128xf32> to vector<8x32xf32>
    %204 = vector.extract_strided_slice %201 {offsets = [0, 64], sizes = [8, 32], strides = [1, 1]} : vector<8x128xf32> to vector<8x32xf32>
    %205 = vector.extract_strided_slice %194 {offsets = [0, 96], sizes = [8, 32], strides = [1, 1]} : vector<8x128xf32> to vector<8x32xf32>
    %206 = math.tanh %205 : vector<8x32xf32>
    %207 = arith.mulf %203, %157 : vector<8x32xf32>
    %208 = arith.mulf %202, %206 : vector<8x32xf32>
    %209 = arith.addf %207, %208 : vector<8x32xf32>
    %cst_71 = arith.constant dense<0.000000e+00> : vector<8xf32>
    %210 = vector.multi_reduction <add>, %209, %cst_71 [1] : vector<8x32xf32> to vector<8xf32>
    %211 = vector.shape_cast %210 : vector<8xf32> to vector<8x1xf32>
    %cst_72 = arith.constant 3.125000e-02 : f32
    %212 = vector.broadcast %cst_72 : f32 to vector<8x1xf32>
    %213 = arith.mulf %211, %212 : vector<8x1xf32>
    %214 = arith.mulf %209, %209 : vector<8x32xf32>
    %cst_73 = arith.constant dense<0.000000e+00> : vector<8xf32>
    %215 = vector.multi_reduction <add>, %214, %cst_73 [1] : vector<8x32xf32> to vector<8xf32>
    %216 = vector.shape_cast %215 : vector<8xf32> to vector<8x1xf32>
    %cst_74 = arith.constant 3.125000e-02 : f32
    %217 = vector.broadcast %cst_74 : f32 to vector<8x1xf32>
    %218 = arith.mulf %216, %217 : vector<8x1xf32>
    %219 = vector.broadcast %213 : vector<8x1xf32> to vector<8x32xf32>
    %220 = arith.subf %209, %219 : vector<8x32xf32>
    %221 = arith.mulf %213, %213 : vector<8x1xf32>
    %222 = arith.subf %218, %221 : vector<8x1xf32>
    %cst_75 = arith.constant 9.99999974E-6 : f32
    %223 = vector.broadcast %cst_75 : f32 to vector<8x1xf32>
    %224 = arith.addf %222, %223 : vector<8x1xf32>
    %225 = math.rsqrt %224 : vector<8x1xf32>
    %226 = vector.broadcast %225 : vector<8x1xf32> to vector<8x32xf32>
    %227 = arith.mulf %220, %226 : vector<8x32xf32>
    %228 = arith.mulf %227, %6 : vector<8x32xf32>
    %229 = arith.addf %228, %9 : vector<8x32xf32>
    %230 = math.tanh %229 : vector<8x32xf32>
    %231 = arith.mulf %204, %230 : vector<8x32xf32>
    %c4_i32 = arith.constant 4 : i32
    %232 = arith.index_cast %c4_i32 : i32 to index
    %c0_76 = arith.constant 0 : index
    %c0_77 = arith.constant 0 : index
    %233 = vector.load %arg0[%232, %c0_76, %c0_77] : memref<8x8x128xf32, #tpu.memory_space<vmem>>, vector<1x8x128xf32>
    %234 = vector.shape_cast %233 : vector<1x8x128xf32> to vector<8x128xf32>
    %cst_78 = arith.constant dense<0.000000e+00> : vector<8x128xf32>
    %235 = tpu.matmul %231, %0, %cst_78 {dimension_numbers = #tpu.dot_dimension_numbers<[1], [0], [0], [1], [0, 0, 1, 1], [], []>, precision = #tpu.contract_precision<fp32>} : vector<8x32xf32>, vector<32x128xf32>, vector<8x128xf32> -> vector<8x128xf32>
    %236 = arith.addf %234, %235 : vector<8x128xf32>
    %cst_79 = arith.constant dense<0.000000e+00> : vector<8x128xf32>
    %237 = tpu.matmul %236, %3, %cst_79 {dimension_numbers = #tpu.dot_dimension_numbers<[1], [0], [0], [1], [0, 0, 1, 1], [], []>, precision = #tpu.contract_precision<fp32>} : vector<8x128xf32>, vector<128x128xf32>, vector<8x128xf32> -> vector<8x128xf32>
    %238 = arith.mulf %236, %236 : vector<8x128xf32>
    %cst_80 = arith.constant dense<0.000000e+00> : vector<8x128xf32>
    %239 = tpu.matmul %238, %3, %cst_80 {dimension_numbers = #tpu.dot_dimension_numbers<[1], [0], [0], [1], [0, 0, 1, 1], [], []>, precision = #tpu.contract_precision<fp32>} : vector<8x128xf32>, vector<128x128xf32>, vector<8x128xf32> -> vector<8x128xf32>
    %240 = arith.subf %236, %237 : vector<8x128xf32>
    %241 = arith.mulf %237, %237 : vector<8x128xf32>
    %242 = arith.subf %239, %241 : vector<8x128xf32>
    %cst_81 = arith.constant 9.99999974E-6 : f32
    %243 = vector.broadcast %cst_81 : f32 to vector<8x128xf32>
    %244 = arith.addf %242, %243 : vector<8x128xf32>
    %245 = math.rsqrt %244 : vector<8x128xf32>
    %246 = arith.mulf %240, %245 : vector<8x128xf32>
    %cst_82 = arith.constant 5.000000e-01 : f32
    %247 = vector.broadcast %cst_82 : f32 to vector<8x128xf32>
    %248 = arith.mulf %247, %246 : vector<8x128xf32>
    %249 = math.tanh %248 : vector<8x128xf32>
    %cst_83 = arith.constant 5.000000e-01 : f32
    %250 = vector.broadcast %cst_83 : f32 to vector<8x128xf32>
    %251 = arith.mulf %250, %249 : vector<8x128xf32>
    %cst_84 = arith.constant 5.000000e-01 : f32
    %252 = vector.broadcast %cst_84 : f32 to vector<8x128xf32>
    %253 = arith.addf %251, %252 : vector<8x128xf32>
    %254 = vector.extract_strided_slice %253 {offsets = [0, 0], sizes = [8, 32], strides = [1, 1]} : vector<8x128xf32> to vector<8x32xf32>
    %255 = vector.extract_strided_slice %253 {offsets = [0, 32], sizes = [8, 32], strides = [1, 1]} : vector<8x128xf32> to vector<8x32xf32>
    %256 = vector.extract_strided_slice %253 {offsets = [0, 64], sizes = [8, 32], strides = [1, 1]} : vector<8x128xf32> to vector<8x32xf32>
    %257 = vector.extract_strided_slice %246 {offsets = [0, 96], sizes = [8, 32], strides = [1, 1]} : vector<8x128xf32> to vector<8x32xf32>
    %258 = math.tanh %257 : vector<8x32xf32>
    %259 = arith.mulf %255, %209 : vector<8x32xf32>
    %260 = arith.mulf %254, %258 : vector<8x32xf32>
    %261 = arith.addf %259, %260 : vector<8x32xf32>
    %cst_85 = arith.constant dense<0.000000e+00> : vector<8xf32>
    %262 = vector.multi_reduction <add>, %261, %cst_85 [1] : vector<8x32xf32> to vector<8xf32>
    %263 = vector.shape_cast %262 : vector<8xf32> to vector<8x1xf32>
    %cst_86 = arith.constant 3.125000e-02 : f32
    %264 = vector.broadcast %cst_86 : f32 to vector<8x1xf32>
    %265 = arith.mulf %263, %264 : vector<8x1xf32>
    %266 = arith.mulf %261, %261 : vector<8x32xf32>
    %cst_87 = arith.constant dense<0.000000e+00> : vector<8xf32>
    %267 = vector.multi_reduction <add>, %266, %cst_87 [1] : vector<8x32xf32> to vector<8xf32>
    %268 = vector.shape_cast %267 : vector<8xf32> to vector<8x1xf32>
    %cst_88 = arith.constant 3.125000e-02 : f32
    %269 = vector.broadcast %cst_88 : f32 to vector<8x1xf32>
    %270 = arith.mulf %268, %269 : vector<8x1xf32>
    %271 = vector.broadcast %265 : vector<8x1xf32> to vector<8x32xf32>
    %272 = arith.subf %261, %271 : vector<8x32xf32>
    %273 = arith.mulf %265, %265 : vector<8x1xf32>
    %274 = arith.subf %270, %273 : vector<8x1xf32>
    %cst_89 = arith.constant 9.99999974E-6 : f32
    %275 = vector.broadcast %cst_89 : f32 to vector<8x1xf32>
    %276 = arith.addf %274, %275 : vector<8x1xf32>
    %277 = math.rsqrt %276 : vector<8x1xf32>
    %278 = vector.broadcast %277 : vector<8x1xf32> to vector<8x32xf32>
    %279 = arith.mulf %272, %278 : vector<8x32xf32>
    %280 = arith.mulf %279, %6 : vector<8x32xf32>
    %281 = arith.addf %280, %9 : vector<8x32xf32>
    %282 = math.tanh %281 : vector<8x32xf32>
    %283 = arith.mulf %256, %282 : vector<8x32xf32>
    %c5_i32 = arith.constant 5 : i32
    %284 = arith.index_cast %c5_i32 : i32 to index
    %c0_90 = arith.constant 0 : index
    %c0_91 = arith.constant 0 : index
    %285 = vector.load %arg0[%284, %c0_90, %c0_91] : memref<8x8x128xf32, #tpu.memory_space<vmem>>, vector<1x8x128xf32>
    %286 = vector.shape_cast %285 : vector<1x8x128xf32> to vector<8x128xf32>
    %cst_92 = arith.constant dense<0.000000e+00> : vector<8x128xf32>
    %287 = tpu.matmul %283, %0, %cst_92 {dimension_numbers = #tpu.dot_dimension_numbers<[1], [0], [0], [1], [0, 0, 1, 1], [], []>, precision = #tpu.contract_precision<fp32>} : vector<8x32xf32>, vector<32x128xf32>, vector<8x128xf32> -> vector<8x128xf32>
    %288 = arith.addf %286, %287 : vector<8x128xf32>
    %cst_93 = arith.constant dense<0.000000e+00> : vector<8x128xf32>
    %289 = tpu.matmul %288, %3, %cst_93 {dimension_numbers = #tpu.dot_dimension_numbers<[1], [0], [0], [1], [0, 0, 1, 1], [], []>, precision = #tpu.contract_precision<fp32>} : vector<8x128xf32>, vector<128x128xf32>, vector<8x128xf32> -> vector<8x128xf32>
    %290 = arith.mulf %288, %288 : vector<8x128xf32>
    %cst_94 = arith.constant dense<0.000000e+00> : vector<8x128xf32>
    %291 = tpu.matmul %290, %3, %cst_94 {dimension_numbers = #tpu.dot_dimension_numbers<[1], [0], [0], [1], [0, 0, 1, 1], [], []>, precision = #tpu.contract_precision<fp32>} : vector<8x128xf32>, vector<128x128xf32>, vector<8x128xf32> -> vector<8x128xf32>
    %292 = arith.subf %288, %289 : vector<8x128xf32>
    %293 = arith.mulf %289, %289 : vector<8x128xf32>
    %294 = arith.subf %291, %293 : vector<8x128xf32>
    %cst_95 = arith.constant 9.99999974E-6 : f32
    %295 = vector.broadcast %cst_95 : f32 to vector<8x128xf32>
    %296 = arith.addf %294, %295 : vector<8x128xf32>
    %297 = math.rsqrt %296 : vector<8x128xf32>
    %298 = arith.mulf %292, %297 : vector<8x128xf32>
    %cst_96 = arith.constant 5.000000e-01 : f32
    %299 = vector.broadcast %cst_96 : f32 to vector<8x128xf32>
    %300 = arith.mulf %299, %298 : vector<8x128xf32>
    %301 = math.tanh %300 : vector<8x128xf32>
    %cst_97 = arith.constant 5.000000e-01 : f32
    %302 = vector.broadcast %cst_97 : f32 to vector<8x128xf32>
    %303 = arith.mulf %302, %301 : vector<8x128xf32>
    %cst_98 = arith.constant 5.000000e-01 : f32
    %304 = vector.broadcast %cst_98 : f32 to vector<8x128xf32>
    %305 = arith.addf %303, %304 : vector<8x128xf32>
    %306 = vector.extract_strided_slice %305 {offsets = [0, 0], sizes = [8, 32], strides = [1, 1]} : vector<8x128xf32> to vector<8x32xf32>
    %307 = vector.extract_strided_slice %305 {offsets = [0, 32], sizes = [8, 32], strides = [1, 1]} : vector<8x128xf32> to vector<8x32xf32>
    %308 = vector.extract_strided_slice %305 {offsets = [0, 64], sizes = [8, 32], strides = [1, 1]} : vector<8x128xf32> to vector<8x32xf32>
    %309 = vector.extract_strided_slice %298 {offsets = [0, 96], sizes = [8, 32], strides = [1, 1]} : vector<8x128xf32> to vector<8x32xf32>
    %310 = math.tanh %309 : vector<8x32xf32>
    %311 = arith.mulf %307, %261 : vector<8x32xf32>
    %312 = arith.mulf %306, %310 : vector<8x32xf32>
    %313 = arith.addf %311, %312 : vector<8x32xf32>
    %cst_99 = arith.constant dense<0.000000e+00> : vector<8xf32>
    %314 = vector.multi_reduction <add>, %313, %cst_99 [1] : vector<8x32xf32> to vector<8xf32>
    %315 = vector.shape_cast %314 : vector<8xf32> to vector<8x1xf32>
    %cst_100 = arith.constant 3.125000e-02 : f32
    %316 = vector.broadcast %cst_100 : f32 to vector<8x1xf32>
    %317 = arith.mulf %315, %316 : vector<8x1xf32>
    %318 = arith.mulf %313, %313 : vector<8x32xf32>
    %cst_101 = arith.constant dense<0.000000e+00> : vector<8xf32>
    %319 = vector.multi_reduction <add>, %318, %cst_101 [1] : vector<8x32xf32> to vector<8xf32>
    %320 = vector.shape_cast %319 : vector<8xf32> to vector<8x1xf32>
    %cst_102 = arith.constant 3.125000e-02 : f32
    %321 = vector.broadcast %cst_102 : f32 to vector<8x1xf32>
    %322 = arith.mulf %320, %321 : vector<8x1xf32>
    %323 = vector.broadcast %317 : vector<8x1xf32> to vector<8x32xf32>
    %324 = arith.subf %313, %323 : vector<8x32xf32>
    %325 = arith.mulf %317, %317 : vector<8x1xf32>
    %326 = arith.subf %322, %325 : vector<8x1xf32>
    %cst_103 = arith.constant 9.99999974E-6 : f32
    %327 = vector.broadcast %cst_103 : f32 to vector<8x1xf32>
    %328 = arith.addf %326, %327 : vector<8x1xf32>
    %329 = math.rsqrt %328 : vector<8x1xf32>
    %330 = vector.broadcast %329 : vector<8x1xf32> to vector<8x32xf32>
    %331 = arith.mulf %324, %330 : vector<8x32xf32>
    %332 = arith.mulf %331, %6 : vector<8x32xf32>
    %333 = arith.addf %332, %9 : vector<8x32xf32>
    %334 = math.tanh %333 : vector<8x32xf32>
    %335 = arith.mulf %308, %334 : vector<8x32xf32>
    %c6_i32 = arith.constant 6 : i32
    %336 = arith.index_cast %c6_i32 : i32 to index
    %c0_104 = arith.constant 0 : index
    %c0_105 = arith.constant 0 : index
    %337 = vector.load %arg0[%336, %c0_104, %c0_105] : memref<8x8x128xf32, #tpu.memory_space<vmem>>, vector<1x8x128xf32>
    %338 = vector.shape_cast %337 : vector<1x8x128xf32> to vector<8x128xf32>
    %cst_106 = arith.constant dense<0.000000e+00> : vector<8x128xf32>
    %339 = tpu.matmul %335, %0, %cst_106 {dimension_numbers = #tpu.dot_dimension_numbers<[1], [0], [0], [1], [0, 0, 1, 1], [], []>, precision = #tpu.contract_precision<fp32>} : vector<8x32xf32>, vector<32x128xf32>, vector<8x128xf32> -> vector<8x128xf32>
    %340 = arith.addf %338, %339 : vector<8x128xf32>
    %cst_107 = arith.constant dense<0.000000e+00> : vector<8x128xf32>
    %341 = tpu.matmul %340, %3, %cst_107 {dimension_numbers = #tpu.dot_dimension_numbers<[1], [0], [0], [1], [0, 0, 1, 1], [], []>, precision = #tpu.contract_precision<fp32>} : vector<8x128xf32>, vector<128x128xf32>, vector<8x128xf32> -> vector<8x128xf32>
    %342 = arith.mulf %340, %340 : vector<8x128xf32>
    %cst_108 = arith.constant dense<0.000000e+00> : vector<8x128xf32>
    %343 = tpu.matmul %342, %3, %cst_108 {dimension_numbers = #tpu.dot_dimension_numbers<[1], [0], [0], [1], [0, 0, 1, 1], [], []>, precision = #tpu.contract_precision<fp32>} : vector<8x128xf32>, vector<128x128xf32>, vector<8x128xf32> -> vector<8x128xf32>
    %344 = arith.subf %340, %341 : vector<8x128xf32>
    %345 = arith.mulf %341, %341 : vector<8x128xf32>
    %346 = arith.subf %343, %345 : vector<8x128xf32>
    %cst_109 = arith.constant 9.99999974E-6 : f32
    %347 = vector.broadcast %cst_109 : f32 to vector<8x128xf32>
    %348 = arith.addf %346, %347 : vector<8x128xf32>
    %349 = math.rsqrt %348 : vector<8x128xf32>
    %350 = arith.mulf %344, %349 : vector<8x128xf32>
    %cst_110 = arith.constant 5.000000e-01 : f32
    %351 = vector.broadcast %cst_110 : f32 to vector<8x128xf32>
    %352 = arith.mulf %351, %350 : vector<8x128xf32>
    %353 = math.tanh %352 : vector<8x128xf32>
    %cst_111 = arith.constant 5.000000e-01 : f32
    %354 = vector.broadcast %cst_111 : f32 to vector<8x128xf32>
    %355 = arith.mulf %354, %353 : vector<8x128xf32>
    %cst_112 = arith.constant 5.000000e-01 : f32
    %356 = vector.broadcast %cst_112 : f32 to vector<8x128xf32>
    %357 = arith.addf %355, %356 : vector<8x128xf32>
    %358 = vector.extract_strided_slice %357 {offsets = [0, 0], sizes = [8, 32], strides = [1, 1]} : vector<8x128xf32> to vector<8x32xf32>
    %359 = vector.extract_strided_slice %357 {offsets = [0, 32], sizes = [8, 32], strides = [1, 1]} : vector<8x128xf32> to vector<8x32xf32>
    %360 = vector.extract_strided_slice %357 {offsets = [0, 64], sizes = [8, 32], strides = [1, 1]} : vector<8x128xf32> to vector<8x32xf32>
    %361 = vector.extract_strided_slice %350 {offsets = [0, 96], sizes = [8, 32], strides = [1, 1]} : vector<8x128xf32> to vector<8x32xf32>
    %362 = math.tanh %361 : vector<8x32xf32>
    %363 = arith.mulf %359, %313 : vector<8x32xf32>
    %364 = arith.mulf %358, %362 : vector<8x32xf32>
    %365 = arith.addf %363, %364 : vector<8x32xf32>
    %cst_113 = arith.constant dense<0.000000e+00> : vector<8xf32>
    %366 = vector.multi_reduction <add>, %365, %cst_113 [1] : vector<8x32xf32> to vector<8xf32>
    %367 = vector.shape_cast %366 : vector<8xf32> to vector<8x1xf32>
    %cst_114 = arith.constant 3.125000e-02 : f32
    %368 = vector.broadcast %cst_114 : f32 to vector<8x1xf32>
    %369 = arith.mulf %367, %368 : vector<8x1xf32>
    %370 = arith.mulf %365, %365 : vector<8x32xf32>
    %cst_115 = arith.constant dense<0.000000e+00> : vector<8xf32>
    %371 = vector.multi_reduction <add>, %370, %cst_115 [1] : vector<8x32xf32> to vector<8xf32>
    %372 = vector.shape_cast %371 : vector<8xf32> to vector<8x1xf32>
    %cst_116 = arith.constant 3.125000e-02 : f32
    %373 = vector.broadcast %cst_116 : f32 to vector<8x1xf32>
    %374 = arith.mulf %372, %373 : vector<8x1xf32>
    %375 = vector.broadcast %369 : vector<8x1xf32> to vector<8x32xf32>
    %376 = arith.subf %365, %375 : vector<8x32xf32>
    %377 = arith.mulf %369, %369 : vector<8x1xf32>
    %378 = arith.subf %374, %377 : vector<8x1xf32>
    %cst_117 = arith.constant 9.99999974E-6 : f32
    %379 = vector.broadcast %cst_117 : f32 to vector<8x1xf32>
    %380 = arith.addf %378, %379 : vector<8x1xf32>
    %381 = math.rsqrt %380 : vector<8x1xf32>
    %382 = vector.broadcast %381 : vector<8x1xf32> to vector<8x32xf32>
    %383 = arith.mulf %376, %382 : vector<8x32xf32>
    %384 = arith.mulf %383, %6 : vector<8x32xf32>
    %385 = arith.addf %384, %9 : vector<8x32xf32>
    %386 = math.tanh %385 : vector<8x32xf32>
    %387 = arith.mulf %360, %386 : vector<8x32xf32>
    %c7_i32 = arith.constant 7 : i32
    %388 = arith.index_cast %c7_i32 : i32 to index
    %c0_118 = arith.constant 0 : index
    %c0_119 = arith.constant 0 : index
    %389 = vector.load %arg0[%388, %c0_118, %c0_119] : memref<8x8x128xf32, #tpu.memory_space<vmem>>, vector<1x8x128xf32>
    %390 = vector.shape_cast %389 : vector<1x8x128xf32> to vector<8x128xf32>
    %cst_120 = arith.constant dense<0.000000e+00> : vector<8x128xf32>
    %391 = tpu.matmul %387, %0, %cst_120 {dimension_numbers = #tpu.dot_dimension_numbers<[1], [0], [0], [1], [0, 0, 1, 1], [], []>, precision = #tpu.contract_precision<fp32>} : vector<8x32xf32>, vector<32x128xf32>, vector<8x128xf32> -> vector<8x128xf32>
    %392 = arith.addf %390, %391 : vector<8x128xf32>
    %cst_121 = arith.constant dense<0.000000e+00> : vector<8x128xf32>
    %393 = tpu.matmul %392, %3, %cst_121 {dimension_numbers = #tpu.dot_dimension_numbers<[1], [0], [0], [1], [0, 0, 1, 1], [], []>, precision = #tpu.contract_precision<fp32>} : vector<8x128xf32>, vector<128x128xf32>, vector<8x128xf32> -> vector<8x128xf32>
    %394 = arith.mulf %392, %392 : vector<8x128xf32>
    %cst_122 = arith.constant dense<0.000000e+00> : vector<8x128xf32>
    %395 = tpu.matmul %394, %3, %cst_122 {dimension_numbers = #tpu.dot_dimension_numbers<[1], [0], [0], [1], [0, 0, 1, 1], [], []>, precision = #tpu.contract_precision<fp32>} : vector<8x128xf32>, vector<128x128xf32>, vector<8x128xf32> -> vector<8x128xf32>
    %396 = arith.subf %392, %393 : vector<8x128xf32>
    %397 = arith.mulf %393, %393 : vector<8x128xf32>
    %398 = arith.subf %395, %397 : vector<8x128xf32>
    %cst_123 = arith.constant 9.99999974E-6 : f32
    %399 = vector.broadcast %cst_123 : f32 to vector<8x128xf32>
    %400 = arith.addf %398, %399 : vector<8x128xf32>
    %401 = math.rsqrt %400 : vector<8x128xf32>
    %402 = arith.mulf %396, %401 : vector<8x128xf32>
    %cst_124 = arith.constant 5.000000e-01 : f32
    %403 = vector.broadcast %cst_124 : f32 to vector<8x128xf32>
    %404 = arith.mulf %403, %402 : vector<8x128xf32>
    %405 = math.tanh %404 : vector<8x128xf32>
    %cst_125 = arith.constant 5.000000e-01 : f32
    %406 = vector.broadcast %cst_125 : f32 to vector<8x128xf32>
    %407 = arith.mulf %406, %405 : vector<8x128xf32>
    %cst_126 = arith.constant 5.000000e-01 : f32
    %408 = vector.broadcast %cst_126 : f32 to vector<8x128xf32>
    %409 = arith.addf %407, %408 : vector<8x128xf32>
    %410 = vector.extract_strided_slice %409 {offsets = [0, 0], sizes = [8, 32], strides = [1, 1]} : vector<8x128xf32> to vector<8x32xf32>
    %411 = vector.extract_strided_slice %409 {offsets = [0, 32], sizes = [8, 32], strides = [1, 1]} : vector<8x128xf32> to vector<8x32xf32>
    %412 = vector.extract_strided_slice %409 {offsets = [0, 64], sizes = [8, 32], strides = [1, 1]} : vector<8x128xf32> to vector<8x32xf32>
    %413 = vector.extract_strided_slice %402 {offsets = [0, 96], sizes = [8, 32], strides = [1, 1]} : vector<8x128xf32> to vector<8x32xf32>
    %414 = math.tanh %413 : vector<8x32xf32>
    %415 = arith.mulf %411, %365 : vector<8x32xf32>
    %416 = arith.mulf %410, %414 : vector<8x32xf32>
    %417 = arith.addf %415, %416 : vector<8x32xf32>
    %cst_127 = arith.constant dense<0.000000e+00> : vector<8xf32>
    %418 = vector.multi_reduction <add>, %417, %cst_127 [1] : vector<8x32xf32> to vector<8xf32>
    %419 = vector.shape_cast %418 : vector<8xf32> to vector<8x1xf32>
    %cst_128 = arith.constant 3.125000e-02 : f32
    %420 = vector.broadcast %cst_128 : f32 to vector<8x1xf32>
    %421 = arith.mulf %419, %420 : vector<8x1xf32>
    %422 = arith.mulf %417, %417 : vector<8x32xf32>
    %cst_129 = arith.constant dense<0.000000e+00> : vector<8xf32>
    %423 = vector.multi_reduction <add>, %422, %cst_129 [1] : vector<8x32xf32> to vector<8xf32>
    %424 = vector.shape_cast %423 : vector<8xf32> to vector<8x1xf32>
    %cst_130 = arith.constant 3.125000e-02 : f32
    %425 = vector.broadcast %cst_130 : f32 to vector<8x1xf32>
    %426 = arith.mulf %424, %425 : vector<8x1xf32>
    %427 = vector.broadcast %421 : vector<8x1xf32> to vector<8x32xf32>
    %428 = arith.subf %417, %427 : vector<8x32xf32>
    %429 = arith.mulf %421, %421 : vector<8x1xf32>
    %430 = arith.subf %426, %429 : vector<8x1xf32>
    %cst_131 = arith.constant 9.99999974E-6 : f32
    %431 = vector.broadcast %cst_131 : f32 to vector<8x1xf32>
    %432 = arith.addf %430, %431 : vector<8x1xf32>
    %433 = math.rsqrt %432 : vector<8x1xf32>
    %434 = vector.broadcast %433 : vector<8x1xf32> to vector<8x32xf32>
    %435 = arith.mulf %428, %434 : vector<8x32xf32>
    %436 = arith.mulf %435, %6 : vector<8x32xf32>
    %437 = arith.addf %436, %9 : vector<8x32xf32>
    %438 = math.tanh %437 : vector<8x32xf32>
    %439 = arith.mulf %412, %438 : vector<8x32xf32>
    %c8_i32 = arith.constant 8 : i32
    %c0_i32_132 = arith.constant 0 : i32
    %cst_133 = arith.constant dense<0.000000e+00> : vector<8x128xf32>
    %440 = tpu.matmul %439, %1, %cst_133 {dimension_numbers = #tpu.dot_dimension_numbers<[1], [0], [0], [1], [0, 0, 1, 1], [], []>, precision = #tpu.contract_precision<fp32>} : vector<8x32xf32>, vector<32x128xf32>, vector<8x128xf32> -> vector<8x128xf32>
    %441 = arith.addf %440, %18 : vector<8x128xf32>
    %cst_134 = arith.constant dense<0.000000e+00> : vector<8x128xf32>
    %442 = tpu.matmul %441, %3, %cst_134 {dimension_numbers = #tpu.dot_dimension_numbers<[1], [0], [0], [1], [0, 0, 1, 1], [], []>, precision = #tpu.contract_precision<fp32>} : vector<8x128xf32>, vector<128x128xf32>, vector<8x128xf32> -> vector<8x128xf32>
    %443 = arith.mulf %441, %441 : vector<8x128xf32>
    %cst_135 = arith.constant dense<0.000000e+00> : vector<8x128xf32>
    %444 = tpu.matmul %443, %3, %cst_135 {dimension_numbers = #tpu.dot_dimension_numbers<[1], [0], [0], [1], [0, 0, 1, 1], [], []>, precision = #tpu.contract_precision<fp32>} : vector<8x128xf32>, vector<128x128xf32>, vector<8x128xf32> -> vector<8x128xf32>
    %445 = arith.subf %441, %442 : vector<8x128xf32>
    %446 = arith.mulf %442, %442 : vector<8x128xf32>
    %447 = arith.subf %444, %446 : vector<8x128xf32>
    %cst_136 = arith.constant 9.99999974E-6 : f32
    %448 = vector.broadcast %cst_136 : f32 to vector<8x128xf32>
    %449 = arith.addf %447, %448 : vector<8x128xf32>
    %450 = math.rsqrt %449 : vector<8x128xf32>
    %451 = arith.mulf %445, %450 : vector<8x128xf32>
    %cst_137 = arith.constant 5.000000e-01 : f32
    %452 = vector.broadcast %cst_137 : f32 to vector<8x128xf32>
    %453 = arith.mulf %452, %451 : vector<8x128xf32>
    %454 = math.tanh %453 : vector<8x128xf32>
    %cst_138 = arith.constant 5.000000e-01 : f32
    %455 = vector.broadcast %cst_138 : f32 to vector<8x128xf32>
    %456 = arith.mulf %455, %454 : vector<8x128xf32>
    %cst_139 = arith.constant 5.000000e-01 : f32
    %457 = vector.broadcast %cst_139 : f32 to vector<8x128xf32>
    %458 = arith.addf %456, %457 : vector<8x128xf32>
    %459 = vector.extract_strided_slice %458 {offsets = [0, 0], sizes = [8, 32], strides = [1, 1]} : vector<8x128xf32> to vector<8x32xf32>
    %460 = vector.extract_strided_slice %458 {offsets = [0, 32], sizes = [8, 32], strides = [1, 1]} : vector<8x128xf32> to vector<8x32xf32>
    %461 = vector.extract_strided_slice %458 {offsets = [0, 64], sizes = [8, 32], strides = [1, 1]} : vector<8x128xf32> to vector<8x32xf32>
    %462 = vector.extract_strided_slice %451 {offsets = [0, 96], sizes = [8, 32], strides = [1, 1]} : vector<8x128xf32> to vector<8x32xf32>
    %463 = math.tanh %462 : vector<8x32xf32>
    %464 = arith.mulf %460, %417 : vector<8x32xf32>
    %465 = arith.mulf %459, %463 : vector<8x32xf32>
    %466 = arith.addf %464, %465 : vector<8x32xf32>
    %cst_140 = arith.constant dense<0.000000e+00> : vector<8xf32>
    %467 = vector.multi_reduction <add>, %466, %cst_140 [1] : vector<8x32xf32> to vector<8xf32>
    %468 = vector.shape_cast %467 : vector<8xf32> to vector<8x1xf32>
    %cst_141 = arith.constant 3.125000e-02 : f32
    %469 = vector.broadcast %cst_141 : f32 to vector<8x1xf32>
    %470 = arith.mulf %468, %469 : vector<8x1xf32>
    %471 = arith.mulf %466, %466 : vector<8x32xf32>
    %cst_142 = arith.constant dense<0.000000e+00> : vector<8xf32>
    %472 = vector.multi_reduction <add>, %471, %cst_142 [1] : vector<8x32xf32> to vector<8xf32>
    %473 = vector.shape_cast %472 : vector<8xf32> to vector<8x1xf32>
    %cst_143 = arith.constant 3.125000e-02 : f32
    %474 = vector.broadcast %cst_143 : f32 to vector<8x1xf32>
    %475 = arith.mulf %473, %474 : vector<8x1xf32>
    %476 = vector.broadcast %470 : vector<8x1xf32> to vector<8x32xf32>
    %477 = arith.subf %466, %476 : vector<8x32xf32>
    %478 = arith.mulf %470, %470 : vector<8x1xf32>
    %479 = arith.subf %475, %478 : vector<8x1xf32>
    %cst_144 = arith.constant 9.99999974E-6 : f32
    %480 = vector.broadcast %cst_144 : f32 to vector<8x1xf32>
    %481 = arith.addf %479, %480 : vector<8x1xf32>
    %482 = math.rsqrt %481 : vector<8x1xf32>
    %483 = vector.broadcast %482 : vector<8x1xf32> to vector<8x32xf32>
    %484 = arith.mulf %477, %483 : vector<8x32xf32>
    %485 = arith.mulf %484, %12 : vector<8x32xf32>
    %486 = arith.addf %485, %15 : vector<8x32xf32>
    %487 = math.tanh %486 : vector<8x32xf32>
    %488 = arith.mulf %461, %487 : vector<8x32xf32>
    %cst_145 = arith.constant dense<0.000000e+00> : vector<8x128xf32>
    %489 = tpu.matmul %488, %2, %cst_145 {dimension_numbers = #tpu.dot_dimension_numbers<[1], [0], [0], [1], [0, 0, 1, 1], [], []>, precision = #tpu.contract_precision<fp32>} : vector<8x32xf32>, vector<32x128xf32>, vector<8x128xf32> -> vector<8x128xf32>
    %490 = arith.addf %489, %21 : vector<8x128xf32>
    %491 = arith.index_cast %c0_i32_132 : i32 to index
    %c0_146 = arith.constant 0 : index
    %c0_147 = arith.constant 0 : index
    %492 = vector.load %arg11[%491, %c0_146, %c0_147] : memref<4x8x128xf32, #tpu.memory_space<vmem>>, vector<1x8x128xf32>
    %493 = vector.shape_cast %492 : vector<1x8x128xf32> to vector<8x128xf32>
    %494 = vector.shape_cast %490 : vector<8x128xf32> to vector<1x8x128xf32>
    tpu.vector_store %arg11[%491, %c0_146, %c0_147], %494 {strides = array<i32>} : memref<4x8x128xf32, #tpu.memory_space<vmem>>, vector<1x8x128xf32>,
    %c1_i32_148 = arith.constant 1 : i32
    %cst_149 = arith.constant dense<0.000000e+00> : vector<8x128xf32>
    %495 = tpu.matmul %488, %1, %cst_149 {dimension_numbers = #tpu.dot_dimension_numbers<[1], [0], [0], [1], [0, 0, 1, 1], [], []>, precision = #tpu.contract_precision<fp32>} : vector<8x32xf32>, vector<32x128xf32>, vector<8x128xf32> -> vector<8x128xf32>
    %496 = arith.addf %495, %18 : vector<8x128xf32>
    %cst_150 = arith.constant dense<0.000000e+00> : vector<8x128xf32>
    %497 = tpu.matmul %496, %3, %cst_150 {dimension_numbers = #tpu.dot_dimension_numbers<[1], [0], [0], [1], [0, 0, 1, 1], [], []>, precision = #tpu.contract_precision<fp32>} : vector<8x128xf32>, vector<128x128xf32>, vector<8x128xf32> -> vector<8x128xf32>
    %498 = arith.mulf %496, %496 : vector<8x128xf32>
    %cst_151 = arith.constant dense<0.000000e+00> : vector<8x128xf32>
    %499 = tpu.matmul %498, %3, %cst_151 {dimension_numbers = #tpu.dot_dimension_numbers<[1], [0], [0], [1], [0, 0, 1, 1], [], []>, precision = #tpu.contract_precision<fp32>} : vector<8x128xf32>, vector<128x128xf32>, vector<8x128xf32> -> vector<8x128xf32>
    %500 = arith.subf %496, %497 : vector<8x128xf32>
    %501 = arith.mulf %497, %497 : vector<8x128xf32>
    %502 = arith.subf %499, %501 : vector<8x128xf32>
    %cst_152 = arith.constant 9.99999974E-6 : f32
    %503 = vector.broadcast %cst_152 : f32 to vector<8x128xf32>
    %504 = arith.addf %502, %503 : vector<8x128xf32>
    %505 = math.rsqrt %504 : vector<8x128xf32>
    %506 = arith.mulf %500, %505 : vector<8x128xf32>
    %cst_153 = arith.constant 5.000000e-01 : f32
    %507 = vector.broadcast %cst_153 : f32 to vector<8x128xf32>
    %508 = arith.mulf %507, %506 : vector<8x128xf32>
    %509 = math.tanh %508 : vector<8x128xf32>
    %cst_154 = arith.constant 5.000000e-01 : f32
    %510 = vector.broadcast %cst_154 : f32 to vector<8x128xf32>
    %511 = arith.mulf %510, %509 : vector<8x128xf32>
    %cst_155 = arith.constant 5.000000e-01 : f32
    %512 = vector.broadcast %cst_155 : f32 to vector<8x128xf32>
    %513 = arith.addf %511, %512 : vector<8x128xf32>
    %514 = vector.extract_strided_slice %513 {offsets = [0, 0], sizes = [8, 32], strides = [1, 1]} : vector<8x128xf32> to vector<8x32xf32>
    %515 = vector.extract_strided_slice %513 {offsets = [0, 32], sizes = [8, 32], strides = [1, 1]} : vector<8x128xf32> to vector<8x32xf32>
    %516 = vector.extract_strided_slice %513 {offsets = [0, 64], sizes = [8, 32], strides = [1, 1]} : vector<8x128xf32> to vector<8x32xf32>
    %517 = vector.extract_strided_slice %506 {offsets = [0, 96], sizes = [8, 32], strides = [1, 1]} : vector<8x128xf32> to vector<8x32xf32>
    %518 = math.tanh %517 : vector<8x32xf32>
    %519 = arith.mulf %515, %466 : vector<8x32xf32>
    %520 = arith.mulf %514, %518 : vector<8x32xf32>
    %521 = arith.addf %519, %520 : vector<8x32xf32>
    %cst_156 = arith.constant dense<0.000000e+00> : vector<8xf32>
    %522 = vector.multi_reduction <add>, %521, %cst_156 [1] : vector<8x32xf32> to vector<8xf32>
    %523 = vector.shape_cast %522 : vector<8xf32> to vector<8x1xf32>
    %cst_157 = arith.constant 3.125000e-02 : f32
    %524 = vector.broadcast %cst_157 : f32 to vector<8x1xf32>
    %525 = arith.mulf %523, %524 : vector<8x1xf32>
    %526 = arith.mulf %521, %521 : vector<8x32xf32>
    %cst_158 = arith.constant dense<0.000000e+00> : vector<8xf32>
    %527 = vector.multi_reduction <add>, %526, %cst_158 [1] : vector<8x32xf32> to vector<8xf32>
    %528 = vector.shape_cast %527 : vector<8xf32> to vector<8x1xf32>
    %cst_159 = arith.constant 3.125000e-02 : f32
    %529 = vector.broadcast %cst_159 : f32 to vector<8x1xf32>
    %530 = arith.mulf %528, %529 : vector<8x1xf32>
    %531 = vector.broadcast %525 : vector<8x1xf32> to vector<8x32xf32>
    %532 = arith.subf %521, %531 : vector<8x32xf32>
    %533 = arith.mulf %525, %525 : vector<8x1xf32>
    %534 = arith.subf %530, %533 : vector<8x1xf32>
    %cst_160 = arith.constant 9.99999974E-6 : f32
    %535 = vector.broadcast %cst_160 : f32 to vector<8x1xf32>
    %536 = arith.addf %534, %535 : vector<8x1xf32>
    %537 = math.rsqrt %536 : vector<8x1xf32>
    %538 = vector.broadcast %537 : vector<8x1xf32> to vector<8x32xf32>
    %539 = arith.mulf %532, %538 : vector<8x32xf32>
    %540 = arith.mulf %539, %12 : vector<8x32xf32>
    %541 = arith.addf %540, %15 : vector<8x32xf32>
    %542 = math.tanh %541 : vector<8x32xf32>
    %543 = arith.mulf %516, %542 : vector<8x32xf32>
    %cst_161 = arith.constant dense<0.000000e+00> : vector<8x128xf32>
    %544 = tpu.matmul %543, %2, %cst_161 {dimension_numbers = #tpu.dot_dimension_numbers<[1], [0], [0], [1], [0, 0, 1, 1], [], []>, precision = #tpu.contract_precision<fp32>} : vector<8x32xf32>, vector<32x128xf32>, vector<8x128xf32> -> vector<8x128xf32>
    %545 = arith.addf %544, %21 : vector<8x128xf32>
    %546 = arith.index_cast %c1_i32_148 : i32 to index
    %c0_162 = arith.constant 0 : index
    %c0_163 = arith.constant 0 : index
    %547 = vector.load %arg11[%546, %c0_162, %c0_163] : memref<4x8x128xf32, #tpu.memory_space<vmem>>, vector<1x8x128xf32>
    %548 = vector.shape_cast %547 : vector<1x8x128xf32> to vector<8x128xf32>
    %549 = vector.shape_cast %545 : vector<8x128xf32> to vector<1x8x128xf32>
    tpu.vector_store %arg11[%546, %c0_162, %c0_163], %549 {strides = array<i32>} : memref<4x8x128xf32, #tpu.memory_space<vmem>>, vector<1x8x128xf32>,
    %c2_i32_164 = arith.constant 2 : i32
    %cst_165 = arith.constant dense<0.000000e+00> : vector<8x128xf32>
    %550 = tpu.matmul %543, %1, %cst_165 {dimension_numbers = #tpu.dot_dimension_numbers<[1], [0], [0], [1], [0, 0, 1, 1], [], []>, precision = #tpu.contract_precision<fp32>} : vector<8x32xf32>, vector<32x128xf32>, vector<8x128xf32> -> vector<8x128xf32>
    %551 = arith.addf %550, %18 : vector<8x128xf32>
    %cst_166 = arith.constant dense<0.000000e+00> : vector<8x128xf32>
    %552 = tpu.matmul %551, %3, %cst_166 {dimension_numbers = #tpu.dot_dimension_numbers<[1], [0], [0], [1], [0, 0, 1, 1], [], []>, precision = #tpu.contract_precision<fp32>} : vector<8x128xf32>, vector<128x128xf32>, vector<8x128xf32> -> vector<8x128xf32>
    %553 = arith.mulf %551, %551 : vector<8x128xf32>
    %cst_167 = arith.constant dense<0.000000e+00> : vector<8x128xf32>
    %554 = tpu.matmul %553, %3, %cst_167 {dimension_numbers = #tpu.dot_dimension_numbers<[1], [0], [0], [1], [0, 0, 1, 1], [], []>, precision = #tpu.contract_precision<fp32>} : vector<8x128xf32>, vector<128x128xf32>, vector<8x128xf32> -> vector<8x128xf32>
    %555 = arith.subf %551, %552 : vector<8x128xf32>
    %556 = arith.mulf %552, %552 : vector<8x128xf32>
    %557 = arith.subf %554, %556 : vector<8x128xf32>
    %cst_168 = arith.constant 9.99999974E-6 : f32
    %558 = vector.broadcast %cst_168 : f32 to vector<8x128xf32>
    %559 = arith.addf %557, %558 : vector<8x128xf32>
    %560 = math.rsqrt %559 : vector<8x128xf32>
    %561 = arith.mulf %555, %560 : vector<8x128xf32>
    %cst_169 = arith.constant 5.000000e-01 : f32
    %562 = vector.broadcast %cst_169 : f32 to vector<8x128xf32>
    %563 = arith.mulf %562, %561 : vector<8x128xf32>
    %564 = math.tanh %563 : vector<8x128xf32>
    %cst_170 = arith.constant 5.000000e-01 : f32
    %565 = vector.broadcast %cst_170 : f32 to vector<8x128xf32>
    %566 = arith.mulf %565, %564 : vector<8x128xf32>
    %cst_171 = arith.constant 5.000000e-01 : f32
    %567 = vector.broadcast %cst_171 : f32 to vector<8x128xf32>
    %568 = arith.addf %566, %567 : vector<8x128xf32>
    %569 = vector.extract_strided_slice %568 {offsets = [0, 0], sizes = [8, 32], strides = [1, 1]} : vector<8x128xf32> to vector<8x32xf32>
    %570 = vector.extract_strided_slice %568 {offsets = [0, 32], sizes = [8, 32], strides = [1, 1]} : vector<8x128xf32> to vector<8x32xf32>
    %571 = vector.extract_strided_slice %568 {offsets = [0, 64], sizes = [8, 32], strides = [1, 1]} : vector<8x128xf32> to vector<8x32xf32>
    %572 = vector.extract_strided_slice %561 {offsets = [0, 96], sizes = [8, 32], strides = [1, 1]} : vector<8x128xf32> to vector<8x32xf32>
    %573 = math.tanh %572 : vector<8x32xf32>
    %574 = arith.mulf %570, %521 : vector<8x32xf32>
    %575 = arith.mulf %569, %573 : vector<8x32xf32>
    %576 = arith.addf %574, %575 : vector<8x32xf32>
    %cst_172 = arith.constant dense<0.000000e+00> : vector<8xf32>
    %577 = vector.multi_reduction <add>, %576, %cst_172 [1] : vector<8x32xf32> to vector<8xf32>
    %578 = vector.shape_cast %577 : vector<8xf32> to vector<8x1xf32>
    %cst_173 = arith.constant 3.125000e-02 : f32
    %579 = vector.broadcast %cst_173 : f32 to vector<8x1xf32>
    %580 = arith.mulf %578, %579 : vector<8x1xf32>
    %581 = arith.mulf %576, %576 : vector<8x32xf32>
    %cst_174 = arith.constant dense<0.000000e+00> : vector<8xf32>
    %582 = vector.multi_reduction <add>, %581, %cst_174 [1] : vector<8x32xf32> to vector<8xf32>
    %583 = vector.shape_cast %582 : vector<8xf32> to vector<8x1xf32>
    %cst_175 = arith.constant 3.125000e-02 : f32
    %584 = vector.broadcast %cst_175 : f32 to vector<8x1xf32>
    %585 = arith.mulf %583, %584 : vector<8x1xf32>
    %586 = vector.broadcast %580 : vector<8x1xf32> to vector<8x32xf32>
    %587 = arith.subf %576, %586 : vector<8x32xf32>
    %588 = arith.mulf %580, %580 : vector<8x1xf32>
    %589 = arith.subf %585, %588 : vector<8x1xf32>
    %cst_176 = arith.constant 9.99999974E-6 : f32
    %590 = vector.broadcast %cst_176 : f32 to vector<8x1xf32>
    %591 = arith.addf %589, %590 : vector<8x1xf32>
    %592 = math.rsqrt %591 : vector<8x1xf32>
    %593 = vector.broadcast %592 : vector<8x1xf32> to vector<8x32xf32>
    %594 = arith.mulf %587, %593 : vector<8x32xf32>
    %595 = arith.mulf %594, %12 : vector<8x32xf32>
    %596 = arith.addf %595, %15 : vector<8x32xf32>
    %597 = math.tanh %596 : vector<8x32xf32>
    %598 = arith.mulf %571, %597 : vector<8x32xf32>
    %cst_177 = arith.constant dense<0.000000e+00> : vector<8x128xf32>
    %599 = tpu.matmul %598, %2, %cst_177 {dimension_numbers = #tpu.dot_dimension_numbers<[1], [0], [0], [1], [0, 0, 1, 1], [], []>, precision = #tpu.contract_precision<fp32>} : vector<8x32xf32>, vector<32x128xf32>, vector<8x128xf32> -> vector<8x128xf32>
    %600 = arith.addf %599, %21 : vector<8x128xf32>
    %601 = arith.index_cast %c2_i32_164 : i32 to index
    %c0_178 = arith.constant 0 : index
    %c0_179 = arith.constant 0 : index
    %602 = vector.load %arg11[%601, %c0_178, %c0_179] : memref<4x8x128xf32, #tpu.memory_space<vmem>>, vector<1x8x128xf32>
    %603 = vector.shape_cast %602 : vector<1x8x128xf32> to vector<8x128xf32>
    %604 = vector.shape_cast %600 : vector<8x128xf32> to vector<1x8x128xf32>
    tpu.vector_store %arg11[%601, %c0_178, %c0_179], %604 {strides = array<i32>} : memref<4x8x128xf32, #tpu.memory_space<vmem>>, vector<1x8x128xf32>,
    %c3_i32_180 = arith.constant 3 : i32
    %cst_181 = arith.constant dense<0.000000e+00> : vector<8x128xf32>
    %605 = tpu.matmul %598, %1, %cst_181 {dimension_numbers = #tpu.dot_dimension_numbers<[1], [0], [0], [1], [0, 0, 1, 1], [], []>, precision = #tpu.contract_precision<fp32>} : vector<8x32xf32>, vector<32x128xf32>, vector<8x128xf32> -> vector<8x128xf32>
    %606 = arith.addf %605, %18 : vector<8x128xf32>
    %cst_182 = arith.constant dense<0.000000e+00> : vector<8x128xf32>
    %607 = tpu.matmul %606, %3, %cst_182 {dimension_numbers = #tpu.dot_dimension_numbers<[1], [0], [0], [1], [0, 0, 1, 1], [], []>, precision = #tpu.contract_precision<fp32>} : vector<8x128xf32>, vector<128x128xf32>, vector<8x128xf32> -> vector<8x128xf32>
    %608 = arith.mulf %606, %606 : vector<8x128xf32>
    %cst_183 = arith.constant dense<0.000000e+00> : vector<8x128xf32>
    %609 = tpu.matmul %608, %3, %cst_183 {dimension_numbers = #tpu.dot_dimension_numbers<[1], [0], [0], [1], [0, 0, 1, 1], [], []>, precision = #tpu.contract_precision<fp32>} : vector<8x128xf32>, vector<128x128xf32>, vector<8x128xf32> -> vector<8x128xf32>
    %610 = arith.subf %606, %607 : vector<8x128xf32>
    %611 = arith.mulf %607, %607 : vector<8x128xf32>
    %612 = arith.subf %609, %611 : vector<8x128xf32>
    %cst_184 = arith.constant 9.99999974E-6 : f32
    %613 = vector.broadcast %cst_184 : f32 to vector<8x128xf32>
    %614 = arith.addf %612, %613 : vector<8x128xf32>
    %615 = math.rsqrt %614 : vector<8x128xf32>
    %616 = arith.mulf %610, %615 : vector<8x128xf32>
    %cst_185 = arith.constant 5.000000e-01 : f32
    %617 = vector.broadcast %cst_185 : f32 to vector<8x128xf32>
    %618 = arith.mulf %617, %616 : vector<8x128xf32>
    %619 = math.tanh %618 : vector<8x128xf32>
    %cst_186 = arith.constant 5.000000e-01 : f32
    %620 = vector.broadcast %cst_186 : f32 to vector<8x128xf32>
    %621 = arith.mulf %620, %619 : vector<8x128xf32>
    %cst_187 = arith.constant 5.000000e-01 : f32
    %622 = vector.broadcast %cst_187 : f32 to vector<8x128xf32>
    %623 = arith.addf %621, %622 : vector<8x128xf32>
    %624 = vector.extract_strided_slice %623 {offsets = [0, 0], sizes = [8, 32], strides = [1, 1]} : vector<8x128xf32> to vector<8x32xf32>
    %625 = vector.extract_strided_slice %623 {offsets = [0, 32], sizes = [8, 32], strides = [1, 1]} : vector<8x128xf32> to vector<8x32xf32>
    %626 = vector.extract_strided_slice %623 {offsets = [0, 64], sizes = [8, 32], strides = [1, 1]} : vector<8x128xf32> to vector<8x32xf32>
    %627 = vector.extract_strided_slice %616 {offsets = [0, 96], sizes = [8, 32], strides = [1, 1]} : vector<8x128xf32> to vector<8x32xf32>
    %628 = math.tanh %627 : vector<8x32xf32>
    %629 = arith.mulf %625, %576 : vector<8x32xf32>
    %630 = arith.mulf %624, %628 : vector<8x32xf32>
    %631 = arith.addf %629, %630 : vector<8x32xf32>
    %cst_188 = arith.constant dense<0.000000e+00> : vector<8xf32>
    %632 = vector.multi_reduction <add>, %631, %cst_188 [1] : vector<8x32xf32> to vector<8xf32>
    %633 = vector.shape_cast %632 : vector<8xf32> to vector<8x1xf32>
    %cst_189 = arith.constant 3.125000e-02 : f32
    %634 = vector.broadcast %cst_189 : f32 to vector<8x1xf32>
    %635 = arith.mulf %633, %634 : vector<8x1xf32>
    %636 = arith.mulf %631, %631 : vector<8x32xf32>
    %cst_190 = arith.constant dense<0.000000e+00> : vector<8xf32>
    %637 = vector.multi_reduction <add>, %636, %cst_190 [1] : vector<8x32xf32> to vector<8xf32>
    %638 = vector.shape_cast %637 : vector<8xf32> to vector<8x1xf32>
    %cst_191 = arith.constant 3.125000e-02 : f32
    %639 = vector.broadcast %cst_191 : f32 to vector<8x1xf32>
    %640 = arith.mulf %638, %639 : vector<8x1xf32>
    %641 = vector.broadcast %635 : vector<8x1xf32> to vector<8x32xf32>
    %642 = arith.subf %631, %641 : vector<8x32xf32>
    %643 = arith.mulf %635, %635 : vector<8x1xf32>
    %644 = arith.subf %640, %643 : vector<8x1xf32>
    %cst_192 = arith.constant 9.99999974E-6 : f32
    %645 = vector.broadcast %cst_192 : f32 to vector<8x1xf32>
    %646 = arith.addf %644, %645 : vector<8x1xf32>
    %647 = math.rsqrt %646 : vector<8x1xf32>
    %648 = vector.broadcast %647 : vector<8x1xf32> to vector<8x32xf32>
    %649 = arith.mulf %642, %648 : vector<8x32xf32>
    %650 = arith.mulf %649, %12 : vector<8x32xf32>
    %651 = arith.addf %650, %15 : vector<8x32xf32>
    %652 = math.tanh %651 : vector<8x32xf32>
    %653 = arith.mulf %626, %652 : vector<8x32xf32>
    %cst_193 = arith.constant dense<0.000000e+00> : vector<8x128xf32>
    %654 = tpu.matmul %653, %2, %cst_193 {dimension_numbers = #tpu.dot_dimension_numbers<[1], [0], [0], [1], [0, 0, 1, 1], [], []>, precision = #tpu.contract_precision<fp32>} : vector<8x32xf32>, vector<32x128xf32>, vector<8x128xf32> -> vector<8x128xf32>
    %655 = arith.addf %654, %21 : vector<8x128xf32>
    %656 = arith.index_cast %c3_i32_180 : i32 to index
    %c0_194 = arith.constant 0 : index
    %c0_195 = arith.constant 0 : index
    %657 = vector.load %arg11[%656, %c0_194, %c0_195] : memref<4x8x128xf32, #tpu.memory_space<vmem>>, vector<1x8x128xf32>
    %658 = vector.shape_cast %657 : vector<1x8x128xf32> to vector<8x128xf32>
    %659 = vector.shape_cast %655 : vector<8x128xf32> to vector<1x8x128xf32>
    tpu.vector_store %arg11[%656, %c0_194, %c0_195], %659 {strides = array<i32>} : memref<4x8x128xf32, #tpu.memory_space<vmem>>, vector<1x8x128xf32>,
    %c4_i32_196 = arith.constant 4 : i32
    return
  }
}

</mosaic_0001>

<bundles_post_ra>
// kernel: tpu_custom_call.1
= control target key start
LH: loop header
LB: loop body
LE: loop exit
PB: predicated region body
PF: predicated region fallthrough
CT: control target
= control target key end

     0   :  { %16 = vsyncpa [#allocation3], 0  ;;  %s42213_s0 = inlined_call_operand.hbm [shape: f32[8,8,128], index: 0, kind: input, shape index: {}]   ;;  %s42214_s1 = inlined_call_operand.hbm [shape: f32[32,128], index: 1, kind: input, shape index: {}]   ;;  %s42215_s2 = inlined_call_operand.vmem [shape: f32[1,32], index: 2, kind: input, shape index: {}]   ;;  %s42216_s3 = inlined_call_operand.vmem [shape: f32[1,32], index: 3, kind: input, shape index: {}]   ;;  %s42217_s4 = inlined_call_operand.hbm [shape: f32[32,128], index: 4, kind: input, shape index: {}]   ;;  %s42218_s5 = inlined_call_operand.vmem [shape: f32[1,128], index: 5, kind: input, shape index: {}]   ;;  %s42219_s6 = inlined_call_operand.vmem [shape: f32[1,32], index: 6, kind: input, shape index: {}]   ;;  %s42220_s7 = inlined_call_operand.vmem [shape: f32[1,32], index: 7, kind: input, shape index: {}]   ;;  %s42221_s8 = inlined_call_operand.hbm [shape: f32[32,128], index: 8, kind: input, shape index: {}]   ;;  %s42222_s9 = inlined_call_operand.vmem [shape: f32[1,128], index: 9, kind: input, shape index: {}]   ;;  %s42223_s10 = inlined_call_operand.hbm [shape: f32[128,128], index: 10, kind: input, shape index: {}]   ;;  %s42224_s11 = inlined_call_operand.hbm [shape: f32[4,8,128], index: 11, kind: output, shape index: {}]  }
   0x1   :  { %17 = vsyncpa [#allocation6], 0 }
   0x2   :  { %18 = vsyncpa [#allocation9], 0 }
   0x3   :  { %19 = vsyncpa [#allocation4], 0  ;;  %s37756_s17 = smov [#allocation5]   ;;  %s37757_s19 = smov [#allocation8]  }
   0x4   :  { %s37_s18 = sshll.u32 %s37756_s17, 4  ;;  %s71_s20 = sshll.u32 %s37757_s19, 4  ;;  %s38_s18 = int_to_ptr.vmem [resolvable:$true] %s37_s18  ;;  %s37830_s20 = int_to_ptr.vmem [resolvable:$true] %s71_s20 }
   0x5   :  { %s37616_s23 = scalar_lea.hbm %s42214_s1, 512 }
   0x6   :  { %p37617_p0 = scmp.ne.s32.totalorder %s42214_s1, %s37616_s23  ;;  %p37620_p1 = scmp.lt.u32.totalorder %s37616_s23, %s42214_s1 }
   0x8   :  { %p37622_p2 = pnand %p37620_p1, %p37617_p0 }
   0xa   :  { %37625 = shalt.err (!%p37622_p2)
}
   0xb   :  { %s37626_s28 = scalar_lea.vmem %s38_s18, 512  ;;  %p37631_p4 = scmp.lt.s32.totalorder %s38_s18, %s38_s18 }
   0xc   :  { %p37627_p3 = scmp.ne.s32.totalorder %s38_s18, %s37626_s28  ;;  %p37632_p5 = scmp.lt.s32.totalorder %s37626_s28, %s37626_s28 }
   0xe   :  { %p37633_p6 = por %p37632_p5, %p37631_p4 }
  0x10   :  { %p37634_p7 = pnand %p37633_p6, %p37627_p3 }
  0x12   :  { %37637 = shalt.err (!%p37634_p7)
}
  0x13   :  { %s37758_s29 = smov 128   ;;  %s37759_s30 = smov 8  }
  0x14   :  { %43 = dma.hbm_to_vmem [thread:$0]  %s42214_s1, 512, %s38_s18, [#allocation6], %s37758_s29, %s37758_s29, %s37759_s30  }
  0x15   :  { %s37638_s16 = scalar_lea.hbm %s42221_s8, 512 }
  0x16   :  { %p37639_p8 = scmp.ne.s32.totalorder %s42221_s8, %s37638_s16  ;;  %p37642_p9 = scmp.lt.u32.totalorder %s37638_s16, %s42221_s8 }
  0x18   :  { %p37644_p10 = pnand %p37642_p9, %p37639_p8 }
  0x1a   :  { %37647 = shalt.err (!%p37644_p10)
}
  0x1b   :  { %s37648_s23 = scalar_lea.vmem %s37830_s20, 512  ;;  %p37653_p12 = scmp.lt.s32.totalorder %s37830_s20, %s37830_s20 }
  0x1c   :  { %p37649_p11 = scmp.ne.s32.totalorder %s37830_s20, %s37648_s23  ;;  %p37654_p13 = scmp.lt.s32.totalorder %s37648_s23, %s37648_s23 }
  0x1e   :  { %p37655_p0 = por %p37654_p13, %p37653_p12 }
  0x20   :  { %p37656_p1 = pnand %p37655_p0, %p37649_p11 }
  0x22   :  { %37659 = shalt.err (!%p37656_p1)
}
  0x23   :  { %77 = dma.hbm_to_vmem [thread:$0]  %s42221_s8, 512, %s37830_s20, [#allocation9], %s37758_s29, %s37758_s29, %s37759_s30  }
  0x24   :  { %s37760_s24 = smov [#allocation2]   ;;  %s37761_s26 = smov [#allocation7]  }
  0x25   :  { %s25_s25 = sshll.u32 %s37760_s24, 4  ;;  %s53_s27 = sshll.u32 %s37761_s26, 4  ;;  %s26_s25 = int_to_ptr.vmem [resolvable:$true] %s25_s25  ;;  %s37867_s27 = int_to_ptr.vmem [resolvable:$true] %s53_s27 }
  0x26   :  { %s37660_s13 = scalar_lea.hbm %s42213_s0, 1024 }
  0x27   :  { %p37661_p2 = scmp.ne.s32.totalorder %s42213_s0, %s37660_s13  ;;  %p37664_p3 = scmp.lt.u32.totalorder %s37660_s13, %s42213_s0 }
  0x29   :  { %p37666_p4 = pnand %p37664_p3, %p37661_p2 }
  0x2b   :  { %37669 = shalt.err (!%p37666_p4)
}
  0x2c   :  { %s37670_s8 = scalar_lea.vmem %s26_s25, 1024  ;;  %p37675_p6 = scmp.lt.s32.totalorder %s26_s25, %s26_s25 }
  0x2d   :  { %p37671_p5 = scmp.ne.s32.totalorder %s26_s25, %s37670_s8  ;;  %p37676_p7 = scmp.lt.s32.totalorder %s37670_s8, %s37670_s8 }
  0x2f   :  { %p37677_p8 = por %p37676_p7, %p37675_p6 }
  0x31   :  { %p37678_p9 = pnand %p37677_p8, %p37671_p5 }
  0x33   :  { %37681 = shalt.err (!%p37678_p9)
}
  0x34   :  { %31 = dma.hbm_to_vmem [thread:$0]  %s42213_s0, 1024, %s26_s25, [#allocation3], %s37758_s29, %s37758_s29, %s37759_s30  }
  0x35   :  { %s37682_s23 = scalar_lea.hbm %s42217_s4, 512 }
  0x36   :  { %p37683_p10 = scmp.ne.s32.totalorder %s42217_s4, %s37682_s23  ;;  %p37686_p11 = scmp.lt.u32.totalorder %s37682_s23, %s42217_s4 }
  0x38   :  { %p37688_p12 = pnand %p37686_p11, %p37683_p10 }
  0x3a   :  { %37691 = shalt.err (!%p37688_p12)
}
  0x3b   :  { %s37692_s28 = scalar_lea.vmem %s37867_s27, 512  ;;  %p37697_p0 = scmp.lt.s32.totalorder %s37867_s27, %s37867_s27 }
  0x3c   :  { %p37693_p13 = scmp.ne.s32.totalorder %s37867_s27, %s37692_s28  ;;  %p37698_p1 = scmp.lt.s32.totalorder %s37692_s28, %s37692_s28 }
  0x3e   :  { %p37699_p2 = por %p37698_p1, %p37697_p0 }
  0x40   :  { %p37700_p3 = pnand %p37699_p2, %p37693_p13 }
  0x42   :  { %37703 = shalt.err (!%p37700_p3)
}
  0x43   :  { %59 = dma.hbm_to_vmem [thread:$0]  %s42217_s4, 512, %s37867_s27, [#allocation6], %s37758_s29, %s37758_s29, %s37759_s30  }
  0x44   :  { %s37762_s12 = smov [#allocation10]   ;;  %s37704_s16 = scalar_lea.hbm %s42223_s10, 2048 }
  0x45   :  { %s85_s13 = sshll.u32 %s37762_s12, 4  ;;  %p37705_p4 = scmp.ne.s32.totalorder %s42223_s10, %s37704_s16  ;;  %s86_s13 = int_to_ptr.vmem [resolvable:$true] %s85_s13 }
  0x46   :  { %p37708_p5 = scmp.lt.u32.totalorder %s37704_s16, %s42223_s10 }
  0x48   :  { %p37710_p6 = pnand %p37708_p5, %p37705_p4 }
  0x4a   :  { %37713 = shalt.err (!%p37710_p6)
}
  0x4b   :  { %s37714_s21 = scalar_lea.vmem %s86_s13, 2048  ;;  %p37719_p8 = scmp.lt.s32.totalorder %s86_s13, %s86_s13 }
  0x4c   :  { %p37715_p7 = scmp.ne.s32.totalorder %s86_s13, %s37714_s21  ;;  %p37720_p9 = scmp.lt.s32.totalorder %s37714_s21, %s37714_s21 }
  0x4e   :  { %p37721_p10 = por %p37720_p9, %p37719_p8 }
  0x50   :  { %p37722_p11 = pnand %p37721_p10, %p37715_p7 }
  0x52   :  { %37725 = shalt.err (!%p37722_p11)
}
  0x53   :  { %91 = dma.hbm_to_vmem [thread:$0]  %s42223_s10, 2048, %s86_s13, [#allocation9], %s37758_s29, %s37758_s29, %s37759_s30  }
  0x54   :  { %37748 = dma.done.wait [#allocation3], 1024  }
  0x55   :  { %37749 = vsyncadd [#allocation3], 4294966272 }
  0x56   :  { %37750 = dma.done.wait [#allocation6], 1024  }
  0x57   :  { %37751 = vsyncadd [#allocation6], 4294966272 }
  0x58   :  { %37752 = dma.done.wait [#allocation9], 2560  }
  0x59   :  { %37753 = vsyncadd [#allocation9], 4294964736  ;;  %v42241_v0 = vmov 0.0|0.0   ;;  %vm37764_vm0 = vmmov 0   ;;  %v42243_v1 = vmov 0.0   ;;  %v107_v2 = vld [vmem:[#allocation5] sm:$0xff] }
  0x5a   :  { %33120 = vmatprep.subr.bf16.mxu0 %v42241_v0  ;;  %33126 = vmatprep.subr.bf16.mxu1 %v42241_v0  ;;  %v108_v3 = vld [vmem:[#allocation5 + $0x8] sm:$0xff]  ;;  %v109_v4 = vld [vmem:[#allocation5 + $0x10] sm:$0xff]  ;;  %v179_v5 = vand.u32 4294901760, %v107_v2  ;;  %v110_v7 = vld [vmem:[#allocation5 + $0x18] sm:$0xff]  ;;  %s37766_s10 = smov 32   ;;  %s37767_s22 = smov 96  }
  0x5b   :  { %27032 = vmatprep.mubr.msk.f32.mxu0 %vm37764_vm0, %v42243_v1  ;;  %27043 = vmatprep.mubr.msk.f32.mxu1 %vm37764_vm0, %v42243_v1  ;;  %v182_v6 = vand.u32 4294901760, %v108_v3  ;;  %v185_v8 = vand.u32 4294901760, %v109_v4  ;;  %v188_v9 = vand.u32 4294901760, %v110_v7  ;;  %v119_v34 = vld [vmem:[#allocation10] sm:$0xff]  ;;  %v120_v35 = vld [vmem:[#allocation10 + $0x8] sm:$0xff]  ;;  %v37987_v39 = vld [vmem:[#allocation10 + $0x10] sm:$0xff] }
  0x5c   :  { %v259_v11 = vsub.f32 %v107_v2, %v179_v5  ;;  %v665_v36 = vand.u32 4294901760, %v119_v34  ;;  %v668_v37 = vand.u32 4294901760, %v120_v35  ;;  %v37989_v40 = vld [vmem:[#allocation10 + $0x18] sm:$0xff]  ;;  %v671_v41 = vand.u32 4294901760, %v37987_v39  ;;  %v38001_v44 = vld [vmem:[#allocation10 + $0x20] sm:$0xff]  ;;  %v38003_v45 = vld [vmem:[#allocation10 + $0x28] sm:$0xff] }
  0x5d   :  { %v37925_v10 = vpack.c.bf16 %v182_v6, %v179_v5  ;;  %v266_v12 = vsub.f32 %v108_v3, %v182_v6  ;;  %v273_v13 = vsub.f32 %v109_v4, %v185_v8  ;;  %v280_v14 = vsub.f32 %v110_v7, %v188_v9  ;;  %v38017_v49 = vld [vmem:[#allocation10 + $0x30] sm:$0xff]  ;;  %v38019_v50 = vld [vmem:[#allocation10 + $0x38] sm:$0xff]  ;;  %v38033_v54 = vld [vmem:[#allocation10 + $0x40] sm:$0xff] }
  0x5e   :  { %v37928_v15 = vpack.c.bf16 %v188_v9, %v185_v8  ;;  %v260_v16 = vand.u32 4294901760, %v259_v11  ;;  %v37983_v38 = vpack.c.bf16 %v668_v37, %v665_v36  ;;  %v674_v42 = vand.u32 4294901760, %v37989_v40  ;;  %v38035_v55 = vld [vmem:[#allocation10 + $0x48] sm:$0xff]  ;;  %v38049_v59 = vld [vmem:[#allocation10 + $0x50] sm:$0xff]  ;;  %v38051_v60 = vld [vmem:[#allocation10 + $0x58] sm:$0xff] }
  0x5f   :  { %33122 = vmatpush3.bf16.msra.mxu0 %v37925_v10  ;;  %v267_v17 = vand.u32 4294901760, %v266_v12  ;;  %v274_v18 = vand.u32 4294901760, %v273_v13  ;;  %v281_v19 = vand.u32 4294901760, %v280_v14  ;;  %v37932_v26 = vpack.c.bf16 %v266_v12, %v259_v11  ;;  %v38065_v2 = vld [vmem:[#allocation10 + $0x60] sm:$0xff]  ;;  %v38067_v3 = vld [vmem:[#allocation10 + $0x68] sm:$0xff]  ;;  %v38085_v9 = vld [vmem:[#allocation10 + $0x70] sm:$0xff] }
  0x60   :  { %33123 = vmatprep.subr.bf16.mxu0 %v42241_v0  ;;  %v261_v20 = vsub.f32 %v259_v11, %v260_v16  ;;  %v37942_v31 = vpack.c.bf16 %v280_v14, %v273_v13  ;;  %v37999_v43 = vpack.c.bf16 %v674_v42, %v671_v41  ;;  %v677_v46 = vand.u32 4294901760, %v38001_v44  ;;  %v38087_v11 = vld [vmem:[#allocation10 + $0x78] sm:$0xff] }
  0x61   :  { %v268_v21 = vsub.f32 %v266_v12, %v267_v17  ;;  %v275_v22 = vsub.f32 %v273_v13, %v274_v18  ;;  %v282_v23 = vsub.f32 %v280_v14, %v281_v19  ;;  %v37950_v32 = vpack.c.bf16 %v267_v17, %v260_v16 }
  0x62   :  { %v262_v24 = vand.u32 4294901760, %v261_v20  ;;  %42281 = vst [vmem:[#allocation16_spill] sm:$0xff] %v37942_v31  ;;  %v37958_v33 = vpack.c.bf16 %v281_v19, %v274_v18  ;;  %v680_v47 = vand.u32 4294901760, %v38003_v45  ;;  %v683_v51 = vand.u32 4294901760, %v38017_v49 }
  0x63   :  { %33125 = vmatpush3.bf16.msra.mxu0 %v37928_v15  ;;  %v269_v25 = vand.u32 4294901760, %v268_v21  ;;  %v276_v27 = vand.u32 4294901760, %v275_v22  ;;  %v283_v28 = vand.u32 4294901760, %v282_v23  ;;  %42282 = vst [vmem:[#allocation17_spill] sm:$0xff] %v37950_v32  ;;  %v686_v52 = vand.u32 4294901760, %v38019_v50 }
  0x64   :  { %33132 = vmatprep.subr.bf16.mxu0 %v42241_v0  ;;  %42283 = vst [vmem:[#allocation18_spill] sm:$0xff] %v37958_v33  ;;  %v38015_v48 = vpack.c.bf16 %v680_v47, %v677_v46  ;;  %v689_v56 = vand.u32 4294901760, %v38033_v54  ;;  %v692_v57 = vand.u32 4294901760, %v38035_v55  ;;  %v695_v61 = vand.u32 4294901760, %v38049_v59 }
  0x65   :  { %v37935_v29 = vpack.c.bf16 %v269_v25, %v262_v24  ;;  %v37940_v30 = vpack.c.bf16 %v283_v28, %v276_v27  ;;  %v38031_v53 = vpack.c.bf16 %v686_v52, %v683_v51  ;;  %v698_v62 = vand.u32 4294901760, %v38051_v60 }
  0x66   :  { %27033 = vmatmul.mubr.f32.vlgmr.msra.gmra.mrb[0].mxu0 %v42243_v1  ;;  %v38047_v58 = vpack.c.bf16 %v692_v57, %v689_v56  ;;  %v701_v4 = vand.u32 4294901760, %v38065_v2  ;;  %v704_v5 = vand.u32 4294901760, %v38067_v3  ;;  %v38081_v7 = vsub.f32 %v119_v34, %v665_v36 }
  0x67   :  { %33128 = vmatpush3.bf16.msra.mxu1 %v37935_v29  ;;  %33134 = vmatpush3.bf16.msra.mxu0 %v37932_v26  ;;  %v38063_v63 = vpack.c.bf16 %v698_v62, %v695_v61  ;;  %v38083_v8 = vsub.f32 %v120_v35, %v668_v37  ;;  %v707_v12 = vand.u32 4294901760, %v38085_v9  ;;  %v710_v13 = vand.u32 4294901760, %v38087_v11 }
  0x68   :  { %33129 = vmatprep.subr.bf16.mxu1 %v42241_v0  ;;  %33135 = vmatprep.subr.bf16.mxu0 %v42241_v0  ;;  %v38079_v6 = vpack.c.bf16 %v704_v5, %v701_v4  ;;  %v42240_v14 = vand.u32 4294901760, %v38081_v7  ;;  %v38112_v20 = vsub.f32 %v37987_v39, %v671_v41  ;;  %v38117_v21 = vsub.f32 %v37989_v40, %v674_v42 }
  0x69   :  { %27054 = vmatprep.mubr.msk.f32.mxu0 %vm37764_vm0, %v42243_v1  ;;  %v42239_v16 = vand.u32 4294901760, %v38083_v8  ;;  %v38101_v17 = vpack.c.bf16 %v710_v13, %v707_v12  ;;  %v38136_v35 = vsub.f32 %v38001_v44, %v677_v46  ;;  %v38141_v36 = vsub.f32 %v38003_v45, %v680_v47 }
  0x6a   :  { %v759_v18 = vsub.f32 %v38081_v7, %v42240_v14  ;;  %v42238_v24 = vand.u32 4294901760, %v38112_v20  ;;  %v42237_v25 = vand.u32 4294901760, %v38117_v21  ;;  %v38156_v45 = vsub.f32 %v38017_v49, %v683_v51 }
  0x6b   :  { %33131 = vmatpush3.bf16.msra.mxu1 %v37940_v30  ;;  %33137 = vmatpush3.bf16.msra.mxu0 %v37942_v31  ;;  %v766_v19 = vsub.f32 %v38083_v8, %v42239_v16  ;;  %v42236_v40 = vand.u32 4294901760, %v38136_v35  ;;  %v42235_v41 = vand.u32 4294901760, %v38141_v36  ;;  %v38161_v46 = vsub.f32 %v38019_v50, %v686_v52 }
  0x6c   :  { %33138 = vmatprep.subr.bf16.mxu1 %v42241_v0  ;;  %33144 = vmatprep.subr.bf16.mxu0 %v42241_v0  ;;  %v760_v22 = vand.u32 4294901760, %v759_v18  ;;  %v773_v28 = vsub.f32 %v38112_v20, %v42238_v24  ;;  %v780_v34 = vsub.f32 %v38117_v21, %v42237_v25  ;;  %v38173_v49 = vsub.f32 %v38033_v54, %v689_v56 }
  0x6d   :  { %v767_v23 = vand.u32 4294901760, %v766_v19  ;;  %v787_v18 = vsub.f32 %v38136_v35, %v42236_v40  ;;  %v794_v44 = vsub.f32 %v38141_v36, %v42235_v41  ;;  %v38178_v50 = vsub.f32 %v38035_v55, %v692_v57 }
  0x6e   :  { %27044 = vmatmul.mubr.f32.vlgmr.msra.gmra.mrb[0].mxu1 %v42243_v1  ;;  %27055 = vmatmul.mubr.f32.vlgmr.msra.gmra.mrb[2].mxu0 %v42243_v1  ;;  %v774_v37 = vand.u32 4294901760, %v773_v28  ;;  %v781_v39 = vand.u32 4294901760, %v780_v34  ;;  %v38194_v55 = vsub.f32 %v38049_v59, %v695_v61  ;;  %v38199_v57 = vsub.f32 %v38051_v60, %v698_v62 }
  0x6f   :  { %33140 = vmatpush3.bf16.msra.mxu1 %v37925_v10  ;;  %33146 = vmatpush3.bf16.msra.mxu0 %v37950_v32  ;;  %v38125_v27 = vpack.c.bf16 %v767_v23, %v760_v22  ;;  %v788_v47 = vand.u32 4294901760, %v787_v18  ;;  %v795_v19 = vand.u32 4294901760, %v794_v44  ;;  %v42234_v22 = vand.u32 4294901760, %v38156_v45 }
  0x70   :  { %33141 = vmatprep.subr.bf16.mxu1 %v42241_v0  ;;  %33147 = vmatprep.subr.bf16.mxu0 %v42241_v0  ;;  %v38145_v42 = vpack.c.bf16 %v781_v39, %v774_v37  ;;  %v42233_v23 = vand.u32 4294901760, %v38161_v46  ;;  %v42225_v37 = vand.u32 4294901760, %v38173_v49  ;;  %v42232_v39 = vand.u32 4294901760, %v38178_v50 }
  0x71   :  { %27065 = vmatprep.mubr.msk.f32.mxu1 %vm37764_vm0, %v42243_v1  ;;  %27076 = vmatprep.mubr.msk.f32.mxu0 %vm37764_vm0, %v42243_v1  ;;  %v38165_v28 = vpack.c.bf16 %v795_v19, %v788_v47  ;;  %v801_v34 = vsub.f32 %v38156_v45, %v42234_v22  ;;  %v38216_v60 = vsub.f32 %v38065_v2, %v701_v4  ;;  %vm174_vm1 = vcmask 261120  }
  0x72   :  { %v808_v51 = vsub.f32 %v38161_v46, %v42233_v23  ;;  %v815_v54 = vsub.f32 %v38173_v49, %v42225_v37  ;;  %v822_v56 = vsub.f32 %v38178_v50, %v42232_v39  ;;  %v38221_v62 = vsub.f32 %v38067_v3, %v704_v5 }
  0x73   :  { %33143 = vmatpush3.bf16.msra.mxu1 %v37928_v15  ;;  %33149 = vmatpush3.bf16.msra.mxu0 %v37958_v33  ;;  %v802_v52 = vand.u32 4294901760, %v801_v34  ;;  %v42231_v34 = vand.u32 4294901760, %v38194_v55  ;;  %v38233_v2 = vsub.f32 %v38085_v9, %v707_v12  ;;  %v38238_v3 = vsub.f32 %v38087_v11, %v710_v13 }
  0x74   :  { %33150 = vmatprep.subr.bf16.mxu1 %v42241_v0  ;;  %33156 = vmatprep.subr.bf16.mxu0 %v42241_v0  ;;  %v809_v18 = vand.u32 4294901760, %v808_v51  ;;  %v816_v47 = vand.u32 4294901760, %v815_v54  ;;  %v823_v19 = vand.u32 4294901760, %v822_v56  ;;  %v42230_v51 = vand.u32 4294901760, %v38199_v57 }
  0x75   :  { %v829_v59 = vsub.f32 %v38194_v55, %v42231_v34  ;;  %v42226_v54 = vand.u32 4294901760, %v38216_v60  ;;  %v42229_v56 = vand.u32 4294901760, %v38221_v62 }
  0x76   :  { %27066 = vmatmul.mubr.f32.vlgmr.msra.gmra.mrb[2].mxu1 %v42243_v1  ;;  %27077 = vmatmul.mubr.f32.vlgmr.msra.gmra.mrb[4].mxu0 %v42243_v1  ;;  %v38201_v44 = vpack.c.bf16 %v809_v18, %v802_v52  ;;  %v38205_v37 = vpack.c.bf16 %v823_v19, %v816_v47  ;;  %v836_v61 = vsub.f32 %v38199_v57, %v42230_v51 }
  0x77   :  { %33152 = vmatpush3.bf16.msra.mxu1 %v37925_v10  ;;  %27087 = vmatprep.mubr.msk.f32.mxu1 %vm37764_vm0, %v42243_v1  ;;  %v830_v52 = vand.u32 4294901760, %v829_v59  ;;  %v843_v19 = vsub.f32 %v38216_v60, %v42226_v54  ;;  %v850_v4 = vsub.f32 %v38221_v62, %v42229_v56  ;;  %v42227_v59 = vand.u32 4294901760, %v38233_v2 }
  0x78   :  { %33153 = vmatprep.subr.bf16.mxu1 %v42241_v0  ;;  %27122 = vmatprep.mubr.msk.f32.mxu0 %vm37764_vm0, %v42243_v1  ;;  %v837_v18 = vand.u32 4294901760, %v836_v61  ;;  %v42228_v61 = vand.u32 4294901760, %v38238_v3 }
  0x79   :  { %33158 = vmatpush3.bf16.msra.mxu0 %v37983_v38  ;;  %v844_v5 = vand.u32 4294901760, %v843_v19  ;;  %v857_v9 = vsub.f32 %v38233_v2, %v42227_v59  ;;  %v38257_v19 = vpack.c.bf16 %v38083_v8, %v38081_v7  ;;  %v38265_v59 = vpack.c.bf16 %v38141_v36, %v38136_v35 }
  0x7a   :  { %33159 = vmatprep.subr.bf16.mxu0 %v42241_v0  ;;  %v38225_v47 = vpack.c.bf16 %v837_v18, %v830_v52  ;;  %v851_v52 = vand.u32 4294901760, %v850_v4  ;;  %v864_v12 = vsub.f32 %v38238_v3, %v42228_v61  ;;  %v38261_v4 = vpack.c.bf16 %v38117_v21, %v38112_v20 }
  0x7b   :  { %33155 = vmatpush3.bf16.msra.mxu1 %v37928_v15  ;;  %v858_v13 = vand.u32 4294901760, %v857_v9  ;;  %v38277_v9 = vpack.c.bf16 %v38199_v57, %v38194_v55 }
  0x7c   :  { %33300 = vmatprep.subr.bf16.mxu1 %v42241_v0  ;;  %v38251_v11 = vpack.c.bf16 %v851_v52, %v844_v5  ;;  %v865_v18 = vand.u32 4294901760, %v864_v12  ;;  %v38269_v5 = vpack.c.bf16 %v38161_v46, %v38156_v45  ;;  %v38273_v52 = vpack.c.bf16 %v38178_v50, %v38173_v49 }
  0x7d   :  { %33161 = vmatpush3.bf16.msra.mxu0 %v37999_v43  ;;  %v38281_v12 = vpack.c.bf16 %v38221_v62, %v38216_v60 }
  0x7e   :  { %27088 = vmatmul.mubr.f32.vlgmr.msra.gmra.mrb[4].mxu1 %v42243_v1  ;;  %33162 = vmatprep.subr.bf16.mxu0 %v42241_v0  ;;  %v38253_v54 = vpack.c.bf16 %v865_v18, %v858_v13  ;;  %v38285_v13 = vpack.c.bf16 %v38238_v3, %v38233_v2 }
  0x7f   :  { %27332 = vmatprep.mubr.msk.f32.mxu1 %vm37764_vm0, %v42243_v1  ;;  %33302 = vmatpush3.bf16.msra.mxu1 %v37983_v38 }
  0x80   :  { %33303 = vmatprep.subr.bf16.mxu1 %v42241_v0 }
  0x81   :  { %33164 = vmatpush3.bf16.msra.mxu0 %v38015_v48 }
  0x82   :  { %33165 = vmatprep.subr.bf16.mxu0 %v42241_v0 }
  0x83   :  { %33305 = vmatpush3.bf16.msra.mxu1 %v37999_v43 }
  0x84   :  { %33306 = vmatprep.subr.bf16.mxu1 %v42241_v0 }
  0x85   :  { %33167 = vmatpush3.bf16.msra.mxu0 %v38031_v53 }
  0x86   :  { %33168 = vmatprep.subr.bf16.mxu0 %v42241_v0 }
  0x87   :  { %33308 = vmatpush3.bf16.msra.mxu1 %v38015_v48 }
  0x88   :  { %33309 = vmatprep.subr.bf16.mxu1 %v42241_v0 }
  0x89   :  { %33170 = vmatpush3.bf16.msra.mxu0 %v38047_v58 }
  0x8a   :  { %33171 = vmatprep.subr.bf16.mxu0 %v42241_v0 }
  0x8b   :  { %33311 = vmatpush3.bf16.msra.mxu1 %v38031_v53 }
  0x8c   :  { %33312 = vmatprep.subr.bf16.mxu1 %v42241_v0 }
  0x8d   :  { %33173 = vmatpush3.bf16.msra.mxu0 %v38063_v63 }
  0x8e   :  { %33174 = vmatprep.subr.bf16.mxu0 %v42241_v0 }
  0x8f   :  { %33314 = vmatpush3.bf16.msra.mxu1 %v38047_v58 }
  0x90   :  { %33315 = vmatprep.subr.bf16.mxu1 %v42241_v0 }
  0x91   :  { %33176 = vmatpush3.bf16.msra.mxu0 %v38079_v6 }
  0x92   :  { %33177 = vmatprep.subr.bf16.mxu0 %v42241_v0 }
  0x93   :  { %33317 = vmatpush3.bf16.msra.mxu1 %v38063_v63 }
  0x94   :  { %33318 = vmatprep.subr.bf16.mxu1 %v42241_v0 }
  0x95   :  { %33179 = vmatpush3.bf16.msra.mxu0 %v38101_v17 }
  0x96   :  { %33180 = vmatprep.subr.bf16.mxu0 %v42241_v0 }
  0x97   :  { %33320 = vmatpush3.bf16.msra.mxu1 %v38079_v6 }
  0x98   :  { %33321 = vmatprep.subr.bf16.mxu1 %v42241_v0 }
  0x9b   :  { %33323 = vmatpush3.bf16.msra.mxu1 %v38101_v17 }
  0x9c   :  { %33324 = vmatprep.subr.bf16.mxu1 %v42241_v0  ;;  %v173_v0 = vld [vmem:[#allocation2] sm:$0xff] }
 0x139   :  { %v253_v18 = vpop.f32.mrb[0].mxu0 }
 0x13a   :  { %v27034_v61 = vpop.f32.mrb[1].mxu0 }
 0x141   :  { %v344_v56 = vpop.f32.mrb[0].mxu1  ;;  %v424_v51 = vpop.f32.mrb[2].mxu0 }
 0x142   :  { %v345_v34 = vadd.f32 %v344_v56, %v253_v18  ;;  %v27045_v39 = vpop.f32.mrb[1].mxu1  ;;  %v27056_v23 = vpop.f32.mrb[3].mxu0  ;;  %v42288_v56 = vand.u32 4294901760, %v38112_v20  ;;  %v42289_v18 = vand.u32 4294901760, %v38117_v21  ;;  %v42292_v20 = vand.u32 4294901760, %v38141_v36 }
 0x143   :  { %v42298_v36 = vand.u32 4294901760, %v38178_v50  ;;  %v42304_v50 = vand.u32 4294901760, %v38221_v62 }
 0x144   :  { %v425_v22 = vadd.f32 %v424_v51, %v345_v34  ;;  %v42287_v34 = vand.u32 4294901760, %v38083_v8  ;;  %v42291_v8 = vand.u32 4294901760, %v38136_v35  ;;  %v42297_v35 = vand.u32 4294901760, %v38173_v49 }
 0x145   :  { %v42303_v49 = vand.u32 4294901760, %v38216_v60 }
 0x146   :  { %v38452_v21 = vpack.c.bf16 %v42292_v20, %v42291_v8 }
 0x148   :  { %42293 = vst [vmem:[#allocation20_spill] sm:$0xff] %v38452_v21 }
 0x149   :  { %v501_v41 = vpop.f32.mrb[2].mxu1  ;;  %v584_v40 = vpop.f32.mrb[4].mxu0 }
 0x14a   :  { %v502_v25 = vadd.f32 %v501_v41, %v425_v22  ;;  %v27067_v24 = vpop.f32.mrb[3].mxu1  ;;  %v27078_v16 = vpop.f32.mrb[5].mxu0  ;;  %v42286_v22 = vand.u32 4294901760, %v38081_v7  ;;  %v38436_v7 = vpack.c.bf16 %v42289_v18, %v42288_v56 }
 0x14c   :  { %v585_v14 = vadd.f32 %v584_v40, %v502_v25  ;;  %v42284_v25 = vmov 0.0   ;;  %v42285_v40 = vmov 0.0|0.0   ;;  %v38424_v51 = vpack.c.bf16 %v42287_v34, %v42286_v22  ;;  %42290 = vst [vmem:[#allocation19_spill] sm:$0xff] %v38436_v7 }
 0x151   :  { %v659_v1 = vpop.f32.mrb[4].mxu1 }
 0x152   :  { %v660_v33 = vadd.f32 %v659_v1, %v585_v14  ;;  %v27089_v32 = vpop.f32.mrb[5].mxu1 }
 0x154   :  { %v38287_v31 = vadd.f32 %v660_v33, %v173_v0 }
 0x156   :  { %v38290_v61 = vand.u32 4294901760, %v38287_v31  ;;  %v1305_v39 = vmul.f32 %v38287_v31, %v38287_v31 }
 0x158   :  { %v38296_v23 = vsub.f32 %v38287_v31, %v38290_v61  ;;  %v38298_v41 = vand.u32 4294901760, %v1305_v39 }
 0x15a   :  { %v747_v16 = vand.u32 4294901760, %v38296_v23  ;;  %v38302_v24 = vsub.f32 %v1305_v39, %v38298_v41  ;;  %v42294_v39 = vand.u32 4294901760, %v38156_v45  ;;  %v42300_v45 = vand.u32 4294901760, %v38194_v55 }
 0x15b   :  { %v42306_v55 = vand.u32 4294901760, %v38233_v2 }
 0x15c   :  { %v748_v0 = vsub.f32 %v38296_v23, %v747_v16  ;;  %v1389_v1 = vand.u32 4294901760, %v38302_v24 }
 0x15e   :  { %v749_v32 = vand.u32 4294901760, %v748_v0  ;;  %v1390_v33 = vsub.f32 %v38302_v24, %v1389_v1 }
 0x160   :  { %27123 = vmatmul.mubr.f32.vlgmr.msra.gmra.mrb[6].mxu0 %v749_v32  ;;  %v1391_v14 = vand.u32 4294901760, %v1390_v33 }
 0x161   :  { %33182 = vmatpush3.bf16.msra.mxu0 %v38125_v27  ;;  %27157 = vmatprep.mubr.msk.f32.mxu0 %vm37764_vm0, %v42284_v25 }
 0x162   :  { %27333 = vmatmul.mubr.f32.vlgmr.msra.gmra.mrb[6].mxu1 %v1391_v14  ;;  %33183 = vmatprep.subr.bf16.mxu0 %v42285_v40 }
 0x163   :  { %33326 = vmatpush3.bf16.msra.mxu1 %v38125_v27  ;;  %27367 = vmatprep.mubr.msk.f32.mxu1 %vm37764_vm0, %v42284_v25 }
 0x164   :  { %33327 = vmatprep.subr.bf16.mxu1 %v42285_v40 }
 0x165   :  { %33185 = vmatpush3.bf16.msra.mxu0 %v38145_v42 }
 0x166   :  { %33186 = vmatprep.subr.bf16.mxu0 %v42285_v40 }
 0x167   :  { %33329 = vmatpush3.bf16.msra.mxu1 %v38145_v42 }
 0x168   :  { %33330 = vmatprep.subr.bf16.mxu1 %v42285_v40 }
 0x169   :  { %33188 = vmatpush3.bf16.msra.mxu0 %v38165_v28 }
 0x16a   :  { %33189 = vmatprep.subr.bf16.mxu0 %v42285_v40 }
 0x16b   :  { %33332 = vmatpush3.bf16.msra.mxu1 %v38165_v28 }
 0x16c   :  { %33333 = vmatprep.subr.bf16.mxu1 %v42285_v40 }
 0x16d   :  { %33191 = vmatpush3.bf16.msra.mxu0 %v38201_v44 }
 0x16e   :  { %33192 = vmatprep.subr.bf16.mxu0 %v42285_v40 }
 0x16f   :  { %33335 = vmatpush3.bf16.msra.mxu1 %v38201_v44 }
 0x170   :  { %33336 = vmatprep.subr.bf16.mxu1 %v42285_v40 }
 0x171   :  { %33194 = vmatpush3.bf16.msra.mxu0 %v38205_v37 }
 0x172   :  { %33195 = vmatprep.subr.bf16.mxu0 %v42285_v40 }
 0x173   :  { %33338 = vmatpush3.bf16.msra.mxu1 %v38205_v37 }
 0x174   :  { %33339 = vmatprep.subr.bf16.mxu1 %v42285_v40 }
 0x175   :  { %33197 = vmatpush3.bf16.msra.mxu0 %v38225_v47 }
 0x176   :  { %33198 = vmatprep.subr.bf16.mxu0 %v42285_v40 }
 0x177   :  { %33341 = vmatpush3.bf16.msra.mxu1 %v38225_v47 }
 0x178   :  { %33342 = vmatprep.subr.bf16.mxu1 %v42285_v40 }
 0x179   :  { %33200 = vmatpush3.bf16.msra.mxu0 %v38251_v11 }
 0x17a   :  { %33201 = vmatprep.subr.bf16.mxu0 %v42285_v40 }
 0x17b   :  { %33344 = vmatpush3.bf16.msra.mxu1 %v38251_v11 }
 0x17c   :  { %33345 = vmatprep.subr.bf16.mxu1 %v42285_v40 }
 0x17d   :  { %33203 = vmatpush3.bf16.msra.mxu0 %v38253_v54 }
 0x17e   :  { %33204 = vmatprep.subr.bf16.mxu0 %v42285_v40 }
 0x17f   :  { %33347 = vmatpush3.bf16.msra.mxu1 %v38253_v54 }
 0x180   :  { %27158 = vmatmul.mubr.f32.vlgmr.msra.gmra.mrb[6].mxu0 %v38290_v61  ;;  %33348 = vmatprep.subr.bf16.mxu1 %v42285_v40 }
 0x181   :  { %33206 = vmatpush3.bf16.msra.mxu0 %v38257_v19  ;;  %27192 = vmatprep.mubr.msk.f32.mxu0 %vm37764_vm0, %v42284_v25 }
 0x182   :  { %27368 = vmatmul.mubr.f32.vlgmr.msra.gmra.mrb[6].mxu1 %v38298_v41  ;;  %33207 = vmatprep.subr.bf16.mxu0 %v42285_v40 }
 0x183   :  { %33350 = vmatpush3.bf16.msra.mxu1 %v38257_v19  ;;  %27402 = vmatprep.mubr.msk.f32.mxu1 %vm37764_vm0, %v42284_v25 }
 0x184   :  { %33351 = vmatprep.subr.bf16.mxu1 %v42285_v40 }
 0x185   :  { %33209 = vmatpush3.bf16.msra.mxu0 %v38261_v4 }
 0x186   :  { %33210 = vmatprep.subr.bf16.mxu0 %v42285_v40 }
 0x187   :  { %33353 = vmatpush3.bf16.msra.mxu1 %v38261_v4 }
 0x188   :  { %33354 = vmatprep.subr.bf16.mxu1 %v42285_v40 }
 0x189   :  { %33212 = vmatpush3.bf16.msra.mxu0 %v38265_v59 }
 0x18a   :  { %33213 = vmatprep.subr.bf16.mxu0 %v42285_v40 }
 0x18b   :  { %33356 = vmatpush3.bf16.msra.mxu1 %v38265_v59 }
 0x18c   :  { %33357 = vmatprep.subr.bf16.mxu1 %v42285_v40 }
 0x18d   :  { %33215 = vmatpush3.bf16.msra.mxu0 %v38269_v5 }
 0x18e   :  { %33216 = vmatprep.subr.bf16.mxu0 %v42285_v40 }
 0x18f   :  { %33359 = vmatpush3.bf16.msra.mxu1 %v38269_v5 }
 0x190   :  { %33360 = vmatprep.subr.bf16.mxu1 %v42285_v40 }
 0x191   :  { %33218 = vmatpush3.bf16.msra.mxu0 %v38273_v52 }
 0x192   :  { %33219 = vmatprep.subr.bf16.mxu0 %v42285_v40 }
 0x193   :  { %33362 = vmatpush3.bf16.msra.mxu1 %v38273_v52 }
 0x194   :  { %33363 = vmatprep.subr.bf16.mxu1 %v42285_v40 }
 0x195   :  { %33221 = vmatpush3.bf16.msra.mxu0 %v38277_v9 }
 0x196   :  { %33222 = vmatprep.subr.bf16.mxu0 %v42285_v40 }
 0x197   :  { %33365 = vmatpush3.bf16.msra.mxu1 %v38277_v9 }
 0x198   :  { %33366 = vmatprep.subr.bf16.mxu1 %v42285_v40 }
 0x199   :  { %33224 = vmatpush3.bf16.msra.mxu0 %v38281_v12 }
 0x19a   :  { %33225 = vmatprep.subr.bf16.mxu0 %v42285_v40 }
 0x19b   :  { %33368 = vmatpush3.bf16.msra.mxu1 %v38281_v12 }
 0x19c   :  { %33369 = vmatprep.subr.bf16.mxu1 %v42285_v40 }
 0x19d   :  { %33227 = vmatpush3.bf16.msra.mxu0 %v38285_v13 }
 0x19e   :  { %33228 = vmatprep.subr.bf16.mxu0 %v42285_v40 }
 0x19f   :  { %33371 = vmatpush3.bf16.msra.mxu1 %v38285_v13 }
 0x1a0   :  { %27193 = vmatmul.mubr.f32.vlgmr.msra.gmra.mrb[6].mxu0 %v38296_v23  ;;  %33372 = vmatprep.subr.bf16.mxu1 %v42285_v40  ;;  %v42295_v23 = vand.u32 4294901760, %v38161_v46  ;;  %v42301_v46 = vand.u32 4294901760, %v38199_v57  ;;  %v42307_v57 = vand.u32 4294901760, %v38238_v3 }
 0x1a1   :  { %33230 = vmatpush3.bf16.msra.mxu0 %v37983_v38  ;;  %27227 = vmatprep.mubr.msk.f32.mxu0 %vm37764_vm0, %v42284_v25 }
 0x1a2   :  { %27403 = vmatmul.mubr.f32.vlgmr.msra.gmra.mrb[6].mxu1 %v38302_v24  ;;  %33231 = vmatprep.subr.bf16.mxu0 %v42285_v40  ;;  %v38472_v24 = vpack.c.bf16 %v42298_v36, %v42297_v35  ;;  %v38482_v0 = vpack.c.bf16 %v42301_v46, %v42300_v45  ;;  %v38502_v32 = vpack.c.bf16 %v42307_v57, %v42306_v55 }
 0x1a3   :  { %33374 = vmatpush3.bf16.msra.mxu1 %v37983_v38  ;;  %27437 = vmatprep.mubr.msk.f32.mxu1 %vm37764_vm0, %v42284_v25 }
 0x1a4   :  { %33375 = vmatprep.subr.bf16.mxu1 %v42285_v40  ;;  %42299 = vst [vmem:[#allocation22_spill] sm:$0xff] %v38472_v24  ;;  %42302 = vst [vmem:[#allocation23_spill] sm:$0xff] %v38482_v0 }
 0x1a5   :  { %33233 = vmatpush3.bf16.msra.mxu0 %v37999_v43  ;;  %42308 = vst [vmem:[#allocation25_spill] sm:$0xff] %v38502_v32 }
 0x1a6   :  { %33234 = vmatprep.subr.bf16.mxu0 %v42285_v40 }
 0x1a7   :  { %33377 = vmatpush3.bf16.msra.mxu1 %v37999_v43 }
 0x1a8   :  { %33378 = vmatprep.subr.bf16.mxu1 %v42285_v40 }
 0x1a9   :  { %33236 = vmatpush3.bf16.msra.mxu0 %v38015_v48 }
 0x1aa   :  { %33237 = vmatprep.subr.bf16.mxu0 %v42285_v40 }
 0x1ab   :  { %33380 = vmatpush3.bf16.msra.mxu1 %v38015_v48 }
 0x1ac   :  { %33381 = vmatprep.subr.bf16.mxu1 %v42285_v40 }
 0x1ad   :  { %33239 = vmatpush3.bf16.msra.mxu0 %v38031_v53 }
 0x1ae   :  { %33240 = vmatprep.subr.bf16.mxu0 %v42285_v40 }
 0x1af   :  { %33383 = vmatpush3.bf16.msra.mxu1 %v38031_v53 }
 0x1b0   :  { %33384 = vmatprep.subr.bf16.mxu1 %v42285_v40 }
 0x1b1   :  { %33242 = vmatpush3.bf16.msra.mxu0 %v38047_v58 }
 0x1b2   :  { %33243 = vmatprep.subr.bf16.mxu0 %v42285_v40 }
 0x1b3   :  { %33386 = vmatpush3.bf16.msra.mxu1 %v38047_v58 }
 0x1b4   :  { %33387 = vmatprep.subr.bf16.mxu1 %v42285_v40 }
 0x1b5   :  { %33245 = vmatpush3.bf16.msra.mxu0 %v38063_v63 }
 0x1b6   :  { %33246 = vmatprep.subr.bf16.mxu0 %v42285_v40 }
 0x1b7   :  { %33389 = vmatpush3.bf16.msra.mxu1 %v38063_v63 }
 0x1b8   :  { %33390 = vmatprep.subr.bf16.mxu1 %v42285_v40 }
 0x1b9   :  { %33248 = vmatpush3.bf16.msra.mxu0 %v38079_v6 }
 0x1ba   :  { %33249 = vmatprep.subr.bf16.mxu0 %v42285_v40 }
 0x1bb   :  { %33392 = vmatpush3.bf16.msra.mxu1 %v38079_v6 }
 0x1bc   :  { %33393 = vmatprep.subr.bf16.mxu1 %v42285_v40 }
 0x1bd   :  { %33251 = vmatpush3.bf16.msra.mxu0 %v38101_v17 }
 0x1be   :  { %33252 = vmatprep.subr.bf16.mxu0 %v42285_v40 }
 0x1bf   :  { %33395 = vmatpush3.bf16.msra.mxu1 %v38101_v17 }
 0x1c0   :  { %27228 = vmatmul.mubr.f32.vlgmr.msra.gmra.mrb[6].mxu0 %v747_v16  ;;  %33396 = vmatprep.subr.bf16.mxu1 %v42285_v40  ;;  %v38462_v16 = vpack.c.bf16 %v42295_v23, %v42294_v39 }
 0x1c1   :  { %33254 = vmatpush3.bf16.msra.mxu0 %v38424_v51  ;;  %27262 = vmatprep.mubr.msk.f32.mxu0 %vm37764_vm0, %v42284_v25 }
 0x1c2   :  { %27438 = vmatmul.mubr.f32.vlgmr.msra.gmra.mrb[6].mxu1 %v1389_v1  ;;  %33255 = vmatprep.subr.bf16.mxu0 %v42285_v40  ;;  %42296 = vst [vmem:[#allocation21_spill] sm:$0xff] %v38462_v16  ;;  %v38492_v1 = vpack.c.bf16 %v42304_v50, %v42303_v49 }
 0x1c3   :  { %33398 = vmatpush3.bf16.msra.mxu1 %v38424_v51  ;;  %27472 = vmatprep.mubr.msk.f32.mxu1 %vm37764_vm0, %v42284_v25 }
 0x1c4   :  { %33399 = vmatprep.subr.bf16.mxu1 %v42285_v40  ;;  %42305 = vst [vmem:[#allocation24_spill] sm:$0xff] %v38492_v1 }
 0x1c5   :  { %33257 = vmatpush3.bf16.msra.mxu0 %v38436_v7 }
 0x1c6   :  { %33258 = vmatprep.subr.bf16.mxu0 %v42285_v40 }
 0x1c7   :  { %33401 = vmatpush3.bf16.msra.mxu1 %v38436_v7 }
 0x1c8   :  { %33402 = vmatprep.subr.bf16.mxu1 %v42285_v40 }
 0x1c9   :  { %33260 = vmatpush3.bf16.msra.mxu0 %v38452_v21 }
 0x1ca   :  { %33261 = vmatprep.subr.bf16.mxu0 %v42285_v40 }
 0x1cb   :  { %33404 = vmatpush3.bf16.msra.mxu1 %v38452_v21 }
 0x1cc   :  { %33405 = vmatprep.subr.bf16.mxu1 %v42285_v40 }
 0x1cd   :  { %33263 = vmatpush3.bf16.msra.mxu0 %v38462_v16 }
 0x1ce   :  { %33264 = vmatprep.subr.bf16.mxu0 %v42285_v40 }
 0x1cf   :  { %33407 = vmatpush3.bf16.msra.mxu1 %v38462_v16 }
 0x1d0   :  { %33408 = vmatprep.subr.bf16.mxu1 %v42285_v40 }
 0x1d1   :  { %33266 = vmatpush3.bf16.msra.mxu0 %v38472_v24 }
 0x1d2   :  { %33267 = vmatprep.subr.bf16.mxu0 %v42285_v40 }
 0x1d3   :  { %33410 = vmatpush3.bf16.msra.mxu1 %v38472_v24 }
 0x1d4   :  { %33411 = vmatprep.subr.bf16.mxu1 %v42285_v40 }
 0x1d5   :  { %33269 = vmatpush3.bf16.msra.mxu0 %v38482_v0 }
 0x1d6   :  { %33270 = vmatprep.subr.bf16.mxu0 %v42285_v40 }
 0x1d7   :  { %33413 = vmatpush3.bf16.msra.mxu1 %v38482_v0 }
 0x1d8   :  { %33414 = vmatprep.subr.bf16.mxu1 %v42285_v40 }
 0x1d9   :  { %33272 = vmatpush3.bf16.msra.mxu0 %v38492_v1 }
 0x1da   :  { %33273 = vmatprep.subr.bf16.mxu0 %v42285_v40 }
 0x1db   :  { %33416 = vmatpush3.bf16.msra.mxu1 %v38492_v1 }
 0x1dc   :  { %33417 = vmatprep.subr.bf16.mxu1 %v42285_v40 }
 0x1dd   :  { %33275 = vmatpush3.bf16.msra.mxu0 %v38502_v32 }
 0x1de   :  { %33276 = vmatprep.subr.bf16.mxu0 %v42285_v40 }
 0x1df   :  { %33419 = vmatpush3.bf16.msra.mxu1 %v38502_v32 }
 0x1e0   :  { %27263 = vmatmul.mubr.f32.vlgmr.msra.gmra.mrb[6].mxu0 %v38290_v61  ;;  %33420 = vmatprep.subr.bf16.mxu1 %v42285_v40 }
 0x1e1   :  { %33278 = vmatpush3.bf16.msra.mxu0 %v37983_v38  ;;  %27297 = vmatprep.mubr.msk.f32.mxu0 %vm37764_vm0, %v42284_v25 }
 0x1e2   :  { %27473 = vmatmul.mubr.f32.vlgmr.msra.gmra.mrb[6].mxu1 %v38298_v41  ;;  %33279 = vmatprep.subr.bf16.mxu0 %v42285_v40 }
 0x1e3   :  { %33422 = vmatpush3.bf16.msra.mxu1 %v37983_v38  ;;  %27507 = vmatprep.mubr.msk.f32.mxu1 %vm37764_vm0, %v42284_v25 }
 0x1e4   :  { %33423 = vmatprep.subr.bf16.mxu1 %v42285_v40 }
 0x1e5   :  { %33281 = vmatpush3.bf16.msra.mxu0 %v37999_v43 }
 0x1e6   :  { %33282 = vmatprep.subr.bf16.mxu0 %v42285_v40 }
 0x1e7   :  { %33425 = vmatpush3.bf16.msra.mxu1 %v37999_v43 }
 0x1e8   :  { %33426 = vmatprep.subr.bf16.mxu1 %v42285_v40 }
 0x1e9   :  { %33284 = vmatpush3.bf16.msra.mxu0 %v38015_v48 }
 0x1ea   :  { %33285 = vmatprep.subr.bf16.mxu0 %v42285_v40 }
 0x1eb   :  { %33428 = vmatpush3.bf16.msra.mxu1 %v38015_v48 }
 0x1ec   :  { %33429 = vmatprep.subr.bf16.mxu1 %v42285_v40 }
 0x1ed   :  { %33287 = vmatpush3.bf16.msra.mxu0 %v38031_v53 }
 0x1ee   :  { %33288 = vmatprep.subr.bf16.mxu0 %v42285_v40 }
 0x1ef   :  { %33431 = vmatpush3.bf16.msra.mxu1 %v38031_v53 }
 0x1f0   :  { %33432 = vmatprep.subr.bf16.mxu1 %v42285_v40 }
 0x1f1   :  { %33290 = vmatpush3.bf16.msra.mxu0 %v38047_v58 }
 0x1f2   :  { %33291 = vmatprep.subr.bf16.mxu0 %v42285_v40 }
 0x1f3   :  { %33434 = vmatpush3.bf16.msra.mxu1 %v38047_v58 }
 0x1f4   :  { %33435 = vmatprep.subr.bf16.mxu1 %v42285_v40 }
 0x1f5   :  { %33293 = vmatpush3.bf16.msra.mxu0 %v38063_v63 }
 0x1f6   :  { %33294 = vmatprep.subr.bf16.mxu0 %v42285_v40 }
 0x1f7   :  { %33437 = vmatpush3.bf16.msra.mxu1 %v38063_v63 }
 0x1f8   :  { %33438 = vmatprep.subr.bf16.mxu1 %v42285_v40 }
 0x1f9   :  { %33296 = vmatpush3.bf16.msra.mxu0 %v38079_v6 }
 0x1fa   :  { %33297 = vmatprep.subr.bf16.mxu0 %v42285_v40 }
 0x1fb   :  { %33440 = vmatpush3.bf16.msra.mxu1 %v38079_v6 }
 0x1fc   :  { %33441 = vmatprep.subr.bf16.mxu1 %v42285_v40 }
 0x1fd   :  { %33299 = vmatpush3.bf16.msra.mxu0 %v38101_v17 }
 0x1fe   :  { %33444 = vmatprep.subr.bf16.mxu0 %v42285_v40 }
 0x1ff   :  { %33443 = vmatpush3.bf16.msra.mxu1 %v38101_v17 }
 0x200   :  { %27298 = vmatmul.mubr.f32.vlgmr.msra.gmra.mrb[6].mxu0 %v38290_v61  ;;  %33450 = vmatprep.subr.bf16.mxu1 %v42285_v40 }
 0x201   :  { %33446 = vmatpush3.bf16.msra.mxu0 %v37925_v10  ;;  %27518 = vmatprep.mubr.msk.f32.mxu0 %vm37764_vm0, %v42284_v25 }
 0x202   :  { %27508 = vmatmul.mubr.f32.vlgmr.msra.gmra.mrb[6].mxu1 %v38298_v41  ;;  %33447 = vmatprep.subr.bf16.mxu0 %v42285_v40 }
 0x203   :  { %33452 = vmatpush3.bf16.msra.mxu1 %v37935_v29  ;;  %27529 = vmatprep.mubr.msk.f32.mxu1 %vm37764_vm0, %v42284_v25 }
 0x204   :  { %33453 = vmatprep.subr.bf16.mxu1 %v42285_v40 }
 0x205   :  { %33449 = vmatpush3.bf16.msra.mxu0 %v37928_v15 }
 0x206   :  { %33456 = vmatprep.subr.bf16.mxu0 %v42285_v40 }
 0x207   :  { %33455 = vmatpush3.bf16.msra.mxu1 %v37940_v30 }
 0x208   :  { %33462 = vmatprep.subr.bf16.mxu1 %v42285_v40 }
 0x2d3   :  { %v1301_v60 = vpop.f32.mrb[6].mxu0 }
 0x2d4   :  { %v1948_v62 = vmul.f32 %v1301_v60, %v1301_v60  ;;  %v27299_v2 = vpop.f32.mrb[7].mxu0  ;;  %v1947_v14 = vsub.f32 %v38287_v31, %v1301_v60  ;;  %v24091_v60 = vld [vmem:[%s42216_s3] ss:$0 sm:$0xff] }
 0x2d5   :  { %v1943_v3 = vpop.f32.mrb[6].mxu1 }
 0x2d6   :  { %v1949_v61 = vsub.f32 %v1943_v3, %v1948_v62  ;;  %v27509_v41 = vpop.f32.mrb[7].mxu1  ;;  %v24090_v62 = vld [vmem:[%s42215_s2] ss:$0 sm:$0xff]  ;;  %s37768_s2 = smov 64  }
 0x2d8   :  { %v1950_v33 = vadd.f32 1e-05, %v1949_v61 }
 0x2da   :  { %37494 = vrsqrt.f32 %v1950_v33 }
 0x2e4   :  { %v37495_v22 = vpop.eup %37494 }
 0x2e5   :  { %v1952_v34 = vmul.f32 %v37495_v22, %v1947_v14 }
 0x2e7   :  { %37496 = vtanh.f32 %v1952_v34  ;;  %v1953_v18 = vmul.f32 0.5, %v1952_v34 }
 0x2e9   :  { %37498 = vtanh.f32 %v1953_v18 }
 0x2f1   :  { %v37497_v56 = vpop.eup %37496 }
 0x2f2   :  { %1960 = vrot.lane.b32.xlu0 %v37497_v56, %s37766_s10 }
 0x2f3   :  { %v37499_v8 = vpop.eup %37498 }
 0x2f4   :  { %v1955_v20 = vmul.f32 0.5, %v37499_v8 }
 0x2f6   :  { %v1956_v39 = vadd.f32 0.5, %v1955_v20 }
 0x2f8   :  { %v1958_v36 = vmul.f32 0.0, %v1956_v39 }
 0x364   :  { %v1961_v23 = vpop.permute.xlu0 %1960 }
 0x365   :  { %v1963_v35 = vmul.f32 %v1961_v23, %v1956_v39 }
 0x367   :  { %1965 = vrot.lane.b32.xlu0 %v1963_v35, %s37766_s10 }
 0x3d9   :  { %v1966_v45 = vpop.permute.xlu0 %1965 }
 0x3da   :  { %v38566_v46 = vadd.f32 %v1966_v45, %v1958_v36 }
 0x3dc   :  { %1970 = vrot.lane.b32.xlu1 %v38566_v46, %s37767_s22  ;;  %v1977_v31 = vmul.f32 %v38566_v46, %v38566_v46 }
 0x3e0   :  { %1979 = vrot.lane.b32.xlu1 %v1977_v31, %s37767_s22 }
 0x44e   :  { %v1971_v49 = vpop.permute.xlu1 %1970 }
 0x44f   :  { %v1973_v50 = vsel %vm174_vm1, %v1971_v49, 0.0 }
 0x450   :  { %1974 = vadd.xlane.f32.xlu0 %v1973_v50 }
 0x452   :  { %v1980_v55 = vpop.permute.xlu1 %1979 }
 0x453   :  { %v1982_v57 = vsel %vm174_vm1, %v1980_v55, 0.0 }
 0x454   :  { %1983 = vadd.xlane.f32.xlu1 %v1982_v57 }
 0x465   :  { %1996 = vrot.lane.b32.xlu1 %v24091_v60, %s37766_s10 }
 0x466   :  { %1992 = vrot.lane.b32.xlu0 %v24090_v62, %s37766_s10 }
 0x4dd   :  { %v1975_v2 = vpop.xlane.xlu0 %1974 }
 0x4de   :  { %v1976_v3 = vmul.f32 0.03125, %v1975_v2  ;;  %v42309_v2 = vld [vmem:[#allocation16_spill] sm:$0xff] }
 0x4e0   :  { %v1987_v41 = vmul.f32 %v1976_v3, %v1976_v3  ;;  %v1986_v34 = vsub.f32 %v38566_v46, %v1976_v3  ;;  %v42310_v3 = vld [vmem:[#allocation17_spill] sm:$0xff] }
 0x4e1   :  { %v1984_v61 = vpop.xlane.xlu1 %1983  ;;  %v38584_v18 = vpop.permute.xlu0 %1992 }
 0x4e2   :  { %v1985_v33 = vmul.f32 0.03125, %v1984_v61  ;;  %v42311_v61 = vld [vmem:[#allocation18_spill] sm:$0xff] }
 0x4e4   :  { %v1988_v14 = vsub.f32 %v1985_v33, %v1987_v41 }
 0x4e5   :  { %v38586_v20 = vpop.permute.xlu1 %1996 }
 0x4e6   :  { %v1989_v22 = vadd.f32 1e-05, %v1988_v14 }
 0x4e8   :  { %37500 = vrsqrt.f32 %v1989_v22 }
 0x4f2   :  { %v37501_v56 = vpop.eup %37500 }
 0x4f3   :  { %v1991_v8 = vmul.f32 %v37501_v56, %v1986_v34 }
 0x4f5   :  { %v1995_v23 = vmul.f32 %v38584_v18, %v1991_v8 }
 0x4f7   :  { %v1999_v35 = vadd.f32 %v38586_v20, %v1995_v23 }
 0x4f9   :  { %37502 = vtanh.f32 %v1999_v35 }
 0x503   :  { %v37503_v36 = vpop.eup %37502 }
 0x504   :  { %2002 = vrot.lane.b32.xlu0 %v37503_v36, %s37766_s10 }
 0x576   :  { %v2003_v45 = vpop.permute.xlu0 %2002 }
 0x577   :  { %v2005_v31 = vmul.f32 %v2003_v45, %v1956_v39 }
 0x579   :  { %2009 = vrot.lane.b32.xlu1 %v2005_v31, %s37768_s2 }
 0x5eb   :  { %v2010_v49 = vpop.permute.xlu1 %2009 }
 0x5ec   :  { %v2011_v50 = vsel %vm174_vm1, %v2010_v49, 0 }
 0x5ed   :  { %v2082_v55 = vand.u32 4294901760, %v2011_v50 }
 0x5ef   :  { %v2083_v57 = vsub.f32 %v2011_v50, %v2082_v55  ;;  %27530 = vmatmul.mubr.f32.vlgmr.msra.gmra.mrb[8].mxu1 %v2082_v55 }
 0x5f0   :  { %33464 = vmatpush3.bf16.msra.mxu1 %v37925_v10  ;;  %27551 = vmatprep.mubr.msk.f32.mxu1 %vm37764_vm0, %v42284_v25 }
 0x5f1   :  { %v2084_v60 = vand.u32 4294901760, %v2083_v57  ;;  %33465 = vmatprep.subr.bf16.mxu1 %v42285_v40 }
 0x5f3   :  { %v2085_v62 = vsub.f32 %v2083_v57, %v2084_v60 }
 0x5f4   :  { %33467 = vmatpush3.bf16.msra.mxu1 %v37928_v15 }
 0x5f5   :  { %v2086_v39 = vand.u32 4294901760, %v2085_v62  ;;  %33474 = vmatprep.subr.bf16.mxu1 %v42285_v40 }
 0x5f7   :  { %27552 = vmatmul.mubr.f32.vlgmr.msra.gmra.mrb[10].mxu1 %v2084_v60  ;;  %27519 = vmatmul.mubr.f32.vlgmr.msra.gmra.mrb[8].mxu0 %v2086_v39  ;;  %v2007_v60 = vld [vmem:[#allocation2 + $0x8] sm:$0xff] }
 0x5f8   :  { %33458 = vmatpush3.bf16.msra.mxu0 %v37932_v26  ;;  %33476 = vmatpush3.bf16.msra.mxu1 %v37925_v10 }
 0x5f9   :  { %33459 = vmatprep.subr.bf16.mxu0 %v42285_v40  ;;  %33477 = vmatprep.subr.bf16.mxu1 %v42285_v40 }
 0x5fa   :  { %27540 = vmatprep.mubr.msk.f32.mxu0 %vm37764_vm0, %v42284_v25  ;;  %27573 = vmatprep.mubr.msk.f32.mxu1 %vm37764_vm0, %v42284_v25 }
 0x5fc   :  { %33461 = vmatpush3.bf16.msra.mxu0 %v42309_v2  ;;  %33479 = vmatpush3.bf16.msra.mxu1 %v37928_v15 }
 0x5fd   :  { %33468 = vmatprep.subr.bf16.mxu0 %v42285_v40  ;;  %33624 = vmatprep.subr.bf16.mxu1 %v42285_v40 }
 0x5ff   :  { %27541 = vmatmul.mubr.f32.vlgmr.msra.gmra.mrb[10].mxu0 %v2083_v57  ;;  %27574 = vmatmul.mubr.f32.vlgmr.msra.gmra.mrb[12].mxu1 %v2082_v55 }
 0x600   :  { %33470 = vmatpush3.bf16.msra.mxu0 %v42310_v3  ;;  %27562 = vmatprep.mubr.msk.f32.mxu0 %vm37764_vm0, %v42284_v25 }
 0x601   :  { %33471 = vmatprep.subr.bf16.mxu0 %v42285_v40  ;;  %33626 = vmatpush3.bf16.msra.mxu1 %v37983_v38 }
 0x602   :  { %33627 = vmatprep.subr.bf16.mxu1 %v42285_v40  ;;  %27818 = vmatprep.mubr.msk.f32.mxu1 %vm37764_vm0, %v42284_v25 }
 0x604   :  { %33473 = vmatpush3.bf16.msra.mxu0 %v42311_v61 }
 0x605   :  { %33480 = vmatprep.subr.bf16.mxu0 %v42285_v40  ;;  %33629 = vmatpush3.bf16.msra.mxu1 %v37999_v43 }
 0x606   :  { %33630 = vmatprep.subr.bf16.mxu1 %v42285_v40 }
 0x607   :  { %27563 = vmatmul.mubr.f32.vlgmr.msra.gmra.mrb[12].mxu0 %v2082_v55 }
 0x608   :  { %33482 = vmatpush3.bf16.msra.mxu0 %v37983_v38  ;;  %27608 = vmatprep.mubr.msk.f32.mxu0 %vm37764_vm0, %v42284_v25 }
 0x609   :  { %33483 = vmatprep.subr.bf16.mxu0 %v42285_v40  ;;  %33632 = vmatpush3.bf16.msra.mxu1 %v38015_v48 }
 0x60a   :  { %33633 = vmatprep.subr.bf16.mxu1 %v42285_v40 }
 0x60c   :  { %33485 = vmatpush3.bf16.msra.mxu0 %v37999_v43 }
 0x60d   :  { %33486 = vmatprep.subr.bf16.mxu0 %v42285_v40  ;;  %33635 = vmatpush3.bf16.msra.mxu1 %v38031_v53 }
 0x60e   :  { %33636 = vmatprep.subr.bf16.mxu1 %v42285_v40 }
 0x610   :  { %33488 = vmatpush3.bf16.msra.mxu0 %v38015_v48 }
 0x611   :  { %33489 = vmatprep.subr.bf16.mxu0 %v42285_v40  ;;  %33638 = vmatpush3.bf16.msra.mxu1 %v38047_v58 }
 0x612   :  { %33639 = vmatprep.subr.bf16.mxu1 %v42285_v40 }
 0x614   :  { %33491 = vmatpush3.bf16.msra.mxu0 %v38031_v53 }
 0x615   :  { %33492 = vmatprep.subr.bf16.mxu0 %v42285_v40  ;;  %33641 = vmatpush3.bf16.msra.mxu1 %v38063_v63 }
 0x616   :  { %33642 = vmatprep.subr.bf16.mxu1 %v42285_v40 }
 0x618   :  { %33494 = vmatpush3.bf16.msra.mxu0 %v38047_v58 }
 0x619   :  { %33495 = vmatprep.subr.bf16.mxu0 %v42285_v40  ;;  %33644 = vmatpush3.bf16.msra.mxu1 %v38079_v6 }
 0x61a   :  { %33645 = vmatprep.subr.bf16.mxu1 %v42285_v40 }
 0x61c   :  { %33497 = vmatpush3.bf16.msra.mxu0 %v38063_v63 }
 0x61d   :  { %33498 = vmatprep.subr.bf16.mxu0 %v42285_v40  ;;  %33647 = vmatpush3.bf16.msra.mxu1 %v38101_v17 }
 0x61e   :  { %33648 = vmatprep.subr.bf16.mxu1 %v42285_v40 }
 0x620   :  { %33500 = vmatpush3.bf16.msra.mxu0 %v38079_v6 }
 0x621   :  { %33501 = vmatprep.subr.bf16.mxu0 %v42285_v40 }
 0x624   :  { %33503 = vmatpush3.bf16.msra.mxu0 %v38101_v17 }
 0x625   :  { %33504 = vmatprep.subr.bf16.mxu0 %v42285_v40 }
 0x6c2   :  { %v2179_v41 = vpop.f32.mrb[8].mxu1 }
 0x6c3   :  { %v27531_v33 = vpop.f32.mrb[9].mxu1 }
 0x6ca   :  { %v2336_v14 = vpop.f32.mrb[10].mxu1  ;;  %v2088_v22 = vpop.f32.mrb[8].mxu0 }
 0x6cb   :  { %v2180_v34 = vadd.f32 %v2179_v41, %v2088_v22  ;;  %v27553_v56 = vpop.f32.mrb[11].mxu1  ;;  %v27520_v8 = vpop.f32.mrb[9].mxu0 }
 0x6d2   :  { %v2259_v23 = vpop.f32.mrb[10].mxu0  ;;  %v2494_v35 = vpop.f32.mrb[12].mxu1 }
 0x6d3   :  { %v2260_v36 = vadd.f32 %v2259_v23, %v2180_v34  ;;  %v27542_v45 = vpop.f32.mrb[11].mxu0  ;;  %v27575_v31 = vpop.f32.mrb[13].mxu1 }
 0x6d5   :  { %v2337_v49 = vadd.f32 %v2336_v14, %v2260_v36 }
 0x6da   :  { %v2419_v50 = vpop.f32.mrb[12].mxu0 }
 0x6db   :  { %v2420_v55 = vadd.f32 %v2419_v50, %v2337_v49  ;;  %v27564_v57 = vpop.f32.mrb[13].mxu0 }
 0x6dd   :  { %v2495_v62 = vadd.f32 %v2494_v35, %v2420_v55 }
 0x6df   :  { %v38653_v39 = vadd.f32 %v2495_v62, %v2007_v60 }
 0x6e1   :  { %v38656_v33 = vand.u32 4294901760, %v38653_v39  ;;  %v3140_v41 = vmul.f32 %v38653_v39, %v38653_v39 }
 0x6e3   :  { %v38660_v22 = vand.u32 4294901760, %v3140_v41  ;;  %v38664_v34 = vsub.f32 %v38653_v39, %v38656_v33 }
 0x6e5   :  { %v2582_v14 = vand.u32 4294901760, %v38664_v34  ;;  %v38668_v56 = vsub.f32 %v3140_v41, %v38660_v22 }
 0x6e7   :  { %v2583_v8 = vsub.f32 %v38664_v34, %v2582_v14  ;;  %v3224_v23 = vand.u32 4294901760, %v38668_v56 }
 0x6e9   :  { %v2584_v35 = vand.u32 4294901760, %v2583_v8  ;;  %v3225_v36 = vsub.f32 %v38668_v56, %v3224_v23 }
 0x6eb   :  { %27609 = vmatmul.mubr.f32.vlgmr.msra.gmra.mrb[14].mxu0 %v2584_v35  ;;  %v3226_v45 = vand.u32 4294901760, %v3225_v36 }
 0x6ec   :  { %33506 = vmatpush3.bf16.msra.mxu0 %v38125_v27  ;;  %27643 = vmatprep.mubr.msk.f32.mxu0 %vm37764_vm0, %v42284_v25 }
 0x6ed   :  { %27819 = vmatmul.mubr.f32.vlgmr.msra.gmra.mrb[14].mxu1 %v3226_v45  ;;  %33507 = vmatprep.subr.bf16.mxu0 %v42285_v40 }
 0x6ee   :  { %33650 = vmatpush3.bf16.msra.mxu1 %v38125_v27  ;;  %27853 = vmatprep.mubr.msk.f32.mxu1 %vm37764_vm0, %v42284_v25 }
 0x6ef   :  { %33651 = vmatprep.subr.bf16.mxu1 %v42285_v40 }
 0x6f0   :  { %33509 = vmatpush3.bf16.msra.mxu0 %v38145_v42 }
 0x6f1   :  { %33510 = vmatprep.subr.bf16.mxu0 %v42285_v40 }
 0x6f2   :  { %33653 = vmatpush3.bf16.msra.mxu1 %v38145_v42 }
 0x6f3   :  { %33654 = vmatprep.subr.bf16.mxu1 %v42285_v40 }
 0x6f4   :  { %33512 = vmatpush3.bf16.msra.mxu0 %v38165_v28 }
 0x6f5   :  { %33513 = vmatprep.subr.bf16.mxu0 %v42285_v40 }
 0x6f6   :  { %33656 = vmatpush3.bf16.msra.mxu1 %v38165_v28 }
 0x6f7   :  { %33657 = vmatprep.subr.bf16.mxu1 %v42285_v40 }
 0x6f8   :  { %33515 = vmatpush3.bf16.msra.mxu0 %v38201_v44 }
 0x6f9   :  { %33516 = vmatprep.subr.bf16.mxu0 %v42285_v40 }
 0x6fa   :  { %33659 = vmatpush3.bf16.msra.mxu1 %v38201_v44 }
 0x6fb   :  { %33660 = vmatprep.subr.bf16.mxu1 %v42285_v40 }
 0x6fc   :  { %33518 = vmatpush3.bf16.msra.mxu0 %v38205_v37 }
 0x6fd   :  { %33519 = vmatprep.subr.bf16.mxu0 %v42285_v40 }
 0x6fe   :  { %33662 = vmatpush3.bf16.msra.mxu1 %v38205_v37 }
 0x6ff   :  { %33663 = vmatprep.subr.bf16.mxu1 %v42285_v40 }
 0x700   :  { %33521 = vmatpush3.bf16.msra.mxu0 %v38225_v47 }
 0x701   :  { %33522 = vmatprep.subr.bf16.mxu0 %v42285_v40 }
 0x702   :  { %33665 = vmatpush3.bf16.msra.mxu1 %v38225_v47 }
 0x703   :  { %33666 = vmatprep.subr.bf16.mxu1 %v42285_v40 }
 0x704   :  { %33524 = vmatpush3.bf16.msra.mxu0 %v38251_v11 }
 0x705   :  { %33525 = vmatprep.subr.bf16.mxu0 %v42285_v40 }
 0x706   :  { %33668 = vmatpush3.bf16.msra.mxu1 %v38251_v11 }
 0x707   :  { %33669 = vmatprep.subr.bf16.mxu1 %v42285_v40 }
 0x708   :  { %33527 = vmatpush3.bf16.msra.mxu0 %v38253_v54 }
 0x709   :  { %33528 = vmatprep.subr.bf16.mxu0 %v42285_v40 }
 0x70a   :  { %33671 = vmatpush3.bf16.msra.mxu1 %v38253_v54 }
 0x70b   :  { %27644 = vmatmul.mubr.f32.vlgmr.msra.gmra.mrb[14].mxu0 %v38656_v33  ;;  %33672 = vmatprep.subr.bf16.mxu1 %v42285_v40 }
 0x70c   :  { %33530 = vmatpush3.bf16.msra.mxu0 %v38257_v19  ;;  %27678 = vmatprep.mubr.msk.f32.mxu0 %vm37764_vm0, %v42284_v25 }
 0x70d   :  { %27854 = vmatmul.mubr.f32.vlgmr.msra.gmra.mrb[14].mxu1 %v38660_v22  ;;  %33531 = vmatprep.subr.bf16.mxu0 %v42285_v40 }
 0x70e   :  { %33674 = vmatpush3.bf16.msra.mxu1 %v38257_v19  ;;  %27888 = vmatprep.mubr.msk.f32.mxu1 %vm37764_vm0, %v42284_v25 }
 0x70f   :  { %33675 = vmatprep.subr.bf16.mxu1 %v42285_v40 }
 0x710   :  { %33533 = vmatpush3.bf16.msra.mxu0 %v38261_v4 }
 0x711   :  { %33534 = vmatprep.subr.bf16.mxu0 %v42285_v40 }
 0x712   :  { %33677 = vmatpush3.bf16.msra.mxu1 %v38261_v4 }
 0x713   :  { %33678 = vmatprep.subr.bf16.mxu1 %v42285_v40 }
 0x714   :  { %33536 = vmatpush3.bf16.msra.mxu0 %v38265_v59 }
 0x715   :  { %33537 = vmatprep.subr.bf16.mxu0 %v42285_v40 }
 0x716   :  { %33680 = vmatpush3.bf16.msra.mxu1 %v38265_v59 }
 0x717   :  { %33681 = vmatprep.subr.bf16.mxu1 %v42285_v40 }
 0x718   :  { %33539 = vmatpush3.bf16.msra.mxu0 %v38269_v5 }
 0x719   :  { %33540 = vmatprep.subr.bf16.mxu0 %v42285_v40 }
 0x71a   :  { %33683 = vmatpush3.bf16.msra.mxu1 %v38269_v5 }
 0x71b   :  { %33684 = vmatprep.subr.bf16.mxu1 %v42285_v40 }
 0x71c   :  { %33542 = vmatpush3.bf16.msra.mxu0 %v38273_v52 }
 0x71d   :  { %33543 = vmatprep.subr.bf16.mxu0 %v42285_v40 }
 0x71e   :  { %33686 = vmatpush3.bf16.msra.mxu1 %v38273_v52 }
 0x71f   :  { %33687 = vmatprep.subr.bf16.mxu1 %v42285_v40 }
 0x720   :  { %33545 = vmatpush3.bf16.msra.mxu0 %v38277_v9 }
 0x721   :  { %33546 = vmatprep.subr.bf16.mxu0 %v42285_v40 }
 0x722   :  { %33689 = vmatpush3.bf16.msra.mxu1 %v38277_v9 }
 0x723   :  { %33690 = vmatprep.subr.bf16.mxu1 %v42285_v40 }
 0x724   :  { %33548 = vmatpush3.bf16.msra.mxu0 %v38281_v12 }
 0x725   :  { %33549 = vmatprep.subr.bf16.mxu0 %v42285_v40 }
 0x726   :  { %33692 = vmatpush3.bf16.msra.mxu1 %v38281_v12 }
 0x727   :  { %33693 = vmatprep.subr.bf16.mxu1 %v42285_v40 }
 0x728   :  { %33551 = vmatpush3.bf16.msra.mxu0 %v38285_v13 }
 0x729   :  { %33552 = vmatprep.subr.bf16.mxu0 %v42285_v40 }
 0x72a   :  { %33695 = vmatpush3.bf16.msra.mxu1 %v38285_v13 }
 0x72b   :  { %27679 = vmatmul.mubr.f32.vlgmr.msra.gmra.mrb[14].mxu0 %v38664_v34  ;;  %33696 = vmatprep.subr.bf16.mxu1 %v42285_v40 }
 0x72c   :  { %33554 = vmatpush3.bf16.msra.mxu0 %v37983_v38  ;;  %27713 = vmatprep.mubr.msk.f32.mxu0 %vm37764_vm0, %v42284_v25 }
 0x72d   :  { %27889 = vmatmul.mubr.f32.vlgmr.msra.gmra.mrb[14].mxu1 %v38668_v56  ;;  %33555 = vmatprep.subr.bf16.mxu0 %v42285_v40 }
 0x72e   :  { %33698 = vmatpush3.bf16.msra.mxu1 %v37983_v38  ;;  %27923 = vmatprep.mubr.msk.f32.mxu1 %vm37764_vm0, %v42284_v25 }
 0x72f   :  { %33699 = vmatprep.subr.bf16.mxu1 %v42285_v40 }
 0x730   :  { %33557 = vmatpush3.bf16.msra.mxu0 %v37999_v43 }
 0x731   :  { %33558 = vmatprep.subr.bf16.mxu0 %v42285_v40 }
 0x732   :  { %33701 = vmatpush3.bf16.msra.mxu1 %v37999_v43 }
 0x733   :  { %33702 = vmatprep.subr.bf16.mxu1 %v42285_v40 }
 0x734   :  { %33560 = vmatpush3.bf16.msra.mxu0 %v38015_v48 }
 0x735   :  { %33561 = vmatprep.subr.bf16.mxu0 %v42285_v40 }
 0x736   :  { %33704 = vmatpush3.bf16.msra.mxu1 %v38015_v48 }
 0x737   :  { %33705 = vmatprep.subr.bf16.mxu1 %v42285_v40 }
 0x738   :  { %33563 = vmatpush3.bf16.msra.mxu0 %v38031_v53 }
 0x739   :  { %33564 = vmatprep.subr.bf16.mxu0 %v42285_v40 }
 0x73a   :  { %33707 = vmatpush3.bf16.msra.mxu1 %v38031_v53 }
 0x73b   :  { %33708 = vmatprep.subr.bf16.mxu1 %v42285_v40 }
 0x73c   :  { %33566 = vmatpush3.bf16.msra.mxu0 %v38047_v58 }
 0x73d   :  { %33567 = vmatprep.subr.bf16.mxu0 %v42285_v40 }
 0x73e   :  { %33710 = vmatpush3.bf16.msra.mxu1 %v38047_v58 }
 0x73f   :  { %33711 = vmatprep.subr.bf16.mxu1 %v42285_v40 }
 0x740   :  { %33569 = vmatpush3.bf16.msra.mxu0 %v38063_v63 }
 0x741   :  { %33570 = vmatprep.subr.bf16.mxu0 %v42285_v40 }
 0x742   :  { %33713 = vmatpush3.bf16.msra.mxu1 %v38063_v63 }
 0x743   :  { %33714 = vmatprep.subr.bf16.mxu1 %v42285_v40 }
 0x744   :  { %33572 = vmatpush3.bf16.msra.mxu0 %v38079_v6 }
 0x745   :  { %33573 = vmatprep.subr.bf16.mxu0 %v42285_v40 }
 0x746   :  { %33716 = vmatpush3.bf16.msra.mxu1 %v38079_v6 }
 0x747   :  { %33717 = vmatprep.subr.bf16.mxu1 %v42285_v40 }
 0x748   :  { %33575 = vmatpush3.bf16.msra.mxu0 %v38101_v17 }
 0x749   :  { %33576 = vmatprep.subr.bf16.mxu0 %v42285_v40 }
 0x74a   :  { %33719 = vmatpush3.bf16.msra.mxu1 %v38101_v17 }
 0x74b   :  { %27714 = vmatmul.mubr.f32.vlgmr.msra.gmra.mrb[14].mxu0 %v2582_v14  ;;  %33720 = vmatprep.subr.bf16.mxu1 %v42285_v40 }
 0x74c   :  { %33578 = vmatpush3.bf16.msra.mxu0 %v38424_v51  ;;  %27748 = vmatprep.mubr.msk.f32.mxu0 %vm37764_vm0, %v42284_v25 }
 0x74d   :  { %27924 = vmatmul.mubr.f32.vlgmr.msra.gmra.mrb[14].mxu1 %v3224_v23  ;;  %33579 = vmatprep.subr.bf16.mxu0 %v42285_v40 }
 0x74e   :  { %33722 = vmatpush3.bf16.msra.mxu1 %v38424_v51  ;;  %27958 = vmatprep.mubr.msk.f32.mxu1 %vm37764_vm0, %v42284_v25 }
 0x74f   :  { %33723 = vmatprep.subr.bf16.mxu1 %v42285_v40 }
 0x750   :  { %33581 = vmatpush3.bf16.msra.mxu0 %v38436_v7 }
 0x751   :  { %33582 = vmatprep.subr.bf16.mxu0 %v42285_v40 }
 0x752   :  { %33725 = vmatpush3.bf16.msra.mxu1 %v38436_v7 }
 0x753   :  { %33726 = vmatprep.subr.bf16.mxu1 %v42285_v40 }
 0x754   :  { %33584 = vmatpush3.bf16.msra.mxu0 %v38452_v21 }
 0x755   :  { %33585 = vmatprep.subr.bf16.mxu0 %v42285_v40 }
 0x756   :  { %33728 = vmatpush3.bf16.msra.mxu1 %v38452_v21 }
 0x757   :  { %33729 = vmatprep.subr.bf16.mxu1 %v42285_v40 }
 0x758   :  { %33587 = vmatpush3.bf16.msra.mxu0 %v38462_v16 }
 0x759   :  { %33588 = vmatprep.subr.bf16.mxu0 %v42285_v40 }
 0x75a   :  { %33731 = vmatpush3.bf16.msra.mxu1 %v38462_v16 }
 0x75b   :  { %33732 = vmatprep.subr.bf16.mxu1 %v42285_v40 }
 0x75c   :  { %33590 = vmatpush3.bf16.msra.mxu0 %v38472_v24 }
 0x75d   :  { %33591 = vmatprep.subr.bf16.mxu0 %v42285_v40 }
 0x75e   :  { %33734 = vmatpush3.bf16.msra.mxu1 %v38472_v24 }
 0x75f   :  { %33735 = vmatprep.subr.bf16.mxu1 %v42285_v40 }
 0x760   :  { %33593 = vmatpush3.bf16.msra.mxu0 %v38482_v0 }
 0x761   :  { %33594 = vmatprep.subr.bf16.mxu0 %v42285_v40 }
 0x762   :  { %33737 = vmatpush3.bf16.msra.mxu1 %v38482_v0 }
 0x763   :  { %33738 = vmatprep.subr.bf16.mxu1 %v42285_v40 }
 0x764   :  { %33596 = vmatpush3.bf16.msra.mxu0 %v38492_v1 }
 0x765   :  { %33597 = vmatprep.subr.bf16.mxu0 %v42285_v40 }
 0x766   :  { %33740 = vmatpush3.bf16.msra.mxu1 %v38492_v1 }
 0x767   :  { %33741 = vmatprep.subr.bf16.mxu1 %v42285_v40 }
 0x768   :  { %33599 = vmatpush3.bf16.msra.mxu0 %v38502_v32 }
 0x769   :  { %33600 = vmatprep.subr.bf16.mxu0 %v42285_v40 }
 0x76a   :  { %33743 = vmatpush3.bf16.msra.mxu1 %v38502_v32 }
 0x76b   :  { %27749 = vmatmul.mubr.f32.vlgmr.msra.gmra.mrb[14].mxu0 %v38656_v33  ;;  %33744 = vmatprep.subr.bf16.mxu1 %v42285_v40 }
 0x76c   :  { %33602 = vmatpush3.bf16.msra.mxu0 %v37983_v38  ;;  %27783 = vmatprep.mubr.msk.f32.mxu0 %vm37764_vm0, %v42284_v25 }
 0x76d   :  { %27959 = vmatmul.mubr.f32.vlgmr.msra.gmra.mrb[14].mxu1 %v38660_v22  ;;  %33603 = vmatprep.subr.bf16.mxu0 %v42285_v40 }
 0x76e   :  { %33746 = vmatpush3.bf16.msra.mxu1 %v37983_v38  ;;  %27993 = vmatprep.mubr.msk.f32.mxu1 %vm37764_vm0, %v42284_v25 }
 0x76f   :  { %33747 = vmatprep.subr.bf16.mxu1 %v42285_v40 }
 0x770   :  { %33605 = vmatpush3.bf16.msra.mxu0 %v37999_v43 }
 0x771   :  { %33606 = vmatprep.subr.bf16.mxu0 %v42285_v40 }
 0x772   :  { %33749 = vmatpush3.bf16.msra.mxu1 %v37999_v43 }
 0x773   :  { %33750 = vmatprep.subr.bf16.mxu1 %v42285_v40 }
 0x774   :  { %33608 = vmatpush3.bf16.msra.mxu0 %v38015_v48 }
 0x775   :  { %33609 = vmatprep.subr.bf16.mxu0 %v42285_v40 }
 0x776   :  { %33752 = vmatpush3.bf16.msra.mxu1 %v38015_v48 }
 0x777   :  { %33753 = vmatprep.subr.bf16.mxu1 %v42285_v40 }
 0x778   :  { %33611 = vmatpush3.bf16.msra.mxu0 %v38031_v53 }
 0x779   :  { %33612 = vmatprep.subr.bf16.mxu0 %v42285_v40 }
 0x77a   :  { %33755 = vmatpush3.bf16.msra.mxu1 %v38031_v53 }
 0x77b   :  { %33756 = vmatprep.subr.bf16.mxu1 %v42285_v40 }
 0x77c   :  { %33614 = vmatpush3.bf16.msra.mxu0 %v38047_v58 }
 0x77d   :  { %33615 = vmatprep.subr.bf16.mxu0 %v42285_v40 }
 0x77e   :  { %33758 = vmatpush3.bf16.msra.mxu1 %v38047_v58 }
 0x77f   :  { %33759 = vmatprep.subr.bf16.mxu1 %v42285_v40 }
 0x780   :  { %33617 = vmatpush3.bf16.msra.mxu0 %v38063_v63 }
 0x781   :  { %33618 = vmatprep.subr.bf16.mxu0 %v42285_v40 }
 0x782   :  { %33761 = vmatpush3.bf16.msra.mxu1 %v38063_v63 }
 0x783   :  { %33762 = vmatprep.subr.bf16.mxu1 %v42285_v40 }
 0x784   :  { %33620 = vmatpush3.bf16.msra.mxu0 %v38079_v6 }
 0x785   :  { %33621 = vmatprep.subr.bf16.mxu0 %v42285_v40 }
 0x786   :  { %33764 = vmatpush3.bf16.msra.mxu1 %v38079_v6 }
 0x787   :  { %33765 = vmatprep.subr.bf16.mxu1 %v42285_v40 }
 0x788   :  { %33623 = vmatpush3.bf16.msra.mxu0 %v38101_v17 }
 0x789   :  { %33768 = vmatprep.subr.bf16.mxu0 %v42285_v40 }
 0x78a   :  { %33767 = vmatpush3.bf16.msra.mxu1 %v38101_v17 }
 0x78b   :  { %27784 = vmatmul.mubr.f32.vlgmr.msra.gmra.mrb[14].mxu0 %v38656_v33  ;;  %33774 = vmatprep.subr.bf16.mxu1 %v42285_v40 }
 0x78c   :  { %33770 = vmatpush3.bf16.msra.mxu0 %v37925_v10  ;;  %28004 = vmatprep.mubr.msk.f32.mxu0 %vm37764_vm0, %v42284_v25 }
 0x78d   :  { %27994 = vmatmul.mubr.f32.vlgmr.msra.gmra.mrb[14].mxu1 %v38660_v22  ;;  %33771 = vmatprep.subr.bf16.mxu0 %v42285_v40 }
 0x78e   :  { %33776 = vmatpush3.bf16.msra.mxu1 %v37935_v29  ;;  %28015 = vmatprep.mubr.msk.f32.mxu1 %vm37764_vm0, %v42284_v25 }
 0x78f   :  { %33777 = vmatprep.subr.bf16.mxu1 %v42285_v40 }
 0x790   :  { %33773 = vmatpush3.bf16.msra.mxu0 %v37928_v15 }
 0x791   :  { %33780 = vmatprep.subr.bf16.mxu0 %v42285_v40 }
 0x792   :  { %33779 = vmatpush3.bf16.msra.mxu1 %v37940_v30 }
 0x793   :  { %33786 = vmatprep.subr.bf16.mxu1 %v42285_v40 }
 0x85e   :  { %v3136_v31 = vpop.f32.mrb[14].mxu0 }
 0x85f   :  { %v3783_v49 = vmul.f32 %v3136_v31, %v3136_v31  ;;  %v27785_v50 = vpop.f32.mrb[15].mxu0  ;;  %v3782_v33 = vsub.f32 %v38653_v39, %v3136_v31 }
 0x860   :  { %v3778_v55 = vpop.f32.mrb[14].mxu1 }
 0x861   :  { %v3784_v57 = vsub.f32 %v3778_v55, %v3783_v49  ;;  %v27995_v60 = vpop.f32.mrb[15].mxu1 }
 0x863   :  { %v3785_v62 = vadd.f32 1e-05, %v3784_v57 }
 0x865   :  { %37504 = vrsqrt.f32 %v3785_v62 }
 0x86f   :  { %v37505_v41 = vpop.eup %37504 }
 0x870   :  { %v3787_v22 = vmul.f32 %v37505_v41, %v3782_v33 }
 0x872   :  { %37506 = vtanh.f32 %v3787_v22  ;;  %v3788_v14 = vmul.f32 0.5, %v3787_v22 }
 0x874   :  { %37508 = vtanh.f32 %v3788_v14 }
 0x87c   :  { %v37507_v34 = vpop.eup %37506 }
 0x87d   :  { %3795 = vrot.lane.b32.xlu0 %v37507_v34, %s37766_s10 }
 0x87e   :  { %v37509_v56 = vpop.eup %37508 }
 0x87f   :  { %v3790_v8 = vmul.f32 0.5, %v37509_v56 }
 0x881   :  { %v3791_v23 = vadd.f32 0.5, %v3790_v8 }
 0x883   :  { %v3793_v45 = vmul.f32 %v3791_v23, %v38566_v46 }
 0x8ef   :  { %v3796_v35 = vpop.permute.xlu0 %3795 }
 0x8f0   :  { %v3798_v36 = vmul.f32 %v3796_v35, %v3791_v23 }
 0x8f2   :  { %3800 = vrot.lane.b32.xlu1 %v3798_v36, %s37766_s10 }
 0x964   :  { %v3801_v49 = vpop.permute.xlu1 %3800 }
 0x965   :  { %v38885_v50 = vadd.f32 %v3801_v49, %v3793_v45 }
 0x967   :  { %3805 = vrot.lane.b32.xlu0 %v38885_v50, %s37767_s22  ;;  %v3812_v39 = vmul.f32 %v38885_v50, %v38885_v50 }
 0x969   :  { %3814 = vrot.lane.b32.xlu1 %v3812_v39, %s37767_s22 }
 0x9d9   :  { %v3806_v31 = vpop.permute.xlu0 %3805 }
 0x9da   :  { %v3808_v55 = vsel %vm174_vm1, %v3806_v31, 0.0 }
 0x9db   :  { %3809 = vadd.xlane.f32.xlu0 %v3808_v55  ;;  %v3815_v57 = vpop.permute.xlu1 %3814 }
 0x9dc   :  { %v3817_v60 = vsel %vm174_vm1, %v3815_v57, 0.0 }
 0x9dd   :  { %3818 = vadd.xlane.f32.xlu1 %v3817_v60 }
 0xa68   :  { %v3810_v46 = vpop.xlane.xlu0 %3809 }
 0xa69   :  { %v3811_v62 = vmul.f32 0.03125, %v3810_v46 }
 0xa6a   :  { %v3819_v33 = vpop.xlane.xlu1 %3818 }
 0xa6b   :  { %v3822_v41 = vmul.f32 %v3811_v62, %v3811_v62  ;;  %v3820_v22 = vmul.f32 0.03125, %v3819_v33  ;;  %v3821_v56 = vsub.f32 %v38885_v50, %v3811_v62 }
 0xa6d   :  { %v3823_v34 = vsub.f32 %v3820_v22, %v3822_v41 }
 0xa6f   :  { %v3824_v14 = vadd.f32 1e-05, %v3823_v34 }
 0xa71   :  { %37510 = vrsqrt.f32 %v3824_v14 }
 0xa7b   :  { %v37511_v8 = vpop.eup %37510 }
 0xa7c   :  { %v3826_v35 = vmul.f32 %v37511_v8, %v3821_v56 }
 0xa7e   :  { %v3827_v36 = vmul.f32 %v3826_v35, %v38584_v18 }
 0xa80   :  { %v3828_v45 = vadd.f32 %v3827_v36, %v38586_v20 }
 0xa82   :  { %37512 = vtanh.f32 %v3828_v45 }
 0xa8c   :  { %v37513_v49 = vpop.eup %37512 }
 0xa8d   :  { %3831 = vrot.lane.b32.xlu0 %v37513_v49, %s37766_s10 }
 0xaff   :  { %v3832_v39 = vpop.permute.xlu0 %3831 }
 0xb00   :  { %v3834_v31 = vmul.f32 %v3832_v39, %v3791_v23 }
 0xb02   :  { %3838 = vrot.lane.b32.xlu1 %v3834_v31, %s37768_s2 }
 0xb74   :  { %v3839_v55 = vpop.permute.xlu1 %3838 }
 0xb75   :  { %v3840_v57 = vsel %vm174_vm1, %v3839_v55, 0 }
 0xb76   :  { %v3911_v60 = vand.u32 4294901760, %v3840_v57 }
 0xb78   :  { %v3912_v46 = vsub.f32 %v3840_v57, %v3911_v60  ;;  %28016 = vmatmul.mubr.f32.vlgmr.msra.gmra.mrb[16].mxu1 %v3911_v60 }
 0xb79   :  { %33788 = vmatpush3.bf16.msra.mxu1 %v37925_v10  ;;  %28037 = vmatprep.mubr.msk.f32.mxu1 %vm37764_vm0, %v42284_v25 }
 0xb7a   :  { %v3913_v62 = vand.u32 4294901760, %v3912_v46  ;;  %33789 = vmatprep.subr.bf16.mxu1 %v42285_v40 }
 0xb7c   :  { %v3914_v33 = vsub.f32 %v3912_v46, %v3913_v62 }
 0xb7d   :  { %33791 = vmatpush3.bf16.msra.mxu1 %v37928_v15 }
 0xb7e   :  { %v3915_v23 = vand.u32 4294901760, %v3914_v33  ;;  %33798 = vmatprep.subr.bf16.mxu1 %v42285_v40 }
 0xb80   :  { %28038 = vmatmul.mubr.f32.vlgmr.msra.gmra.mrb[18].mxu1 %v3913_v62  ;;  %28005 = vmatmul.mubr.f32.vlgmr.msra.gmra.mrb[16].mxu0 %v3915_v23  ;;  %v3836_v62 = vld [vmem:[#allocation2 + $0x10] sm:$0xff] }
 0xb81   :  { %33782 = vmatpush3.bf16.msra.mxu0 %v37932_v26  ;;  %33800 = vmatpush3.bf16.msra.mxu1 %v37925_v10 }
 0xb82   :  { %33783 = vmatprep.subr.bf16.mxu0 %v42285_v40  ;;  %33801 = vmatprep.subr.bf16.mxu1 %v42285_v40 }
 0xb83   :  { %28026 = vmatprep.mubr.msk.f32.mxu0 %vm37764_vm0, %v42284_v25  ;;  %28059 = vmatprep.mubr.msk.f32.mxu1 %vm37764_vm0, %v42284_v25 }
 0xb85   :  { %33785 = vmatpush3.bf16.msra.mxu0 %v42309_v2  ;;  %33803 = vmatpush3.bf16.msra.mxu1 %v37928_v15 }
 0xb86   :  { %33792 = vmatprep.subr.bf16.mxu0 %v42285_v40  ;;  %33948 = vmatprep.subr.bf16.mxu1 %v42285_v40 }
 0xb88   :  { %28027 = vmatmul.mubr.f32.vlgmr.msra.gmra.mrb[18].mxu0 %v3912_v46  ;;  %28060 = vmatmul.mubr.f32.vlgmr.msra.gmra.mrb[20].mxu1 %v3911_v60 }
 0xb89   :  { %33794 = vmatpush3.bf16.msra.mxu0 %v42310_v3  ;;  %28048 = vmatprep.mubr.msk.f32.mxu0 %vm37764_vm0, %v42284_v25 }
 0xb8a   :  { %33795 = vmatprep.subr.bf16.mxu0 %v42285_v40  ;;  %33950 = vmatpush3.bf16.msra.mxu1 %v37983_v38 }
 0xb8b   :  { %33951 = vmatprep.subr.bf16.mxu1 %v42285_v40  ;;  %28304 = vmatprep.mubr.msk.f32.mxu1 %vm37764_vm0, %v42284_v25 }
 0xb8d   :  { %33797 = vmatpush3.bf16.msra.mxu0 %v42311_v61 }
 0xb8e   :  { %33804 = vmatprep.subr.bf16.mxu0 %v42285_v40  ;;  %33953 = vmatpush3.bf16.msra.mxu1 %v37999_v43 }
 0xb8f   :  { %33954 = vmatprep.subr.bf16.mxu1 %v42285_v40 }
 0xb90   :  { %28049 = vmatmul.mubr.f32.vlgmr.msra.gmra.mrb[20].mxu0 %v3911_v60 }
 0xb91   :  { %33806 = vmatpush3.bf16.msra.mxu0 %v37983_v38  ;;  %28094 = vmatprep.mubr.msk.f32.mxu0 %vm37764_vm0, %v42284_v25 }
 0xb92   :  { %33807 = vmatprep.subr.bf16.mxu0 %v42285_v40  ;;  %33956 = vmatpush3.bf16.msra.mxu1 %v38015_v48 }
 0xb93   :  { %33957 = vmatprep.subr.bf16.mxu1 %v42285_v40 }
 0xb95   :  { %33809 = vmatpush3.bf16.msra.mxu0 %v37999_v43 }
 0xb96   :  { %33810 = vmatprep.subr.bf16.mxu0 %v42285_v40  ;;  %33959 = vmatpush3.bf16.msra.mxu1 %v38031_v53 }
 0xb97   :  { %33960 = vmatprep.subr.bf16.mxu1 %v42285_v40 }
 0xb99   :  { %33812 = vmatpush3.bf16.msra.mxu0 %v38015_v48 }
 0xb9a   :  { %33813 = vmatprep.subr.bf16.mxu0 %v42285_v40  ;;  %33962 = vmatpush3.bf16.msra.mxu1 %v38047_v58 }
 0xb9b   :  { %33963 = vmatprep.subr.bf16.mxu1 %v42285_v40 }
 0xb9d   :  { %33815 = vmatpush3.bf16.msra.mxu0 %v38031_v53 }
 0xb9e   :  { %33816 = vmatprep.subr.bf16.mxu0 %v42285_v40  ;;  %33965 = vmatpush3.bf16.msra.mxu1 %v38063_v63 }
 0xb9f   :  { %33966 = vmatprep.subr.bf16.mxu1 %v42285_v40 }
 0xba1   :  { %33818 = vmatpush3.bf16.msra.mxu0 %v38047_v58 }
 0xba2   :  { %33819 = vmatprep.subr.bf16.mxu0 %v42285_v40  ;;  %33968 = vmatpush3.bf16.msra.mxu1 %v38079_v6 }
 0xba3   :  { %33969 = vmatprep.subr.bf16.mxu1 %v42285_v40 }
 0xba5   :  { %33821 = vmatpush3.bf16.msra.mxu0 %v38063_v63 }
 0xba6   :  { %33822 = vmatprep.subr.bf16.mxu0 %v42285_v40  ;;  %33971 = vmatpush3.bf16.msra.mxu1 %v38101_v17 }
 0xba7   :  { %33972 = vmatprep.subr.bf16.mxu1 %v42285_v40 }
 0xba9   :  { %33824 = vmatpush3.bf16.msra.mxu0 %v38079_v6 }
 0xbaa   :  { %33825 = vmatprep.subr.bf16.mxu0 %v42285_v40 }
 0xbad   :  { %33827 = vmatpush3.bf16.msra.mxu0 %v38101_v17 }
 0xbae   :  { %33828 = vmatprep.subr.bf16.mxu0 %v42285_v40 }
 0xc4b   :  { %v4008_v41 = vpop.f32.mrb[16].mxu1 }
 0xc4c   :  { %v28017_v22 = vpop.f32.mrb[17].mxu1 }
 0xc53   :  { %v4165_v34 = vpop.f32.mrb[18].mxu1  ;;  %v3917_v14 = vpop.f32.mrb[16].mxu0 }
 0xc54   :  { %v4009_v56 = vadd.f32 %v4008_v41, %v3917_v14  ;;  %v28039_v8 = vpop.f32.mrb[19].mxu1  ;;  %v28006_v35 = vpop.f32.mrb[17].mxu0 }
 0xc5b   :  { %v4088_v36 = vpop.f32.mrb[18].mxu0  ;;  %v4323_v45 = vpop.f32.mrb[20].mxu1 }
 0xc5c   :  { %v4089_v49 = vadd.f32 %v4088_v36, %v4009_v56  ;;  %v28028_v39 = vpop.f32.mrb[19].mxu0  ;;  %v28061_v31 = vpop.f32.mrb[21].mxu1 }
 0xc5e   :  { %v4166_v55 = vadd.f32 %v4165_v34, %v4089_v49 }
 0xc63   :  { %v4248_v57 = vpop.f32.mrb[20].mxu0 }
 0xc64   :  { %v4249_v60 = vadd.f32 %v4248_v57, %v4166_v55  ;;  %v28050_v46 = vpop.f32.mrb[21].mxu0 }
 0xc66   :  { %v4324_v33 = vadd.f32 %v4323_v45, %v4249_v60 }
 0xc68   :  { %v38960_v23 = vadd.f32 %v4324_v33, %v3836_v62 }
 0xc6a   :  { %v38963_v22 = vand.u32 4294901760, %v38960_v23  ;;  %v4969_v41 = vmul.f32 %v38960_v23, %v38960_v23 }
 0xc6c   :  { %v38967_v14 = vand.u32 4294901760, %v4969_v41  ;;  %v38971_v56 = vsub.f32 %v38960_v23, %v38963_v22 }
 0xc6e   :  { %v4411_v34 = vand.u32 4294901760, %v38971_v56  ;;  %v38975_v8 = vsub.f32 %v4969_v41, %v38967_v14 }
 0xc70   :  { %v4412_v35 = vsub.f32 %v38971_v56, %v4411_v34  ;;  %v5053_v36 = vand.u32 4294901760, %v38975_v8 }
 0xc72   :  { %v4413_v45 = vand.u32 4294901760, %v4412_v35  ;;  %v5054_v49 = vsub.f32 %v38975_v8, %v5053_v36 }
 0xc74   :  { %28095 = vmatmul.mubr.f32.vlgmr.msra.gmra.mrb[22].mxu0 %v4413_v45  ;;  %v5055_v39 = vand.u32 4294901760, %v5054_v49 }
 0xc75   :  { %33830 = vmatpush3.bf16.msra.mxu0 %v38125_v27  ;;  %28129 = vmatprep.mubr.msk.f32.mxu0 %vm37764_vm0, %v42284_v25 }
 0xc76   :  { %28305 = vmatmul.mubr.f32.vlgmr.msra.gmra.mrb[22].mxu1 %v5055_v39  ;;  %33831 = vmatprep.subr.bf16.mxu0 %v42285_v40 }
 0xc77   :  { %33974 = vmatpush3.bf16.msra.mxu1 %v38125_v27  ;;  %28339 = vmatprep.mubr.msk.f32.mxu1 %vm37764_vm0, %v42284_v25 }
 0xc78   :  { %33975 = vmatprep.subr.bf16.mxu1 %v42285_v40 }
 0xc79   :  { %33833 = vmatpush3.bf16.msra.mxu0 %v38145_v42 }
 0xc7a   :  { %33834 = vmatprep.subr.bf16.mxu0 %v42285_v40 }
 0xc7b   :  { %33977 = vmatpush3.bf16.msra.mxu1 %v38145_v42 }
 0xc7c   :  { %33978 = vmatprep.subr.bf16.mxu1 %v42285_v40 }
 0xc7d   :  { %33836 = vmatpush3.bf16.msra.mxu0 %v38165_v28 }
 0xc7e   :  { %33837 = vmatprep.subr.bf16.mxu0 %v42285_v40 }
 0xc7f   :  { %33980 = vmatpush3.bf16.msra.mxu1 %v38165_v28 }
 0xc80   :  { %33981 = vmatprep.subr.bf16.mxu1 %v42285_v40 }
 0xc81   :  { %33839 = vmatpush3.bf16.msra.mxu0 %v38201_v44 }
 0xc82   :  { %33840 = vmatprep.subr.bf16.mxu0 %v42285_v40 }
 0xc83   :  { %33983 = vmatpush3.bf16.msra.mxu1 %v38201_v44 }
 0xc84   :  { %33984 = vmatprep.subr.bf16.mxu1 %v42285_v40 }
 0xc85   :  { %33842 = vmatpush3.bf16.msra.mxu0 %v38205_v37 }
 0xc86   :  { %33843 = vmatprep.subr.bf16.mxu0 %v42285_v40 }
 0xc87   :  { %33986 = vmatpush3.bf16.msra.mxu1 %v38205_v37 }
 0xc88   :  { %33987 = vmatprep.subr.bf16.mxu1 %v42285_v40 }
 0xc89   :  { %33845 = vmatpush3.bf16.msra.mxu0 %v38225_v47 }
 0xc8a   :  { %33846 = vmatprep.subr.bf16.mxu0 %v42285_v40 }
 0xc8b   :  { %33989 = vmatpush3.bf16.msra.mxu1 %v38225_v47 }
 0xc8c   :  { %33990 = vmatprep.subr.bf16.mxu1 %v42285_v40 }
 0xc8d   :  { %33848 = vmatpush3.bf16.msra.mxu0 %v38251_v11 }
 0xc8e   :  { %33849 = vmatprep.subr.bf16.mxu0 %v42285_v40 }
 0xc8f   :  { %33992 = vmatpush3.bf16.msra.mxu1 %v38251_v11 }
 0xc90   :  { %33993 = vmatprep.subr.bf16.mxu1 %v42285_v40 }
 0xc91   :  { %33851 = vmatpush3.bf16.msra.mxu0 %v38253_v54 }
 0xc92   :  { %33852 = vmatprep.subr.bf16.mxu0 %v42285_v40 }
 0xc93   :  { %33995 = vmatpush3.bf16.msra.mxu1 %v38253_v54 }
 0xc94   :  { %28130 = vmatmul.mubr.f32.vlgmr.msra.gmra.mrb[22].mxu0 %v38963_v22  ;;  %33996 = vmatprep.subr.bf16.mxu1 %v42285_v40 }
 0xc95   :  { %33854 = vmatpush3.bf16.msra.mxu0 %v38257_v19  ;;  %28164 = vmatprep.mubr.msk.f32.mxu0 %vm37764_vm0, %v42284_v25 }
 0xc96   :  { %28340 = vmatmul.mubr.f32.vlgmr.msra.gmra.mrb[22].mxu1 %v38967_v14  ;;  %33855 = vmatprep.subr.bf16.mxu0 %v42285_v40 }
 0xc97   :  { %33998 = vmatpush3.bf16.msra.mxu1 %v38257_v19  ;;  %28374 = vmatprep.mubr.msk.f32.mxu1 %vm37764_vm0, %v42284_v25 }
 0xc98   :  { %33999 = vmatprep.subr.bf16.mxu1 %v42285_v40 }
 0xc99   :  { %33857 = vmatpush3.bf16.msra.mxu0 %v38261_v4 }
 0xc9a   :  { %33858 = vmatprep.subr.bf16.mxu0 %v42285_v40 }
 0xc9b   :  { %34001 = vmatpush3.bf16.msra.mxu1 %v38261_v4 }
 0xc9c   :  { %34002 = vmatprep.subr.bf16.mxu1 %v42285_v40 }
 0xc9d   :  { %33860 = vmatpush3.bf16.msra.mxu0 %v38265_v59 }
 0xc9e   :  { %33861 = vmatprep.subr.bf16.mxu0 %v42285_v40 }
 0xc9f   :  { %34004 = vmatpush3.bf16.msra.mxu1 %v38265_v59 }
 0xca0   :  { %34005 = vmatprep.subr.bf16.mxu1 %v42285_v40 }
 0xca1   :  { %33863 = vmatpush3.bf16.msra.mxu0 %v38269_v5 }
 0xca2   :  { %33864 = vmatprep.subr.bf16.mxu0 %v42285_v40 }
 0xca3   :  { %34007 = vmatpush3.bf16.msra.mxu1 %v38269_v5 }
 0xca4   :  { %34008 = vmatprep.subr.bf16.mxu1 %v42285_v40 }
 0xca5   :  { %33866 = vmatpush3.bf16.msra.mxu0 %v38273_v52 }
 0xca6   :  { %33867 = vmatprep.subr.bf16.mxu0 %v42285_v40 }
 0xca7   :  { %34010 = vmatpush3.bf16.msra.mxu1 %v38273_v52 }
 0xca8   :  { %34011 = vmatprep.subr.bf16.mxu1 %v42285_v40 }
 0xca9   :  { %33869 = vmatpush3.bf16.msra.mxu0 %v38277_v9 }
 0xcaa   :  { %33870 = vmatprep.subr.bf16.mxu0 %v42285_v40 }
 0xcab   :  { %34013 = vmatpush3.bf16.msra.mxu1 %v38277_v9 }
 0xcac   :  { %34014 = vmatprep.subr.bf16.mxu1 %v42285_v40 }
 0xcad   :  { %33872 = vmatpush3.bf16.msra.mxu0 %v38281_v12 }
 0xcae   :  { %33873 = vmatprep.subr.bf16.mxu0 %v42285_v40 }
 0xcaf   :  { %34016 = vmatpush3.bf16.msra.mxu1 %v38281_v12 }
 0xcb0   :  { %34017 = vmatprep.subr.bf16.mxu1 %v42285_v40 }
 0xcb1   :  { %33875 = vmatpush3.bf16.msra.mxu0 %v38285_v13 }
 0xcb2   :  { %33876 = vmatprep.subr.bf16.mxu0 %v42285_v40 }
 0xcb3   :  { %34019 = vmatpush3.bf16.msra.mxu1 %v38285_v13 }
 0xcb4   :  { %28165 = vmatmul.mubr.f32.vlgmr.msra.gmra.mrb[22].mxu0 %v38971_v56  ;;  %34020 = vmatprep.subr.bf16.mxu1 %v42285_v40 }
 0xcb5   :  { %33878 = vmatpush3.bf16.msra.mxu0 %v37983_v38  ;;  %28199 = vmatprep.mubr.msk.f32.mxu0 %vm37764_vm0, %v42284_v25 }
 0xcb6   :  { %28375 = vmatmul.mubr.f32.vlgmr.msra.gmra.mrb[22].mxu1 %v38975_v8  ;;  %33879 = vmatprep.subr.bf16.mxu0 %v42285_v40 }
 0xcb7   :  { %34022 = vmatpush3.bf16.msra.mxu1 %v37983_v38  ;;  %28409 = vmatprep.mubr.msk.f32.mxu1 %vm37764_vm0, %v42284_v25 }
 0xcb8   :  { %34023 = vmatprep.subr.bf16.mxu1 %v42285_v40 }
 0xcb9   :  { %33881 = vmatpush3.bf16.msra.mxu0 %v37999_v43 }
 0xcba   :  { %33882 = vmatprep.subr.bf16.mxu0 %v42285_v40 }
 0xcbb   :  { %34025 = vmatpush3.bf16.msra.mxu1 %v37999_v43 }
 0xcbc   :  { %34026 = vmatprep.subr.bf16.mxu1 %v42285_v40 }
 0xcbd   :  { %33884 = vmatpush3.bf16.msra.mxu0 %v38015_v48 }
 0xcbe   :  { %33885 = vmatprep.subr.bf16.mxu0 %v42285_v40 }
 0xcbf   :  { %34028 = vmatpush3.bf16.msra.mxu1 %v38015_v48 }
 0xcc0   :  { %34029 = vmatprep.subr.bf16.mxu1 %v42285_v40 }
 0xcc1   :  { %33887 = vmatpush3.bf16.msra.mxu0 %v38031_v53 }
 0xcc2   :  { %33888 = vmatprep.subr.bf16.mxu0 %v42285_v40 }
 0xcc3   :  { %34031 = vmatpush3.bf16.msra.mxu1 %v38031_v53 }
 0xcc4   :  { %34032 = vmatprep.subr.bf16.mxu1 %v42285_v40 }
 0xcc5   :  { %33890 = vmatpush3.bf16.msra.mxu0 %v38047_v58 }
 0xcc6   :  { %33891 = vmatprep.subr.bf16.mxu0 %v42285_v40 }
 0xcc7   :  { %34034 = vmatpush3.bf16.msra.mxu1 %v38047_v58 }
 0xcc8   :  { %34035 = vmatprep.subr.bf16.mxu1 %v42285_v40 }
 0xcc9   :  { %33893 = vmatpush3.bf16.msra.mxu0 %v38063_v63 }
 0xcca   :  { %33894 = vmatprep.subr.bf16.mxu0 %v42285_v40 }
 0xccb   :  { %34037 = vmatpush3.bf16.msra.mxu1 %v38063_v63 }
 0xccc   :  { %34038 = vmatprep.subr.bf16.mxu1 %v42285_v40 }
 0xccd   :  { %33896 = vmatpush3.bf16.msra.mxu0 %v38079_v6 }
 0xcce   :  { %33897 = vmatprep.subr.bf16.mxu0 %v42285_v40 }
 0xccf   :  { %34040 = vmatpush3.bf16.msra.mxu1 %v38079_v6 }
 0xcd0   :  { %34041 = vmatprep.subr.bf16.mxu1 %v42285_v40 }
 0xcd1   :  { %33899 = vmatpush3.bf16.msra.mxu0 %v38101_v17 }
 0xcd2   :  { %33900 = vmatprep.subr.bf16.mxu0 %v42285_v40 }
 0xcd3   :  { %34043 = vmatpush3.bf16.msra.mxu1 %v38101_v17 }
 0xcd4   :  { %28200 = vmatmul.mubr.f32.vlgmr.msra.gmra.mrb[22].mxu0 %v4411_v34  ;;  %34044 = vmatprep.subr.bf16.mxu1 %v42285_v40 }
 0xcd5   :  { %33902 = vmatpush3.bf16.msra.mxu0 %v38424_v51  ;;  %28234 = vmatprep.mubr.msk.f32.mxu0 %vm37764_vm0, %v42284_v25 }
 0xcd6   :  { %28410 = vmatmul.mubr.f32.vlgmr.msra.gmra.mrb[22].mxu1 %v5053_v36  ;;  %33903 = vmatprep.subr.bf16.mxu0 %v42285_v40 }
 0xcd7   :  { %34046 = vmatpush3.bf16.msra.mxu1 %v38424_v51  ;;  %28444 = vmatprep.mubr.msk.f32.mxu1 %vm37764_vm0, %v42284_v25 }
 0xcd8   :  { %34047 = vmatprep.subr.bf16.mxu1 %v42285_v40 }
 0xcd9   :  { %33905 = vmatpush3.bf16.msra.mxu0 %v38436_v7 }
 0xcda   :  { %33906 = vmatprep.subr.bf16.mxu0 %v42285_v40 }
 0xcdb   :  { %34049 = vmatpush3.bf16.msra.mxu1 %v38436_v7 }
 0xcdc   :  { %34050 = vmatprep.subr.bf16.mxu1 %v42285_v40 }
 0xcdd   :  { %33908 = vmatpush3.bf16.msra.mxu0 %v38452_v21 }
 0xcde   :  { %33909 = vmatprep.subr.bf16.mxu0 %v42285_v40 }
 0xcdf   :  { %34052 = vmatpush3.bf16.msra.mxu1 %v38452_v21 }
 0xce0   :  { %34053 = vmatprep.subr.bf16.mxu1 %v42285_v40 }
 0xce1   :  { %33911 = vmatpush3.bf16.msra.mxu0 %v38462_v16 }
 0xce2   :  { %33912 = vmatprep.subr.bf16.mxu0 %v42285_v40 }
 0xce3   :  { %34055 = vmatpush3.bf16.msra.mxu1 %v38462_v16 }
 0xce4   :  { %34056 = vmatprep.subr.bf16.mxu1 %v42285_v40 }
 0xce5   :  { %33914 = vmatpush3.bf16.msra.mxu0 %v38472_v24 }
 0xce6   :  { %33915 = vmatprep.subr.bf16.mxu0 %v42285_v40 }
 0xce7   :  { %34058 = vmatpush3.bf16.msra.mxu1 %v38472_v24 }
 0xce8   :  { %34059 = vmatprep.subr.bf16.mxu1 %v42285_v40 }
 0xce9   :  { %33917 = vmatpush3.bf16.msra.mxu0 %v38482_v0 }
 0xcea   :  { %33918 = vmatprep.subr.bf16.mxu0 %v42285_v40 }
 0xceb   :  { %34061 = vmatpush3.bf16.msra.mxu1 %v38482_v0 }
 0xcec   :  { %34062 = vmatprep.subr.bf16.mxu1 %v42285_v40 }
 0xced   :  { %33920 = vmatpush3.bf16.msra.mxu0 %v38492_v1 }
 0xcee   :  { %33921 = vmatprep.subr.bf16.mxu0 %v42285_v40 }
 0xcef   :  { %34064 = vmatpush3.bf16.msra.mxu1 %v38492_v1 }
 0xcf0   :  { %34065 = vmatprep.subr.bf16.mxu1 %v42285_v40 }
 0xcf1   :  { %33923 = vmatpush3.bf16.msra.mxu0 %v38502_v32 }
 0xcf2   :  { %33924 = vmatprep.subr.bf16.mxu0 %v42285_v40 }
 0xcf3   :  { %34067 = vmatpush3.bf16.msra.mxu1 %v38502_v32 }
 0xcf4   :  { %28235 = vmatmul.mubr.f32.vlgmr.msra.gmra.mrb[22].mxu0 %v38963_v22  ;;  %34068 = vmatprep.subr.bf16.mxu1 %v42285_v40 }
 0xcf5   :  { %33926 = vmatpush3.bf16.msra.mxu0 %v37983_v38  ;;  %28269 = vmatprep.mubr.msk.f32.mxu0 %vm37764_vm0, %v42284_v25 }
 0xcf6   :  { %28445 = vmatmul.mubr.f32.vlgmr.msra.gmra.mrb[22].mxu1 %v38967_v14  ;;  %33927 = vmatprep.subr.bf16.mxu0 %v42285_v40 }
 0xcf7   :  { %34070 = vmatpush3.bf16.msra.mxu1 %v37983_v38  ;;  %28479 = vmatprep.mubr.msk.f32.mxu1 %vm37764_vm0, %v42284_v25 }
 0xcf8   :  { %34071 = vmatprep.subr.bf16.mxu1 %v42285_v40 }
 0xcf9   :  { %33929 = vmatpush3.bf16.msra.mxu0 %v37999_v43 }
 0xcfa   :  { %33930 = vmatprep.subr.bf16.mxu0 %v42285_v40 }
 0xcfb   :  { %34073 = vmatpush3.bf16.msra.mxu1 %v37999_v43 }
 0xcfc   :  { %34074 = vmatprep.subr.bf16.mxu1 %v42285_v40 }
 0xcfd   :  { %33932 = vmatpush3.bf16.msra.mxu0 %v38015_v48 }
 0xcfe   :  { %33933 = vmatprep.subr.bf16.mxu0 %v42285_v40 }
 0xcff   :  { %34076 = vmatpush3.bf16.msra.mxu1 %v38015_v48 }
 0xd00   :  { %34077 = vmatprep.subr.bf16.mxu1 %v42285_v40 }
 0xd01   :  { %33935 = vmatpush3.bf16.msra.mxu0 %v38031_v53 }
 0xd02   :  { %33936 = vmatprep.subr.bf16.mxu0 %v42285_v40 }
 0xd03   :  { %34079 = vmatpush3.bf16.msra.mxu1 %v38031_v53 }
 0xd04   :  { %34080 = vmatprep.subr.bf16.mxu1 %v42285_v40 }
 0xd05   :  { %33938 = vmatpush3.bf16.msra.mxu0 %v38047_v58 }
 0xd06   :  { %33939 = vmatprep.subr.bf16.mxu0 %v42285_v40 }
 0xd07   :  { %34082 = vmatpush3.bf16.msra.mxu1 %v38047_v58 }
 0xd08   :  { %34083 = vmatprep.subr.bf16.mxu1 %v42285_v40 }
 0xd09   :  { %33941 = vmatpush3.bf16.msra.mxu0 %v38063_v63 }
 0xd0a   :  { %33942 = vmatprep.subr.bf16.mxu0 %v42285_v40 }
 0xd0b   :  { %34085 = vmatpush3.bf16.msra.mxu1 %v38063_v63 }
 0xd0c   :  { %34086 = vmatprep.subr.bf16.mxu1 %v42285_v40 }
 0xd0d   :  { %33944 = vmatpush3.bf16.msra.mxu0 %v38079_v6 }
 0xd0e   :  { %33945 = vmatprep.subr.bf16.mxu0 %v42285_v40 }
 0xd0f   :  { %34088 = vmatpush3.bf16.msra.mxu1 %v38079_v6 }
 0xd10   :  { %34089 = vmatprep.subr.bf16.mxu1 %v42285_v40 }
 0xd11   :  { %33947 = vmatpush3.bf16.msra.mxu0 %v38101_v17 }
 0xd12   :  { %34092 = vmatprep.subr.bf16.mxu0 %v42285_v40 }
 0xd13   :  { %34091 = vmatpush3.bf16.msra.mxu1 %v38101_v17 }
 0xd14   :  { %28270 = vmatmul.mubr.f32.vlgmr.msra.gmra.mrb[22].mxu0 %v38963_v22  ;;  %34098 = vmatprep.subr.bf16.mxu1 %v42285_v40 }
 0xd15   :  { %34094 = vmatpush3.bf16.msra.mxu0 %v37925_v10  ;;  %28490 = vmatprep.mubr.msk.f32.mxu0 %vm37764_vm0, %v42284_v25 }
 0xd16   :  { %28480 = vmatmul.mubr.f32.vlgmr.msra.gmra.mrb[22].mxu1 %v38967_v14  ;;  %34095 = vmatprep.subr.bf16.mxu0 %v42285_v40 }
 0xd17   :  { %34100 = vmatpush3.bf16.msra.mxu1 %v37935_v29  ;;  %28501 = vmatprep.mubr.msk.f32.mxu1 %vm37764_vm0, %v42284_v25 }
 0xd18   :  { %34101 = vmatprep.subr.bf16.mxu1 %v42285_v40 }
 0xd19   :  { %34097 = vmatpush3.bf16.msra.mxu0 %v37928_v15 }
 0xd1a   :  { %34104 = vmatprep.subr.bf16.mxu0 %v42285_v40 }
 0xd1b   :  { %34103 = vmatpush3.bf16.msra.mxu1 %v37940_v30 }
 0xd1c   :  { %34110 = vmatprep.subr.bf16.mxu1 %v42285_v40 }
 0xde7   :  { %v4965_v31 = vpop.f32.mrb[22].mxu0 }
 0xde8   :  { %v5612_v55 = vmul.f32 %v4965_v31, %v4965_v31  ;;  %v28271_v57 = vpop.f32.mrb[23].mxu0  ;;  %v5611_v22 = vsub.f32 %v38960_v23, %v4965_v31 }
 0xde9   :  { %v5607_v60 = vpop.f32.mrb[22].mxu1 }
 0xdea   :  { %v5613_v46 = vsub.f32 %v5607_v60, %v5612_v55  ;;  %v28481_v62 = vpop.f32.mrb[23].mxu1 }
 0xdec   :  { %v5614_v33 = vadd.f32 1e-05, %v5613_v46 }
 0xdee   :  { %37514 = vrsqrt.f32 %v5614_v33 }
 0xdf8   :  { %v37515_v41 = vpop.eup %37514 }
 0xdf9   :  { %v5616_v14 = vmul.f32 %v37515_v41, %v5611_v22 }
 0xdfb   :  { %37516 = vtanh.f32 %v5616_v14  ;;  %v5617_v34 = vmul.f32 0.5, %v5616_v14 }
 0xdfd   :  { %37518 = vtanh.f32 %v5617_v34 }
 0xe05   :  { %v37517_v56 = vpop.eup %37516 }
 0xe06   :  { %5624 = vrot.lane.b32.xlu0 %v37517_v56, %s37766_s10 }
 0xe07   :  { %v37519_v8 = vpop.eup %37518 }
 0xe08   :  { %v5619_v35 = vmul.f32 0.5, %v37519_v8 }
 0xe0a   :  { %v5620_v36 = vadd.f32 0.5, %v5619_v35 }
 0xe0c   :  { %v5622_v39 = vmul.f32 %v5620_v36, %v38885_v50 }
 0xe78   :  { %v5625_v45 = vpop.permute.xlu0 %5624 }
 0xe79   :  { %v5627_v49 = vmul.f32 %v5625_v45, %v5620_v36 }
 0xe7b   :  { %5629 = vrot.lane.b32.xlu1 %v5627_v49, %s37766_s10 }
 0xeed   :  { %v5630_v55 = vpop.permute.xlu1 %5629 }
 0xeee   :  { %v39192_v57 = vadd.f32 %v5630_v55, %v5622_v39 }
 0xef0   :  { %5634 = vrot.lane.b32.xlu0 %v39192_v57, %s37767_s22  ;;  %v5641_v23 = vmul.f32 %v39192_v57, %v39192_v57 }
 0xef2   :  { %5643 = vrot.lane.b32.xlu1 %v5641_v23, %s37767_s22 }
 0xf62   :  { %v5635_v31 = vpop.permute.xlu0 %5634 }
 0xf63   :  { %v5637_v60 = vsel %vm174_vm1, %v5635_v31, 0.0 }
 0xf64   :  { %5638 = vadd.xlane.f32.xlu0 %v5637_v60  ;;  %v5644_v46 = vpop.permute.xlu1 %5643 }
 0xf65   :  { %v5646_v62 = vsel %vm174_vm1, %v5644_v46, 0.0 }
 0xf66   :  { %5647 = vadd.xlane.f32.xlu1 %v5646_v62 }
 0xff1   :  { %v5639_v50 = vpop.xlane.xlu0 %5638 }
 0xff2   :  { %v5640_v33 = vmul.f32 0.03125, %v5639_v50 }
 0xff3   :  { %v5648_v22 = vpop.xlane.xlu1 %5647 }
 0xff4   :  { %v5651_v41 = vmul.f32 %v5640_v33, %v5640_v33  ;;  %v5649_v14 = vmul.f32 0.03125, %v5648_v22  ;;  %v5650_v8 = vsub.f32 %v39192_v57, %v5640_v33 }
 0xff6   :  { %v5652_v56 = vsub.f32 %v5649_v14, %v5651_v41 }
 0xff8   :  { %v5653_v34 = vadd.f32 1e-05, %v5652_v56 }
 0xffa   :  { %37520 = vrsqrt.f32 %v5653_v34 }
0x1004   :  { %v37521_v35 = vpop.eup %37520 }
0x1005   :  { %v5655_v45 = vmul.f32 %v37521_v35, %v5650_v8 }
0x1007   :  { %v5656_v49 = vmul.f32 %v5655_v45, %v38584_v18 }
0x1009   :  { %v5657_v39 = vadd.f32 %v5656_v49, %v38586_v20 }
0x100b   :  { %37522 = vtanh.f32 %v5657_v39 }
0x1015   :  { %v37523_v55 = vpop.eup %37522 }
0x1016   :  { %5660 = vrot.lane.b32.xlu0 %v37523_v55, %s37766_s10 }
0x1088   :  { %v5661_v23 = vpop.permute.xlu0 %5660 }
0x1089   :  { %v5663_v31 = vmul.f32 %v5661_v23, %v5620_v36 }
0x108b   :  { %5667 = vrot.lane.b32.xlu1 %v5663_v31, %s37768_s2 }
0x10fd   :  { %v5668_v60 = vpop.permute.xlu1 %5667 }
0x10fe   :  { %v5669_v46 = vsel %vm174_vm1, %v5668_v60, 0 }
0x10ff   :  { %v5740_v62 = vand.u32 4294901760, %v5669_v46 }
0x1101   :  { %v5741_v50 = vsub.f32 %v5669_v46, %v5740_v62  ;;  %28502 = vmatmul.mubr.f32.vlgmr.msra.gmra.mrb[24].mxu1 %v5740_v62 }
0x1102   :  { %34112 = vmatpush3.bf16.msra.mxu1 %v37925_v10  ;;  %28523 = vmatprep.mubr.msk.f32.mxu1 %vm37764_vm0, %v42284_v25 }
0x1103   :  { %v5742_v33 = vand.u32 4294901760, %v5741_v50  ;;  %34113 = vmatprep.subr.bf16.mxu1 %v42285_v40 }
0x1105   :  { %v5743_v22 = vsub.f32 %v5741_v50, %v5742_v33 }
0x1106   :  { %34115 = vmatpush3.bf16.msra.mxu1 %v37928_v15 }
0x1107   :  { %v5744_v36 = vand.u32 4294901760, %v5743_v22  ;;  %34122 = vmatprep.subr.bf16.mxu1 %v42285_v40 }
0x1109   :  { %28524 = vmatmul.mubr.f32.vlgmr.msra.gmra.mrb[26].mxu1 %v5742_v33  ;;  %28491 = vmatmul.mubr.f32.vlgmr.msra.gmra.mrb[24].mxu0 %v5744_v36  ;;  %v5665_v33 = vld [vmem:[#allocation2 + $0x18] sm:$0xff] }
0x110a   :  { %34106 = vmatpush3.bf16.msra.mxu0 %v37932_v26  ;;  %34124 = vmatpush3.bf16.msra.mxu1 %v37925_v10 }
0x110b   :  { %34107 = vmatprep.subr.bf16.mxu0 %v42285_v40  ;;  %34125 = vmatprep.subr.bf16.mxu1 %v42285_v40 }
0x110c   :  { %28512 = vmatprep.mubr.msk.f32.mxu0 %vm37764_vm0, %v42284_v25  ;;  %28545 = vmatprep.mubr.msk.f32.mxu1 %vm37764_vm0, %v42284_v25 }
0x110e   :  { %34109 = vmatpush3.bf16.msra.mxu0 %v42309_v2  ;;  %34127 = vmatpush3.bf16.msra.mxu1 %v37928_v15 }
0x110f   :  { %34116 = vmatprep.subr.bf16.mxu0 %v42285_v40  ;;  %34272 = vmatprep.subr.bf16.mxu1 %v42285_v40 }
0x1111   :  { %28513 = vmatmul.mubr.f32.vlgmr.msra.gmra.mrb[26].mxu0 %v5741_v50  ;;  %28546 = vmatmul.mubr.f32.vlgmr.msra.gmra.mrb[28].mxu1 %v5740_v62 }
0x1112   :  { %34118 = vmatpush3.bf16.msra.mxu0 %v42310_v3  ;;  %28534 = vmatprep.mubr.msk.f32.mxu0 %vm37764_vm0, %v42284_v25 }
0x1113   :  { %34119 = vmatprep.subr.bf16.mxu0 %v42285_v40  ;;  %34274 = vmatpush3.bf16.msra.mxu1 %v37983_v38 }
0x1114   :  { %34275 = vmatprep.subr.bf16.mxu1 %v42285_v40  ;;  %28790 = vmatprep.mubr.msk.f32.mxu1 %vm37764_vm0, %v42284_v25 }
0x1116   :  { %34121 = vmatpush3.bf16.msra.mxu0 %v42311_v61 }
0x1117   :  { %34128 = vmatprep.subr.bf16.mxu0 %v42285_v40  ;;  %34277 = vmatpush3.bf16.msra.mxu1 %v37999_v43 }
0x1118   :  { %34278 = vmatprep.subr.bf16.mxu1 %v42285_v40 }
0x1119   :  { %28535 = vmatmul.mubr.f32.vlgmr.msra.gmra.mrb[28].mxu0 %v5740_v62 }
0x111a   :  { %34130 = vmatpush3.bf16.msra.mxu0 %v37983_v38  ;;  %28580 = vmatprep.mubr.msk.f32.mxu0 %vm37764_vm0, %v42284_v25 }
0x111b   :  { %34131 = vmatprep.subr.bf16.mxu0 %v42285_v40  ;;  %34280 = vmatpush3.bf16.msra.mxu1 %v38015_v48 }
0x111c   :  { %34281 = vmatprep.subr.bf16.mxu1 %v42285_v40 }
0x111e   :  { %34133 = vmatpush3.bf16.msra.mxu0 %v37999_v43 }
0x111f   :  { %34134 = vmatprep.subr.bf16.mxu0 %v42285_v40  ;;  %34283 = vmatpush3.bf16.msra.mxu1 %v38031_v53 }
0x1120   :  { %34284 = vmatprep.subr.bf16.mxu1 %v42285_v40 }
0x1122   :  { %34136 = vmatpush3.bf16.msra.mxu0 %v38015_v48 }
0x1123   :  { %34137 = vmatprep.subr.bf16.mxu0 %v42285_v40  ;;  %34286 = vmatpush3.bf16.msra.mxu1 %v38047_v58 }
0x1124   :  { %34287 = vmatprep.subr.bf16.mxu1 %v42285_v40 }
0x1126   :  { %34139 = vmatpush3.bf16.msra.mxu0 %v38031_v53 }
0x1127   :  { %34140 = vmatprep.subr.bf16.mxu0 %v42285_v40  ;;  %34289 = vmatpush3.bf16.msra.mxu1 %v38063_v63 }
0x1128   :  { %34290 = vmatprep.subr.bf16.mxu1 %v42285_v40 }
0x112a   :  { %34142 = vmatpush3.bf16.msra.mxu0 %v38047_v58 }
0x112b   :  { %34143 = vmatprep.subr.bf16.mxu0 %v42285_v40  ;;  %34292 = vmatpush3.bf16.msra.mxu1 %v38079_v6 }
0x112c   :  { %34293 = vmatprep.subr.bf16.mxu1 %v42285_v40 }
0x112e   :  { %34145 = vmatpush3.bf16.msra.mxu0 %v38063_v63 }
0x112f   :  { %34146 = vmatprep.subr.bf16.mxu0 %v42285_v40  ;;  %34295 = vmatpush3.bf16.msra.mxu1 %v38101_v17 }
0x1130   :  { %34296 = vmatprep.subr.bf16.mxu1 %v42285_v40 }
0x1132   :  { %34148 = vmatpush3.bf16.msra.mxu0 %v38079_v6 }
0x1133   :  { %34149 = vmatprep.subr.bf16.mxu0 %v42285_v40 }
0x1136   :  { %34151 = vmatpush3.bf16.msra.mxu0 %v38101_v17 }
0x1137   :  { %34152 = vmatprep.subr.bf16.mxu0 %v42285_v40 }
0x11d4   :  { %v5837_v41 = vpop.f32.mrb[24].mxu1 }
0x11d5   :  { %v28503_v14 = vpop.f32.mrb[25].mxu1 }
0x11dc   :  { %v5994_v56 = vpop.f32.mrb[26].mxu1  ;;  %v5746_v34 = vpop.f32.mrb[24].mxu0 }
0x11dd   :  { %v5838_v8 = vadd.f32 %v5837_v41, %v5746_v34  ;;  %v28525_v35 = vpop.f32.mrb[27].mxu1  ;;  %v28492_v45 = vpop.f32.mrb[25].mxu0 }
0x11e4   :  { %v5917_v49 = vpop.f32.mrb[26].mxu0  ;;  %v6152_v39 = vpop.f32.mrb[28].mxu1 }
0x11e5   :  { %v5918_v55 = vadd.f32 %v5917_v49, %v5838_v8  ;;  %v28514_v23 = vpop.f32.mrb[27].mxu0  ;;  %v28547_v31 = vpop.f32.mrb[29].mxu1 }
0x11e7   :  { %v5995_v60 = vadd.f32 %v5994_v56, %v5918_v55 }
0x11ec   :  { %v6077_v46 = vpop.f32.mrb[28].mxu0 }
0x11ed   :  { %v6078_v62 = vadd.f32 %v6077_v46, %v5995_v60  ;;  %v28536_v50 = vpop.f32.mrb[29].mxu0 }
0x11ef   :  { %v6153_v22 = vadd.f32 %v6152_v39, %v6078_v62 }
0x11f1   :  { %v39267_v36 = vadd.f32 %v6153_v22, %v5665_v33 }
0x11f3   :  { %v39270_v14 = vand.u32 4294901760, %v39267_v36  ;;  %v6798_v41 = vmul.f32 %v39267_v36, %v39267_v36 }
0x11f5   :  { %v39274_v34 = vand.u32 4294901760, %v6798_v41  ;;  %v39278_v8 = vsub.f32 %v39267_v36, %v39270_v14 }
0x11f7   :  { %v6240_v56 = vand.u32 4294901760, %v39278_v8  ;;  %v39282_v35 = vsub.f32 %v6798_v41, %v39274_v34 }
0x11f9   :  { %v6241_v45 = vsub.f32 %v39278_v8, %v6240_v56  ;;  %v6882_v49 = vand.u32 4294901760, %v39282_v35 }
0x11fb   :  { %v6242_v39 = vand.u32 4294901760, %v6241_v45  ;;  %v6883_v55 = vsub.f32 %v39282_v35, %v6882_v49 }
0x11fd   :  { %28581 = vmatmul.mubr.f32.vlgmr.msra.gmra.mrb[30].mxu0 %v6242_v39  ;;  %v6884_v23 = vand.u32 4294901760, %v6883_v55 }
0x11fe   :  { %34154 = vmatpush3.bf16.msra.mxu0 %v38125_v27  ;;  %28615 = vmatprep.mubr.msk.f32.mxu0 %vm37764_vm0, %v42284_v25 }
0x11ff   :  { %28791 = vmatmul.mubr.f32.vlgmr.msra.gmra.mrb[30].mxu1 %v6884_v23  ;;  %34155 = vmatprep.subr.bf16.mxu0 %v42285_v40 }
0x1200   :  { %34298 = vmatpush3.bf16.msra.mxu1 %v38125_v27  ;;  %28825 = vmatprep.mubr.msk.f32.mxu1 %vm37764_vm0, %v42284_v25 }
0x1201   :  { %34299 = vmatprep.subr.bf16.mxu1 %v42285_v40 }
0x1202   :  { %34157 = vmatpush3.bf16.msra.mxu0 %v38145_v42 }
0x1203   :  { %34158 = vmatprep.subr.bf16.mxu0 %v42285_v40 }
0x1204   :  { %34301 = vmatpush3.bf16.msra.mxu1 %v38145_v42 }
0x1205   :  { %34302 = vmatprep.subr.bf16.mxu1 %v42285_v40 }
0x1206   :  { %34160 = vmatpush3.bf16.msra.mxu0 %v38165_v28 }
0x1207   :  { %34161 = vmatprep.subr.bf16.mxu0 %v42285_v40 }
0x1208   :  { %34304 = vmatpush3.bf16.msra.mxu1 %v38165_v28 }
0x1209   :  { %34305 = vmatprep.subr.bf16.mxu1 %v42285_v40 }
0x120a   :  { %34163 = vmatpush3.bf16.msra.mxu0 %v38201_v44 }
0x120b   :  { %34164 = vmatprep.subr.bf16.mxu0 %v42285_v40 }
0x120c   :  { %34307 = vmatpush3.bf16.msra.mxu1 %v38201_v44 }
0x120d   :  { %34308 = vmatprep.subr.bf16.mxu1 %v42285_v40 }
0x120e   :  { %34166 = vmatpush3.bf16.msra.mxu0 %v38205_v37 }
0x120f   :  { %34167 = vmatprep.subr.bf16.mxu0 %v42285_v40 }
0x1210   :  { %34310 = vmatpush3.bf16.msra.mxu1 %v38205_v37 }
0x1211   :  { %34311 = vmatprep.subr.bf16.mxu1 %v42285_v40 }
0x1212   :  { %34169 = vmatpush3.bf16.msra.mxu0 %v38225_v47 }
0x1213   :  { %34170 = vmatprep.subr.bf16.mxu0 %v42285_v40 }
0x1214   :  { %34313 = vmatpush3.bf16.msra.mxu1 %v38225_v47 }
0x1215   :  { %34314 = vmatprep.subr.bf16.mxu1 %v42285_v40 }
0x1216   :  { %34172 = vmatpush3.bf16.msra.mxu0 %v38251_v11 }
0x1217   :  { %34173 = vmatprep.subr.bf16.mxu0 %v42285_v40 }
0x1218   :  { %34316 = vmatpush3.bf16.msra.mxu1 %v38251_v11 }
0x1219   :  { %34317 = vmatprep.subr.bf16.mxu1 %v42285_v40 }
0x121a   :  { %34175 = vmatpush3.bf16.msra.mxu0 %v38253_v54 }
0x121b   :  { %34176 = vmatprep.subr.bf16.mxu0 %v42285_v40 }
0x121c   :  { %34319 = vmatpush3.bf16.msra.mxu1 %v38253_v54 }
0x121d   :  { %28616 = vmatmul.mubr.f32.vlgmr.msra.gmra.mrb[30].mxu0 %v39270_v14  ;;  %34320 = vmatprep.subr.bf16.mxu1 %v42285_v40 }
0x121e   :  { %34178 = vmatpush3.bf16.msra.mxu0 %v38257_v19  ;;  %28650 = vmatprep.mubr.msk.f32.mxu0 %vm37764_vm0, %v42284_v25 }
0x121f   :  { %28826 = vmatmul.mubr.f32.vlgmr.msra.gmra.mrb[30].mxu1 %v39274_v34  ;;  %34179 = vmatprep.subr.bf16.mxu0 %v42285_v40 }
0x1220   :  { %34322 = vmatpush3.bf16.msra.mxu1 %v38257_v19  ;;  %28860 = vmatprep.mubr.msk.f32.mxu1 %vm37764_vm0, %v42284_v25 }
0x1221   :  { %34323 = vmatprep.subr.bf16.mxu1 %v42285_v40 }
0x1222   :  { %34181 = vmatpush3.bf16.msra.mxu0 %v38261_v4 }
0x1223   :  { %34182 = vmatprep.subr.bf16.mxu0 %v42285_v40 }
0x1224   :  { %34325 = vmatpush3.bf16.msra.mxu1 %v38261_v4 }
0x1225   :  { %34326 = vmatprep.subr.bf16.mxu1 %v42285_v40 }
0x1226   :  { %34184 = vmatpush3.bf16.msra.mxu0 %v38265_v59 }
0x1227   :  { %34185 = vmatprep.subr.bf16.mxu0 %v42285_v40 }
0x1228   :  { %34328 = vmatpush3.bf16.msra.mxu1 %v38265_v59 }
0x1229   :  { %34329 = vmatprep.subr.bf16.mxu1 %v42285_v40 }
0x122a   :  { %34187 = vmatpush3.bf16.msra.mxu0 %v38269_v5 }
0x122b   :  { %34188 = vmatprep.subr.bf16.mxu0 %v42285_v40 }
0x122c   :  { %34331 = vmatpush3.bf16.msra.mxu1 %v38269_v5 }
0x122d   :  { %34332 = vmatprep.subr.bf16.mxu1 %v42285_v40 }
0x122e   :  { %34190 = vmatpush3.bf16.msra.mxu0 %v38273_v52 }
0x122f   :  { %34191 = vmatprep.subr.bf16.mxu0 %v42285_v40 }
0x1230   :  { %34334 = vmatpush3.bf16.msra.mxu1 %v38273_v52 }
0x1231   :  { %34335 = vmatprep.subr.bf16.mxu1 %v42285_v40 }
0x1232   :  { %34193 = vmatpush3.bf16.msra.mxu0 %v38277_v9 }
0x1233   :  { %34194 = vmatprep.subr.bf16.mxu0 %v42285_v40 }
0x1234   :  { %34337 = vmatpush3.bf16.msra.mxu1 %v38277_v9 }
0x1235   :  { %34338 = vmatprep.subr.bf16.mxu1 %v42285_v40 }
0x1236   :  { %34196 = vmatpush3.bf16.msra.mxu0 %v38281_v12 }
0x1237   :  { %34197 = vmatprep.subr.bf16.mxu0 %v42285_v40 }
0x1238   :  { %34340 = vmatpush3.bf16.msra.mxu1 %v38281_v12 }
0x1239   :  { %34341 = vmatprep.subr.bf16.mxu1 %v42285_v40 }
0x123a   :  { %34199 = vmatpush3.bf16.msra.mxu0 %v38285_v13 }
0x123b   :  { %34200 = vmatprep.subr.bf16.mxu0 %v42285_v40 }
0x123c   :  { %34343 = vmatpush3.bf16.msra.mxu1 %v38285_v13 }
0x123d   :  { %28651 = vmatmul.mubr.f32.vlgmr.msra.gmra.mrb[30].mxu0 %v39278_v8  ;;  %34344 = vmatprep.subr.bf16.mxu1 %v42285_v40 }
0x123e   :  { %34202 = vmatpush3.bf16.msra.mxu0 %v37983_v38  ;;  %28685 = vmatprep.mubr.msk.f32.mxu0 %vm37764_vm0, %v42284_v25 }
0x123f   :  { %28861 = vmatmul.mubr.f32.vlgmr.msra.gmra.mrb[30].mxu1 %v39282_v35  ;;  %34203 = vmatprep.subr.bf16.mxu0 %v42285_v40 }
0x1240   :  { %34346 = vmatpush3.bf16.msra.mxu1 %v37983_v38  ;;  %28895 = vmatprep.mubr.msk.f32.mxu1 %vm37764_vm0, %v42284_v25 }
0x1241   :  { %34347 = vmatprep.subr.bf16.mxu1 %v42285_v40 }
0x1242   :  { %34205 = vmatpush3.bf16.msra.mxu0 %v37999_v43 }
0x1243   :  { %34206 = vmatprep.subr.bf16.mxu0 %v42285_v40 }
0x1244   :  { %34349 = vmatpush3.bf16.msra.mxu1 %v37999_v43 }
0x1245   :  { %34350 = vmatprep.subr.bf16.mxu1 %v42285_v40 }
0x1246   :  { %34208 = vmatpush3.bf16.msra.mxu0 %v38015_v48 }
0x1247   :  { %34209 = vmatprep.subr.bf16.mxu0 %v42285_v40 }
0x1248   :  { %34352 = vmatpush3.bf16.msra.mxu1 %v38015_v48 }
0x1249   :  { %34353 = vmatprep.subr.bf16.mxu1 %v42285_v40 }
0x124a   :  { %34211 = vmatpush3.bf16.msra.mxu0 %v38031_v53 }
0x124b   :  { %34212 = vmatprep.subr.bf16.mxu0 %v42285_v40 }
0x124c   :  { %34355 = vmatpush3.bf16.msra.mxu1 %v38031_v53 }
0x124d   :  { %34356 = vmatprep.subr.bf16.mxu1 %v42285_v40 }
0x124e   :  { %34214 = vmatpush3.bf16.msra.mxu0 %v38047_v58 }
0x124f   :  { %34215 = vmatprep.subr.bf16.mxu0 %v42285_v40 }
0x1250   :  { %34358 = vmatpush3.bf16.msra.mxu1 %v38047_v58 }
0x1251   :  { %34359 = vmatprep.subr.bf16.mxu1 %v42285_v40 }
0x1252   :  { %34217 = vmatpush3.bf16.msra.mxu0 %v38063_v63 }
0x1253   :  { %34218 = vmatprep.subr.bf16.mxu0 %v42285_v40 }
0x1254   :  { %34361 = vmatpush3.bf16.msra.mxu1 %v38063_v63 }
0x1255   :  { %34362 = vmatprep.subr.bf16.mxu1 %v42285_v40 }
0x1256   :  { %34220 = vmatpush3.bf16.msra.mxu0 %v38079_v6 }
0x1257   :  { %34221 = vmatprep.subr.bf16.mxu0 %v42285_v40 }
0x1258   :  { %34364 = vmatpush3.bf16.msra.mxu1 %v38079_v6 }
0x1259   :  { %34365 = vmatprep.subr.bf16.mxu1 %v42285_v40 }
0x125a   :  { %34223 = vmatpush3.bf16.msra.mxu0 %v38101_v17 }
0x125b   :  { %34224 = vmatprep.subr.bf16.mxu0 %v42285_v40 }
0x125c   :  { %34367 = vmatpush3.bf16.msra.mxu1 %v38101_v17 }
0x125d   :  { %28686 = vmatmul.mubr.f32.vlgmr.msra.gmra.mrb[30].mxu0 %v6240_v56  ;;  %34368 = vmatprep.subr.bf16.mxu1 %v42285_v40 }
0x125e   :  { %34226 = vmatpush3.bf16.msra.mxu0 %v38424_v51  ;;  %28720 = vmatprep.mubr.msk.f32.mxu0 %vm37764_vm0, %v42284_v25 }
0x125f   :  { %28896 = vmatmul.mubr.f32.vlgmr.msra.gmra.mrb[30].mxu1 %v6882_v49  ;;  %34227 = vmatprep.subr.bf16.mxu0 %v42285_v40 }
0x1260   :  { %34370 = vmatpush3.bf16.msra.mxu1 %v38424_v51  ;;  %28930 = vmatprep.mubr.msk.f32.mxu1 %vm37764_vm0, %v42284_v25 }
0x1261   :  { %34371 = vmatprep.subr.bf16.mxu1 %v42285_v40 }
0x1262   :  { %34229 = vmatpush3.bf16.msra.mxu0 %v38436_v7 }
0x1263   :  { %34230 = vmatprep.subr.bf16.mxu0 %v42285_v40 }
0x1264   :  { %34373 = vmatpush3.bf16.msra.mxu1 %v38436_v7 }
0x1265   :  { %34374 = vmatprep.subr.bf16.mxu1 %v42285_v40 }
0x1266   :  { %34232 = vmatpush3.bf16.msra.mxu0 %v38452_v21 }
0x1267   :  { %34233 = vmatprep.subr.bf16.mxu0 %v42285_v40 }
0x1268   :  { %34376 = vmatpush3.bf16.msra.mxu1 %v38452_v21 }
0x1269   :  { %34377 = vmatprep.subr.bf16.mxu1 %v42285_v40 }
0x126a   :  { %34235 = vmatpush3.bf16.msra.mxu0 %v38462_v16 }
0x126b   :  { %34236 = vmatprep.subr.bf16.mxu0 %v42285_v40 }
0x126c   :  { %34379 = vmatpush3.bf16.msra.mxu1 %v38462_v16 }
0x126d   :  { %34380 = vmatprep.subr.bf16.mxu1 %v42285_v40 }
0x126e   :  { %34238 = vmatpush3.bf16.msra.mxu0 %v38472_v24 }
0x126f   :  { %34239 = vmatprep.subr.bf16.mxu0 %v42285_v40 }
0x1270   :  { %34382 = vmatpush3.bf16.msra.mxu1 %v38472_v24 }
0x1271   :  { %34383 = vmatprep.subr.bf16.mxu1 %v42285_v40 }
0x1272   :  { %34241 = vmatpush3.bf16.msra.mxu0 %v38482_v0 }
0x1273   :  { %34242 = vmatprep.subr.bf16.mxu0 %v42285_v40 }
0x1274   :  { %34385 = vmatpush3.bf16.msra.mxu1 %v38482_v0 }
0x1275   :  { %34386 = vmatprep.subr.bf16.mxu1 %v42285_v40 }
0x1276   :  { %34244 = vmatpush3.bf16.msra.mxu0 %v38492_v1 }
0x1277   :  { %34245 = vmatprep.subr.bf16.mxu0 %v42285_v40 }
0x1278   :  { %34388 = vmatpush3.bf16.msra.mxu1 %v38492_v1 }
0x1279   :  { %34389 = vmatprep.subr.bf16.mxu1 %v42285_v40 }
0x127a   :  { %34247 = vmatpush3.bf16.msra.mxu0 %v38502_v32 }
0x127b   :  { %34248 = vmatprep.subr.bf16.mxu0 %v42285_v40 }
0x127c   :  { %34391 = vmatpush3.bf16.msra.mxu1 %v38502_v32 }
0x127d   :  { %28721 = vmatmul.mubr.f32.vlgmr.msra.gmra.mrb[30].mxu0 %v39270_v14  ;;  %34392 = vmatprep.subr.bf16.mxu1 %v42285_v40 }
0x127e   :  { %34250 = vmatpush3.bf16.msra.mxu0 %v37983_v38  ;;  %28755 = vmatprep.mubr.msk.f32.mxu0 %vm37764_vm0, %v42284_v25 }
0x127f   :  { %28931 = vmatmul.mubr.f32.vlgmr.msra.gmra.mrb[30].mxu1 %v39274_v34  ;;  %34251 = vmatprep.subr.bf16.mxu0 %v42285_v40 }
0x1280   :  { %34394 = vmatpush3.bf16.msra.mxu1 %v37983_v38  ;;  %28965 = vmatprep.mubr.msk.f32.mxu1 %vm37764_vm0, %v42284_v25 }
0x1281   :  { %34395 = vmatprep.subr.bf16.mxu1 %v42285_v40 }
0x1282   :  { %34253 = vmatpush3.bf16.msra.mxu0 %v37999_v43 }
0x1283   :  { %34254 = vmatprep.subr.bf16.mxu0 %v42285_v40 }
0x1284   :  { %34397 = vmatpush3.bf16.msra.mxu1 %v37999_v43 }
0x1285   :  { %34398 = vmatprep.subr.bf16.mxu1 %v42285_v40 }
0x1286   :  { %34256 = vmatpush3.bf16.msra.mxu0 %v38015_v48 }
0x1287   :  { %34257 = vmatprep.subr.bf16.mxu0 %v42285_v40 }
0x1288   :  { %34400 = vmatpush3.bf16.msra.mxu1 %v38015_v48 }
0x1289   :  { %34401 = vmatprep.subr.bf16.mxu1 %v42285_v40 }
0x128a   :  { %34259 = vmatpush3.bf16.msra.mxu0 %v38031_v53 }
0x128b   :  { %34260 = vmatprep.subr.bf16.mxu0 %v42285_v40 }
0x128c   :  { %34403 = vmatpush3.bf16.msra.mxu1 %v38031_v53 }
0x128d   :  { %34404 = vmatprep.subr.bf16.mxu1 %v42285_v40 }
0x128e   :  { %34262 = vmatpush3.bf16.msra.mxu0 %v38047_v58 }
0x128f   :  { %34263 = vmatprep.subr.bf16.mxu0 %v42285_v40 }
0x1290   :  { %34406 = vmatpush3.bf16.msra.mxu1 %v38047_v58 }
0x1291   :  { %34407 = vmatprep.subr.bf16.mxu1 %v42285_v40 }
0x1292   :  { %34265 = vmatpush3.bf16.msra.mxu0 %v38063_v63 }
0x1293   :  { %34266 = vmatprep.subr.bf16.mxu0 %v42285_v40 }
0x1294   :  { %34409 = vmatpush3.bf16.msra.mxu1 %v38063_v63 }
0x1295   :  { %34410 = vmatprep.subr.bf16.mxu1 %v42285_v40 }
0x1296   :  { %34268 = vmatpush3.bf16.msra.mxu0 %v38079_v6 }
0x1297   :  { %34269 = vmatprep.subr.bf16.mxu0 %v42285_v40 }
0x1298   :  { %34412 = vmatpush3.bf16.msra.mxu1 %v38079_v6 }
0x1299   :  { %34413 = vmatprep.subr.bf16.mxu1 %v42285_v40 }
0x129a   :  { %34271 = vmatpush3.bf16.msra.mxu0 %v38101_v17 }
0x129b   :  { %34416 = vmatprep.subr.bf16.mxu0 %v42285_v40 }
0x129c   :  { %34415 = vmatpush3.bf16.msra.mxu1 %v38101_v17 }
0x129d   :  { %28756 = vmatmul.mubr.f32.vlgmr.msra.gmra.mrb[30].mxu0 %v39270_v14  ;;  %34422 = vmatprep.subr.bf16.mxu1 %v42285_v40 }
0x129e   :  { %34418 = vmatpush3.bf16.msra.mxu0 %v37925_v10  ;;  %28976 = vmatprep.mubr.msk.f32.mxu0 %vm37764_vm0, %v42284_v25 }
0x129f   :  { %28966 = vmatmul.mubr.f32.vlgmr.msra.gmra.mrb[30].mxu1 %v39274_v34  ;;  %34419 = vmatprep.subr.bf16.mxu0 %v42285_v40 }
0x12a0   :  { %34424 = vmatpush3.bf16.msra.mxu1 %v37935_v29  ;;  %28987 = vmatprep.mubr.msk.f32.mxu1 %vm37764_vm0, %v42284_v25 }
0x12a1   :  { %34425 = vmatprep.subr.bf16.mxu1 %v42285_v40 }
0x12a2   :  { %34421 = vmatpush3.bf16.msra.mxu0 %v37928_v15 }
0x12a3   :  { %34428 = vmatprep.subr.bf16.mxu0 %v42285_v40 }
0x12a4   :  { %34427 = vmatpush3.bf16.msra.mxu1 %v37940_v30 }
0x12a5   :  { %34434 = vmatprep.subr.bf16.mxu1 %v42285_v40 }
0x1370   :  { %v6794_v31 = vpop.f32.mrb[30].mxu0 }
0x1371   :  { %v7441_v60 = vmul.f32 %v6794_v31, %v6794_v31  ;;  %v28757_v46 = vpop.f32.mrb[31].mxu0  ;;  %v7440_v14 = vsub.f32 %v39267_v36, %v6794_v31 }
0x1372   :  { %v7436_v62 = vpop.f32.mrb[30].mxu1 }
0x1373   :  { %v7442_v50 = vsub.f32 %v7436_v62, %v7441_v60  ;;  %v28967_v33 = vpop.f32.mrb[31].mxu1 }
0x1375   :  { %v7443_v22 = vadd.f32 1e-05, %v7442_v50 }
0x1377   :  { %37524 = vrsqrt.f32 %v7443_v22 }
0x1381   :  { %v37525_v41 = vpop.eup %37524 }
0x1382   :  { %v7445_v34 = vmul.f32 %v37525_v41, %v7440_v14 }
0x1384   :  { %37526 = vtanh.f32 %v7445_v34  ;;  %v7446_v56 = vmul.f32 0.5, %v7445_v34 }
0x1386   :  { %37528 = vtanh.f32 %v7446_v56 }
0x138e   :  { %v37527_v8 = vpop.eup %37526 }
0x138f   :  { %7453 = vrot.lane.b32.xlu0 %v37527_v8, %s37766_s10 }
0x1390   :  { %v37529_v35 = vpop.eup %37528 }
0x1391   :  { %v7448_v45 = vmul.f32 0.5, %v37529_v35 }
0x1393   :  { %v7449_v49 = vadd.f32 0.5, %v7448_v45 }
0x1395   :  { %v7451_v23 = vmul.f32 %v7449_v49, %v39192_v57 }
0x1401   :  { %v7454_v39 = vpop.permute.xlu0 %7453 }
0x1402   :  { %v7456_v55 = vmul.f32 %v7454_v39, %v7449_v49 }
0x1404   :  { %7458 = vrot.lane.b32.xlu1 %v7456_v55, %s37766_s10 }
0x1476   :  { %v7459_v60 = vpop.permute.xlu1 %7458 }
0x1477   :  { %v39499_v46 = vadd.f32 %v7459_v60, %v7451_v23 }
0x1479   :  { %7463 = vrot.lane.b32.xlu0 %v39499_v46, %s37767_s22  ;;  %v7470_v36 = vmul.f32 %v39499_v46, %v39499_v46 }
0x147b   :  { %7472 = vrot.lane.b32.xlu1 %v7470_v36, %s37767_s22 }
0x14eb   :  { %v7464_v31 = vpop.permute.xlu0 %7463 }
0x14ec   :  { %v7466_v62 = vsel %vm174_vm1, %v7464_v31, 0.0 }
0x14ed   :  { %7467 = vadd.xlane.f32.xlu0 %v7466_v62  ;;  %v7473_v50 = vpop.permute.xlu1 %7472 }
0x14ee   :  { %v7475_v33 = vsel %vm174_vm1, %v7473_v50, 0.0 }
0x14ef   :  { %7476 = vadd.xlane.f32.xlu1 %v7475_v33 }
0x157a   :  { %v7468_v57 = vpop.xlane.xlu0 %7467 }
0x157b   :  { %v7469_v22 = vmul.f32 0.03125, %v7468_v57 }
0x157c   :  { %v7477_v14 = vpop.xlane.xlu1 %7476 }
0x157d   :  { %v7480_v41 = vmul.f32 %v7469_v22, %v7469_v22  ;;  %v7478_v34 = vmul.f32 0.03125, %v7477_v14  ;;  %v7479_v35 = vsub.f32 %v39499_v46, %v7469_v22 }
0x157f   :  { %v7481_v8 = vsub.f32 %v7478_v34, %v7480_v41 }
0x1581   :  { %v7482_v56 = vadd.f32 1e-05, %v7481_v8 }
0x1583   :  { %37530 = vrsqrt.f32 %v7482_v56 }
0x158d   :  { %v37531_v45 = vpop.eup %37530 }
0x158e   :  { %v7484_v39 = vmul.f32 %v37531_v45, %v7479_v35 }
0x1590   :  { %v7485_v55 = vmul.f32 %v7484_v39, %v38584_v18 }
0x1592   :  { %v7486_v23 = vadd.f32 %v7485_v55, %v38586_v20 }
0x1594   :  { %37532 = vtanh.f32 %v7486_v23 }
0x159e   :  { %v37533_v60 = vpop.eup %37532 }
0x159f   :  { %7489 = vrot.lane.b32.xlu0 %v37533_v60, %s37766_s10 }
0x1611   :  { %v7490_v36 = vpop.permute.xlu0 %7489 }
0x1612   :  { %v7492_v31 = vmul.f32 %v7490_v36, %v7449_v49 }
0x1614   :  { %7496 = vrot.lane.b32.xlu1 %v7492_v31, %s37768_s2 }
0x1686   :  { %v7497_v62 = vpop.permute.xlu1 %7496 }
0x1687   :  { %v7498_v50 = vsel %vm174_vm1, %v7497_v62, 0 }
0x1688   :  { %v7569_v33 = vand.u32 4294901760, %v7498_v50 }
0x168a   :  { %v7570_v57 = vsub.f32 %v7498_v50, %v7569_v33  ;;  %28988 = vmatmul.mubr.f32.vlgmr.msra.gmra.mrb[32].mxu1 %v7569_v33 }
0x168b   :  { %34436 = vmatpush3.bf16.msra.mxu1 %v37925_v10  ;;  %29009 = vmatprep.mubr.msk.f32.mxu1 %vm37764_vm0, %v42284_v25 }
0x168c   :  { %v7571_v22 = vand.u32 4294901760, %v7570_v57  ;;  %34437 = vmatprep.subr.bf16.mxu1 %v42285_v40 }
0x168e   :  { %v7572_v14 = vsub.f32 %v7570_v57, %v7571_v22 }
0x168f   :  { %34439 = vmatpush3.bf16.msra.mxu1 %v37928_v15 }
0x1690   :  { %v7573_v49 = vand.u32 4294901760, %v7572_v14  ;;  %34446 = vmatprep.subr.bf16.mxu1 %v42285_v40 }
0x1692   :  { %29010 = vmatmul.mubr.f32.vlgmr.msra.gmra.mrb[34].mxu1 %v7571_v22  ;;  %28977 = vmatmul.mubr.f32.vlgmr.msra.gmra.mrb[32].mxu0 %v7573_v49  ;;  %v7494_v22 = vld [vmem:[#allocation2 + $0x20] sm:$0xff] }
0x1693   :  { %34430 = vmatpush3.bf16.msra.mxu0 %v37932_v26  ;;  %34448 = vmatpush3.bf16.msra.mxu1 %v37925_v10 }
0x1694   :  { %34431 = vmatprep.subr.bf16.mxu0 %v42285_v40  ;;  %34449 = vmatprep.subr.bf16.mxu1 %v42285_v40 }
0x1695   :  { %28998 = vmatprep.mubr.msk.f32.mxu0 %vm37764_vm0, %v42284_v25  ;;  %29031 = vmatprep.mubr.msk.f32.mxu1 %vm37764_vm0, %v42284_v25 }
0x1697   :  { %34433 = vmatpush3.bf16.msra.mxu0 %v42309_v2  ;;  %34451 = vmatpush3.bf16.msra.mxu1 %v37928_v15 }
0x1698   :  { %34440 = vmatprep.subr.bf16.mxu0 %v42285_v40  ;;  %34596 = vmatprep.subr.bf16.mxu1 %v42285_v40 }
0x169a   :  { %28999 = vmatmul.mubr.f32.vlgmr.msra.gmra.mrb[34].mxu0 %v7570_v57  ;;  %29032 = vmatmul.mubr.f32.vlgmr.msra.gmra.mrb[36].mxu1 %v7569_v33 }
0x169b   :  { %34442 = vmatpush3.bf16.msra.mxu0 %v42310_v3  ;;  %29020 = vmatprep.mubr.msk.f32.mxu0 %vm37764_vm0, %v42284_v25 }
0x169c   :  { %34443 = vmatprep.subr.bf16.mxu0 %v42285_v40  ;;  %34598 = vmatpush3.bf16.msra.mxu1 %v37983_v38 }
0x169d   :  { %34599 = vmatprep.subr.bf16.mxu1 %v42285_v40  ;;  %29276 = vmatprep.mubr.msk.f32.mxu1 %vm37764_vm0, %v42284_v25 }
0x169f   :  { %34445 = vmatpush3.bf16.msra.mxu0 %v42311_v61 }
0x16a0   :  { %34452 = vmatprep.subr.bf16.mxu0 %v42285_v40  ;;  %34601 = vmatpush3.bf16.msra.mxu1 %v37999_v43 }
0x16a1   :  { %34602 = vmatprep.subr.bf16.mxu1 %v42285_v40 }
0x16a2   :  { %29021 = vmatmul.mubr.f32.vlgmr.msra.gmra.mrb[36].mxu0 %v7569_v33 }
0x16a3   :  { %34454 = vmatpush3.bf16.msra.mxu0 %v37983_v38  ;;  %29066 = vmatprep.mubr.msk.f32.mxu0 %vm37764_vm0, %v42284_v25 }
0x16a4   :  { %34455 = vmatprep.subr.bf16.mxu0 %v42285_v40  ;;  %34604 = vmatpush3.bf16.msra.mxu1 %v38015_v48 }
0x16a5   :  { %34605 = vmatprep.subr.bf16.mxu1 %v42285_v40 }
0x16a7   :  { %34457 = vmatpush3.bf16.msra.mxu0 %v37999_v43 }
0x16a8   :  { %34458 = vmatprep.subr.bf16.mxu0 %v42285_v40  ;;  %34607 = vmatpush3.bf16.msra.mxu1 %v38031_v53 }
0x16a9   :  { %34608 = vmatprep.subr.bf16.mxu1 %v42285_v40 }
0x16ab   :  { %34460 = vmatpush3.bf16.msra.mxu0 %v38015_v48 }
0x16ac   :  { %34461 = vmatprep.subr.bf16.mxu0 %v42285_v40  ;;  %34610 = vmatpush3.bf16.msra.mxu1 %v38047_v58 }
0x16ad   :  { %34611 = vmatprep.subr.bf16.mxu1 %v42285_v40 }
0x16af   :  { %34463 = vmatpush3.bf16.msra.mxu0 %v38031_v53 }
0x16b0   :  { %34464 = vmatprep.subr.bf16.mxu0 %v42285_v40  ;;  %34613 = vmatpush3.bf16.msra.mxu1 %v38063_v63 }
0x16b1   :  { %34614 = vmatprep.subr.bf16.mxu1 %v42285_v40 }
0x16b3   :  { %34466 = vmatpush3.bf16.msra.mxu0 %v38047_v58 }
0x16b4   :  { %34467 = vmatprep.subr.bf16.mxu0 %v42285_v40  ;;  %34616 = vmatpush3.bf16.msra.mxu1 %v38079_v6 }
0x16b5   :  { %34617 = vmatprep.subr.bf16.mxu1 %v42285_v40 }
0x16b7   :  { %34469 = vmatpush3.bf16.msra.mxu0 %v38063_v63 }
0x16b8   :  { %34470 = vmatprep.subr.bf16.mxu0 %v42285_v40  ;;  %34619 = vmatpush3.bf16.msra.mxu1 %v38101_v17 }
0x16b9   :  { %34620 = vmatprep.subr.bf16.mxu1 %v42285_v40 }
0x16bb   :  { %34472 = vmatpush3.bf16.msra.mxu0 %v38079_v6 }
0x16bc   :  { %34473 = vmatprep.subr.bf16.mxu0 %v42285_v40 }
0x16bf   :  { %34475 = vmatpush3.bf16.msra.mxu0 %v38101_v17 }
0x16c0   :  { %34476 = vmatprep.subr.bf16.mxu0 %v42285_v40 }
0x175d   :  { %v7666_v41 = vpop.f32.mrb[32].mxu1 }
0x175e   :  { %v28989_v34 = vpop.f32.mrb[33].mxu1 }
0x1765   :  { %v7823_v8 = vpop.f32.mrb[34].mxu1  ;;  %v7575_v56 = vpop.f32.mrb[32].mxu0 }
0x1766   :  { %v7667_v35 = vadd.f32 %v7666_v41, %v7575_v56  ;;  %v29011_v45 = vpop.f32.mrb[35].mxu1  ;;  %v28978_v39 = vpop.f32.mrb[33].mxu0 }
0x176d   :  { %v7746_v55 = vpop.f32.mrb[34].mxu0  ;;  %v7981_v23 = vpop.f32.mrb[36].mxu1 }
0x176e   :  { %v7747_v60 = vadd.f32 %v7746_v55, %v7667_v35  ;;  %v29000_v36 = vpop.f32.mrb[35].mxu0  ;;  %v29033_v31 = vpop.f32.mrb[37].mxu1 }
0x1770   :  { %v7824_v62 = vadd.f32 %v7823_v8, %v7747_v60 }
0x1775   :  { %v7906_v50 = vpop.f32.mrb[36].mxu0 }
0x1776   :  { %v7907_v33 = vadd.f32 %v7906_v50, %v7824_v62  ;;  %v29022_v57 = vpop.f32.mrb[37].mxu0 }
0x1778   :  { %v7982_v14 = vadd.f32 %v7981_v23, %v7907_v33 }
0x177a   :  { %v39574_v49 = vadd.f32 %v7982_v14, %v7494_v22 }
0x177c   :  { %v39577_v34 = vand.u32 4294901760, %v39574_v49  ;;  %v8627_v41 = vmul.f32 %v39574_v49, %v39574_v49 }
0x177e   :  { %v39581_v56 = vand.u32 4294901760, %v8627_v41  ;;  %v39585_v35 = vsub.f32 %v39574_v49, %v39577_v34 }
0x1780   :  { %v8069_v8 = vand.u32 4294901760, %v39585_v35  ;;  %v39589_v45 = vsub.f32 %v8627_v41, %v39581_v56 }
0x1782   :  { %v8070_v39 = vsub.f32 %v39585_v35, %v8069_v8  ;;  %v8711_v55 = vand.u32 4294901760, %v39589_v45 }
0x1784   :  { %v8071_v23 = vand.u32 4294901760, %v8070_v39  ;;  %v8712_v60 = vsub.f32 %v39589_v45, %v8711_v55 }
0x1786   :  { %29067 = vmatmul.mubr.f32.vlgmr.msra.gmra.mrb[38].mxu0 %v8071_v23  ;;  %v8713_v36 = vand.u32 4294901760, %v8712_v60 }
0x1787   :  { %34478 = vmatpush3.bf16.msra.mxu0 %v38125_v27  ;;  %29101 = vmatprep.mubr.msk.f32.mxu0 %vm37764_vm0, %v42284_v25 }
0x1788   :  { %29277 = vmatmul.mubr.f32.vlgmr.msra.gmra.mrb[38].mxu1 %v8713_v36  ;;  %34479 = vmatprep.subr.bf16.mxu0 %v42285_v40 }
0x1789   :  { %34622 = vmatpush3.bf16.msra.mxu1 %v38125_v27  ;;  %29311 = vmatprep.mubr.msk.f32.mxu1 %vm37764_vm0, %v42284_v25 }
0x178a   :  { %34623 = vmatprep.subr.bf16.mxu1 %v42285_v40 }
0x178b   :  { %34481 = vmatpush3.bf16.msra.mxu0 %v38145_v42 }
0x178c   :  { %34482 = vmatprep.subr.bf16.mxu0 %v42285_v40 }
0x178d   :  { %34625 = vmatpush3.bf16.msra.mxu1 %v38145_v42 }
0x178e   :  { %34626 = vmatprep.subr.bf16.mxu1 %v42285_v40 }
0x178f   :  { %34484 = vmatpush3.bf16.msra.mxu0 %v38165_v28 }
0x1790   :  { %34485 = vmatprep.subr.bf16.mxu0 %v42285_v40 }
0x1791   :  { %34628 = vmatpush3.bf16.msra.mxu1 %v38165_v28 }
0x1792   :  { %34629 = vmatprep.subr.bf16.mxu1 %v42285_v40 }
0x1793   :  { %34487 = vmatpush3.bf16.msra.mxu0 %v38201_v44 }
0x1794   :  { %34488 = vmatprep.subr.bf16.mxu0 %v42285_v40 }
0x1795   :  { %34631 = vmatpush3.bf16.msra.mxu1 %v38201_v44 }
0x1796   :  { %34632 = vmatprep.subr.bf16.mxu1 %v42285_v40 }
0x1797   :  { %34490 = vmatpush3.bf16.msra.mxu0 %v38205_v37 }
0x1798   :  { %34491 = vmatprep.subr.bf16.mxu0 %v42285_v40 }
0x1799   :  { %34634 = vmatpush3.bf16.msra.mxu1 %v38205_v37 }
0x179a   :  { %34635 = vmatprep.subr.bf16.mxu1 %v42285_v40 }
0x179b   :  { %34493 = vmatpush3.bf16.msra.mxu0 %v38225_v47 }
0x179c   :  { %34494 = vmatprep.subr.bf16.mxu0 %v42285_v40 }
0x179d   :  { %34637 = vmatpush3.bf16.msra.mxu1 %v38225_v47 }
0x179e   :  { %34638 = vmatprep.subr.bf16.mxu1 %v42285_v40 }
0x179f   :  { %34496 = vmatpush3.bf16.msra.mxu0 %v38251_v11 }
0x17a0   :  { %34497 = vmatprep.subr.bf16.mxu0 %v42285_v40 }
0x17a1   :  { %34640 = vmatpush3.bf16.msra.mxu1 %v38251_v11 }
0x17a2   :  { %34641 = vmatprep.subr.bf16.mxu1 %v42285_v40 }
0x17a3   :  { %34499 = vmatpush3.bf16.msra.mxu0 %v38253_v54 }
0x17a4   :  { %34500 = vmatprep.subr.bf16.mxu0 %v42285_v40 }
0x17a5   :  { %34643 = vmatpush3.bf16.msra.mxu1 %v38253_v54 }
0x17a6   :  { %29102 = vmatmul.mubr.f32.vlgmr.msra.gmra.mrb[38].mxu0 %v39577_v34  ;;  %34644 = vmatprep.subr.bf16.mxu1 %v42285_v40 }
0x17a7   :  { %34502 = vmatpush3.bf16.msra.mxu0 %v38257_v19  ;;  %29136 = vmatprep.mubr.msk.f32.mxu0 %vm37764_vm0, %v42284_v25 }
0x17a8   :  { %29312 = vmatmul.mubr.f32.vlgmr.msra.gmra.mrb[38].mxu1 %v39581_v56  ;;  %34503 = vmatprep.subr.bf16.mxu0 %v42285_v40 }
0x17a9   :  { %34646 = vmatpush3.bf16.msra.mxu1 %v38257_v19  ;;  %29346 = vmatprep.mubr.msk.f32.mxu1 %vm37764_vm0, %v42284_v25 }
0x17aa   :  { %34647 = vmatprep.subr.bf16.mxu1 %v42285_v40 }
0x17ab   :  { %34505 = vmatpush3.bf16.msra.mxu0 %v38261_v4 }
0x17ac   :  { %34506 = vmatprep.subr.bf16.mxu0 %v42285_v40 }
0x17ad   :  { %34649 = vmatpush3.bf16.msra.mxu1 %v38261_v4 }
0x17ae   :  { %34650 = vmatprep.subr.bf16.mxu1 %v42285_v40 }
0x17af   :  { %34508 = vmatpush3.bf16.msra.mxu0 %v38265_v59 }
0x17b0   :  { %34509 = vmatprep.subr.bf16.mxu0 %v42285_v40 }
0x17b1   :  { %34652 = vmatpush3.bf16.msra.mxu1 %v38265_v59 }
0x17b2   :  { %34653 = vmatprep.subr.bf16.mxu1 %v42285_v40 }
0x17b3   :  { %34511 = vmatpush3.bf16.msra.mxu0 %v38269_v5 }
0x17b4   :  { %34512 = vmatprep.subr.bf16.mxu0 %v42285_v40 }
0x17b5   :  { %34655 = vmatpush3.bf16.msra.mxu1 %v38269_v5 }
0x17b6   :  { %34656 = vmatprep.subr.bf16.mxu1 %v42285_v40 }
0x17b7   :  { %34514 = vmatpush3.bf16.msra.mxu0 %v38273_v52 }
0x17b8   :  { %34515 = vmatprep.subr.bf16.mxu0 %v42285_v40 }
0x17b9   :  { %34658 = vmatpush3.bf16.msra.mxu1 %v38273_v52 }
0x17ba   :  { %34659 = vmatprep.subr.bf16.mxu1 %v42285_v40 }
0x17bb   :  { %34517 = vmatpush3.bf16.msra.mxu0 %v38277_v9 }
0x17bc   :  { %34518 = vmatprep.subr.bf16.mxu0 %v42285_v40 }
0x17bd   :  { %34661 = vmatpush3.bf16.msra.mxu1 %v38277_v9 }
0x17be   :  { %34662 = vmatprep.subr.bf16.mxu1 %v42285_v40 }
0x17bf   :  { %34520 = vmatpush3.bf16.msra.mxu0 %v38281_v12 }
0x17c0   :  { %34521 = vmatprep.subr.bf16.mxu0 %v42285_v40 }
0x17c1   :  { %34664 = vmatpush3.bf16.msra.mxu1 %v38281_v12 }
0x17c2   :  { %34665 = vmatprep.subr.bf16.mxu1 %v42285_v40 }
0x17c3   :  { %34523 = vmatpush3.bf16.msra.mxu0 %v38285_v13 }
0x17c4   :  { %34524 = vmatprep.subr.bf16.mxu0 %v42285_v40 }
0x17c5   :  { %34667 = vmatpush3.bf16.msra.mxu1 %v38285_v13 }
0x17c6   :  { %29137 = vmatmul.mubr.f32.vlgmr.msra.gmra.mrb[38].mxu0 %v39585_v35  ;;  %34668 = vmatprep.subr.bf16.mxu1 %v42285_v40 }
0x17c7   :  { %34526 = vmatpush3.bf16.msra.mxu0 %v37983_v38  ;;  %29171 = vmatprep.mubr.msk.f32.mxu0 %vm37764_vm0, %v42284_v25 }
0x17c8   :  { %29347 = vmatmul.mubr.f32.vlgmr.msra.gmra.mrb[38].mxu1 %v39589_v45  ;;  %34527 = vmatprep.subr.bf16.mxu0 %v42285_v40 }
0x17c9   :  { %34670 = vmatpush3.bf16.msra.mxu1 %v37983_v38  ;;  %29381 = vmatprep.mubr.msk.f32.mxu1 %vm37764_vm0, %v42284_v25 }
0x17ca   :  { %34671 = vmatprep.subr.bf16.mxu1 %v42285_v40 }
0x17cb   :  { %34529 = vmatpush3.bf16.msra.mxu0 %v37999_v43 }
0x17cc   :  { %34530 = vmatprep.subr.bf16.mxu0 %v42285_v40 }
0x17cd   :  { %34673 = vmatpush3.bf16.msra.mxu1 %v37999_v43 }
0x17ce   :  { %34674 = vmatprep.subr.bf16.mxu1 %v42285_v40 }
0x17cf   :  { %34532 = vmatpush3.bf16.msra.mxu0 %v38015_v48 }
0x17d0   :  { %34533 = vmatprep.subr.bf16.mxu0 %v42285_v40 }
0x17d1   :  { %34676 = vmatpush3.bf16.msra.mxu1 %v38015_v48 }
0x17d2   :  { %34677 = vmatprep.subr.bf16.mxu1 %v42285_v40 }
0x17d3   :  { %34535 = vmatpush3.bf16.msra.mxu0 %v38031_v53 }
0x17d4   :  { %34536 = vmatprep.subr.bf16.mxu0 %v42285_v40 }
0x17d5   :  { %34679 = vmatpush3.bf16.msra.mxu1 %v38031_v53 }
0x17d6   :  { %34680 = vmatprep.subr.bf16.mxu1 %v42285_v40 }
0x17d7   :  { %34538 = vmatpush3.bf16.msra.mxu0 %v38047_v58 }
0x17d8   :  { %34539 = vmatprep.subr.bf16.mxu0 %v42285_v40 }
0x17d9   :  { %34682 = vmatpush3.bf16.msra.mxu1 %v38047_v58 }
0x17da   :  { %34683 = vmatprep.subr.bf16.mxu1 %v42285_v40 }
0x17db   :  { %34541 = vmatpush3.bf16.msra.mxu0 %v38063_v63 }
0x17dc   :  { %34542 = vmatprep.subr.bf16.mxu0 %v42285_v40 }
0x17dd   :  { %34685 = vmatpush3.bf16.msra.mxu1 %v38063_v63 }
0x17de   :  { %34686 = vmatprep.subr.bf16.mxu1 %v42285_v40 }
0x17df   :  { %34544 = vmatpush3.bf16.msra.mxu0 %v38079_v6 }
0x17e0   :  { %34545 = vmatprep.subr.bf16.mxu0 %v42285_v40 }
0x17e1   :  { %34688 = vmatpush3.bf16.msra.mxu1 %v38079_v6 }
0x17e2   :  { %34689 = vmatprep.subr.bf16.mxu1 %v42285_v40 }
0x17e3   :  { %34547 = vmatpush3.bf16.msra.mxu0 %v38101_v17 }
0x17e4   :  { %34548 = vmatprep.subr.bf16.mxu0 %v42285_v40 }
0x17e5   :  { %34691 = vmatpush3.bf16.msra.mxu1 %v38101_v17 }
0x17e6   :  { %29172 = vmatmul.mubr.f32.vlgmr.msra.gmra.mrb[38].mxu0 %v8069_v8  ;;  %34692 = vmatprep.subr.bf16.mxu1 %v42285_v40 }
0x17e7   :  { %34550 = vmatpush3.bf16.msra.mxu0 %v38424_v51  ;;  %29206 = vmatprep.mubr.msk.f32.mxu0 %vm37764_vm0, %v42284_v25 }
0x17e8   :  { %29382 = vmatmul.mubr.f32.vlgmr.msra.gmra.mrb[38].mxu1 %v8711_v55  ;;  %34551 = vmatprep.subr.bf16.mxu0 %v42285_v40 }
0x17e9   :  { %34694 = vmatpush3.bf16.msra.mxu1 %v38424_v51  ;;  %29416 = vmatprep.mubr.msk.f32.mxu1 %vm37764_vm0, %v42284_v25 }
0x17ea   :  { %34695 = vmatprep.subr.bf16.mxu1 %v42285_v40 }
0x17eb   :  { %34553 = vmatpush3.bf16.msra.mxu0 %v38436_v7 }
0x17ec   :  { %34554 = vmatprep.subr.bf16.mxu0 %v42285_v40 }
0x17ed   :  { %34697 = vmatpush3.bf16.msra.mxu1 %v38436_v7 }
0x17ee   :  { %34698 = vmatprep.subr.bf16.mxu1 %v42285_v40 }
0x17ef   :  { %34556 = vmatpush3.bf16.msra.mxu0 %v38452_v21 }
0x17f0   :  { %34557 = vmatprep.subr.bf16.mxu0 %v42285_v40 }
0x17f1   :  { %34700 = vmatpush3.bf16.msra.mxu1 %v38452_v21 }
0x17f2   :  { %34701 = vmatprep.subr.bf16.mxu1 %v42285_v40 }
0x17f3   :  { %34559 = vmatpush3.bf16.msra.mxu0 %v38462_v16 }
0x17f4   :  { %34560 = vmatprep.subr.bf16.mxu0 %v42285_v40 }
0x17f5   :  { %34703 = vmatpush3.bf16.msra.mxu1 %v38462_v16 }
0x17f6   :  { %34704 = vmatprep.subr.bf16.mxu1 %v42285_v40 }
0x17f7   :  { %34562 = vmatpush3.bf16.msra.mxu0 %v38472_v24 }
0x17f8   :  { %34563 = vmatprep.subr.bf16.mxu0 %v42285_v40 }
0x17f9   :  { %34706 = vmatpush3.bf16.msra.mxu1 %v38472_v24 }
0x17fa   :  { %34707 = vmatprep.subr.bf16.mxu1 %v42285_v40 }
0x17fb   :  { %34565 = vmatpush3.bf16.msra.mxu0 %v38482_v0 }
0x17fc   :  { %34566 = vmatprep.subr.bf16.mxu0 %v42285_v40 }
0x17fd   :  { %34709 = vmatpush3.bf16.msra.mxu1 %v38482_v0 }
0x17fe   :  { %34710 = vmatprep.subr.bf16.mxu1 %v42285_v40 }
0x17ff   :  { %34568 = vmatpush3.bf16.msra.mxu0 %v38492_v1 }
0x1800   :  { %34569 = vmatprep.subr.bf16.mxu0 %v42285_v40 }
0x1801   :  { %34712 = vmatpush3.bf16.msra.mxu1 %v38492_v1 }
0x1802   :  { %34713 = vmatprep.subr.bf16.mxu1 %v42285_v40 }
0x1803   :  { %34571 = vmatpush3.bf16.msra.mxu0 %v38502_v32 }
0x1804   :  { %34572 = vmatprep.subr.bf16.mxu0 %v42285_v40 }
0x1805   :  { %34715 = vmatpush3.bf16.msra.mxu1 %v38502_v32 }
0x1806   :  { %29207 = vmatmul.mubr.f32.vlgmr.msra.gmra.mrb[38].mxu0 %v39577_v34  ;;  %34716 = vmatprep.subr.bf16.mxu1 %v42285_v40 }
0x1807   :  { %34574 = vmatpush3.bf16.msra.mxu0 %v37983_v38  ;;  %29241 = vmatprep.mubr.msk.f32.mxu0 %vm37764_vm0, %v42284_v25 }
0x1808   :  { %29417 = vmatmul.mubr.f32.vlgmr.msra.gmra.mrb[38].mxu1 %v39581_v56  ;;  %34575 = vmatprep.subr.bf16.mxu0 %v42285_v40 }
0x1809   :  { %34718 = vmatpush3.bf16.msra.mxu1 %v37983_v38  ;;  %29451 = vmatprep.mubr.msk.f32.mxu1 %vm37764_vm0, %v42284_v25 }
0x180a   :  { %34719 = vmatprep.subr.bf16.mxu1 %v42285_v40 }
0x180b   :  { %34577 = vmatpush3.bf16.msra.mxu0 %v37999_v43 }
0x180c   :  { %34578 = vmatprep.subr.bf16.mxu0 %v42285_v40 }
0x180d   :  { %34721 = vmatpush3.bf16.msra.mxu1 %v37999_v43 }
0x180e   :  { %34722 = vmatprep.subr.bf16.mxu1 %v42285_v40 }
0x180f   :  { %34580 = vmatpush3.bf16.msra.mxu0 %v38015_v48 }
0x1810   :  { %34581 = vmatprep.subr.bf16.mxu0 %v42285_v40 }
0x1811   :  { %34724 = vmatpush3.bf16.msra.mxu1 %v38015_v48 }
0x1812   :  { %34725 = vmatprep.subr.bf16.mxu1 %v42285_v40 }
0x1813   :  { %34583 = vmatpush3.bf16.msra.mxu0 %v38031_v53 }
0x1814   :  { %34584 = vmatprep.subr.bf16.mxu0 %v42285_v40 }
0x1815   :  { %34727 = vmatpush3.bf16.msra.mxu1 %v38031_v53 }
0x1816   :  { %34728 = vmatprep.subr.bf16.mxu1 %v42285_v40 }
0x1817   :  { %34586 = vmatpush3.bf16.msra.mxu0 %v38047_v58 }
0x1818   :  { %34587 = vmatprep.subr.bf16.mxu0 %v42285_v40 }
0x1819   :  { %34730 = vmatpush3.bf16.msra.mxu1 %v38047_v58 }
0x181a   :  { %34731 = vmatprep.subr.bf16.mxu1 %v42285_v40 }
0x181b   :  { %34589 = vmatpush3.bf16.msra.mxu0 %v38063_v63 }
0x181c   :  { %34590 = vmatprep.subr.bf16.mxu0 %v42285_v40 }
0x181d   :  { %34733 = vmatpush3.bf16.msra.mxu1 %v38063_v63 }
0x181e   :  { %34734 = vmatprep.subr.bf16.mxu1 %v42285_v40 }
0x181f   :  { %34592 = vmatpush3.bf16.msra.mxu0 %v38079_v6 }
0x1820   :  { %34593 = vmatprep.subr.bf16.mxu0 %v42285_v40 }
0x1821   :  { %34736 = vmatpush3.bf16.msra.mxu1 %v38079_v6 }
0x1822   :  { %34737 = vmatprep.subr.bf16.mxu1 %v42285_v40 }
0x1823   :  { %34595 = vmatpush3.bf16.msra.mxu0 %v38101_v17 }
0x1824   :  { %34740 = vmatprep.subr.bf16.mxu0 %v42285_v40 }
0x1825   :  { %34739 = vmatpush3.bf16.msra.mxu1 %v38101_v17 }
0x1826   :  { %29242 = vmatmul.mubr.f32.vlgmr.msra.gmra.mrb[38].mxu0 %v39577_v34  ;;  %34746 = vmatprep.subr.bf16.mxu1 %v42285_v40 }
0x1827   :  { %34742 = vmatpush3.bf16.msra.mxu0 %v37925_v10  ;;  %29462 = vmatprep.mubr.msk.f32.mxu0 %vm37764_vm0, %v42284_v25 }
0x1828   :  { %29452 = vmatmul.mubr.f32.vlgmr.msra.gmra.mrb[38].mxu1 %v39581_v56  ;;  %34743 = vmatprep.subr.bf16.mxu0 %v42285_v40 }
0x1829   :  { %34748 = vmatpush3.bf16.msra.mxu1 %v37935_v29  ;;  %29473 = vmatprep.mubr.msk.f32.mxu1 %vm37764_vm0, %v42284_v25 }
0x182a   :  { %34749 = vmatprep.subr.bf16.mxu1 %v42285_v40 }
0x182b   :  { %34745 = vmatpush3.bf16.msra.mxu0 %v37928_v15 }
0x182c   :  { %34752 = vmatprep.subr.bf16.mxu0 %v42285_v40 }
0x182d   :  { %34751 = vmatpush3.bf16.msra.mxu1 %v37940_v30 }
0x182e   :  { %34758 = vmatprep.subr.bf16.mxu1 %v42285_v40 }
0x18f9   :  { %v8623_v31 = vpop.f32.mrb[38].mxu0 }
0x18fa   :  { %v9270_v62 = vmul.f32 %v8623_v31, %v8623_v31  ;;  %v29243_v50 = vpop.f32.mrb[39].mxu0  ;;  %v9269_v34 = vsub.f32 %v39574_v49, %v8623_v31 }
0x18fb   :  { %v9265_v33 = vpop.f32.mrb[38].mxu1 }
0x18fc   :  { %v9271_v57 = vsub.f32 %v9265_v33, %v9270_v62  ;;  %v29453_v22 = vpop.f32.mrb[39].mxu1 }
0x18fe   :  { %v9272_v14 = vadd.f32 1e-05, %v9271_v57 }
0x1900   :  { %37534 = vrsqrt.f32 %v9272_v14 }
0x190a   :  { %v37535_v41 = vpop.eup %37534 }
0x190b   :  { %v9274_v56 = vmul.f32 %v37535_v41, %v9269_v34 }
0x190d   :  { %37536 = vtanh.f32 %v9274_v56  ;;  %v9275_v8 = vmul.f32 0.5, %v9274_v56 }
0x190f   :  { %37538 = vtanh.f32 %v9275_v8 }
0x1917   :  { %v37537_v35 = vpop.eup %37536 }
0x1918   :  { %9282 = vrot.lane.b32.xlu0 %v37537_v35, %s37766_s10 }
0x1919   :  { %v37539_v45 = vpop.eup %37538 }
0x191a   :  { %v9277_v39 = vmul.f32 0.5, %v37539_v45 }
0x191c   :  { %v9278_v55 = vadd.f32 0.5, %v9277_v39 }
0x191e   :  { %v9280_v36 = vmul.f32 %v9278_v55, %v39499_v46 }
0x198a   :  { %v9283_v23 = vpop.permute.xlu0 %9282 }
0x198b   :  { %v9285_v60 = vmul.f32 %v9283_v23, %v9278_v55 }
0x198d   :  { %9287 = vrot.lane.b32.xlu1 %v9285_v60, %s37766_s10 }
0x19ff   :  { %v9288_v62 = vpop.permute.xlu1 %9287 }
0x1a00   :  { %v39806_v50 = vadd.f32 %v9288_v62, %v9280_v36 }
0x1a02   :  { %9292 = vrot.lane.b32.xlu0 %v39806_v50, %s37767_s22  ;;  %v9299_v49 = vmul.f32 %v39806_v50, %v39806_v50 }
0x1a04   :  { %9301 = vrot.lane.b32.xlu1 %v9299_v49, %s37767_s22 }
0x1a74   :  { %v9293_v31 = vpop.permute.xlu0 %9292 }
0x1a75   :  { %v9295_v33 = vsel %vm174_vm1, %v9293_v31, 0.0 }
0x1a76   :  { %9296 = vadd.xlane.f32.xlu0 %v9295_v33  ;;  %v9302_v57 = vpop.permute.xlu1 %9301 }
0x1a77   :  { %v9304_v22 = vsel %vm174_vm1, %v9302_v57, 0.0 }
0x1a78   :  { %9305 = vadd.xlane.f32.xlu1 %v9304_v22 }
0x1b03   :  { %v9297_v46 = vpop.xlane.xlu0 %9296 }
0x1b04   :  { %v9298_v14 = vmul.f32 0.03125, %v9297_v46 }
0x1b05   :  { %v9306_v34 = vpop.xlane.xlu1 %9305 }
0x1b06   :  { %v9309_v41 = vmul.f32 %v9298_v14, %v9298_v14  ;;  %v9307_v56 = vmul.f32 0.03125, %v9306_v34  ;;  %v9308_v45 = vsub.f32 %v39806_v50, %v9298_v14 }
0x1b08   :  { %v9310_v35 = vsub.f32 %v9307_v56, %v9309_v41 }
0x1b0a   :  { %v9311_v8 = vadd.f32 1e-05, %v9310_v35 }
0x1b0c   :  { %37540 = vrsqrt.f32 %v9311_v8 }
0x1b16   :  { %v37541_v39 = vpop.eup %37540 }
0x1b17   :  { %v9313_v23 = vmul.f32 %v37541_v39, %v9308_v45 }
0x1b19   :  { %v9314_v60 = vmul.f32 %v9313_v23, %v38584_v18 }
0x1b1b   :  { %v9315_v36 = vadd.f32 %v9314_v60, %v38586_v20 }
0x1b1d   :  { %37542 = vtanh.f32 %v9315_v36 }
0x1b27   :  { %v37543_v62 = vpop.eup %37542 }
0x1b28   :  { %9318 = vrot.lane.b32.xlu0 %v37543_v62, %s37766_s10 }
0x1b9a   :  { %v9319_v49 = vpop.permute.xlu0 %9318 }
0x1b9b   :  { %v9321_v31 = vmul.f32 %v9319_v49, %v9278_v55 }
0x1b9d   :  { %9325 = vrot.lane.b32.xlu1 %v9321_v31, %s37768_s2 }
0x1c0f   :  { %v9326_v33 = vpop.permute.xlu1 %9325 }
0x1c10   :  { %v9327_v57 = vsel %vm174_vm1, %v9326_v33, 0 }
0x1c11   :  { %v9398_v22 = vand.u32 4294901760, %v9327_v57 }
0x1c13   :  { %v9399_v46 = vsub.f32 %v9327_v57, %v9398_v22  ;;  %29474 = vmatmul.mubr.f32.vlgmr.msra.gmra.mrb[40].mxu1 %v9398_v22 }
0x1c14   :  { %34760 = vmatpush3.bf16.msra.mxu1 %v37925_v10  ;;  %29495 = vmatprep.mubr.msk.f32.mxu1 %vm37764_vm0, %v42284_v25 }
0x1c15   :  { %v9400_v14 = vand.u32 4294901760, %v9399_v46  ;;  %34761 = vmatprep.subr.bf16.mxu1 %v42285_v40 }
0x1c17   :  { %v9401_v34 = vsub.f32 %v9399_v46, %v9400_v14 }
0x1c18   :  { %34763 = vmatpush3.bf16.msra.mxu1 %v37928_v15 }
0x1c19   :  { %v9402_v55 = vand.u32 4294901760, %v9401_v34  ;;  %34770 = vmatprep.subr.bf16.mxu1 %v42285_v40 }
0x1c1b   :  { %29496 = vmatmul.mubr.f32.vlgmr.msra.gmra.mrb[42].mxu1 %v9400_v14  ;;  %29463 = vmatmul.mubr.f32.vlgmr.msra.gmra.mrb[40].mxu0 %v9402_v55  ;;  %v9323_v14 = vld [vmem:[#allocation2 + $0x28] sm:$0xff] }
0x1c1c   :  { %34754 = vmatpush3.bf16.msra.mxu0 %v37932_v26  ;;  %34772 = vmatpush3.bf16.msra.mxu1 %v37925_v10 }
0x1c1d   :  { %34755 = vmatprep.subr.bf16.mxu0 %v42285_v40  ;;  %34773 = vmatprep.subr.bf16.mxu1 %v42285_v40 }
0x1c1e   :  { %29484 = vmatprep.mubr.msk.f32.mxu0 %vm37764_vm0, %v42284_v25  ;;  %29517 = vmatprep.mubr.msk.f32.mxu1 %vm37764_vm0, %v42284_v25 }
0x1c20   :  { %34757 = vmatpush3.bf16.msra.mxu0 %v42309_v2  ;;  %34775 = vmatpush3.bf16.msra.mxu1 %v37928_v15 }
0x1c21   :  { %34764 = vmatprep.subr.bf16.mxu0 %v42285_v40  ;;  %34920 = vmatprep.subr.bf16.mxu1 %v42285_v40 }
0x1c23   :  { %29485 = vmatmul.mubr.f32.vlgmr.msra.gmra.mrb[42].mxu0 %v9399_v46  ;;  %29518 = vmatmul.mubr.f32.vlgmr.msra.gmra.mrb[44].mxu1 %v9398_v22 }
0x1c24   :  { %34766 = vmatpush3.bf16.msra.mxu0 %v42310_v3  ;;  %29506 = vmatprep.mubr.msk.f32.mxu0 %vm37764_vm0, %v42284_v25 }
0x1c25   :  { %34767 = vmatprep.subr.bf16.mxu0 %v42285_v40  ;;  %34922 = vmatpush3.bf16.msra.mxu1 %v37983_v38 }
0x1c26   :  { %34923 = vmatprep.subr.bf16.mxu1 %v42285_v40  ;;  %29762 = vmatprep.mubr.msk.f32.mxu1 %vm37764_vm0, %v42284_v25 }
0x1c28   :  { %34769 = vmatpush3.bf16.msra.mxu0 %v42311_v61 }
0x1c29   :  { %34776 = vmatprep.subr.bf16.mxu0 %v42285_v40  ;;  %34925 = vmatpush3.bf16.msra.mxu1 %v37999_v43 }
0x1c2a   :  { %34926 = vmatprep.subr.bf16.mxu1 %v42285_v40 }
0x1c2b   :  { %29507 = vmatmul.mubr.f32.vlgmr.msra.gmra.mrb[44].mxu0 %v9398_v22 }
0x1c2c   :  { %34778 = vmatpush3.bf16.msra.mxu0 %v37983_v38  ;;  %29552 = vmatprep.mubr.msk.f32.mxu0 %vm37764_vm0, %v42284_v25 }
0x1c2d   :  { %34779 = vmatprep.subr.bf16.mxu0 %v42285_v40  ;;  %34928 = vmatpush3.bf16.msra.mxu1 %v38015_v48 }
0x1c2e   :  { %34929 = vmatprep.subr.bf16.mxu1 %v42285_v40 }
0x1c30   :  { %34781 = vmatpush3.bf16.msra.mxu0 %v37999_v43 }
0x1c31   :  { %34782 = vmatprep.subr.bf16.mxu0 %v42285_v40  ;;  %34931 = vmatpush3.bf16.msra.mxu1 %v38031_v53 }
0x1c32   :  { %34932 = vmatprep.subr.bf16.mxu1 %v42285_v40 }
0x1c34   :  { %34784 = vmatpush3.bf16.msra.mxu0 %v38015_v48 }
0x1c35   :  { %34785 = vmatprep.subr.bf16.mxu0 %v42285_v40  ;;  %34934 = vmatpush3.bf16.msra.mxu1 %v38047_v58 }
0x1c36   :  { %34935 = vmatprep.subr.bf16.mxu1 %v42285_v40 }
0x1c38   :  { %34787 = vmatpush3.bf16.msra.mxu0 %v38031_v53 }
0x1c39   :  { %34788 = vmatprep.subr.bf16.mxu0 %v42285_v40  ;;  %34937 = vmatpush3.bf16.msra.mxu1 %v38063_v63 }
0x1c3a   :  { %34938 = vmatprep.subr.bf16.mxu1 %v42285_v40 }
0x1c3c   :  { %34790 = vmatpush3.bf16.msra.mxu0 %v38047_v58 }
0x1c3d   :  { %34791 = vmatprep.subr.bf16.mxu0 %v42285_v40  ;;  %34940 = vmatpush3.bf16.msra.mxu1 %v38079_v6 }
0x1c3e   :  { %34941 = vmatprep.subr.bf16.mxu1 %v42285_v40 }
0x1c40   :  { %34793 = vmatpush3.bf16.msra.mxu0 %v38063_v63 }
0x1c41   :  { %34794 = vmatprep.subr.bf16.mxu0 %v42285_v40  ;;  %34943 = vmatpush3.bf16.msra.mxu1 %v38101_v17 }
0x1c42   :  { %34944 = vmatprep.subr.bf16.mxu1 %v42285_v40 }
0x1c44   :  { %34796 = vmatpush3.bf16.msra.mxu0 %v38079_v6 }
0x1c45   :  { %34797 = vmatprep.subr.bf16.mxu0 %v42285_v40 }
0x1c48   :  { %34799 = vmatpush3.bf16.msra.mxu0 %v38101_v17 }
0x1c49   :  { %34800 = vmatprep.subr.bf16.mxu0 %v42285_v40 }
0x1ce6   :  { %v9495_v41 = vpop.f32.mrb[40].mxu1 }
0x1ce7   :  { %v29475_v56 = vpop.f32.mrb[41].mxu1 }
0x1cee   :  { %v9652_v35 = vpop.f32.mrb[42].mxu1  ;;  %v9404_v8 = vpop.f32.mrb[40].mxu0 }
0x1cef   :  { %v9496_v45 = vadd.f32 %v9495_v41, %v9404_v8  ;;  %v29497_v39 = vpop.f32.mrb[43].mxu1  ;;  %v29464_v23 = vpop.f32.mrb[41].mxu0 }
0x1cf6   :  { %v9575_v60 = vpop.f32.mrb[42].mxu0  ;;  %v9810_v36 = vpop.f32.mrb[44].mxu1 }
0x1cf7   :  { %v9576_v62 = vadd.f32 %v9575_v60, %v9496_v45  ;;  %v29486_v49 = vpop.f32.mrb[43].mxu0  ;;  %v29519_v31 = vpop.f32.mrb[45].mxu1 }
0x1cf9   :  { %v9653_v33 = vadd.f32 %v9652_v35, %v9576_v62 }
0x1cfe   :  { %v9735_v57 = vpop.f32.mrb[44].mxu0 }
0x1cff   :  { %v9736_v22 = vadd.f32 %v9735_v57, %v9653_v33  ;;  %v29508_v46 = vpop.f32.mrb[45].mxu0 }
0x1d01   :  { %v9811_v34 = vadd.f32 %v9810_v36, %v9736_v22 }
0x1d03   :  { %v39881_v55 = vadd.f32 %v9811_v34, %v9323_v14 }
0x1d05   :  { %v39884_v56 = vand.u32 4294901760, %v39881_v55  ;;  %v10456_v41 = vmul.f32 %v39881_v55, %v39881_v55 }
0x1d07   :  { %v39888_v8 = vand.u32 4294901760, %v10456_v41  ;;  %v39892_v45 = vsub.f32 %v39881_v55, %v39884_v56 }
0x1d09   :  { %v9898_v35 = vand.u32 4294901760, %v39892_v45  ;;  %v39896_v39 = vsub.f32 %v10456_v41, %v39888_v8 }
0x1d0b   :  { %v9899_v23 = vsub.f32 %v39892_v45, %v9898_v35  ;;  %v10540_v60 = vand.u32 4294901760, %v39896_v39 }
0x1d0d   :  { %v9900_v36 = vand.u32 4294901760, %v9899_v23  ;;  %v10541_v62 = vsub.f32 %v39896_v39, %v10540_v60 }
0x1d0f   :  { %29553 = vmatmul.mubr.f32.vlgmr.msra.gmra.mrb[46].mxu0 %v9900_v36  ;;  %v10542_v49 = vand.u32 4294901760, %v10541_v62 }
0x1d10   :  { %34802 = vmatpush3.bf16.msra.mxu0 %v38125_v27  ;;  %29587 = vmatprep.mubr.msk.f32.mxu0 %vm37764_vm0, %v42284_v25 }
0x1d11   :  { %29763 = vmatmul.mubr.f32.vlgmr.msra.gmra.mrb[46].mxu1 %v10542_v49  ;;  %34803 = vmatprep.subr.bf16.mxu0 %v42285_v40 }
0x1d12   :  { %34946 = vmatpush3.bf16.msra.mxu1 %v38125_v27  ;;  %29797 = vmatprep.mubr.msk.f32.mxu1 %vm37764_vm0, %v42284_v25 }
0x1d13   :  { %34947 = vmatprep.subr.bf16.mxu1 %v42285_v40 }
0x1d14   :  { %34805 = vmatpush3.bf16.msra.mxu0 %v38145_v42 }
0x1d15   :  { %34806 = vmatprep.subr.bf16.mxu0 %v42285_v40 }
0x1d16   :  { %34949 = vmatpush3.bf16.msra.mxu1 %v38145_v42 }
0x1d17   :  { %34950 = vmatprep.subr.bf16.mxu1 %v42285_v40 }
0x1d18   :  { %34808 = vmatpush3.bf16.msra.mxu0 %v38165_v28 }
0x1d19   :  { %34809 = vmatprep.subr.bf16.mxu0 %v42285_v40 }
0x1d1a   :  { %34952 = vmatpush3.bf16.msra.mxu1 %v38165_v28 }
0x1d1b   :  { %34953 = vmatprep.subr.bf16.mxu1 %v42285_v40 }
0x1d1c   :  { %34811 = vmatpush3.bf16.msra.mxu0 %v38201_v44 }
0x1d1d   :  { %34812 = vmatprep.subr.bf16.mxu0 %v42285_v40 }
0x1d1e   :  { %34955 = vmatpush3.bf16.msra.mxu1 %v38201_v44 }
0x1d1f   :  { %34956 = vmatprep.subr.bf16.mxu1 %v42285_v40 }
0x1d20   :  { %34814 = vmatpush3.bf16.msra.mxu0 %v38205_v37 }
0x1d21   :  { %34815 = vmatprep.subr.bf16.mxu0 %v42285_v40 }
0x1d22   :  { %34958 = vmatpush3.bf16.msra.mxu1 %v38205_v37 }
0x1d23   :  { %34959 = vmatprep.subr.bf16.mxu1 %v42285_v40 }
0x1d24   :  { %34817 = vmatpush3.bf16.msra.mxu0 %v38225_v47 }
0x1d25   :  { %34818 = vmatprep.subr.bf16.mxu0 %v42285_v40 }
0x1d26   :  { %34961 = vmatpush3.bf16.msra.mxu1 %v38225_v47 }
0x1d27   :  { %34962 = vmatprep.subr.bf16.mxu1 %v42285_v40 }
0x1d28   :  { %34820 = vmatpush3.bf16.msra.mxu0 %v38251_v11 }
0x1d29   :  { %34821 = vmatprep.subr.bf16.mxu0 %v42285_v40 }
0x1d2a   :  { %34964 = vmatpush3.bf16.msra.mxu1 %v38251_v11 }
0x1d2b   :  { %34965 = vmatprep.subr.bf16.mxu1 %v42285_v40 }
0x1d2c   :  { %34823 = vmatpush3.bf16.msra.mxu0 %v38253_v54 }
0x1d2d   :  { %34824 = vmatprep.subr.bf16.mxu0 %v42285_v40 }
0x1d2e   :  { %34967 = vmatpush3.bf16.msra.mxu1 %v38253_v54 }
0x1d2f   :  { %29588 = vmatmul.mubr.f32.vlgmr.msra.gmra.mrb[46].mxu0 %v39884_v56  ;;  %34968 = vmatprep.subr.bf16.mxu1 %v42285_v40 }
0x1d30   :  { %34826 = vmatpush3.bf16.msra.mxu0 %v38257_v19  ;;  %29622 = vmatprep.mubr.msk.f32.mxu0 %vm37764_vm0, %v42284_v25 }
0x1d31   :  { %29798 = vmatmul.mubr.f32.vlgmr.msra.gmra.mrb[46].mxu1 %v39888_v8  ;;  %34827 = vmatprep.subr.bf16.mxu0 %v42285_v40 }
0x1d32   :  { %34970 = vmatpush3.bf16.msra.mxu1 %v38257_v19  ;;  %29832 = vmatprep.mubr.msk.f32.mxu1 %vm37764_vm0, %v42284_v25 }
0x1d33   :  { %34971 = vmatprep.subr.bf16.mxu1 %v42285_v40 }
0x1d34   :  { %34829 = vmatpush3.bf16.msra.mxu0 %v38261_v4 }
0x1d35   :  { %34830 = vmatprep.subr.bf16.mxu0 %v42285_v40 }
0x1d36   :  { %34973 = vmatpush3.bf16.msra.mxu1 %v38261_v4 }
0x1d37   :  { %34974 = vmatprep.subr.bf16.mxu1 %v42285_v40 }
0x1d38   :  { %34832 = vmatpush3.bf16.msra.mxu0 %v38265_v59 }
0x1d39   :  { %34833 = vmatprep.subr.bf16.mxu0 %v42285_v40 }
0x1d3a   :  { %34976 = vmatpush3.bf16.msra.mxu1 %v38265_v59 }
0x1d3b   :  { %34977 = vmatprep.subr.bf16.mxu1 %v42285_v40 }
0x1d3c   :  { %34835 = vmatpush3.bf16.msra.mxu0 %v38269_v5 }
0x1d3d   :  { %34836 = vmatprep.subr.bf16.mxu0 %v42285_v40 }
0x1d3e   :  { %34979 = vmatpush3.bf16.msra.mxu1 %v38269_v5 }
0x1d3f   :  { %34980 = vmatprep.subr.bf16.mxu1 %v42285_v40 }
0x1d40   :  { %34838 = vmatpush3.bf16.msra.mxu0 %v38273_v52 }
0x1d41   :  { %34839 = vmatprep.subr.bf16.mxu0 %v42285_v40 }
0x1d42   :  { %34982 = vmatpush3.bf16.msra.mxu1 %v38273_v52 }
0x1d43   :  { %34983 = vmatprep.subr.bf16.mxu1 %v42285_v40 }
0x1d44   :  { %34841 = vmatpush3.bf16.msra.mxu0 %v38277_v9 }
0x1d45   :  { %34842 = vmatprep.subr.bf16.mxu0 %v42285_v40 }
0x1d46   :  { %34985 = vmatpush3.bf16.msra.mxu1 %v38277_v9 }
0x1d47   :  { %34986 = vmatprep.subr.bf16.mxu1 %v42285_v40 }
0x1d48   :  { %34844 = vmatpush3.bf16.msra.mxu0 %v38281_v12 }
0x1d49   :  { %34845 = vmatprep.subr.bf16.mxu0 %v42285_v40 }
0x1d4a   :  { %34988 = vmatpush3.bf16.msra.mxu1 %v38281_v12 }
0x1d4b   :  { %34989 = vmatprep.subr.bf16.mxu1 %v42285_v40 }
0x1d4c   :  { %34847 = vmatpush3.bf16.msra.mxu0 %v38285_v13 }
0x1d4d   :  { %34848 = vmatprep.subr.bf16.mxu0 %v42285_v40 }
0x1d4e   :  { %34991 = vmatpush3.bf16.msra.mxu1 %v38285_v13 }
0x1d4f   :  { %29623 = vmatmul.mubr.f32.vlgmr.msra.gmra.mrb[46].mxu0 %v39892_v45  ;;  %34992 = vmatprep.subr.bf16.mxu1 %v42285_v40 }
0x1d50   :  { %34850 = vmatpush3.bf16.msra.mxu0 %v37983_v38  ;;  %29657 = vmatprep.mubr.msk.f32.mxu0 %vm37764_vm0, %v42284_v25 }
0x1d51   :  { %29833 = vmatmul.mubr.f32.vlgmr.msra.gmra.mrb[46].mxu1 %v39896_v39  ;;  %34851 = vmatprep.subr.bf16.mxu0 %v42285_v40 }
0x1d52   :  { %34994 = vmatpush3.bf16.msra.mxu1 %v37983_v38  ;;  %29867 = vmatprep.mubr.msk.f32.mxu1 %vm37764_vm0, %v42284_v25 }
0x1d53   :  { %34995 = vmatprep.subr.bf16.mxu1 %v42285_v40 }
0x1d54   :  { %34853 = vmatpush3.bf16.msra.mxu0 %v37999_v43 }
0x1d55   :  { %34854 = vmatprep.subr.bf16.mxu0 %v42285_v40 }
0x1d56   :  { %34997 = vmatpush3.bf16.msra.mxu1 %v37999_v43 }
0x1d57   :  { %34998 = vmatprep.subr.bf16.mxu1 %v42285_v40 }
0x1d58   :  { %34856 = vmatpush3.bf16.msra.mxu0 %v38015_v48 }
0x1d59   :  { %34857 = vmatprep.subr.bf16.mxu0 %v42285_v40 }
0x1d5a   :  { %35000 = vmatpush3.bf16.msra.mxu1 %v38015_v48 }
0x1d5b   :  { %35001 = vmatprep.subr.bf16.mxu1 %v42285_v40 }
0x1d5c   :  { %34859 = vmatpush3.bf16.msra.mxu0 %v38031_v53 }
0x1d5d   :  { %34860 = vmatprep.subr.bf16.mxu0 %v42285_v40 }
0x1d5e   :  { %35003 = vmatpush3.bf16.msra.mxu1 %v38031_v53 }
0x1d5f   :  { %35004 = vmatprep.subr.bf16.mxu1 %v42285_v40 }
0x1d60   :  { %34862 = vmatpush3.bf16.msra.mxu0 %v38047_v58 }
0x1d61   :  { %34863 = vmatprep.subr.bf16.mxu0 %v42285_v40 }
0x1d62   :  { %35006 = vmatpush3.bf16.msra.mxu1 %v38047_v58 }
0x1d63   :  { %35007 = vmatprep.subr.bf16.mxu1 %v42285_v40 }
0x1d64   :  { %34865 = vmatpush3.bf16.msra.mxu0 %v38063_v63 }
0x1d65   :  { %34866 = vmatprep.subr.bf16.mxu0 %v42285_v40 }
0x1d66   :  { %35009 = vmatpush3.bf16.msra.mxu1 %v38063_v63 }
0x1d67   :  { %35010 = vmatprep.subr.bf16.mxu1 %v42285_v40 }
0x1d68   :  { %34868 = vmatpush3.bf16.msra.mxu0 %v38079_v6 }
0x1d69   :  { %34869 = vmatprep.subr.bf16.mxu0 %v42285_v40 }
0x1d6a   :  { %35012 = vmatpush3.bf16.msra.mxu1 %v38079_v6 }
0x1d6b   :  { %35013 = vmatprep.subr.bf16.mxu1 %v42285_v40 }
0x1d6c   :  { %34871 = vmatpush3.bf16.msra.mxu0 %v38101_v17 }
0x1d6d   :  { %34872 = vmatprep.subr.bf16.mxu0 %v42285_v40 }
0x1d6e   :  { %35015 = vmatpush3.bf16.msra.mxu1 %v38101_v17 }
0x1d6f   :  { %29658 = vmatmul.mubr.f32.vlgmr.msra.gmra.mrb[46].mxu0 %v9898_v35  ;;  %35016 = vmatprep.subr.bf16.mxu1 %v42285_v40 }
0x1d70   :  { %34874 = vmatpush3.bf16.msra.mxu0 %v38424_v51  ;;  %29692 = vmatprep.mubr.msk.f32.mxu0 %vm37764_vm0, %v42284_v25 }
0x1d71   :  { %29868 = vmatmul.mubr.f32.vlgmr.msra.gmra.mrb[46].mxu1 %v10540_v60  ;;  %34875 = vmatprep.subr.bf16.mxu0 %v42285_v40 }
0x1d72   :  { %35018 = vmatpush3.bf16.msra.mxu1 %v38424_v51  ;;  %29902 = vmatprep.mubr.msk.f32.mxu1 %vm37764_vm0, %v42284_v25 }
0x1d73   :  { %35019 = vmatprep.subr.bf16.mxu1 %v42285_v40 }
0x1d74   :  { %34877 = vmatpush3.bf16.msra.mxu0 %v38436_v7 }
0x1d75   :  { %34878 = vmatprep.subr.bf16.mxu0 %v42285_v40 }
0x1d76   :  { %35021 = vmatpush3.bf16.msra.mxu1 %v38436_v7 }
0x1d77   :  { %35022 = vmatprep.subr.bf16.mxu1 %v42285_v40 }
0x1d78   :  { %34880 = vmatpush3.bf16.msra.mxu0 %v38452_v21 }
0x1d79   :  { %34881 = vmatprep.subr.bf16.mxu0 %v42285_v40 }
0x1d7a   :  { %35024 = vmatpush3.bf16.msra.mxu1 %v38452_v21 }
0x1d7b   :  { %35025 = vmatprep.subr.bf16.mxu1 %v42285_v40 }
0x1d7c   :  { %34883 = vmatpush3.bf16.msra.mxu0 %v38462_v16 }
0x1d7d   :  { %34884 = vmatprep.subr.bf16.mxu0 %v42285_v40 }
0x1d7e   :  { %35027 = vmatpush3.bf16.msra.mxu1 %v38462_v16 }
0x1d7f   :  { %35028 = vmatprep.subr.bf16.mxu1 %v42285_v40 }
0x1d80   :  { %34886 = vmatpush3.bf16.msra.mxu0 %v38472_v24 }
0x1d81   :  { %34887 = vmatprep.subr.bf16.mxu0 %v42285_v40 }
0x1d82   :  { %35030 = vmatpush3.bf16.msra.mxu1 %v38472_v24 }
0x1d83   :  { %35031 = vmatprep.subr.bf16.mxu1 %v42285_v40 }
0x1d84   :  { %34889 = vmatpush3.bf16.msra.mxu0 %v38482_v0 }
0x1d85   :  { %34890 = vmatprep.subr.bf16.mxu0 %v42285_v40 }
0x1d86   :  { %35033 = vmatpush3.bf16.msra.mxu1 %v38482_v0 }
0x1d87   :  { %35034 = vmatprep.subr.bf16.mxu1 %v42285_v40 }
0x1d88   :  { %34892 = vmatpush3.bf16.msra.mxu0 %v38492_v1 }
0x1d89   :  { %34893 = vmatprep.subr.bf16.mxu0 %v42285_v40 }
0x1d8a   :  { %35036 = vmatpush3.bf16.msra.mxu1 %v38492_v1 }
0x1d8b   :  { %35037 = vmatprep.subr.bf16.mxu1 %v42285_v40 }
0x1d8c   :  { %34895 = vmatpush3.bf16.msra.mxu0 %v38502_v32 }
0x1d8d   :  { %34896 = vmatprep.subr.bf16.mxu0 %v42285_v40 }
0x1d8e   :  { %35039 = vmatpush3.bf16.msra.mxu1 %v38502_v32 }
0x1d8f   :  { %29693 = vmatmul.mubr.f32.vlgmr.msra.gmra.mrb[46].mxu0 %v39884_v56  ;;  %35040 = vmatprep.subr.bf16.mxu1 %v42285_v40 }
0x1d90   :  { %34898 = vmatpush3.bf16.msra.mxu0 %v37983_v38  ;;  %29727 = vmatprep.mubr.msk.f32.mxu0 %vm37764_vm0, %v42284_v25 }
0x1d91   :  { %29903 = vmatmul.mubr.f32.vlgmr.msra.gmra.mrb[46].mxu1 %v39888_v8  ;;  %34899 = vmatprep.subr.bf16.mxu0 %v42285_v40 }
0x1d92   :  { %35042 = vmatpush3.bf16.msra.mxu1 %v37983_v38  ;;  %29937 = vmatprep.mubr.msk.f32.mxu1 %vm37764_vm0, %v42284_v25 }
0x1d93   :  { %35043 = vmatprep.subr.bf16.mxu1 %v42285_v40 }
0x1d94   :  { %34901 = vmatpush3.bf16.msra.mxu0 %v37999_v43 }
0x1d95   :  { %34902 = vmatprep.subr.bf16.mxu0 %v42285_v40 }
0x1d96   :  { %35045 = vmatpush3.bf16.msra.mxu1 %v37999_v43 }
0x1d97   :  { %35046 = vmatprep.subr.bf16.mxu1 %v42285_v40 }
0x1d98   :  { %34904 = vmatpush3.bf16.msra.mxu0 %v38015_v48 }
0x1d99   :  { %34905 = vmatprep.subr.bf16.mxu0 %v42285_v40 }
0x1d9a   :  { %35048 = vmatpush3.bf16.msra.mxu1 %v38015_v48 }
0x1d9b   :  { %35049 = vmatprep.subr.bf16.mxu1 %v42285_v40 }
0x1d9c   :  { %34907 = vmatpush3.bf16.msra.mxu0 %v38031_v53 }
0x1d9d   :  { %34908 = vmatprep.subr.bf16.mxu0 %v42285_v40 }
0x1d9e   :  { %35051 = vmatpush3.bf16.msra.mxu1 %v38031_v53 }
0x1d9f   :  { %35052 = vmatprep.subr.bf16.mxu1 %v42285_v40 }
0x1da0   :  { %34910 = vmatpush3.bf16.msra.mxu0 %v38047_v58 }
0x1da1   :  { %34911 = vmatprep.subr.bf16.mxu0 %v42285_v40 }
0x1da2   :  { %35054 = vmatpush3.bf16.msra.mxu1 %v38047_v58 }
0x1da3   :  { %35055 = vmatprep.subr.bf16.mxu1 %v42285_v40 }
0x1da4   :  { %34913 = vmatpush3.bf16.msra.mxu0 %v38063_v63 }
0x1da5   :  { %34914 = vmatprep.subr.bf16.mxu0 %v42285_v40 }
0x1da6   :  { %35057 = vmatpush3.bf16.msra.mxu1 %v38063_v63 }
0x1da7   :  { %35058 = vmatprep.subr.bf16.mxu1 %v42285_v40 }
0x1da8   :  { %34916 = vmatpush3.bf16.msra.mxu0 %v38079_v6 }
0x1da9   :  { %34917 = vmatprep.subr.bf16.mxu0 %v42285_v40 }
0x1daa   :  { %35060 = vmatpush3.bf16.msra.mxu1 %v38079_v6 }
0x1dab   :  { %35061 = vmatprep.subr.bf16.mxu1 %v42285_v40 }
0x1dac   :  { %34919 = vmatpush3.bf16.msra.mxu0 %v38101_v17 }
0x1dad   :  { %35064 = vmatprep.subr.bf16.mxu0 %v42285_v40 }
0x1dae   :  { %35063 = vmatpush3.bf16.msra.mxu1 %v38101_v17 }
0x1daf   :  { %29728 = vmatmul.mubr.f32.vlgmr.msra.gmra.mrb[46].mxu0 %v39884_v56  ;;  %35070 = vmatprep.subr.bf16.mxu1 %v42285_v40 }
0x1db0   :  { %35066 = vmatpush3.bf16.msra.mxu0 %v37925_v10  ;;  %29948 = vmatprep.mubr.msk.f32.mxu0 %vm37764_vm0, %v42284_v25 }
0x1db1   :  { %29938 = vmatmul.mubr.f32.vlgmr.msra.gmra.mrb[46].mxu1 %v39888_v8  ;;  %35067 = vmatprep.subr.bf16.mxu0 %v42285_v40 }
0x1db2   :  { %35072 = vmatpush3.bf16.msra.mxu1 %v37935_v29  ;;  %29959 = vmatprep.mubr.msk.f32.mxu1 %vm37764_vm0, %v42284_v25 }
0x1db3   :  { %35073 = vmatprep.subr.bf16.mxu1 %v42285_v40 }
0x1db4   :  { %35069 = vmatpush3.bf16.msra.mxu0 %v37928_v15 }
0x1db5   :  { %35076 = vmatprep.subr.bf16.mxu0 %v42285_v40 }
0x1db6   :  { %35075 = vmatpush3.bf16.msra.mxu1 %v37940_v30 }
0x1db7   :  { %35082 = vmatprep.subr.bf16.mxu1 %v42285_v40 }
0x1e82   :  { %v10452_v31 = vpop.f32.mrb[46].mxu0 }
0x1e83   :  { %v11099_v33 = vmul.f32 %v10452_v31, %v10452_v31  ;;  %v29729_v57 = vpop.f32.mrb[47].mxu0  ;;  %v11098_v56 = vsub.f32 %v39881_v55, %v10452_v31 }
0x1e84   :  { %v11094_v22 = vpop.f32.mrb[46].mxu1 }
0x1e85   :  { %v11100_v46 = vsub.f32 %v11094_v22, %v11099_v33  ;;  %v29939_v14 = vpop.f32.mrb[47].mxu1 }
0x1e87   :  { %v11101_v34 = vadd.f32 1e-05, %v11100_v46 }
0x1e89   :  { %37544 = vrsqrt.f32 %v11101_v34 }
0x1e93   :  { %v37545_v41 = vpop.eup %37544 }
0x1e94   :  { %v11103_v8 = vmul.f32 %v37545_v41, %v11098_v56 }
0x1e96   :  { %37546 = vtanh.f32 %v11103_v8  ;;  %v11104_v35 = vmul.f32 0.5, %v11103_v8 }
0x1e98   :  { %37548 = vtanh.f32 %v11104_v35 }
0x1ea0   :  { %v37547_v45 = vpop.eup %37546 }
0x1ea1   :  { %11111 = vrot.lane.b32.xlu0 %v37547_v45, %s37766_s10 }
0x1ea2   :  { %v37549_v39 = vpop.eup %37548 }
0x1ea3   :  { %v11106_v23 = vmul.f32 0.5, %v37549_v39 }
0x1ea5   :  { %v11107_v60 = vadd.f32 0.5, %v11106_v23 }
0x1ea7   :  { %v11109_v49 = vmul.f32 %v11107_v60, %v39806_v50 }
0x1f13   :  { %v11112_v36 = vpop.permute.xlu0 %11111 }
0x1f14   :  { %v11114_v62 = vmul.f32 %v11112_v36, %v11107_v60 }
0x1f16   :  { %11116 = vrot.lane.b32.xlu1 %v11114_v62, %s37766_s10 }
0x1f88   :  { %v11117_v33 = vpop.permute.xlu1 %11116 }
0x1f89   :  { %v40113_v57 = vadd.f32 %v11117_v33, %v11109_v49 }
0x1f8b   :  { %11121 = vrot.lane.b32.xlu0 %v40113_v57, %s37767_s22  ;;  %v11128_v55 = vmul.f32 %v40113_v57, %v40113_v57 }
0x1f8d   :  { %11130 = vrot.lane.b32.xlu1 %v11128_v55, %s37767_s22 }
0x1ffd   :  { %v11122_v31 = vpop.permute.xlu0 %11121 }
0x1ffe   :  { %v11124_v22 = vsel %vm174_vm1, %v11122_v31, 0.0 }
0x1fff   :  { %11125 = vadd.xlane.f32.xlu0 %v11124_v22  ;;  %v11131_v46 = vpop.permute.xlu1 %11130 }
0x2000   :  { %v11133_v14 = vsel %vm174_vm1, %v11131_v46, 0.0 }
0x2001   :  { %11134 = vadd.xlane.f32.xlu1 %v11133_v14 }
0x208c   :  { %v11126_v50 = vpop.xlane.xlu0 %11125 }
0x208d   :  { %v11127_v34 = vmul.f32 0.03125, %v11126_v50 }
0x208e   :  { %v11135_v56 = vpop.xlane.xlu1 %11134 }
0x208f   :  { %v11138_v41 = vmul.f32 %v11127_v34, %v11127_v34  ;;  %v11136_v8 = vmul.f32 0.03125, %v11135_v56  ;;  %v11137_v39 = vsub.f32 %v40113_v57, %v11127_v34 }
0x2091   :  { %v11139_v45 = vsub.f32 %v11136_v8, %v11138_v41 }
0x2093   :  { %v11140_v35 = vadd.f32 1e-05, %v11139_v45 }
0x2095   :  { %37550 = vrsqrt.f32 %v11140_v35 }
0x209f   :  { %v37551_v23 = vpop.eup %37550 }
0x20a0   :  { %v11142_v36 = vmul.f32 %v37551_v23, %v11137_v39 }
0x20a2   :  { %v11143_v62 = vmul.f32 %v11142_v36, %v38584_v18 }
0x20a4   :  { %v11144_v49 = vadd.f32 %v11143_v62, %v38586_v20 }
0x20a6   :  { %37552 = vtanh.f32 %v11144_v49 }
0x20b0   :  { %v37553_v33 = vpop.eup %37552 }
0x20b1   :  { %11147 = vrot.lane.b32.xlu0 %v37553_v33, %s37766_s10 }
0x2123   :  { %v11148_v55 = vpop.permute.xlu0 %11147 }
0x2124   :  { %v11150_v31 = vmul.f32 %v11148_v55, %v11107_v60 }
0x2126   :  { %11154 = vrot.lane.b32.xlu1 %v11150_v31, %s37768_s2 }
0x2198   :  { %v11155_v22 = vpop.permute.xlu1 %11154 }
0x2199   :  { %v11156_v46 = vsel %vm174_vm1, %v11155_v22, 0 }
0x219a   :  { %v11227_v14 = vand.u32 4294901760, %v11156_v46 }
0x219c   :  { %v11228_v50 = vsub.f32 %v11156_v46, %v11227_v14  ;;  %29960 = vmatmul.mubr.f32.vlgmr.msra.gmra.mrb[48].mxu1 %v11227_v14 }
0x219d   :  { %35084 = vmatpush3.bf16.msra.mxu1 %v37925_v10  ;;  %29981 = vmatprep.mubr.msk.f32.mxu1 %vm37764_vm0, %v42284_v25 }
0x219e   :  { %v11229_v34 = vand.u32 4294901760, %v11228_v50  ;;  %35085 = vmatprep.subr.bf16.mxu1 %v42285_v40 }
0x21a0   :  { %v11230_v56 = vsub.f32 %v11228_v50, %v11229_v34 }
0x21a1   :  { %35087 = vmatpush3.bf16.msra.mxu1 %v37928_v15 }
0x21a2   :  { %v11231_v60 = vand.u32 4294901760, %v11230_v56  ;;  %35094 = vmatprep.subr.bf16.mxu1 %v42285_v40 }
0x21a4   :  { %29982 = vmatmul.mubr.f32.vlgmr.msra.gmra.mrb[50].mxu1 %v11229_v34  ;;  %29949 = vmatmul.mubr.f32.vlgmr.msra.gmra.mrb[48].mxu0 %v11231_v60  ;;  %v11152_v34 = vld [vmem:[#allocation2 + $0x30] sm:$0xff] }
0x21a5   :  { %35078 = vmatpush3.bf16.msra.mxu0 %v37932_v26  ;;  %35096 = vmatpush3.bf16.msra.mxu1 %v37925_v10 }
0x21a6   :  { %35079 = vmatprep.subr.bf16.mxu0 %v42285_v40  ;;  %35097 = vmatprep.subr.bf16.mxu1 %v42285_v40 }
0x21a7   :  { %29970 = vmatprep.mubr.msk.f32.mxu0 %vm37764_vm0, %v42284_v25  ;;  %30003 = vmatprep.mubr.msk.f32.mxu1 %vm37764_vm0, %v42284_v25 }
0x21a9   :  { %35081 = vmatpush3.bf16.msra.mxu0 %v42309_v2  ;;  %35099 = vmatpush3.bf16.msra.mxu1 %v37928_v15 }
0x21aa   :  { %35088 = vmatprep.subr.bf16.mxu0 %v42285_v40  ;;  %35244 = vmatprep.subr.bf16.mxu1 %v42285_v40 }
0x21ac   :  { %29971 = vmatmul.mubr.f32.vlgmr.msra.gmra.mrb[50].mxu0 %v11228_v50  ;;  %30004 = vmatmul.mubr.f32.vlgmr.msra.gmra.mrb[52].mxu1 %v11227_v14 }
0x21ad   :  { %35090 = vmatpush3.bf16.msra.mxu0 %v42310_v3  ;;  %29992 = vmatprep.mubr.msk.f32.mxu0 %vm37764_vm0, %v42284_v25 }
0x21ae   :  { %35091 = vmatprep.subr.bf16.mxu0 %v42285_v40  ;;  %35246 = vmatpush3.bf16.msra.mxu1 %v37983_v38 }
0x21af   :  { %35247 = vmatprep.subr.bf16.mxu1 %v42285_v40  ;;  %30248 = vmatprep.mubr.msk.f32.mxu1 %vm37764_vm0, %v42284_v25 }
0x21b1   :  { %35093 = vmatpush3.bf16.msra.mxu0 %v42311_v61 }
0x21b2   :  { %35100 = vmatprep.subr.bf16.mxu0 %v42285_v40  ;;  %35249 = vmatpush3.bf16.msra.mxu1 %v37999_v43 }
0x21b3   :  { %35250 = vmatprep.subr.bf16.mxu1 %v42285_v40 }
0x21b4   :  { %29993 = vmatmul.mubr.f32.vlgmr.msra.gmra.mrb[52].mxu0 %v11227_v14 }
0x21b5   :  { %35102 = vmatpush3.bf16.msra.mxu0 %v37983_v38  ;;  %30038 = vmatprep.mubr.msk.f32.mxu0 %vm37764_vm0, %v42284_v25 }
0x21b6   :  { %35103 = vmatprep.subr.bf16.mxu0 %v42285_v40  ;;  %35252 = vmatpush3.bf16.msra.mxu1 %v38015_v48 }
0x21b7   :  { %35253 = vmatprep.subr.bf16.mxu1 %v42285_v40 }
0x21b9   :  { %35105 = vmatpush3.bf16.msra.mxu0 %v37999_v43 }
0x21ba   :  { %35106 = vmatprep.subr.bf16.mxu0 %v42285_v40  ;;  %35255 = vmatpush3.bf16.msra.mxu1 %v38031_v53 }
0x21bb   :  { %35256 = vmatprep.subr.bf16.mxu1 %v42285_v40 }
0x21bd   :  { %35108 = vmatpush3.bf16.msra.mxu0 %v38015_v48 }
0x21be   :  { %35109 = vmatprep.subr.bf16.mxu0 %v42285_v40  ;;  %35258 = vmatpush3.bf16.msra.mxu1 %v38047_v58 }
0x21bf   :  { %35259 = vmatprep.subr.bf16.mxu1 %v42285_v40 }
0x21c1   :  { %35111 = vmatpush3.bf16.msra.mxu0 %v38031_v53 }
0x21c2   :  { %35112 = vmatprep.subr.bf16.mxu0 %v42285_v40  ;;  %35261 = vmatpush3.bf16.msra.mxu1 %v38063_v63 }
0x21c3   :  { %35262 = vmatprep.subr.bf16.mxu1 %v42285_v40 }
0x21c5   :  { %35114 = vmatpush3.bf16.msra.mxu0 %v38047_v58 }
0x21c6   :  { %35115 = vmatprep.subr.bf16.mxu0 %v42285_v40  ;;  %35264 = vmatpush3.bf16.msra.mxu1 %v38079_v6 }
0x21c7   :  { %35265 = vmatprep.subr.bf16.mxu1 %v42285_v40 }
0x21c9   :  { %35117 = vmatpush3.bf16.msra.mxu0 %v38063_v63 }
0x21ca   :  { %35118 = vmatprep.subr.bf16.mxu0 %v42285_v40  ;;  %35267 = vmatpush3.bf16.msra.mxu1 %v38101_v17 }
0x21cb   :  { %35268 = vmatprep.subr.bf16.mxu1 %v42285_v40 }
0x21cd   :  { %35120 = vmatpush3.bf16.msra.mxu0 %v38079_v6 }
0x21ce   :  { %35121 = vmatprep.subr.bf16.mxu0 %v42285_v40 }
0x21d1   :  { %35123 = vmatpush3.bf16.msra.mxu0 %v38101_v17 }
0x21d2   :  { %35124 = vmatprep.subr.bf16.mxu0 %v42285_v40 }
0x226f   :  { %v11324_v41 = vpop.f32.mrb[48].mxu1 }
0x2270   :  { %v29961_v8 = vpop.f32.mrb[49].mxu1 }
0x2277   :  { %v11481_v45 = vpop.f32.mrb[50].mxu1  ;;  %v11233_v35 = vpop.f32.mrb[48].mxu0 }
0x2278   :  { %v11325_v39 = vadd.f32 %v11324_v41, %v11233_v35  ;;  %v29983_v23 = vpop.f32.mrb[51].mxu1  ;;  %v29950_v36 = vpop.f32.mrb[49].mxu0 }
0x227f   :  { %v11404_v62 = vpop.f32.mrb[50].mxu0  ;;  %v11639_v49 = vpop.f32.mrb[52].mxu1 }
0x2280   :  { %v11405_v33 = vadd.f32 %v11404_v62, %v11325_v39  ;;  %v29972_v55 = vpop.f32.mrb[51].mxu0  ;;  %v30005_v31 = vpop.f32.mrb[53].mxu1 }
0x2282   :  { %v11482_v22 = vadd.f32 %v11481_v45, %v11405_v33 }
0x2287   :  { %v11564_v46 = vpop.f32.mrb[52].mxu0 }
0x2288   :  { %v11565_v14 = vadd.f32 %v11564_v46, %v11482_v22  ;;  %v29994_v50 = vpop.f32.mrb[53].mxu0 }
0x228a   :  { %v11640_v56 = vadd.f32 %v11639_v49, %v11565_v14 }
0x228c   :  { %v40188_v60 = vadd.f32 %v11640_v56, %v11152_v34 }
0x228e   :  { %v40191_v8 = vand.u32 4294901760, %v40188_v60  ;;  %v12285_v41 = vmul.f32 %v40188_v60, %v40188_v60 }
0x2290   :  { %v40195_v35 = vand.u32 4294901760, %v12285_v41  ;;  %v40199_v39 = vsub.f32 %v40188_v60, %v40191_v8 }
0x2292   :  { %v11727_v45 = vand.u32 4294901760, %v40199_v39  ;;  %v40203_v23 = vsub.f32 %v12285_v41, %v40195_v35 }
0x2294   :  { %v11728_v36 = vsub.f32 %v40199_v39, %v11727_v45  ;;  %v12369_v62 = vand.u32 4294901760, %v40203_v23 }
0x2296   :  { %v11729_v49 = vand.u32 4294901760, %v11728_v36  ;;  %v12370_v33 = vsub.f32 %v40203_v23, %v12369_v62 }
0x2298   :  { %30039 = vmatmul.mubr.f32.vlgmr.msra.gmra.mrb[54].mxu0 %v11729_v49  ;;  %v12371_v55 = vand.u32 4294901760, %v12370_v33 }
0x2299   :  { %35126 = vmatpush3.bf16.msra.mxu0 %v38125_v27  ;;  %30073 = vmatprep.mubr.msk.f32.mxu0 %vm37764_vm0, %v42284_v25 }
0x229a   :  { %30249 = vmatmul.mubr.f32.vlgmr.msra.gmra.mrb[54].mxu1 %v12371_v55  ;;  %35127 = vmatprep.subr.bf16.mxu0 %v42285_v40 }
0x229b   :  { %35270 = vmatpush3.bf16.msra.mxu1 %v38125_v27  ;;  %30283 = vmatprep.mubr.msk.f32.mxu1 %vm37764_vm0, %v42284_v25 }
0x229c   :  { %35271 = vmatprep.subr.bf16.mxu1 %v42285_v40 }
0x229d   :  { %35129 = vmatpush3.bf16.msra.mxu0 %v38145_v42 }
0x229e   :  { %35130 = vmatprep.subr.bf16.mxu0 %v42285_v40 }
0x229f   :  { %35273 = vmatpush3.bf16.msra.mxu1 %v38145_v42 }
0x22a0   :  { %35274 = vmatprep.subr.bf16.mxu1 %v42285_v40 }
0x22a1   :  { %35132 = vmatpush3.bf16.msra.mxu0 %v38165_v28 }
0x22a2   :  { %35133 = vmatprep.subr.bf16.mxu0 %v42285_v40 }
0x22a3   :  { %35276 = vmatpush3.bf16.msra.mxu1 %v38165_v28 }
0x22a4   :  { %35277 = vmatprep.subr.bf16.mxu1 %v42285_v40 }
0x22a5   :  { %35135 = vmatpush3.bf16.msra.mxu0 %v38201_v44 }
0x22a6   :  { %35136 = vmatprep.subr.bf16.mxu0 %v42285_v40 }
0x22a7   :  { %35279 = vmatpush3.bf16.msra.mxu1 %v38201_v44 }
0x22a8   :  { %35280 = vmatprep.subr.bf16.mxu1 %v42285_v40 }
0x22a9   :  { %35138 = vmatpush3.bf16.msra.mxu0 %v38205_v37 }
0x22aa   :  { %35139 = vmatprep.subr.bf16.mxu0 %v42285_v40 }
0x22ab   :  { %35282 = vmatpush3.bf16.msra.mxu1 %v38205_v37 }
0x22ac   :  { %35283 = vmatprep.subr.bf16.mxu1 %v42285_v40 }
0x22ad   :  { %35141 = vmatpush3.bf16.msra.mxu0 %v38225_v47 }
0x22ae   :  { %35142 = vmatprep.subr.bf16.mxu0 %v42285_v40 }
0x22af   :  { %35285 = vmatpush3.bf16.msra.mxu1 %v38225_v47 }
0x22b0   :  { %35286 = vmatprep.subr.bf16.mxu1 %v42285_v40 }
0x22b1   :  { %35144 = vmatpush3.bf16.msra.mxu0 %v38251_v11 }
0x22b2   :  { %35145 = vmatprep.subr.bf16.mxu0 %v42285_v40 }
0x22b3   :  { %35288 = vmatpush3.bf16.msra.mxu1 %v38251_v11 }
0x22b4   :  { %35289 = vmatprep.subr.bf16.mxu1 %v42285_v40 }
0x22b5   :  { %35147 = vmatpush3.bf16.msra.mxu0 %v38253_v54 }
0x22b6   :  { %35148 = vmatprep.subr.bf16.mxu0 %v42285_v40 }
0x22b7   :  { %35291 = vmatpush3.bf16.msra.mxu1 %v38253_v54 }
0x22b8   :  { %30074 = vmatmul.mubr.f32.vlgmr.msra.gmra.mrb[54].mxu0 %v40191_v8  ;;  %35292 = vmatprep.subr.bf16.mxu1 %v42285_v40 }
0x22b9   :  { %35150 = vmatpush3.bf16.msra.mxu0 %v38257_v19  ;;  %30108 = vmatprep.mubr.msk.f32.mxu0 %vm37764_vm0, %v42284_v25 }
0x22ba   :  { %30284 = vmatmul.mubr.f32.vlgmr.msra.gmra.mrb[54].mxu1 %v40195_v35  ;;  %35151 = vmatprep.subr.bf16.mxu0 %v42285_v40 }
0x22bb   :  { %35294 = vmatpush3.bf16.msra.mxu1 %v38257_v19  ;;  %30318 = vmatprep.mubr.msk.f32.mxu1 %vm37764_vm0, %v42284_v25 }
0x22bc   :  { %35295 = vmatprep.subr.bf16.mxu1 %v42285_v40 }
0x22bd   :  { %35153 = vmatpush3.bf16.msra.mxu0 %v38261_v4 }
0x22be   :  { %35154 = vmatprep.subr.bf16.mxu0 %v42285_v40 }
0x22bf   :  { %35297 = vmatpush3.bf16.msra.mxu1 %v38261_v4 }
0x22c0   :  { %35298 = vmatprep.subr.bf16.mxu1 %v42285_v40 }
0x22c1   :  { %35156 = vmatpush3.bf16.msra.mxu0 %v38265_v59 }
0x22c2   :  { %35157 = vmatprep.subr.bf16.mxu0 %v42285_v40 }
0x22c3   :  { %35300 = vmatpush3.bf16.msra.mxu1 %v38265_v59 }
0x22c4   :  { %35301 = vmatprep.subr.bf16.mxu1 %v42285_v40 }
0x22c5   :  { %35159 = vmatpush3.bf16.msra.mxu0 %v38269_v5 }
0x22c6   :  { %35160 = vmatprep.subr.bf16.mxu0 %v42285_v40 }
0x22c7   :  { %35303 = vmatpush3.bf16.msra.mxu1 %v38269_v5 }
0x22c8   :  { %35304 = vmatprep.subr.bf16.mxu1 %v42285_v40 }
0x22c9   :  { %35162 = vmatpush3.bf16.msra.mxu0 %v38273_v52 }
0x22ca   :  { %35163 = vmatprep.subr.bf16.mxu0 %v42285_v40 }
0x22cb   :  { %35306 = vmatpush3.bf16.msra.mxu1 %v38273_v52 }
0x22cc   :  { %35307 = vmatprep.subr.bf16.mxu1 %v42285_v40 }
0x22cd   :  { %35165 = vmatpush3.bf16.msra.mxu0 %v38277_v9 }
0x22ce   :  { %35166 = vmatprep.subr.bf16.mxu0 %v42285_v40 }
0x22cf   :  { %35309 = vmatpush3.bf16.msra.mxu1 %v38277_v9 }
0x22d0   :  { %35310 = vmatprep.subr.bf16.mxu1 %v42285_v40 }
0x22d1   :  { %35168 = vmatpush3.bf16.msra.mxu0 %v38281_v12 }
0x22d2   :  { %35169 = vmatprep.subr.bf16.mxu0 %v42285_v40 }
0x22d3   :  { %35312 = vmatpush3.bf16.msra.mxu1 %v38281_v12 }
0x22d4   :  { %35313 = vmatprep.subr.bf16.mxu1 %v42285_v40 }
0x22d5   :  { %35171 = vmatpush3.bf16.msra.mxu0 %v38285_v13 }
0x22d6   :  { %35172 = vmatprep.subr.bf16.mxu0 %v42285_v40 }
0x22d7   :  { %35315 = vmatpush3.bf16.msra.mxu1 %v38285_v13 }
0x22d8   :  { %30109 = vmatmul.mubr.f32.vlgmr.msra.gmra.mrb[54].mxu0 %v40199_v39  ;;  %35316 = vmatprep.subr.bf16.mxu1 %v42285_v40 }
0x22d9   :  { %35174 = vmatpush3.bf16.msra.mxu0 %v37983_v38  ;;  %30143 = vmatprep.mubr.msk.f32.mxu0 %vm37764_vm0, %v42284_v25 }
0x22da   :  { %30319 = vmatmul.mubr.f32.vlgmr.msra.gmra.mrb[54].mxu1 %v40203_v23  ;;  %35175 = vmatprep.subr.bf16.mxu0 %v42285_v40 }
0x22db   :  { %35318 = vmatpush3.bf16.msra.mxu1 %v37983_v38  ;;  %30353 = vmatprep.mubr.msk.f32.mxu1 %vm37764_vm0, %v42284_v25 }
0x22dc   :  { %35319 = vmatprep.subr.bf16.mxu1 %v42285_v40 }
0x22dd   :  { %35177 = vmatpush3.bf16.msra.mxu0 %v37999_v43 }
0x22de   :  { %35178 = vmatprep.subr.bf16.mxu0 %v42285_v40 }
0x22df   :  { %35321 = vmatpush3.bf16.msra.mxu1 %v37999_v43 }
0x22e0   :  { %35322 = vmatprep.subr.bf16.mxu1 %v42285_v40 }
0x22e1   :  { %35180 = vmatpush3.bf16.msra.mxu0 %v38015_v48 }
0x22e2   :  { %35181 = vmatprep.subr.bf16.mxu0 %v42285_v40 }
0x22e3   :  { %35324 = vmatpush3.bf16.msra.mxu1 %v38015_v48 }
0x22e4   :  { %35325 = vmatprep.subr.bf16.mxu1 %v42285_v40 }
0x22e5   :  { %35183 = vmatpush3.bf16.msra.mxu0 %v38031_v53 }
0x22e6   :  { %35184 = vmatprep.subr.bf16.mxu0 %v42285_v40 }
0x22e7   :  { %35327 = vmatpush3.bf16.msra.mxu1 %v38031_v53 }
0x22e8   :  { %35328 = vmatprep.subr.bf16.mxu1 %v42285_v40 }
0x22e9   :  { %35186 = vmatpush3.bf16.msra.mxu0 %v38047_v58 }
0x22ea   :  { %35187 = vmatprep.subr.bf16.mxu0 %v42285_v40 }
0x22eb   :  { %35330 = vmatpush3.bf16.msra.mxu1 %v38047_v58 }
0x22ec   :  { %35331 = vmatprep.subr.bf16.mxu1 %v42285_v40 }
0x22ed   :  { %35189 = vmatpush3.bf16.msra.mxu0 %v38063_v63 }
0x22ee   :  { %35190 = vmatprep.subr.bf16.mxu0 %v42285_v40 }
0x22ef   :  { %35333 = vmatpush3.bf16.msra.mxu1 %v38063_v63 }
0x22f0   :  { %35334 = vmatprep.subr.bf16.mxu1 %v42285_v40 }
0x22f1   :  { %35192 = vmatpush3.bf16.msra.mxu0 %v38079_v6 }
0x22f2   :  { %35193 = vmatprep.subr.bf16.mxu0 %v42285_v40 }
0x22f3   :  { %35336 = vmatpush3.bf16.msra.mxu1 %v38079_v6 }
0x22f4   :  { %35337 = vmatprep.subr.bf16.mxu1 %v42285_v40 }
0x22f5   :  { %35195 = vmatpush3.bf16.msra.mxu0 %v38101_v17 }
0x22f6   :  { %35196 = vmatprep.subr.bf16.mxu0 %v42285_v40 }
0x22f7   :  { %35339 = vmatpush3.bf16.msra.mxu1 %v38101_v17 }
0x22f8   :  { %30144 = vmatmul.mubr.f32.vlgmr.msra.gmra.mrb[54].mxu0 %v11727_v45  ;;  %35340 = vmatprep.subr.bf16.mxu1 %v42285_v40 }
0x22f9   :  { %35198 = vmatpush3.bf16.msra.mxu0 %v38424_v51  ;;  %30178 = vmatprep.mubr.msk.f32.mxu0 %vm37764_vm0, %v42284_v25 }
0x22fa   :  { %30354 = vmatmul.mubr.f32.vlgmr.msra.gmra.mrb[54].mxu1 %v12369_v62  ;;  %35199 = vmatprep.subr.bf16.mxu0 %v42285_v40 }
0x22fb   :  { %35342 = vmatpush3.bf16.msra.mxu1 %v38424_v51  ;;  %30388 = vmatprep.mubr.msk.f32.mxu1 %vm37764_vm0, %v42284_v25 }
0x22fc   :  { %35343 = vmatprep.subr.bf16.mxu1 %v42285_v40 }
0x22fd   :  { %35201 = vmatpush3.bf16.msra.mxu0 %v38436_v7 }
0x22fe   :  { %35202 = vmatprep.subr.bf16.mxu0 %v42285_v40 }
0x22ff   :  { %35345 = vmatpush3.bf16.msra.mxu1 %v38436_v7 }
0x2300   :  { %35346 = vmatprep.subr.bf16.mxu1 %v42285_v40 }
0x2301   :  { %35204 = vmatpush3.bf16.msra.mxu0 %v38452_v21 }
0x2302   :  { %35205 = vmatprep.subr.bf16.mxu0 %v42285_v40 }
0x2303   :  { %35348 = vmatpush3.bf16.msra.mxu1 %v38452_v21 }
0x2304   :  { %35349 = vmatprep.subr.bf16.mxu1 %v42285_v40 }
0x2305   :  { %35207 = vmatpush3.bf16.msra.mxu0 %v38462_v16 }
0x2306   :  { %35208 = vmatprep.subr.bf16.mxu0 %v42285_v40 }
0x2307   :  { %35351 = vmatpush3.bf16.msra.mxu1 %v38462_v16 }
0x2308   :  { %35352 = vmatprep.subr.bf16.mxu1 %v42285_v40 }
0x2309   :  { %35210 = vmatpush3.bf16.msra.mxu0 %v38472_v24 }
0x230a   :  { %35211 = vmatprep.subr.bf16.mxu0 %v42285_v40 }
0x230b   :  { %35354 = vmatpush3.bf16.msra.mxu1 %v38472_v24 }
0x230c   :  { %35355 = vmatprep.subr.bf16.mxu1 %v42285_v40 }
0x230d   :  { %35213 = vmatpush3.bf16.msra.mxu0 %v38482_v0 }
0x230e   :  { %35214 = vmatprep.subr.bf16.mxu0 %v42285_v40 }
0x230f   :  { %35357 = vmatpush3.bf16.msra.mxu1 %v38482_v0 }
0x2310   :  { %35358 = vmatprep.subr.bf16.mxu1 %v42285_v40 }
0x2311   :  { %35216 = vmatpush3.bf16.msra.mxu0 %v38492_v1 }
0x2312   :  { %35217 = vmatprep.subr.bf16.mxu0 %v42285_v40 }
0x2313   :  { %35360 = vmatpush3.bf16.msra.mxu1 %v38492_v1 }
0x2314   :  { %35361 = vmatprep.subr.bf16.mxu1 %v42285_v40 }
0x2315   :  { %35219 = vmatpush3.bf16.msra.mxu0 %v38502_v32 }
0x2316   :  { %35220 = vmatprep.subr.bf16.mxu0 %v42285_v40 }
0x2317   :  { %35363 = vmatpush3.bf16.msra.mxu1 %v38502_v32 }
0x2318   :  { %30179 = vmatmul.mubr.f32.vlgmr.msra.gmra.mrb[54].mxu0 %v40191_v8  ;;  %35364 = vmatprep.subr.bf16.mxu1 %v42285_v40 }
0x2319   :  { %35222 = vmatpush3.bf16.msra.mxu0 %v37983_v38  ;;  %30213 = vmatprep.mubr.msk.f32.mxu0 %vm37764_vm0, %v42284_v25 }
0x231a   :  { %30389 = vmatmul.mubr.f32.vlgmr.msra.gmra.mrb[54].mxu1 %v40195_v35  ;;  %35223 = vmatprep.subr.bf16.mxu0 %v42285_v40 }
0x231b   :  { %35366 = vmatpush3.bf16.msra.mxu1 %v37983_v38  ;;  %30423 = vmatprep.mubr.msk.f32.mxu1 %vm37764_vm0, %v42284_v25 }
0x231c   :  { %35367 = vmatprep.subr.bf16.mxu1 %v42285_v40 }
0x231d   :  { %35225 = vmatpush3.bf16.msra.mxu0 %v37999_v43 }
0x231e   :  { %35226 = vmatprep.subr.bf16.mxu0 %v42285_v40 }
0x231f   :  { %35369 = vmatpush3.bf16.msra.mxu1 %v37999_v43 }
0x2320   :  { %35370 = vmatprep.subr.bf16.mxu1 %v42285_v40 }
0x2321   :  { %35228 = vmatpush3.bf16.msra.mxu0 %v38015_v48 }
0x2322   :  { %35229 = vmatprep.subr.bf16.mxu0 %v42285_v40 }
0x2323   :  { %35372 = vmatpush3.bf16.msra.mxu1 %v38015_v48 }
0x2324   :  { %35373 = vmatprep.subr.bf16.mxu1 %v42285_v40 }
0x2325   :  { %35231 = vmatpush3.bf16.msra.mxu0 %v38031_v53 }
0x2326   :  { %35232 = vmatprep.subr.bf16.mxu0 %v42285_v40 }
0x2327   :  { %35375 = vmatpush3.bf16.msra.mxu1 %v38031_v53 }
0x2328   :  { %35376 = vmatprep.subr.bf16.mxu1 %v42285_v40 }
0x2329   :  { %35234 = vmatpush3.bf16.msra.mxu0 %v38047_v58 }
0x232a   :  { %35235 = vmatprep.subr.bf16.mxu0 %v42285_v40 }
0x232b   :  { %35378 = vmatpush3.bf16.msra.mxu1 %v38047_v58 }
0x232c   :  { %35379 = vmatprep.subr.bf16.mxu1 %v42285_v40 }
0x232d   :  { %35237 = vmatpush3.bf16.msra.mxu0 %v38063_v63 }
0x232e   :  { %35238 = vmatprep.subr.bf16.mxu0 %v42285_v40 }
0x232f   :  { %35381 = vmatpush3.bf16.msra.mxu1 %v38063_v63 }
0x2330   :  { %35382 = vmatprep.subr.bf16.mxu1 %v42285_v40 }
0x2331   :  { %35240 = vmatpush3.bf16.msra.mxu0 %v38079_v6 }
0x2332   :  { %35241 = vmatprep.subr.bf16.mxu0 %v42285_v40 }
0x2333   :  { %35384 = vmatpush3.bf16.msra.mxu1 %v38079_v6 }
0x2334   :  { %35385 = vmatprep.subr.bf16.mxu1 %v42285_v40 }
0x2335   :  { %35243 = vmatpush3.bf16.msra.mxu0 %v38101_v17 }
0x2336   :  { %35388 = vmatprep.subr.bf16.mxu0 %v42285_v40 }
0x2337   :  { %35387 = vmatpush3.bf16.msra.mxu1 %v38101_v17 }
0x2338   :  { %30214 = vmatmul.mubr.f32.vlgmr.msra.gmra.mrb[54].mxu0 %v40191_v8  ;;  %35394 = vmatprep.subr.bf16.mxu1 %v42285_v40 }
0x2339   :  { %35390 = vmatpush3.bf16.msra.mxu0 %v37925_v10  ;;  %30434 = vmatprep.mubr.msk.f32.mxu0 %vm37764_vm0, %v42284_v25 }
0x233a   :  { %30424 = vmatmul.mubr.f32.vlgmr.msra.gmra.mrb[54].mxu1 %v40195_v35  ;;  %35391 = vmatprep.subr.bf16.mxu0 %v42285_v40 }
0x233b   :  { %35396 = vmatpush3.bf16.msra.mxu1 %v37935_v29  ;;  %30445 = vmatprep.mubr.msk.f32.mxu1 %vm37764_vm0, %v42284_v25 }
0x233c   :  { %35397 = vmatprep.subr.bf16.mxu1 %v42285_v40 }
0x233d   :  { %35393 = vmatpush3.bf16.msra.mxu0 %v37928_v15 }
0x233e   :  { %35400 = vmatprep.subr.bf16.mxu0 %v42285_v40 }
0x233f   :  { %35399 = vmatpush3.bf16.msra.mxu1 %v37940_v30 }
0x2340   :  { %35406 = vmatprep.subr.bf16.mxu1 %v42285_v40 }
0x240b   :  { %v12281_v31 = vpop.f32.mrb[54].mxu0 }
0x240c   :  { %v12928_v22 = vmul.f32 %v12281_v31, %v12281_v31  ;;  %v30215_v46 = vpop.f32.mrb[55].mxu0  ;;  %v12927_v56 = vsub.f32 %v40188_v60, %v12281_v31 }
0x240d   :  { %v12923_v14 = vpop.f32.mrb[54].mxu1 }
0x240e   :  { %v12929_v50 = vsub.f32 %v12923_v14, %v12928_v22  ;;  %v30425_v34 = vpop.f32.mrb[55].mxu1 }
0x2410   :  { %v12930_v29 = vadd.f32 1e-05, %v12929_v50 }
0x2412   :  { %37554 = vrsqrt.f32 %v12930_v29 }
0x241c   :  { %v37555_v8 = vpop.eup %37554 }
0x241d   :  { %v12932_v41 = vmul.f32 %v37555_v8, %v12927_v56 }
0x241f   :  { %37556 = vtanh.f32 %v12932_v41  ;;  %v12933_v39 = vmul.f32 0.5, %v12932_v41 }
0x2421   :  { %37558 = vtanh.f32 %v12933_v39 }
0x2429   :  { %v37557_v35 = vpop.eup %37556 }
0x242a   :  { %12940 = vrot.lane.b32.xlu0 %v37557_v35, %s37766_s10 }
0x242b   :  { %v37559_v30 = vpop.eup %37558 }
0x242c   :  { %v12935_v45 = vmul.f32 0.5, %v37559_v30 }
0x242e   :  { %v12936_v23 = vadd.f32 0.5, %v12935_v45 }
0x2430   :  { %v12938_v49 = vmul.f32 %v12936_v23, %v40113_v57 }
0x249c   :  { %v12941_v36 = vpop.permute.xlu0 %12940 }
0x249d   :  { %v12943_v62 = vmul.f32 %v12941_v36, %v12936_v23 }
0x249f   :  { %12945 = vrot.lane.b32.xlu1 %v12943_v62, %s37766_s10 }
0x2511   :  { %v12946_v33 = vpop.permute.xlu1 %12945 }
0x2512   :  { %v40420_v55 = vadd.f32 %v12946_v33, %v12938_v49 }
0x2514   :  { %12950 = vrot.lane.b32.xlu0 %v40420_v55, %s37767_s22  ;;  %v12957_v60 = vmul.f32 %v40420_v55, %v40420_v55 }
0x2516   :  { %12959 = vrot.lane.b32.xlu1 %v12957_v60, %s37767_s22 }
0x2586   :  { %v12951_v31 = vpop.permute.xlu0 %12950 }
0x2587   :  { %v12953_v22 = vsel %vm174_vm1, %v12951_v31, 0.0 }
0x2588   :  { %12954 = vadd.xlane.f32.xlu0 %v12953_v22  ;;  %v12960_v46 = vpop.permute.xlu1 %12959 }
0x2589   :  { %v12962_v14 = vsel %vm174_vm1, %v12960_v46, 0.0 }
0x258a   :  { %12963 = vadd.xlane.f32.xlu1 %v12962_v14 }
0x2615   :  { %v12955_v57 = vpop.xlane.xlu0 %12954 }
0x2616   :  { %v12956_v50 = vmul.f32 0.03125, %v12955_v57 }
0x2617   :  { %v12964_v34 = vpop.xlane.xlu1 %12963 }
0x2618   :  { %v12967_v29 = vmul.f32 %v12956_v50, %v12956_v50  ;;  %v12965_v56 = vmul.f32 0.03125, %v12964_v34  ;;  %v12966_v35 = vsub.f32 %v40420_v55, %v12956_v50 }
0x261a   :  { %v12968_v8 = vsub.f32 %v12965_v56, %v12967_v29 }
0x261c   :  { %v12969_v41 = vadd.f32 1e-05, %v12968_v8 }
0x261e   :  { %37560 = vrsqrt.f32 %v12969_v41 }
0x2628   :  { %v37561_v39 = vpop.eup %37560 }
0x2629   :  { %v12971_v30 = vmul.f32 %v37561_v39, %v12966_v35 }
0x262b   :  { %v12972_v45 = vmul.f32 %v12971_v30, %v38584_v18 }
0x262d   :  { %v12973_v36 = vadd.f32 %v12972_v45, %v38586_v20 }
0x262f   :  { %37562 = vtanh.f32 %v12973_v36  ;;  %v12981_v36 = vld [vmem:[#allocation2 + $0x38] sm:$0xff] }
0x2639   :  { %v37563_v62 = vpop.eup %37562 }
0x263a   :  { %12976 = vrot.lane.b32.xlu0 %v37563_v62, %s37766_s10 }
0x26ac   :  { %v12977_v49 = vpop.permute.xlu0 %12976 }
0x26ad   :  { %v12979_v33 = vmul.f32 %v12977_v49, %v12936_v23 }
0x26af   :  { %12983 = vrot.lane.b32.xlu1 %v12979_v33, %s37768_s2 }
0x2721   :  { %v12984_v60 = vpop.permute.xlu1 %12983 }
0x2722   :  { %v12985_v31 = vsel %vm174_vm1, %v12984_v60, 0 }
0x2723   :  { %v13056_v22 = vand.u32 4294901760, %v12985_v31 }
0x2725   :  { %v13057_v46 = vsub.f32 %v12985_v31, %v13056_v22  ;;  %30446 = vmatmul.mubr.f32.vlgmr.msra.gmra.mrb[56].mxu1 %v13056_v22 }
0x2726   :  { %35408 = vmatpush3.bf16.msra.mxu1 %v37925_v10  ;;  %30467 = vmatprep.mubr.msk.f32.mxu1 %vm37764_vm0, %v42284_v25 }
0x2727   :  { %v13058_v14 = vand.u32 4294901760, %v13057_v46  ;;  %35409 = vmatprep.subr.bf16.mxu1 %v42285_v40 }
0x2729   :  { %v13059_v57 = vsub.f32 %v13057_v46, %v13058_v14 }
0x272a   :  { %35411 = vmatpush3.bf16.msra.mxu1 %v37928_v15 }
0x272b   :  { %v13060_v23 = vand.u32 4294901760, %v13059_v57  ;;  %35418 = vmatprep.subr.bf16.mxu1 %v42285_v40 }
0x272d   :  { %30468 = vmatmul.mubr.f32.vlgmr.msra.gmra.mrb[58].mxu1 %v13058_v14  ;;  %30435 = vmatmul.mubr.f32.vlgmr.msra.gmra.mrb[56].mxu0 %v13060_v23 }
0x272e   :  { %35402 = vmatpush3.bf16.msra.mxu0 %v37932_v26  ;;  %35420 = vmatpush3.bf16.msra.mxu1 %v37925_v10 }
0x272f   :  { %35403 = vmatprep.subr.bf16.mxu0 %v42285_v40  ;;  %35421 = vmatprep.subr.bf16.mxu1 %v42285_v40 }
0x2730   :  { %30456 = vmatprep.mubr.msk.f32.mxu0 %vm37764_vm0, %v42284_v25  ;;  %30489 = vmatprep.mubr.msk.f32.mxu1 %vm37764_vm0, %v42284_v25 }
0x2732   :  { %35405 = vmatpush3.bf16.msra.mxu0 %v42309_v2  ;;  %35423 = vmatpush3.bf16.msra.mxu1 %v37928_v15 }
0x2733   :  { %35412 = vmatprep.subr.bf16.mxu0 %v42285_v40  ;;  %35568 = vmatprep.subr.bf16.mxu1 %v42285_v40 }
0x2735   :  { %30457 = vmatmul.mubr.f32.vlgmr.msra.gmra.mrb[58].mxu0 %v13057_v46  ;;  %30490 = vmatmul.mubr.f32.vlgmr.msra.gmra.mrb[60].mxu1 %v13056_v22 }
0x2736   :  { %35414 = vmatpush3.bf16.msra.mxu0 %v42310_v3  ;;  %30478 = vmatprep.mubr.msk.f32.mxu0 %vm37764_vm0, %v42284_v25 }
0x2737   :  { %35415 = vmatprep.subr.bf16.mxu0 %v42285_v40  ;;  %35570 = vmatpush3.bf16.msra.mxu1 %v37983_v38 }
0x2738   :  { %35571 = vmatprep.subr.bf16.mxu1 %v42285_v40  ;;  %30734 = vmatprep.mubr.msk.f32.mxu1 %vm37764_vm0, %v42284_v25 }
0x273a   :  { %35417 = vmatpush3.bf16.msra.mxu0 %v42311_v61 }
0x273b   :  { %35424 = vmatprep.subr.bf16.mxu0 %v42285_v40  ;;  %35573 = vmatpush3.bf16.msra.mxu1 %v37999_v43 }
0x273c   :  { %35574 = vmatprep.subr.bf16.mxu1 %v42285_v40 }
0x273d   :  { %30479 = vmatmul.mubr.f32.vlgmr.msra.gmra.mrb[60].mxu0 %v13056_v22 }
0x273e   :  { %35426 = vmatpush3.bf16.msra.mxu0 %v37983_v38  ;;  %30524 = vmatprep.mubr.msk.f32.mxu0 %vm37764_vm0, %v42284_v25 }
0x273f   :  { %35427 = vmatprep.subr.bf16.mxu0 %v42285_v40  ;;  %35576 = vmatpush3.bf16.msra.mxu1 %v38015_v48 }
0x2740   :  { %35577 = vmatprep.subr.bf16.mxu1 %v42285_v40 }
0x2742   :  { %35429 = vmatpush3.bf16.msra.mxu0 %v37999_v43 }
0x2743   :  { %35430 = vmatprep.subr.bf16.mxu0 %v42285_v40  ;;  %35579 = vmatpush3.bf16.msra.mxu1 %v38031_v53 }
0x2744   :  { %35580 = vmatprep.subr.bf16.mxu1 %v42285_v40 }
0x2746   :  { %35432 = vmatpush3.bf16.msra.mxu0 %v38015_v48 }
0x2747   :  { %35433 = vmatprep.subr.bf16.mxu0 %v42285_v40  ;;  %35582 = vmatpush3.bf16.msra.mxu1 %v38047_v58 }
0x2748   :  { %35583 = vmatprep.subr.bf16.mxu1 %v42285_v40 }
0x274a   :  { %35435 = vmatpush3.bf16.msra.mxu0 %v38031_v53 }
0x274b   :  { %35436 = vmatprep.subr.bf16.mxu0 %v42285_v40  ;;  %35585 = vmatpush3.bf16.msra.mxu1 %v38063_v63 }
0x274c   :  { %35586 = vmatprep.subr.bf16.mxu1 %v42285_v40 }
0x274e   :  { %35438 = vmatpush3.bf16.msra.mxu0 %v38047_v58 }
0x274f   :  { %35439 = vmatprep.subr.bf16.mxu0 %v42285_v40  ;;  %35588 = vmatpush3.bf16.msra.mxu1 %v38079_v6 }
0x2750   :  { %35589 = vmatprep.subr.bf16.mxu1 %v42285_v40 }
0x2752   :  { %35441 = vmatpush3.bf16.msra.mxu0 %v38063_v63 }
0x2753   :  { %35442 = vmatprep.subr.bf16.mxu0 %v42285_v40  ;;  %35591 = vmatpush3.bf16.msra.mxu1 %v38101_v17 }
0x2754   :  { %35592 = vmatprep.subr.bf16.mxu1 %v42285_v40 }
0x2756   :  { %35444 = vmatpush3.bf16.msra.mxu0 %v38079_v6 }
0x2757   :  { %35445 = vmatprep.subr.bf16.mxu0 %v42285_v40 }
0x275a   :  { %35447 = vmatpush3.bf16.msra.mxu0 %v38101_v17 }
0x275b   :  { %35448 = vmatprep.subr.bf16.mxu0 %v42285_v40 }
0x27f8   :  { %v13153_v10 = vpop.f32.mrb[56].mxu1 }
0x27f9   :  { %v30447_v15 = vpop.f32.mrb[57].mxu1 }
0x2800   :  { %v13310_v26 = vpop.f32.mrb[58].mxu1  ;;  %v13062_v2 = vpop.f32.mrb[56].mxu0 }
0x2801   :  { %v13154_v3 = vadd.f32 %v13153_v10, %v13062_v2  ;;  %v30469_v61 = vpop.f32.mrb[59].mxu1  ;;  %v30436_v50 = vpop.f32.mrb[57].mxu0 }
0x2808   :  { %v13233_v34 = vpop.f32.mrb[58].mxu0  ;;  %v13468_v29 = vpop.f32.mrb[60].mxu1 }
0x2809   :  { %v13234_v56 = vadd.f32 %v13233_v34, %v13154_v3  ;;  %v30458_v8 = vpop.f32.mrb[59].mxu0  ;;  %v30491_v41 = vpop.f32.mrb[61].mxu1 }
0x280b   :  { %v13311_v35 = vadd.f32 %v13310_v26, %v13234_v56 }
0x2810   :  { %v13393_v39 = vpop.f32.mrb[60].mxu0 }
0x2811   :  { %v13394_v30 = vadd.f32 %v13393_v39, %v13311_v35  ;;  %v30480_v45 = vpop.f32.mrb[61].mxu0 }
0x2813   :  { %v13469_v62 = vadd.f32 %v13468_v29, %v13394_v30 }
0x2815   :  { %v40495_v49 = vadd.f32 %v13469_v62, %v12981_v36 }
0x2817   :  { %v40498_v33 = vand.u32 4294901760, %v40495_v49  ;;  %v14114_v60 = vmul.f32 %v40495_v49, %v40495_v49 }
0x2819   :  { %v40502_v31 = vand.u32 4294901760, %v14114_v60  ;;  %v40506_v22 = vsub.f32 %v40495_v49, %v40498_v33 }
0x281b   :  { %v13556_v46 = vand.u32 4294901760, %v40506_v22  ;;  %v40510_v14 = vsub.f32 %v14114_v60, %v40502_v31 }
0x281d   :  { %v13557_v57 = vsub.f32 %v40506_v22, %v13556_v46  ;;  %v14198_v23 = vand.u32 4294901760, %v40510_v14 }
0x281f   :  { %v13558_v10 = vand.u32 4294901760, %v13557_v57  ;;  %v14199_v15 = vsub.f32 %v40510_v14, %v14198_v23 }
0x2821   :  { %30525 = vmatmul.mubr.f32.vlgmr.msra.gmra.mrb[62].mxu0 %v13558_v10  ;;  %v14200_v26 = vand.u32 4294901760, %v14199_v15 }
0x2822   :  { %35450 = vmatpush3.bf16.msra.mxu0 %v38125_v27  ;;  %30559 = vmatprep.mubr.msk.f32.mxu0 %vm37764_vm0, %v42284_v25 }
0x2823   :  { %30735 = vmatmul.mubr.f32.vlgmr.msra.gmra.mrb[62].mxu1 %v14200_v26  ;;  %35451 = vmatprep.subr.bf16.mxu0 %v42285_v40 }
0x2824   :  { %35594 = vmatpush3.bf16.msra.mxu1 %v38125_v27  ;;  %30769 = vmatprep.mubr.msk.f32.mxu1 %vm37764_vm0, %v42284_v25 }
0x2825   :  { %35595 = vmatprep.subr.bf16.mxu1 %v42285_v40 }
0x2826   :  { %35453 = vmatpush3.bf16.msra.mxu0 %v38145_v42 }
0x2827   :  { %35454 = vmatprep.subr.bf16.mxu0 %v42285_v40 }
0x2828   :  { %35597 = vmatpush3.bf16.msra.mxu1 %v38145_v42 }
0x2829   :  { %35598 = vmatprep.subr.bf16.mxu1 %v42285_v40 }
0x282a   :  { %35456 = vmatpush3.bf16.msra.mxu0 %v38165_v28 }
0x282b   :  { %35457 = vmatprep.subr.bf16.mxu0 %v42285_v40 }
0x282c   :  { %35600 = vmatpush3.bf16.msra.mxu1 %v38165_v28 }
0x282d   :  { %35601 = vmatprep.subr.bf16.mxu1 %v42285_v40 }
0x282e   :  { %35459 = vmatpush3.bf16.msra.mxu0 %v38201_v44 }
0x282f   :  { %35460 = vmatprep.subr.bf16.mxu0 %v42285_v40 }
0x2830   :  { %35603 = vmatpush3.bf16.msra.mxu1 %v38201_v44 }
0x2831   :  { %35604 = vmatprep.subr.bf16.mxu1 %v42285_v40 }
0x2832   :  { %35462 = vmatpush3.bf16.msra.mxu0 %v38205_v37 }
0x2833   :  { %35463 = vmatprep.subr.bf16.mxu0 %v42285_v40 }
0x2834   :  { %35606 = vmatpush3.bf16.msra.mxu1 %v38205_v37 }
0x2835   :  { %35607 = vmatprep.subr.bf16.mxu1 %v42285_v40 }
0x2836   :  { %35465 = vmatpush3.bf16.msra.mxu0 %v38225_v47 }
0x2837   :  { %35466 = vmatprep.subr.bf16.mxu0 %v42285_v40 }
0x2838   :  { %35609 = vmatpush3.bf16.msra.mxu1 %v38225_v47 }
0x2839   :  { %35610 = vmatprep.subr.bf16.mxu1 %v42285_v40 }
0x283a   :  { %35468 = vmatpush3.bf16.msra.mxu0 %v38251_v11 }
0x283b   :  { %35469 = vmatprep.subr.bf16.mxu0 %v42285_v40 }
0x283c   :  { %35612 = vmatpush3.bf16.msra.mxu1 %v38251_v11 }
0x283d   :  { %35613 = vmatprep.subr.bf16.mxu1 %v42285_v40 }
0x283e   :  { %35471 = vmatpush3.bf16.msra.mxu0 %v38253_v54 }
0x283f   :  { %35472 = vmatprep.subr.bf16.mxu0 %v42285_v40 }
0x2840   :  { %35615 = vmatpush3.bf16.msra.mxu1 %v38253_v54 }
0x2841   :  { %30560 = vmatmul.mubr.f32.vlgmr.msra.gmra.mrb[62].mxu0 %v40498_v33  ;;  %35616 = vmatprep.subr.bf16.mxu1 %v42285_v40 }
0x2842   :  { %35474 = vmatpush3.bf16.msra.mxu0 %v38257_v19  ;;  %30594 = vmatprep.mubr.msk.f32.mxu0 %vm37764_vm0, %v42284_v25 }
0x2843   :  { %30770 = vmatmul.mubr.f32.vlgmr.msra.gmra.mrb[62].mxu1 %v40502_v31  ;;  %35475 = vmatprep.subr.bf16.mxu0 %v42285_v40 }
0x2844   :  { %35618 = vmatpush3.bf16.msra.mxu1 %v38257_v19  ;;  %30804 = vmatprep.mubr.msk.f32.mxu1 %vm37764_vm0, %v42284_v25 }
0x2845   :  { %35619 = vmatprep.subr.bf16.mxu1 %v42285_v40 }
0x2846   :  { %35477 = vmatpush3.bf16.msra.mxu0 %v38261_v4 }
0x2847   :  { %35478 = vmatprep.subr.bf16.mxu0 %v42285_v40 }
0x2848   :  { %35621 = vmatpush3.bf16.msra.mxu1 %v38261_v4 }
0x2849   :  { %35622 = vmatprep.subr.bf16.mxu1 %v42285_v40 }
0x284a   :  { %35480 = vmatpush3.bf16.msra.mxu0 %v38265_v59 }
0x284b   :  { %35481 = vmatprep.subr.bf16.mxu0 %v42285_v40 }
0x284c   :  { %35624 = vmatpush3.bf16.msra.mxu1 %v38265_v59 }
0x284d   :  { %35625 = vmatprep.subr.bf16.mxu1 %v42285_v40 }
0x284e   :  { %35483 = vmatpush3.bf16.msra.mxu0 %v38269_v5 }
0x284f   :  { %35484 = vmatprep.subr.bf16.mxu0 %v42285_v40 }
0x2850   :  { %35627 = vmatpush3.bf16.msra.mxu1 %v38269_v5 }
0x2851   :  { %35628 = vmatprep.subr.bf16.mxu1 %v42285_v40 }
0x2852   :  { %35486 = vmatpush3.bf16.msra.mxu0 %v38273_v52 }
0x2853   :  { %35487 = vmatprep.subr.bf16.mxu0 %v42285_v40 }
0x2854   :  { %35630 = vmatpush3.bf16.msra.mxu1 %v38273_v52 }
0x2855   :  { %35631 = vmatprep.subr.bf16.mxu1 %v42285_v40 }
0x2856   :  { %35489 = vmatpush3.bf16.msra.mxu0 %v38277_v9 }
0x2857   :  { %35490 = vmatprep.subr.bf16.mxu0 %v42285_v40 }
0x2858   :  { %35633 = vmatpush3.bf16.msra.mxu1 %v38277_v9 }
0x2859   :  { %35634 = vmatprep.subr.bf16.mxu1 %v42285_v40 }
0x285a   :  { %35492 = vmatpush3.bf16.msra.mxu0 %v38281_v12 }
0x285b   :  { %35493 = vmatprep.subr.bf16.mxu0 %v42285_v40 }
0x285c   :  { %35636 = vmatpush3.bf16.msra.mxu1 %v38281_v12 }
0x285d   :  { %35637 = vmatprep.subr.bf16.mxu1 %v42285_v40 }
0x285e   :  { %35495 = vmatpush3.bf16.msra.mxu0 %v38285_v13 }
0x285f   :  { %35496 = vmatprep.subr.bf16.mxu0 %v42285_v40 }
0x2860   :  { %35639 = vmatpush3.bf16.msra.mxu1 %v38285_v13 }
0x2861   :  { %30595 = vmatmul.mubr.f32.vlgmr.msra.gmra.mrb[62].mxu0 %v40506_v22  ;;  %35640 = vmatprep.subr.bf16.mxu1 %v42285_v40 }
0x2862   :  { %35498 = vmatpush3.bf16.msra.mxu0 %v37983_v38  ;;  %30629 = vmatprep.mubr.msk.f32.mxu0 %vm37764_vm0, %v42284_v25 }
0x2863   :  { %30805 = vmatmul.mubr.f32.vlgmr.msra.gmra.mrb[62].mxu1 %v40510_v14  ;;  %35499 = vmatprep.subr.bf16.mxu0 %v42285_v40 }
0x2864   :  { %35642 = vmatpush3.bf16.msra.mxu1 %v37983_v38  ;;  %30839 = vmatprep.mubr.msk.f32.mxu1 %vm37764_vm0, %v42284_v25 }
0x2865   :  { %35643 = vmatprep.subr.bf16.mxu1 %v42285_v40 }
0x2866   :  { %35501 = vmatpush3.bf16.msra.mxu0 %v37999_v43 }
0x2867   :  { %35502 = vmatprep.subr.bf16.mxu0 %v42285_v40 }
0x2868   :  { %35645 = vmatpush3.bf16.msra.mxu1 %v37999_v43 }
0x2869   :  { %35646 = vmatprep.subr.bf16.mxu1 %v42285_v40 }
0x286a   :  { %35504 = vmatpush3.bf16.msra.mxu0 %v38015_v48 }
0x286b   :  { %35505 = vmatprep.subr.bf16.mxu0 %v42285_v40 }
0x286c   :  { %35648 = vmatpush3.bf16.msra.mxu1 %v38015_v48 }
0x286d   :  { %35649 = vmatprep.subr.bf16.mxu1 %v42285_v40 }
0x286e   :  { %35507 = vmatpush3.bf16.msra.mxu0 %v38031_v53 }
0x286f   :  { %35508 = vmatprep.subr.bf16.mxu0 %v42285_v40 }
0x2870   :  { %35651 = vmatpush3.bf16.msra.mxu1 %v38031_v53 }
0x2871   :  { %35652 = vmatprep.subr.bf16.mxu1 %v42285_v40 }
0x2872   :  { %35510 = vmatpush3.bf16.msra.mxu0 %v38047_v58 }
0x2873   :  { %35511 = vmatprep.subr.bf16.mxu0 %v42285_v40 }
0x2874   :  { %35654 = vmatpush3.bf16.msra.mxu1 %v38047_v58 }
0x2875   :  { %35655 = vmatprep.subr.bf16.mxu1 %v42285_v40 }
0x2876   :  { %35513 = vmatpush3.bf16.msra.mxu0 %v38063_v63 }
0x2877   :  { %35514 = vmatprep.subr.bf16.mxu0 %v42285_v40 }
0x2878   :  { %35657 = vmatpush3.bf16.msra.mxu1 %v38063_v63 }
0x2879   :  { %35658 = vmatprep.subr.bf16.mxu1 %v42285_v40 }
0x287a   :  { %35516 = vmatpush3.bf16.msra.mxu0 %v38079_v6 }
0x287b   :  { %35517 = vmatprep.subr.bf16.mxu0 %v42285_v40 }
0x287c   :  { %35660 = vmatpush3.bf16.msra.mxu1 %v38079_v6 }
0x287d   :  { %35661 = vmatprep.subr.bf16.mxu1 %v42285_v40 }
0x287e   :  { %35519 = vmatpush3.bf16.msra.mxu0 %v38101_v17 }
0x287f   :  { %35520 = vmatprep.subr.bf16.mxu0 %v42285_v40 }
0x2880   :  { %35663 = vmatpush3.bf16.msra.mxu1 %v38101_v17 }
0x2881   :  { %30630 = vmatmul.mubr.f32.vlgmr.msra.gmra.mrb[62].mxu0 %v13556_v46  ;;  %35664 = vmatprep.subr.bf16.mxu1 %v42285_v40 }
0x2882   :  { %35522 = vmatpush3.bf16.msra.mxu0 %v38424_v51  ;;  %30664 = vmatprep.mubr.msk.f32.mxu0 %vm37764_vm0, %v42284_v25 }
0x2883   :  { %30840 = vmatmul.mubr.f32.vlgmr.msra.gmra.mrb[62].mxu1 %v14198_v23  ;;  %35523 = vmatprep.subr.bf16.mxu0 %v42285_v40 }
0x2884   :  { %35666 = vmatpush3.bf16.msra.mxu1 %v38424_v51  ;;  %30874 = vmatprep.mubr.msk.f32.mxu1 %vm37764_vm0, %v42284_v25 }
0x2885   :  { %35667 = vmatprep.subr.bf16.mxu1 %v42285_v40 }
0x2886   :  { %35525 = vmatpush3.bf16.msra.mxu0 %v38436_v7 }
0x2887   :  { %35526 = vmatprep.subr.bf16.mxu0 %v42285_v40 }
0x2888   :  { %35669 = vmatpush3.bf16.msra.mxu1 %v38436_v7 }
0x2889   :  { %35670 = vmatprep.subr.bf16.mxu1 %v42285_v40 }
0x288a   :  { %35528 = vmatpush3.bf16.msra.mxu0 %v38452_v21 }
0x288b   :  { %35529 = vmatprep.subr.bf16.mxu0 %v42285_v40 }
0x288c   :  { %35672 = vmatpush3.bf16.msra.mxu1 %v38452_v21 }
0x288d   :  { %35673 = vmatprep.subr.bf16.mxu1 %v42285_v40 }
0x288e   :  { %35531 = vmatpush3.bf16.msra.mxu0 %v38462_v16 }
0x288f   :  { %35532 = vmatprep.subr.bf16.mxu0 %v42285_v40 }
0x2890   :  { %35675 = vmatpush3.bf16.msra.mxu1 %v38462_v16 }
0x2891   :  { %35676 = vmatprep.subr.bf16.mxu1 %v42285_v40 }
0x2892   :  { %35534 = vmatpush3.bf16.msra.mxu0 %v38472_v24 }
0x2893   :  { %35535 = vmatprep.subr.bf16.mxu0 %v42285_v40 }
0x2894   :  { %35678 = vmatpush3.bf16.msra.mxu1 %v38472_v24 }
0x2895   :  { %35679 = vmatprep.subr.bf16.mxu1 %v42285_v40 }
0x2896   :  { %35537 = vmatpush3.bf16.msra.mxu0 %v38482_v0 }
0x2897   :  { %35538 = vmatprep.subr.bf16.mxu0 %v42285_v40 }
0x2898   :  { %35681 = vmatpush3.bf16.msra.mxu1 %v38482_v0 }
0x2899   :  { %35682 = vmatprep.subr.bf16.mxu1 %v42285_v40 }
0x289a   :  { %35540 = vmatpush3.bf16.msra.mxu0 %v38492_v1 }
0x289b   :  { %35541 = vmatprep.subr.bf16.mxu0 %v42285_v40 }
0x289c   :  { %35684 = vmatpush3.bf16.msra.mxu1 %v38492_v1 }
0x289d   :  { %35685 = vmatprep.subr.bf16.mxu1 %v42285_v40 }
0x289e   :  { %35543 = vmatpush3.bf16.msra.mxu0 %v38502_v32 }
0x289f   :  { %35544 = vmatprep.subr.bf16.mxu0 %v42285_v40 }
0x28a0   :  { %35687 = vmatpush3.bf16.msra.mxu1 %v38502_v32 }
0x28a1   :  { %30665 = vmatmul.mubr.f32.vlgmr.msra.gmra.mrb[62].mxu0 %v40498_v33  ;;  %35688 = vmatprep.subr.bf16.mxu1 %v42285_v40 }
0x28a2   :  { %35546 = vmatpush3.bf16.msra.mxu0 %v37983_v38  ;;  %30699 = vmatprep.mubr.msk.f32.mxu0 %vm37764_vm0, %v42284_v25 }
0x28a3   :  { %30875 = vmatmul.mubr.f32.vlgmr.msra.gmra.mrb[62].mxu1 %v40502_v31  ;;  %35547 = vmatprep.subr.bf16.mxu0 %v42285_v40 }
0x28a4   :  { %35690 = vmatpush3.bf16.msra.mxu1 %v37983_v38  ;;  %30909 = vmatprep.mubr.msk.f32.mxu1 %vm37764_vm0, %v42284_v25 }
0x28a5   :  { %35691 = vmatprep.subr.bf16.mxu1 %v42285_v40 }
0x28a6   :  { %35549 = vmatpush3.bf16.msra.mxu0 %v37999_v43 }
0x28a7   :  { %35550 = vmatprep.subr.bf16.mxu0 %v42285_v40 }
0x28a8   :  { %35693 = vmatpush3.bf16.msra.mxu1 %v37999_v43 }
0x28a9   :  { %35694 = vmatprep.subr.bf16.mxu1 %v42285_v40 }
0x28aa   :  { %35552 = vmatpush3.bf16.msra.mxu0 %v38015_v48 }
0x28ab   :  { %35553 = vmatprep.subr.bf16.mxu0 %v42285_v40 }
0x28ac   :  { %35696 = vmatpush3.bf16.msra.mxu1 %v38015_v48 }
0x28ad   :  { %35697 = vmatprep.subr.bf16.mxu1 %v42285_v40 }
0x28ae   :  { %35555 = vmatpush3.bf16.msra.mxu0 %v38031_v53 }
0x28af   :  { %35556 = vmatprep.subr.bf16.mxu0 %v42285_v40 }
0x28b0   :  { %35699 = vmatpush3.bf16.msra.mxu1 %v38031_v53 }
0x28b1   :  { %35700 = vmatprep.subr.bf16.mxu1 %v42285_v40 }
0x28b2   :  { %35558 = vmatpush3.bf16.msra.mxu0 %v38047_v58 }
0x28b3   :  { %35559 = vmatprep.subr.bf16.mxu0 %v42285_v40 }
0x28b4   :  { %35702 = vmatpush3.bf16.msra.mxu1 %v38047_v58 }
0x28b5   :  { %35703 = vmatprep.subr.bf16.mxu1 %v42285_v40 }
0x28b6   :  { %35561 = vmatpush3.bf16.msra.mxu0 %v38063_v63 }
0x28b7   :  { %35562 = vmatprep.subr.bf16.mxu0 %v42285_v40 }
0x28b8   :  { %35705 = vmatpush3.bf16.msra.mxu1 %v38063_v63 }
0x28b9   :  { %35706 = vmatprep.subr.bf16.mxu1 %v42285_v40 }
0x28ba   :  { %35564 = vmatpush3.bf16.msra.mxu0 %v38079_v6 }
0x28bb   :  { %35565 = vmatprep.subr.bf16.mxu0 %v42285_v40 }
0x28bc   :  { %35708 = vmatpush3.bf16.msra.mxu1 %v38079_v6 }
0x28bd   :  { %35709 = vmatprep.subr.bf16.mxu1 %v42285_v40 }
0x28be   :  { %35567 = vmatpush3.bf16.msra.mxu0 %v38101_v17 }
0x28bf   :  { %35712 = vmatprep.subr.bf16.mxu0 %v42285_v40 }
0x28c0   :  { %35711 = vmatpush3.bf16.msra.mxu1 %v38101_v17 }
0x28c1   :  { %30700 = vmatmul.mubr.f32.vlgmr.msra.gmra.mrb[62].mxu0 %v40498_v33  ;;  %35748 = vmatprep.subr.bf16.mxu1 %v42285_v40 }
0x28c2   :  { %30920 = vmatprep.mubr.msk.f32.mxu0 %vm37764_vm0, %v42284_v25 }
0x28c3   :  { %30910 = vmatmul.mubr.f32.vlgmr.msra.gmra.mrb[62].mxu1 %v40502_v31 }
0x28c4   :  { %35750 = vmatpush3.bf16.msra.mxu1 %v37983_v38  ;;  %31010 = vmatprep.mubr.msk.f32.mxu1 %vm37764_vm0, %v42284_v25 }
0x28c5   :  { %35751 = vmatprep.subr.bf16.mxu1 %v42285_v40 }
0x28c8   :  { %35753 = vmatpush3.bf16.msra.mxu1 %v37999_v43 }
0x28c9   :  { %35754 = vmatprep.subr.bf16.mxu1 %v42285_v40 }
0x28cc   :  { %35756 = vmatpush3.bf16.msra.mxu1 %v38015_v48 }
0x28cd   :  { %35757 = vmatprep.subr.bf16.mxu1 %v42285_v40 }
0x28d0   :  { %35759 = vmatpush3.bf16.msra.mxu1 %v38031_v53 }
0x28d1   :  { %35760 = vmatprep.subr.bf16.mxu1 %v42285_v40 }
0x28d4   :  { %35762 = vmatpush3.bf16.msra.mxu1 %v38047_v58 }
0x28d5   :  { %35763 = vmatprep.subr.bf16.mxu1 %v42285_v40 }
0x28d8   :  { %35765 = vmatpush3.bf16.msra.mxu1 %v38063_v63 }
0x28d9   :  { %35766 = vmatprep.subr.bf16.mxu1 %v42285_v40 }
0x28dc   :  { %35768 = vmatpush3.bf16.msra.mxu1 %v38079_v6 }
0x28dd   :  { %35769 = vmatprep.subr.bf16.mxu1 %v42285_v40 }
0x28e0   :  { %35771 = vmatpush3.bf16.msra.mxu1 %v38101_v17 }
0x28e1   :  { %35772 = vmatprep.subr.bf16.mxu1 %v42285_v40 }
0x2994   :  { %v14110_v2 = vpop.f32.mrb[62].mxu0 }
0x2995   :  { %v14757_v3 = vmul.f32 %v14110_v2, %v14110_v2  ;;  %v30701_v61 = vpop.f32.mrb[63].mxu0  ;;  %v14756_v8 = vsub.f32 %v40495_v49, %v14110_v2 }
0x2996   :  { %v14752_v50 = vpop.f32.mrb[62].mxu1 }
0x2997   :  { %v14758_v34 = vsub.f32 %v14752_v50, %v14757_v3  ;;  %v30911_v29 = vpop.f32.mrb[63].mxu1 }
0x2999   :  { %v14759_v56 = vadd.f32 1e-05, %v14758_v34 }
0x299b   :  { %37564 = vrsqrt.f32 %v14759_v56 }
0x29a5   :  { %v37565_v41 = vpop.eup %37564 }
0x29a6   :  { %v14761_v35 = vmul.f32 %v37565_v41, %v14756_v8 }
0x29a8   :  { %37566 = vtanh.f32 %v14761_v35  ;;  %v14762_v30 = vmul.f32 0.5, %v14761_v35 }
0x29aa   :  { %37568 = vtanh.f32 %v14762_v30  ;;  %v112_v30 = vld [vmem:[#allocation7 + $0x8] sm:$0xff] }
0x29b2   :  { %v37567_v39 = vpop.eup %37566 }
0x29b3   :  { %14769 = vrot.lane.b32.xlu0 %v37567_v39, %s37766_s10  ;;  %v111_v39 = vld [vmem:[#allocation7] sm:$0xff] }
0x29b4   :  { %v37569_v45 = vpop.eup %37568 }
0x29b5   :  { %v14764_v36 = vmul.f32 0.5, %v37569_v45  ;;  %v14815_v45 = vand.u32 4294901760, %v111_v39 }
0x29b7   :  { %v14765_v62 = vadd.f32 0.5, %v14764_v36  ;;  %v14818_v36 = vand.u32 4294901760, %v112_v30 }
0x29b9   :  { %v14767_v31 = vmul.f32 %v14765_v62, %v40420_v55 }
0x2a25   :  { %v14770_v33 = vpop.permute.xlu0 %14769 }
0x2a26   :  { %v14772_v60 = vmul.f32 %v14770_v33, %v14765_v62  ;;  %v40748_v33 = vpack.c.bf16 %v14818_v36, %v14815_v45 }
0x2a28   :  { %14774 = vrot.lane.b32.xlu1 %v14772_v60, %s37766_s10  ;;  %v14895_v60 = vsub.f32 %v111_v39, %v14815_v45  ;;  %35714 = vmatpush3.bf16.msra.mxu0 %v40748_v33 }
0x2a29   :  { %35715 = vmatprep.subr.bf16.mxu0 %v42285_v40 }
0x2a9a   :  { %v14775_v22 = vpop.permute.xlu1 %14774 }
0x2a9b   :  { %v40735_v46 = vadd.f32 %v14775_v22, %v14767_v31  ;;  %v14902_v31 = vsub.f32 %v112_v30, %v14818_v36  ;;  %v113_v22 = vld [vmem:[#allocation7 + $0x10] sm:$0xff] }
0x2a9d   :  { %14779 = vrot.lane.b32.xlu0 %v40735_v46, %s37767_s22  ;;  %v14786_v49 = vmul.f32 %v40735_v46, %v40735_v46  ;;  %v40761_v45 = vpack.c.bf16 %v14902_v31, %v14895_v60 }
0x2a9f   :  { %14788 = vrot.lane.b32.xlu1 %v14786_v49, %s37767_s22  ;;  %v114_v49 = vld [vmem:[#allocation7 + $0x18] sm:$0xff] }
0x2b0f   :  { %v14780_v14 = vpop.permute.xlu0 %14779 }
0x2b10   :  { %v14782_v57 = vsel %vm174_vm1, %v14780_v14, 0.0  ;;  %v14821_v14 = vand.u32 4294901760, %v113_v22 }
0x2b11   :  { %14783 = vadd.xlane.f32.xlu0 %v14782_v57  ;;  %v14789_v23 = vpop.permute.xlu1 %14788  ;;  %v14896_v57 = vand.u32 4294901760, %v14895_v60 }
0x2b12   :  { %v14791_v10 = vsel %vm174_vm1, %v14789_v23, 0.0 }
0x2b13   :  { %14792 = vadd.xlane.f32.xlu1 %v14791_v10  ;;  %v14897_v10 = vsub.f32 %v14895_v60, %v14896_v57  ;;  %v40821_v60 = vld [vmem:[%s42218_s5] ss:$0 sm:$0xff] }
0x2b9e   :  { %v14784_v55 = vpop.xlane.xlu0 %14783 }
0x2b9f   :  { %v14785_v15 = vmul.f32 0.03125, %v14784_v55 }
0x2ba0   :  { %v14793_v26 = vpop.xlane.xlu1 %14792 }
0x2ba1   :  { %v14796_v2 = vmul.f32 %v14785_v15, %v14785_v15  ;;  %v14794_v3 = vmul.f32 0.03125, %v14793_v26  ;;  %v14795_v34 = vsub.f32 %v40735_v46, %v14785_v15  ;;  %v14909_v15 = vsub.f32 %v113_v22, %v14821_v14 }
0x2ba3   :  { %v14797_v61 = vsub.f32 %v14794_v3, %v14796_v2  ;;  %v14898_v2 = vand.u32 4294901760, %v14897_v10 }
0x2ba5   :  { %v14798_v50 = vadd.f32 1e-05, %v14797_v61  ;;  %v14910_v61 = vand.u32 4294901760, %v14909_v15 }
0x2ba7   :  { %37570 = vrsqrt.f32 %v14798_v50 }
0x2bb1   :  { %v37571_v29 = vpop.eup %37570 }
0x2bb2   :  { %v14800_v56 = vmul.f32 %v37571_v29, %v14795_v34 }
0x2bb4   :  { %v14801_v8 = vmul.f32 %v14800_v56, %v38584_v18  ;;  %v14824_v18 = vand.u32 4294901760, %v114_v49  ;;  %v14911_v56 = vsub.f32 %v14909_v15, %v14910_v61 }
0x2bb6   :  { %v14802_v41 = vadd.f32 %v14801_v8, %v38586_v20  ;;  %v14903_v20 = vand.u32 4294901760, %v14902_v31  ;;  %v40752_v23 = vpack.c.bf16 %v14824_v18, %v14821_v14  ;;  %v14916_v26 = vsub.f32 %v114_v49, %v14824_v18 }
0x2bb8   :  { %37572 = vtanh.f32 %v14802_v41  ;;  %v14904_v55 = vsub.f32 %v14902_v31, %v14903_v20  ;;  %35717 = vmatpush3.bf16.msra.mxu0 %v40752_v23  ;;  %v14917_v50 = vand.u32 4294901760, %v14916_v26  ;;  %v40763_v36 = vpack.c.bf16 %v14916_v26, %v14909_v15 }
0x2bb9   :  { %35718 = vmatprep.subr.bf16.mxu0 %v42285_v40  ;;  %v40765_v22 = vpack.c.bf16 %v14903_v20, %v14896_v57 }
0x2bba   :  { %v14905_v3 = vand.u32 4294901760, %v14904_v55  ;;  %v14918_v41 = vsub.f32 %v14916_v26, %v14917_v50  ;;  %v40767_v49 = vpack.c.bf16 %v14917_v50, %v14910_v61 }
0x2bbc   :  { %v40756_v29 = vpack.c.bf16 %v14905_v3, %v14898_v2  ;;  %v14919_v39 = vand.u32 4294901760, %v14918_v41 }
0x2bc2   :  { %v37573_v35 = vpop.eup %37572 }
0x2bc3   :  { %14805 = vrot.lane.b32.xlu0 %v37573_v35, %s37766_s10  ;;  %v14912_v35 = vand.u32 4294901760, %v14911_v56 }
0x2bc5   :  { %v40759_v30 = vpack.c.bf16 %v14919_v39, %v14912_v35 }
0x2c35   :  { %v14806_v34 = vpop.permute.xlu0 %14805 }
0x2c36   :  { %v14808_v8 = vmul.f32 %v14806_v34, %v14765_v62 }
0x2c38   :  { %14810 = vrot.lane.b32.xlu1 %v14808_v8, %s37768_s2 }
0x2caa   :  { %v14811_v14 = vpop.permute.xlu1 %14810 }
0x2cab   :  { %v14812_v18 = vsel %vm174_vm1, %v14811_v14, 0 }
0x2cac   :  { %v14883_v10 = vand.u32 4294901760, %v14812_v18 }
0x2cae   :  { %v14884_v62 = vsub.f32 %v14812_v18, %v14883_v10 }
0x2cb0   :  { %v14885_v55 = vand.u32 4294901760, %v14884_v62 }
0x2cb2   :  { %v14886_v2 = vsub.f32 %v14884_v62, %v14885_v55 }
0x2cb4   :  { %v14887_v3 = vand.u32 4294901760, %v14886_v2 }
0x2cb6   :  { %30921 = vmatmul.mubr.f32.vlgmr.msra.gmra.mrb[64].mxu0 %v14887_v3 }
0x2cb7   :  { %35720 = vmatpush3.bf16.msra.mxu0 %v40756_v29  ;;  %30931 = vmatprep.mubr.msk.f32.mxu0 %vm37764_vm0, %v42284_v25 }
0x2cb8   :  { %35721 = vmatprep.subr.bf16.mxu0 %v42285_v40 }
0x2cbb   :  { %35723 = vmatpush3.bf16.msra.mxu0 %v40759_v30 }
0x2cbc   :  { %35724 = vmatprep.subr.bf16.mxu0 %v42285_v40 }
0x2cbe   :  { %30932 = vmatmul.mubr.f32.vlgmr.msra.gmra.mrb[64].mxu0 %v14883_v10 }
0x2cbf   :  { %35726 = vmatpush3.bf16.msra.mxu0 %v40761_v45  ;;  %30942 = vmatprep.mubr.msk.f32.mxu0 %vm37764_vm0, %v42284_v25 }
0x2cc0   :  { %35727 = vmatprep.subr.bf16.mxu0 %v42285_v40 }
0x2cc3   :  { %35729 = vmatpush3.bf16.msra.mxu0 %v40763_v36 }
0x2cc4   :  { %35730 = vmatprep.subr.bf16.mxu0 %v42285_v40 }
0x2cc6   :  { %30943 = vmatmul.mubr.f32.vlgmr.msra.gmra.mrb[64].mxu0 %v14884_v62 }
0x2cc7   :  { %35732 = vmatpush3.bf16.msra.mxu0 %v40748_v33  ;;  %30953 = vmatprep.mubr.msk.f32.mxu0 %vm37764_vm0, %v42284_v25 }
0x2cc8   :  { %35733 = vmatprep.subr.bf16.mxu0 %v42285_v40 }
0x2ccb   :  { %35735 = vmatpush3.bf16.msra.mxu0 %v40752_v23 }
0x2ccc   :  { %35736 = vmatprep.subr.bf16.mxu0 %v42285_v40 }
0x2cce   :  { %30954 = vmatmul.mubr.f32.vlgmr.msra.gmra.mrb[64].mxu0 %v14885_v55 }
0x2ccf   :  { %35738 = vmatpush3.bf16.msra.mxu0 %v40765_v22  ;;  %30964 = vmatprep.mubr.msk.f32.mxu0 %vm37764_vm0, %v42284_v25 }
0x2cd0   :  { %35739 = vmatprep.subr.bf16.mxu0 %v42285_v40 }
0x2cd3   :  { %35741 = vmatpush3.bf16.msra.mxu0 %v40767_v49 }
0x2cd4   :  { %35742 = vmatprep.subr.bf16.mxu0 %v42285_v40 }
0x2cd6   :  { %30965 = vmatmul.mubr.f32.vlgmr.msra.gmra.mrb[64].mxu0 %v14883_v10 }
0x2cd7   :  { %35744 = vmatpush3.bf16.msra.mxu0 %v40748_v33  ;;  %30975 = vmatprep.mubr.msk.f32.mxu0 %vm37764_vm0, %v42284_v25 }
0x2cd8   :  { %35745 = vmatprep.subr.bf16.mxu0 %v42285_v40 }
0x2cdb   :  { %35747 = vmatpush3.bf16.msra.mxu0 %v40752_v23 }
0x2cdc   :  { %35892 = vmatprep.subr.bf16.mxu0 %v42285_v40 }
0x2cde   :  { %30976 = vmatmul.mubr.f32.vlgmr.msra.gmra.mrb[64].mxu0 %v14883_v10 }
0x2cdf   :  { %35894 = vmatpush3.bf16.msra.mxu0 %v37983_v38  ;;  %31220 = vmatprep.mubr.msk.f32.mxu0 %vm37764_vm0, %v42284_v25 }
0x2ce0   :  { %35895 = vmatprep.subr.bf16.mxu0 %v42285_v40 }
0x2ce3   :  { %35897 = vmatpush3.bf16.msra.mxu0 %v37999_v43 }
0x2ce4   :  { %35898 = vmatprep.subr.bf16.mxu0 %v42285_v40 }
0x2ce7   :  { %35900 = vmatpush3.bf16.msra.mxu0 %v38015_v48 }
0x2ce8   :  { %35901 = vmatprep.subr.bf16.mxu0 %v42285_v40 }
0x2ceb   :  { %35903 = vmatpush3.bf16.msra.mxu0 %v38031_v53 }
0x2cec   :  { %35904 = vmatprep.subr.bf16.mxu0 %v42285_v40 }
0x2cef   :  { %35906 = vmatpush3.bf16.msra.mxu0 %v38047_v58 }
0x2cf0   :  { %35907 = vmatprep.subr.bf16.mxu0 %v42285_v40 }
0x2cf3   :  { %35909 = vmatpush3.bf16.msra.mxu0 %v38063_v63 }
0x2cf4   :  { %35910 = vmatprep.subr.bf16.mxu0 %v42285_v40 }
0x2cf7   :  { %35912 = vmatpush3.bf16.msra.mxu0 %v38079_v6 }
0x2cf8   :  { %35913 = vmatprep.subr.bf16.mxu0 %v42285_v40 }
0x2cfb   :  { %35915 = vmatpush3.bf16.msra.mxu0 %v38101_v17 }
0x2cfc   :  { %35916 = vmatprep.subr.bf16.mxu0 %v42285_v40 }
0x2db1   :  { %v15295_v31 = vpop.f32.mrb[64].mxu0 }
0x2db2   :  { %v40824_v57 = vadd.f32 %v40821_v60, %v15295_v31  ;;  %v30977_v20 = vpop.f32.mrb[65].mxu0 }
0x2db4   :  { %v40827_v15 = vand.u32 4294901760, %v40824_v57  ;;  %v15940_v26 = vmul.f32 %v40824_v57, %v40824_v57 }
0x2db6   :  { %v40833_v61 = vsub.f32 %v40824_v57, %v40827_v15  ;;  %v40835_v50 = vand.u32 4294901760, %v15940_v26 }
0x2db8   :  { %v40838_v34 = vsub.f32 %v15940_v26, %v40835_v50  ;;  %v15382_v56 = vand.u32 4294901760, %v40833_v61 }
0x2dba   :  { %v15383_v8 = vsub.f32 %v40833_v61, %v15382_v56  ;;  %v16024_v41 = vand.u32 4294901760, %v40838_v34 }
0x2dbc   :  { %v15384_v35 = vand.u32 4294901760, %v15383_v8  ;;  %v16025_v39 = vsub.f32 %v40838_v34, %v16024_v41 }
0x2dbe   :  { %31011 = vmatmul.mubr.f32.vlgmr.msra.gmra.mrb[64].mxu1 %v15384_v35  ;;  %v16026_v14 = vand.u32 4294901760, %v16025_v39 }
0x2dbf   :  { %35774 = vmatpush3.bf16.msra.mxu1 %v38125_v27  ;;  %31045 = vmatprep.mubr.msk.f32.mxu1 %vm37764_vm0, %v42284_v25 }
0x2dc0   :  { %31221 = vmatmul.mubr.f32.vlgmr.msra.gmra.mrb[66].mxu0 %v16026_v14  ;;  %35775 = vmatprep.subr.bf16.mxu1 %v42285_v40 }
0x2dc1   :  { %35918 = vmatpush3.bf16.msra.mxu0 %v38125_v27  ;;  %31255 = vmatprep.mubr.msk.f32.mxu0 %vm37764_vm0, %v42284_v25 }
0x2dc2   :  { %35919 = vmatprep.subr.bf16.mxu0 %v42285_v40 }
0x2dc3   :  { %35777 = vmatpush3.bf16.msra.mxu1 %v38145_v42 }
0x2dc4   :  { %35778 = vmatprep.subr.bf16.mxu1 %v42285_v40 }
0x2dc5   :  { %35921 = vmatpush3.bf16.msra.mxu0 %v38145_v42 }
0x2dc6   :  { %35922 = vmatprep.subr.bf16.mxu0 %v42285_v40 }
0x2dc7   :  { %35780 = vmatpush3.bf16.msra.mxu1 %v38165_v28 }
0x2dc8   :  { %35781 = vmatprep.subr.bf16.mxu1 %v42285_v40 }
0x2dc9   :  { %35924 = vmatpush3.bf16.msra.mxu0 %v38165_v28 }
0x2dca   :  { %35925 = vmatprep.subr.bf16.mxu0 %v42285_v40 }
0x2dcb   :  { %35783 = vmatpush3.bf16.msra.mxu1 %v38201_v44 }
0x2dcc   :  { %35784 = vmatprep.subr.bf16.mxu1 %v42285_v40 }
0x2dcd   :  { %35927 = vmatpush3.bf16.msra.mxu0 %v38201_v44 }
0x2dce   :  { %35928 = vmatprep.subr.bf16.mxu0 %v42285_v40 }
0x2dcf   :  { %35786 = vmatpush3.bf16.msra.mxu1 %v38205_v37 }
0x2dd0   :  { %35787 = vmatprep.subr.bf16.mxu1 %v42285_v40 }
0x2dd1   :  { %35930 = vmatpush3.bf16.msra.mxu0 %v38205_v37 }
0x2dd2   :  { %35931 = vmatprep.subr.bf16.mxu0 %v42285_v40 }
0x2dd3   :  { %35789 = vmatpush3.bf16.msra.mxu1 %v38225_v47 }
0x2dd4   :  { %35790 = vmatprep.subr.bf16.mxu1 %v42285_v40 }
0x2dd5   :  { %35933 = vmatpush3.bf16.msra.mxu0 %v38225_v47 }
0x2dd6   :  { %35934 = vmatprep.subr.bf16.mxu0 %v42285_v40 }
0x2dd7   :  { %35792 = vmatpush3.bf16.msra.mxu1 %v38251_v11 }
0x2dd8   :  { %35793 = vmatprep.subr.bf16.mxu1 %v42285_v40 }
0x2dd9   :  { %35936 = vmatpush3.bf16.msra.mxu0 %v38251_v11 }
0x2dda   :  { %35937 = vmatprep.subr.bf16.mxu0 %v42285_v40 }
0x2ddb   :  { %35795 = vmatpush3.bf16.msra.mxu1 %v38253_v54 }
0x2ddc   :  { %35796 = vmatprep.subr.bf16.mxu1 %v42285_v40 }
0x2ddd   :  { %35939 = vmatpush3.bf16.msra.mxu0 %v38253_v54 }
0x2dde   :  { %31046 = vmatmul.mubr.f32.vlgmr.msra.gmra.mrb[64].mxu1 %v40827_v15  ;;  %35940 = vmatprep.subr.bf16.mxu0 %v42285_v40 }
0x2ddf   :  { %35798 = vmatpush3.bf16.msra.mxu1 %v38257_v19  ;;  %31080 = vmatprep.mubr.msk.f32.mxu1 %vm37764_vm0, %v42284_v25 }
0x2de0   :  { %31256 = vmatmul.mubr.f32.vlgmr.msra.gmra.mrb[66].mxu0 %v40835_v50  ;;  %35799 = vmatprep.subr.bf16.mxu1 %v42285_v40 }
0x2de1   :  { %35942 = vmatpush3.bf16.msra.mxu0 %v38257_v19  ;;  %31290 = vmatprep.mubr.msk.f32.mxu0 %vm37764_vm0, %v42284_v25 }
0x2de2   :  { %35943 = vmatprep.subr.bf16.mxu0 %v42285_v40 }
0x2de3   :  { %35801 = vmatpush3.bf16.msra.mxu1 %v38261_v4 }
0x2de4   :  { %35802 = vmatprep.subr.bf16.mxu1 %v42285_v40 }
0x2de5   :  { %35945 = vmatpush3.bf16.msra.mxu0 %v38261_v4 }
0x2de6   :  { %35946 = vmatprep.subr.bf16.mxu0 %v42285_v40 }
0x2de7   :  { %35804 = vmatpush3.bf16.msra.mxu1 %v38265_v59 }
0x2de8   :  { %35805 = vmatprep.subr.bf16.mxu1 %v42285_v40 }
0x2de9   :  { %35948 = vmatpush3.bf16.msra.mxu0 %v38265_v59 }
0x2dea   :  { %35949 = vmatprep.subr.bf16.mxu0 %v42285_v40 }
0x2deb   :  { %35807 = vmatpush3.bf16.msra.mxu1 %v38269_v5 }
0x2dec   :  { %35808 = vmatprep.subr.bf16.mxu1 %v42285_v40 }
0x2ded   :  { %35951 = vmatpush3.bf16.msra.mxu0 %v38269_v5 }
0x2dee   :  { %35952 = vmatprep.subr.bf16.mxu0 %v42285_v40 }
0x2def   :  { %35810 = vmatpush3.bf16.msra.mxu1 %v38273_v52 }
0x2df0   :  { %35811 = vmatprep.subr.bf16.mxu1 %v42285_v40 }
0x2df1   :  { %35954 = vmatpush3.bf16.msra.mxu0 %v38273_v52 }
0x2df2   :  { %35955 = vmatprep.subr.bf16.mxu0 %v42285_v40 }
0x2df3   :  { %35813 = vmatpush3.bf16.msra.mxu1 %v38277_v9 }
0x2df4   :  { %35814 = vmatprep.subr.bf16.mxu1 %v42285_v40 }
0x2df5   :  { %35957 = vmatpush3.bf16.msra.mxu0 %v38277_v9 }
0x2df6   :  { %35958 = vmatprep.subr.bf16.mxu0 %v42285_v40 }
0x2df7   :  { %35816 = vmatpush3.bf16.msra.mxu1 %v38281_v12 }
0x2df8   :  { %35817 = vmatprep.subr.bf16.mxu1 %v42285_v40 }
0x2df9   :  { %35960 = vmatpush3.bf16.msra.mxu0 %v38281_v12 }
0x2dfa   :  { %35961 = vmatprep.subr.bf16.mxu0 %v42285_v40 }
0x2dfb   :  { %35819 = vmatpush3.bf16.msra.mxu1 %v38285_v13 }
0x2dfc   :  { %35820 = vmatprep.subr.bf16.mxu1 %v42285_v40 }
0x2dfd   :  { %35963 = vmatpush3.bf16.msra.mxu0 %v38285_v13 }
0x2dfe   :  { %31081 = vmatmul.mubr.f32.vlgmr.msra.gmra.mrb[64].mxu1 %v40833_v61  ;;  %35964 = vmatprep.subr.bf16.mxu0 %v42285_v40 }
0x2dff   :  { %35822 = vmatpush3.bf16.msra.mxu1 %v37983_v38  ;;  %31115 = vmatprep.mubr.msk.f32.mxu1 %vm37764_vm0, %v42284_v25 }
0x2e00   :  { %31291 = vmatmul.mubr.f32.vlgmr.msra.gmra.mrb[66].mxu0 %v40838_v34  ;;  %35823 = vmatprep.subr.bf16.mxu1 %v42285_v40 }
0x2e01   :  { %35966 = vmatpush3.bf16.msra.mxu0 %v37983_v38  ;;  %31325 = vmatprep.mubr.msk.f32.mxu0 %vm37764_vm0, %v42284_v25 }
0x2e02   :  { %35967 = vmatprep.subr.bf16.mxu0 %v42285_v40 }
0x2e03   :  { %35825 = vmatpush3.bf16.msra.mxu1 %v37999_v43 }
0x2e04   :  { %35826 = vmatprep.subr.bf16.mxu1 %v42285_v40 }
0x2e05   :  { %35969 = vmatpush3.bf16.msra.mxu0 %v37999_v43 }
0x2e06   :  { %35970 = vmatprep.subr.bf16.mxu0 %v42285_v40 }
0x2e07   :  { %35828 = vmatpush3.bf16.msra.mxu1 %v38015_v48 }
0x2e08   :  { %35829 = vmatprep.subr.bf16.mxu1 %v42285_v40 }
0x2e09   :  { %35972 = vmatpush3.bf16.msra.mxu0 %v38015_v48 }
0x2e0a   :  { %35973 = vmatprep.subr.bf16.mxu0 %v42285_v40 }
0x2e0b   :  { %35831 = vmatpush3.bf16.msra.mxu1 %v38031_v53 }
0x2e0c   :  { %35832 = vmatprep.subr.bf16.mxu1 %v42285_v40 }
0x2e0d   :  { %35975 = vmatpush3.bf16.msra.mxu0 %v38031_v53 }
0x2e0e   :  { %35976 = vmatprep.subr.bf16.mxu0 %v42285_v40 }
0x2e0f   :  { %35834 = vmatpush3.bf16.msra.mxu1 %v38047_v58 }
0x2e10   :  { %35835 = vmatprep.subr.bf16.mxu1 %v42285_v40 }
0x2e11   :  { %35978 = vmatpush3.bf16.msra.mxu0 %v38047_v58 }
0x2e12   :  { %35979 = vmatprep.subr.bf16.mxu0 %v42285_v40 }
0x2e13   :  { %35837 = vmatpush3.bf16.msra.mxu1 %v38063_v63 }
0x2e14   :  { %35838 = vmatprep.subr.bf16.mxu1 %v42285_v40 }
0x2e15   :  { %35981 = vmatpush3.bf16.msra.mxu0 %v38063_v63 }
0x2e16   :  { %35982 = vmatprep.subr.bf16.mxu0 %v42285_v40 }
0x2e17   :  { %35840 = vmatpush3.bf16.msra.mxu1 %v38079_v6 }
0x2e18   :  { %35841 = vmatprep.subr.bf16.mxu1 %v42285_v40 }
0x2e19   :  { %35984 = vmatpush3.bf16.msra.mxu0 %v38079_v6 }
0x2e1a   :  { %35985 = vmatprep.subr.bf16.mxu0 %v42285_v40 }
0x2e1b   :  { %35843 = vmatpush3.bf16.msra.mxu1 %v38101_v17 }
0x2e1c   :  { %35844 = vmatprep.subr.bf16.mxu1 %v42285_v40 }
0x2e1d   :  { %35987 = vmatpush3.bf16.msra.mxu0 %v38101_v17 }
0x2e1e   :  { %31116 = vmatmul.mubr.f32.vlgmr.msra.gmra.mrb[64].mxu1 %v15382_v56  ;;  %35988 = vmatprep.subr.bf16.mxu0 %v42285_v40 }
0x2e1f   :  { %35846 = vmatpush3.bf16.msra.mxu1 %v38424_v51  ;;  %31150 = vmatprep.mubr.msk.f32.mxu1 %vm37764_vm0, %v42284_v25 }
0x2e20   :  { %31326 = vmatmul.mubr.f32.vlgmr.msra.gmra.mrb[66].mxu0 %v16024_v41  ;;  %35847 = vmatprep.subr.bf16.mxu1 %v42285_v40 }
0x2e21   :  { %35990 = vmatpush3.bf16.msra.mxu0 %v38424_v51  ;;  %31360 = vmatprep.mubr.msk.f32.mxu0 %vm37764_vm0, %v42284_v25 }
0x2e22   :  { %35991 = vmatprep.subr.bf16.mxu0 %v42285_v40 }
0x2e23   :  { %35849 = vmatpush3.bf16.msra.mxu1 %v38436_v7 }
0x2e24   :  { %35850 = vmatprep.subr.bf16.mxu1 %v42285_v40 }
0x2e25   :  { %35993 = vmatpush3.bf16.msra.mxu0 %v38436_v7 }
0x2e26   :  { %35994 = vmatprep.subr.bf16.mxu0 %v42285_v40 }
0x2e27   :  { %35852 = vmatpush3.bf16.msra.mxu1 %v38452_v21 }
0x2e28   :  { %35853 = vmatprep.subr.bf16.mxu1 %v42285_v40 }
0x2e29   :  { %35996 = vmatpush3.bf16.msra.mxu0 %v38452_v21 }
0x2e2a   :  { %35997 = vmatprep.subr.bf16.mxu0 %v42285_v40 }
0x2e2b   :  { %35855 = vmatpush3.bf16.msra.mxu1 %v38462_v16 }
0x2e2c   :  { %35856 = vmatprep.subr.bf16.mxu1 %v42285_v40 }
0x2e2d   :  { %35999 = vmatpush3.bf16.msra.mxu0 %v38462_v16 }
0x2e2e   :  { %36000 = vmatprep.subr.bf16.mxu0 %v42285_v40 }
0x2e2f   :  { %35858 = vmatpush3.bf16.msra.mxu1 %v38472_v24 }
0x2e30   :  { %35859 = vmatprep.subr.bf16.mxu1 %v42285_v40 }
0x2e31   :  { %36002 = vmatpush3.bf16.msra.mxu0 %v38472_v24 }
0x2e32   :  { %36003 = vmatprep.subr.bf16.mxu0 %v42285_v40 }
0x2e33   :  { %35861 = vmatpush3.bf16.msra.mxu1 %v38482_v0 }
0x2e34   :  { %35862 = vmatprep.subr.bf16.mxu1 %v42285_v40 }
0x2e35   :  { %36005 = vmatpush3.bf16.msra.mxu0 %v38482_v0 }
0x2e36   :  { %36006 = vmatprep.subr.bf16.mxu0 %v42285_v40 }
0x2e37   :  { %35864 = vmatpush3.bf16.msra.mxu1 %v38492_v1 }
0x2e38   :  { %35865 = vmatprep.subr.bf16.mxu1 %v42285_v40 }
0x2e39   :  { %36008 = vmatpush3.bf16.msra.mxu0 %v38492_v1 }
0x2e3a   :  { %36009 = vmatprep.subr.bf16.mxu0 %v42285_v40 }
0x2e3b   :  { %35867 = vmatpush3.bf16.msra.mxu1 %v38502_v32 }
0x2e3c   :  { %35868 = vmatprep.subr.bf16.mxu1 %v42285_v40 }
0x2e3d   :  { %36011 = vmatpush3.bf16.msra.mxu0 %v38502_v32 }
0x2e3e   :  { %31151 = vmatmul.mubr.f32.vlgmr.msra.gmra.mrb[64].mxu1 %v40827_v15  ;;  %36012 = vmatprep.subr.bf16.mxu0 %v42285_v40 }
0x2e3f   :  { %35870 = vmatpush3.bf16.msra.mxu1 %v37983_v38  ;;  %31185 = vmatprep.mubr.msk.f32.mxu1 %vm37764_vm0, %v42284_v25 }
0x2e40   :  { %31361 = vmatmul.mubr.f32.vlgmr.msra.gmra.mrb[66].mxu0 %v40835_v50  ;;  %35871 = vmatprep.subr.bf16.mxu1 %v42285_v40 }
0x2e41   :  { %36014 = vmatpush3.bf16.msra.mxu0 %v37983_v38  ;;  %31395 = vmatprep.mubr.msk.f32.mxu0 %vm37764_vm0, %v42284_v25 }
0x2e42   :  { %36015 = vmatprep.subr.bf16.mxu0 %v42285_v40 }
0x2e43   :  { %35873 = vmatpush3.bf16.msra.mxu1 %v37999_v43 }
0x2e44   :  { %35874 = vmatprep.subr.bf16.mxu1 %v42285_v40 }
0x2e45   :  { %36017 = vmatpush3.bf16.msra.mxu0 %v37999_v43 }
0x2e46   :  { %36018 = vmatprep.subr.bf16.mxu0 %v42285_v40 }
0x2e47   :  { %35876 = vmatpush3.bf16.msra.mxu1 %v38015_v48 }
0x2e48   :  { %35877 = vmatprep.subr.bf16.mxu1 %v42285_v40 }
0x2e49   :  { %36020 = vmatpush3.bf16.msra.mxu0 %v38015_v48 }
0x2e4a   :  { %36021 = vmatprep.subr.bf16.mxu0 %v42285_v40 }
0x2e4b   :  { %35879 = vmatpush3.bf16.msra.mxu1 %v38031_v53 }
0x2e4c   :  { %35880 = vmatprep.subr.bf16.mxu1 %v42285_v40 }
0x2e4d   :  { %36023 = vmatpush3.bf16.msra.mxu0 %v38031_v53 }
0x2e4e   :  { %36024 = vmatprep.subr.bf16.mxu0 %v42285_v40 }
0x2e4f   :  { %35882 = vmatpush3.bf16.msra.mxu1 %v38047_v58 }
0x2e50   :  { %35883 = vmatprep.subr.bf16.mxu1 %v42285_v40 }
0x2e51   :  { %36026 = vmatpush3.bf16.msra.mxu0 %v38047_v58 }
0x2e52   :  { %36027 = vmatprep.subr.bf16.mxu0 %v42285_v40 }
0x2e53   :  { %35885 = vmatpush3.bf16.msra.mxu1 %v38063_v63 }
0x2e54   :  { %35886 = vmatprep.subr.bf16.mxu1 %v42285_v40 }
0x2e55   :  { %36029 = vmatpush3.bf16.msra.mxu0 %v38063_v63 }
0x2e56   :  { %36030 = vmatprep.subr.bf16.mxu0 %v42285_v40 }
0x2e57   :  { %35888 = vmatpush3.bf16.msra.mxu1 %v38079_v6 }
0x2e58   :  { %35889 = vmatprep.subr.bf16.mxu1 %v42285_v40 }
0x2e59   :  { %36032 = vmatpush3.bf16.msra.mxu0 %v38079_v6 }
0x2e5a   :  { %36033 = vmatprep.subr.bf16.mxu0 %v42285_v40 }
0x2e5b   :  { %35891 = vmatpush3.bf16.msra.mxu1 %v38101_v17 }
0x2e5c   :  { %36036 = vmatprep.subr.bf16.mxu1 %v42285_v40 }
0x2e5d   :  { %36035 = vmatpush3.bf16.msra.mxu0 %v38101_v17 }
0x2e5e   :  { %31186 = vmatmul.mubr.f32.vlgmr.msra.gmra.mrb[64].mxu1 %v40827_v15  ;;  %36072 = vmatprep.subr.bf16.mxu0 %v42285_v40 }
0x2e5f   :  { %31406 = vmatprep.mubr.msk.f32.mxu1 %vm37764_vm0, %v42284_v25 }
0x2e60   :  { %31396 = vmatmul.mubr.f32.vlgmr.msra.gmra.mrb[66].mxu0 %v40835_v50 }
0x2e61   :  { %36074 = vmatpush3.bf16.msra.mxu0 %v40748_v33  ;;  %31472 = vmatprep.mubr.msk.f32.mxu0 %vm37764_vm0, %v42284_v25 }
0x2e62   :  { %36075 = vmatprep.subr.bf16.mxu0 %v42285_v40 }
0x2e65   :  { %36077 = vmatpush3.bf16.msra.mxu0 %v40752_v23 }
0x2e66   :  { %36078 = vmatprep.subr.bf16.mxu0 %v42285_v40 }
0x2f31   :  { %v15936_v18 = vpop.f32.mrb[64].mxu1 }
0x2f32   :  { %v16583_v10 = vmul.f32 %v15936_v18, %v15936_v18  ;;  %v31187_v62 = vpop.f32.mrb[65].mxu1  ;;  %v16582_v20 = vsub.f32 %v40824_v57, %v15936_v18 }
0x2f33   :  { %v16578_v55 = vpop.f32.mrb[66].mxu0 }
0x2f34   :  { %v16584_v2 = vsub.f32 %v16578_v55, %v16583_v10  ;;  %v31397_v3 = vpop.f32.mrb[67].mxu0 }
0x2f35   :  { %v24092_v3 = vld [vmem:[%s42219_s6] ss:$0 sm:$0xff] }
0x2f36   :  { %v16585_v31 = vadd.f32 1e-05, %v16584_v2 }
0x2f38   :  { %37574 = vrsqrt.f32 %v16585_v31 }
0x2f42   :  { %v37575_v15 = vpop.eup %37574 }
0x2f43   :  { %v16587_v26 = vmul.f32 %v37575_v15, %v16582_v20 }
0x2f45   :  { %37576 = vtanh.f32 %v16587_v26  ;;  %v16588_v50 = vmul.f32 0.5, %v16587_v26 }
0x2f47   :  { %37578 = vtanh.f32 %v16588_v50 }
0x2f4f   :  { %v37577_v61 = vpop.eup %37576 }
0x2f50   :  { %16595 = vrot.lane.b32.xlu0 %v37577_v61, %s37766_s10 }
0x2f51   :  { %v37579_v34 = vpop.eup %37578 }
0x2f52   :  { %v16590_v56 = vmul.f32 0.5, %v37579_v34 }
0x2f54   :  { %v41050_v8 = vadd.f32 0.5, %v16590_v56 }
0x2f56   :  { %v16593_v57 = vmul.f32 %v41050_v8, %v40735_v46  ;;  %v24093_v46 = vld [vmem:[%s42220_s7] ss:$0 sm:$0xff] }
0x2fc2   :  { %v16596_v41 = vpop.permute.xlu0 %16595 }
0x2fc3   :  { %v16598_v35 = vmul.f32 %v16596_v41, %v41050_v8 }
0x2fc5   :  { %16600 = vrot.lane.b32.xlu1 %v16598_v35, %s37766_s10 }
0x3037   :  { %v16601_v39 = vpop.permute.xlu1 %16600 }
0x3038   :  { %v41056_v14 = vadd.f32 %v16601_v39, %v16593_v57 }
0x303a   :  { %42312 = vst [vmem:[#allocation16_spill] sm:$0xff] %v41056_v14  ;;  %16605 = vrot.lane.b32.xlu0 %v41056_v14, %s37767_s22  ;;  %v16612_v18 = vmul.f32 %v41056_v14, %v41056_v14 }
0x303c   :  { %16614 = vrot.lane.b32.xlu1 %v16612_v18, %s37767_s22 }
0x30ac   :  { %v16606_v10 = vpop.permute.xlu0 %16605 }
0x30ad   :  { %v16608_v62 = vsel %vm174_vm1, %v16606_v10, 0.0 }
0x30ae   :  { %16609 = vadd.xlane.f32.xlu0 %v16608_v62  ;;  %v16615_v55 = vpop.permute.xlu1 %16614 }
0x30af   :  { %v16617_v2 = vsel %vm174_vm1, %v16615_v55, 0.0  ;;  %v115_v55 = vld [vmem:[#allocation8] sm:$0xff] }
0x30b0   :  { %16618 = vadd.xlane.f32.xlu1 %v16617_v2  ;;  %v116_v2 = vld [vmem:[#allocation8 + $0x8] sm:$0xff] }
0x30c1   :  { %16631 = vrot.lane.b32.xlu1 %v24093_v46, %s37766_s10  ;;  %v16647_v46 = vand.u32 4294901760, %v115_v55 }
0x30c4   :  { %16627 = vrot.lane.b32.xlu0 %v24092_v3, %s37766_s10  ;;  %v16650_v3 = vand.u32 4294901760, %v116_v2 }
0x313b   :  { %v16610_v31 = vpop.xlane.xlu0 %16609 }
0x313c   :  { %v16611_v20 = vmul.f32 0.03125, %v16610_v31  ;;  %v41081_v31 = vpack.c.bf16 %v16650_v3, %v16647_v46 }
0x313d   :  { %v16619_v15 = vpop.xlane.xlu1 %16618 }
0x313e   :  { %v16622_v26 = vmul.f32 %v16611_v20, %v16611_v20  ;;  %v16620_v61 = vmul.f32 0.03125, %v16619_v15  ;;  %v16621_v56 = vsub.f32 %v41056_v14, %v16611_v20  ;;  %v16727_v20 = vsub.f32 %v115_v55, %v16647_v46  ;;  %36038 = vmatpush3.bf16.msra.mxu1 %v41081_v31 }
0x313f   :  { %v41074_v35 = vpop.permute.xlu0 %16627  ;;  %v16734_v15 = vsub.f32 %v116_v2, %v16650_v3  ;;  %36039 = vmatprep.subr.bf16.mxu1 %v42285_v40 }
0x3140   :  { %v16623_v50 = vsub.f32 %v16620_v61, %v16622_v26  ;;  %42313 = vst [vmem:[#allocation17_spill] sm:$0xff] %v41074_v35  ;;  %v117_v26 = vld [vmem:[#allocation8 + $0x10] sm:$0xff]  ;;  %v118_v61 = vld [vmem:[#allocation8 + $0x18] sm:$0xff] }
0x3141   :  { %v41076_v39 = vpop.permute.xlu1 %16631 }
0x3142   :  { %v16624_v34 = vadd.f32 1e-05, %v16623_v50  ;;  %42314 = vst [vmem:[#allocation18_spill] sm:$0xff] %v41076_v39  ;;  %v16653_v50 = vand.u32 4294901760, %v117_v26 }
0x3144   :  { %37580 = vrsqrt.f32 %v16624_v34  ;;  %v16656_v34 = vand.u32 4294901760, %v118_v61 }
0x314e   :  { %v37581_v41 = vpop.eup %37580 }
0x314f   :  { %v16626_v57 = vmul.f32 %v37581_v41, %v16621_v56  ;;  %v16728_v56 = vand.u32 4294901760, %v16727_v20  ;;  %v16735_v41 = vand.u32 4294901760, %v16734_v15 }
0x3151   :  { %v16630_v18 = vmul.f32 %v41074_v35, %v16626_v57  ;;  %v41085_v57 = vpack.c.bf16 %v16656_v34, %v16653_v50 }
0x3153   :  { %v16634_v10 = vadd.f32 %v41076_v39, %v16630_v18  ;;  %v16729_v18 = vsub.f32 %v16727_v20, %v16728_v56  ;;  %v16748_v39 = vsub.f32 %v118_v61, %v16656_v34  ;;  %36041 = vmatpush3.bf16.msra.mxu1 %v41085_v57 }
0x3154   :  { %36042 = vmatprep.subr.bf16.mxu1 %v42285_v40 }
0x3155   :  { %37582 = vtanh.f32 %v16634_v10  ;;  %v16736_v10 = vsub.f32 %v16734_v15, %v16735_v41  ;;  %v16730_v55 = vand.u32 4294901760, %v16729_v18  ;;  %v16749_v3 = vand.u32 4294901760, %v16748_v39 }
0x3156   :  { %v41099_v18 = vpack.c.bf16 %v16735_v41, %v16728_v56 }
0x3157   :  { %v16737_v2 = vand.u32 4294901760, %v16736_v10  ;;  %v16750_v0 = vsub.f32 %v16748_v39, %v16749_v3 }
0x3159   :  { %v41089_v14 = vpack.c.bf16 %v16737_v2, %v16730_v55 }
0x315f   :  { %v37583_v62 = vpop.eup %37582 }
0x3160   :  { %16637 = vrot.lane.b32.xlu0 %v37583_v62, %s37766_s10  ;;  %v16741_v62 = vsub.f32 %v117_v26, %v16653_v50  ;;  %v16751_v26 = vand.u32 4294901760, %v16750_v0  ;;  %v41095_v50 = vpack.c.bf16 %v16734_v15, %v16727_v20 }
0x3162   :  { %v16742_v46 = vand.u32 4294901760, %v16741_v62  ;;  %v41097_v34 = vpack.c.bf16 %v16748_v39, %v16741_v62 }
0x3164   :  { %v16743_v32 = vsub.f32 %v16741_v62, %v16742_v46  ;;  %v41101_v10 = vpack.c.bf16 %v16749_v3, %v16742_v46 }
0x3166   :  { %v16744_v24 = vand.u32 4294901760, %v16743_v32 }
0x3168   :  { %v41093_v61 = vpack.c.bf16 %v16751_v26, %v16744_v24 }
0x31d2   :  { %v16638_v35 = vpop.permute.xlu0 %16637 }
0x31d3   :  { %v16640_v1 = vmul.f32 %v16638_v35, %v41050_v8 }
0x31d5   :  { %16642 = vrot.lane.b32.xlu1 %v16640_v1, %s37768_s2 }
0x3247   :  { %v16643_v55 = vpop.permute.xlu1 %16642 }
0x3248   :  { %v16644_v2 = vsel %vm174_vm1, %v16643_v55, 0 }
0x3249   :  { %v41104_v16 = vand.u32 4294901760, %v16644_v2 }
0x324b   :  { %v16716_v32 = vsub.f32 %v16644_v2, %v41104_v16 }
0x324d   :  { %v16717_v8 = vand.u32 4294901760, %v16716_v32 }
0x324f   :  { %v16718_v1 = vsub.f32 %v16716_v32, %v16717_v8 }
0x3251   :  { %v16719_v0 = vand.u32 4294901760, %v16718_v1 }
0x3253   :  { %31407 = vmatmul.mubr.f32.vlgmr.msra.gmra.mrb[66].mxu1 %v16719_v0  ;;  %31473 = vmatmul.mubr.f32.vlgmr.msra.gmra.mrb[68].mxu0 %v16719_v0  ;;  %v42315_v0 = vld [vmem:[#allocation21_spill] sm:$0xff] }
0x3254   :  { %36080 = vmatpush3.bf16.msra.mxu0 %v40756_v29  ;;  %36044 = vmatpush3.bf16.msra.mxu1 %v41089_v14 }
0x3255   :  { %36081 = vmatprep.subr.bf16.mxu0 %v42285_v40  ;;  %36045 = vmatprep.subr.bf16.mxu1 %v42285_v40 }
0x3256   :  { %31417 = vmatprep.mubr.msk.f32.mxu1 %vm37764_vm0, %v42284_v25  ;;  %31483 = vmatprep.mubr.msk.f32.mxu0 %vm37764_vm0, %v42284_v25 }
0x3258   :  { %36083 = vmatpush3.bf16.msra.mxu0 %v40759_v30  ;;  %36047 = vmatpush3.bf16.msra.mxu1 %v41093_v61 }
0x3259   :  { %36084 = vmatprep.subr.bf16.mxu0 %v42285_v40  ;;  %36048 = vmatprep.subr.bf16.mxu1 %v42285_v40 }
0x325b   :  { %31418 = vmatmul.mubr.f32.vlgmr.msra.gmra.mrb[66].mxu1 %v41104_v16  ;;  %31484 = vmatmul.mubr.f32.vlgmr.msra.gmra.mrb[68].mxu0 %v41104_v16 }
0x325c   :  { %36086 = vmatpush3.bf16.msra.mxu0 %v40761_v45  ;;  %36050 = vmatpush3.bf16.msra.mxu1 %v41095_v50 }
0x325d   :  { %36087 = vmatprep.subr.bf16.mxu0 %v42285_v40  ;;  %36051 = vmatprep.subr.bf16.mxu1 %v42285_v40 }
0x325e   :  { %31428 = vmatprep.mubr.msk.f32.mxu1 %vm37764_vm0, %v42284_v25  ;;  %31494 = vmatprep.mubr.msk.f32.mxu0 %vm37764_vm0, %v42284_v25 }
0x3260   :  { %36089 = vmatpush3.bf16.msra.mxu0 %v40763_v36  ;;  %36053 = vmatpush3.bf16.msra.mxu1 %v41097_v34 }
0x3261   :  { %36090 = vmatprep.subr.bf16.mxu0 %v42285_v40  ;;  %36054 = vmatprep.subr.bf16.mxu1 %v42285_v40 }
0x3263   :  { %31429 = vmatmul.mubr.f32.vlgmr.msra.gmra.mrb[66].mxu1 %v16716_v32  ;;  %31495 = vmatmul.mubr.f32.vlgmr.msra.gmra.mrb[68].mxu0 %v16716_v32 }
0x3264   :  { %36092 = vmatpush3.bf16.msra.mxu0 %v40748_v33  ;;  %36056 = vmatpush3.bf16.msra.mxu1 %v41081_v31 }
0x3265   :  { %36093 = vmatprep.subr.bf16.mxu0 %v42285_v40  ;;  %36057 = vmatprep.subr.bf16.mxu1 %v42285_v40 }
0x3266   :  { %31439 = vmatprep.mubr.msk.f32.mxu1 %vm37764_vm0, %v42284_v25  ;;  %31505 = vmatprep.mubr.msk.f32.mxu0 %vm37764_vm0, %v42284_v25 }
0x3268   :  { %36095 = vmatpush3.bf16.msra.mxu0 %v40752_v23  ;;  %36059 = vmatpush3.bf16.msra.mxu1 %v41085_v57 }
0x3269   :  { %36096 = vmatprep.subr.bf16.mxu0 %v42285_v40  ;;  %36060 = vmatprep.subr.bf16.mxu1 %v42285_v40 }
0x326b   :  { %31440 = vmatmul.mubr.f32.vlgmr.msra.gmra.mrb[66].mxu1 %v16717_v8  ;;  %31506 = vmatmul.mubr.f32.vlgmr.msra.gmra.mrb[68].mxu0 %v16717_v8 }
0x326c   :  { %36098 = vmatpush3.bf16.msra.mxu0 %v40765_v22  ;;  %36062 = vmatpush3.bf16.msra.mxu1 %v41099_v18 }
0x326d   :  { %36099 = vmatprep.subr.bf16.mxu0 %v42285_v40  ;;  %36063 = vmatprep.subr.bf16.mxu1 %v42285_v40 }
0x326e   :  { %31450 = vmatprep.mubr.msk.f32.mxu1 %vm37764_vm0, %v42284_v25  ;;  %31516 = vmatprep.mubr.msk.f32.mxu0 %vm37764_vm0, %v42284_v25 }
0x3270   :  { %36101 = vmatpush3.bf16.msra.mxu0 %v40767_v49  ;;  %36065 = vmatpush3.bf16.msra.mxu1 %v41101_v10 }
0x3271   :  { %36102 = vmatprep.subr.bf16.mxu0 %v42285_v40  ;;  %36066 = vmatprep.subr.bf16.mxu1 %v42285_v40 }
0x3273   :  { %31451 = vmatmul.mubr.f32.vlgmr.msra.gmra.mrb[66].mxu1 %v41104_v16  ;;  %31517 = vmatmul.mubr.f32.vlgmr.msra.gmra.mrb[68].mxu0 %v41104_v16 }
0x3274   :  { %36104 = vmatpush3.bf16.msra.mxu0 %v40748_v33  ;;  %36068 = vmatpush3.bf16.msra.mxu1 %v41081_v31 }
0x3275   :  { %36105 = vmatprep.subr.bf16.mxu0 %v42285_v40  ;;  %36069 = vmatprep.subr.bf16.mxu1 %v42285_v40 }
0x3276   :  { %31461 = vmatprep.mubr.msk.f32.mxu1 %vm37764_vm0, %v42284_v25  ;;  %31527 = vmatprep.mubr.msk.f32.mxu0 %vm37764_vm0, %v42284_v25 }
0x3278   :  { %36107 = vmatpush3.bf16.msra.mxu0 %v40752_v23  ;;  %36071 = vmatpush3.bf16.msra.mxu1 %v41085_v57 }
0x3279   :  { %36108 = vmatprep.subr.bf16.mxu1 %v42285_v40  ;;  %36252 = vmatprep.subr.bf16.mxu0 %v42285_v40 }
0x327b   :  { %31462 = vmatmul.mubr.f32.vlgmr.msra.gmra.mrb[66].mxu1 %v41104_v16  ;;  %31528 = vmatmul.mubr.f32.vlgmr.msra.gmra.mrb[68].mxu0 %v41104_v16  ;;  %v41212_v16 = vld [vmem:[%s42222_s9] ss:$0 sm:$0xff] }
0x327c   :  { %36110 = vmatpush3.bf16.msra.mxu1 %v37983_v38  ;;  %36254 = vmatpush3.bf16.msra.mxu0 %v37983_v38 }
0x327d   :  { %36111 = vmatprep.subr.bf16.mxu1 %v42285_v40  ;;  %36255 = vmatprep.subr.bf16.mxu0 %v42285_v40 }
0x327e   :  { %31562 = vmatprep.mubr.msk.f32.mxu1 %vm37764_vm0, %v42284_v25  ;;  %31772 = vmatprep.mubr.msk.f32.mxu0 %vm37764_vm0, %v42284_v25 }
0x3280   :  { %36113 = vmatpush3.bf16.msra.mxu1 %v37999_v43  ;;  %36257 = vmatpush3.bf16.msra.mxu0 %v37999_v43 }
0x3281   :  { %36114 = vmatprep.subr.bf16.mxu1 %v42285_v40  ;;  %36258 = vmatprep.subr.bf16.mxu0 %v42285_v40 }
0x3284   :  { %36116 = vmatpush3.bf16.msra.mxu1 %v38015_v48  ;;  %36260 = vmatpush3.bf16.msra.mxu0 %v38015_v48 }
0x3285   :  { %36117 = vmatprep.subr.bf16.mxu1 %v42285_v40  ;;  %36261 = vmatprep.subr.bf16.mxu0 %v42285_v40 }
0x3288   :  { %36119 = vmatpush3.bf16.msra.mxu1 %v38031_v53  ;;  %36263 = vmatpush3.bf16.msra.mxu0 %v38031_v53 }
0x3289   :  { %36120 = vmatprep.subr.bf16.mxu1 %v42285_v40  ;;  %36264 = vmatprep.subr.bf16.mxu0 %v42285_v40 }
0x328c   :  { %36122 = vmatpush3.bf16.msra.mxu1 %v38047_v58  ;;  %36266 = vmatpush3.bf16.msra.mxu0 %v38047_v58 }
0x328d   :  { %36123 = vmatprep.subr.bf16.mxu1 %v42285_v40  ;;  %36267 = vmatprep.subr.bf16.mxu0 %v42285_v40 }
0x3290   :  { %36125 = vmatpush3.bf16.msra.mxu1 %v38063_v63  ;;  %36269 = vmatpush3.bf16.msra.mxu0 %v38063_v63 }
0x3291   :  { %36126 = vmatprep.subr.bf16.mxu1 %v42285_v40  ;;  %36270 = vmatprep.subr.bf16.mxu0 %v42285_v40 }
0x3294   :  { %36128 = vmatpush3.bf16.msra.mxu1 %v38079_v6  ;;  %36272 = vmatpush3.bf16.msra.mxu0 %v38079_v6 }
0x3295   :  { %36129 = vmatprep.subr.bf16.mxu1 %v42285_v40  ;;  %36273 = vmatprep.subr.bf16.mxu0 %v42285_v40 }
0x3298   :  { %36131 = vmatpush3.bf16.msra.mxu1 %v38101_v17  ;;  %36275 = vmatpush3.bf16.msra.mxu0 %v38101_v17 }
0x3299   :  { %36132 = vmatprep.subr.bf16.mxu1 %v42285_v40  ;;  %36276 = vmatprep.subr.bf16.mxu0 %v42285_v40 }
0x334e   :  { %v17127_v24 = vpop.f32.mrb[66].mxu1  ;;  %v17613_v35 = vpop.f32.mrb[68].mxu0 }
0x334f   :  { %v37153_v39 = vadd.f32 %v41212_v16, %v17127_v24  ;;  %v41216_v20 = vadd.f32 %v40821_v60, %v17613_v35  ;;  %v31463_v15 = vpop.f32.mrb[67].mxu1  ;;  %v31529_v56 = vpop.f32.mrb[69].mxu0  ;;  %v42316_v24 = vld [vmem:[#allocation22_spill] sm:$0xff]  ;;  %v42317_v35 = vld [vmem:[#allocation23_spill] sm:$0xff] }
0x3350   :  { %v42319_v15 = vld [vmem:[#allocation25_spill] sm:$0xff] }
0x3351   :  { %17131 = vst [vmem:[#allocation11] sm:$0xff] %v37153_v39  ;;  %v41219_v41 = vand.u32 4294901760, %v41216_v20  ;;  %v18258_v62 = vmul.f32 %v41216_v20, %v41216_v20  ;;  %v42318_v39 = vld [vmem:[#allocation24_spill] sm:$0xff] }
0x3353   :  { %v41225_v46 = vsub.f32 %v41216_v20, %v41219_v41  ;;  %v41227_v3 = vand.u32 4294901760, %v18258_v62 }
0x3355   :  { %v41230_v26 = vsub.f32 %v18258_v62, %v41227_v3  ;;  %v17700_v60 = vand.u32 4294901760, %v41225_v46 }
0x3357   :  { %v17701_v55 = vsub.f32 %v41225_v46, %v17700_v60  ;;  %v18342_v2 = vand.u32 4294901760, %v41230_v26 }
0x3359   :  { %v17702_v32 = vand.u32 4294901760, %v17701_v55  ;;  %v18343_v8 = vsub.f32 %v41230_v26, %v18342_v2 }
0x335b   :  { %31563 = vmatmul.mubr.f32.vlgmr.msra.gmra.mrb[68].mxu1 %v17702_v32  ;;  %v18344_v1 = vand.u32 4294901760, %v18343_v8 }
0x335c   :  { %36134 = vmatpush3.bf16.msra.mxu1 %v38125_v27  ;;  %31597 = vmatprep.mubr.msk.f32.mxu1 %vm37764_vm0, %v42284_v25 }
0x335d   :  { %31773 = vmatmul.mubr.f32.vlgmr.msra.gmra.mrb[70].mxu0 %v18344_v1  ;;  %36135 = vmatprep.subr.bf16.mxu1 %v42285_v40 }
0x335e   :  { %36278 = vmatpush3.bf16.msra.mxu0 %v38125_v27  ;;  %31807 = vmatprep.mubr.msk.f32.mxu0 %vm37764_vm0, %v42284_v25 }
0x335f   :  { %36279 = vmatprep.subr.bf16.mxu0 %v42285_v40 }
0x3360   :  { %36137 = vmatpush3.bf16.msra.mxu1 %v38145_v42 }
0x3361   :  { %36138 = vmatprep.subr.bf16.mxu1 %v42285_v40 }
0x3362   :  { %36281 = vmatpush3.bf16.msra.mxu0 %v38145_v42 }
0x3363   :  { %36282 = vmatprep.subr.bf16.mxu0 %v42285_v40 }
0x3364   :  { %36140 = vmatpush3.bf16.msra.mxu1 %v38165_v28 }
0x3365   :  { %36141 = vmatprep.subr.bf16.mxu1 %v42285_v40 }
0x3366   :  { %36284 = vmatpush3.bf16.msra.mxu0 %v38165_v28 }
0x3367   :  { %36285 = vmatprep.subr.bf16.mxu0 %v42285_v40 }
0x3368   :  { %36143 = vmatpush3.bf16.msra.mxu1 %v38201_v44 }
0x3369   :  { %36144 = vmatprep.subr.bf16.mxu1 %v42285_v40 }
0x336a   :  { %36287 = vmatpush3.bf16.msra.mxu0 %v38201_v44 }
0x336b   :  { %36288 = vmatprep.subr.bf16.mxu0 %v42285_v40 }
0x336c   :  { %36146 = vmatpush3.bf16.msra.mxu1 %v38205_v37 }
0x336d   :  { %36147 = vmatprep.subr.bf16.mxu1 %v42285_v40 }
0x336e   :  { %36290 = vmatpush3.bf16.msra.mxu0 %v38205_v37 }
0x336f   :  { %36291 = vmatprep.subr.bf16.mxu0 %v42285_v40 }
0x3370   :  { %36149 = vmatpush3.bf16.msra.mxu1 %v38225_v47 }
0x3371   :  { %36150 = vmatprep.subr.bf16.mxu1 %v42285_v40 }
0x3372   :  { %36293 = vmatpush3.bf16.msra.mxu0 %v38225_v47 }
0x3373   :  { %36294 = vmatprep.subr.bf16.mxu0 %v42285_v40 }
0x3374   :  { %36152 = vmatpush3.bf16.msra.mxu1 %v38251_v11 }
0x3375   :  { %36153 = vmatprep.subr.bf16.mxu1 %v42285_v40 }
0x3376   :  { %36296 = vmatpush3.bf16.msra.mxu0 %v38251_v11 }
0x3377   :  { %36297 = vmatprep.subr.bf16.mxu0 %v42285_v40 }
0x3378   :  { %36155 = vmatpush3.bf16.msra.mxu1 %v38253_v54 }
0x3379   :  { %36156 = vmatprep.subr.bf16.mxu1 %v42285_v40 }
0x337a   :  { %36299 = vmatpush3.bf16.msra.mxu0 %v38253_v54 }
0x337b   :  { %31598 = vmatmul.mubr.f32.vlgmr.msra.gmra.mrb[68].mxu1 %v41219_v41  ;;  %36300 = vmatprep.subr.bf16.mxu0 %v42285_v40 }
0x337c   :  { %36158 = vmatpush3.bf16.msra.mxu1 %v38257_v19  ;;  %31632 = vmatprep.mubr.msk.f32.mxu1 %vm37764_vm0, %v42284_v25 }
0x337d   :  { %31808 = vmatmul.mubr.f32.vlgmr.msra.gmra.mrb[70].mxu0 %v41227_v3  ;;  %36159 = vmatprep.subr.bf16.mxu1 %v42285_v40 }
0x337e   :  { %36302 = vmatpush3.bf16.msra.mxu0 %v38257_v19  ;;  %31842 = vmatprep.mubr.msk.f32.mxu0 %vm37764_vm0, %v42284_v25 }
0x337f   :  { %36303 = vmatprep.subr.bf16.mxu0 %v42285_v40 }
0x3380   :  { %36161 = vmatpush3.bf16.msra.mxu1 %v38261_v4 }
0x3381   :  { %36162 = vmatprep.subr.bf16.mxu1 %v42285_v40 }
0x3382   :  { %36305 = vmatpush3.bf16.msra.mxu0 %v38261_v4 }
0x3383   :  { %36306 = vmatprep.subr.bf16.mxu0 %v42285_v40 }
0x3384   :  { %36164 = vmatpush3.bf16.msra.mxu1 %v38265_v59 }
0x3385   :  { %36165 = vmatprep.subr.bf16.mxu1 %v42285_v40 }
0x3386   :  { %36308 = vmatpush3.bf16.msra.mxu0 %v38265_v59 }
0x3387   :  { %36309 = vmatprep.subr.bf16.mxu0 %v42285_v40 }
0x3388   :  { %36167 = vmatpush3.bf16.msra.mxu1 %v38269_v5 }
0x3389   :  { %36168 = vmatprep.subr.bf16.mxu1 %v42285_v40 }
0x338a   :  { %36311 = vmatpush3.bf16.msra.mxu0 %v38269_v5 }
0x338b   :  { %36312 = vmatprep.subr.bf16.mxu0 %v42285_v40 }
0x338c   :  { %36170 = vmatpush3.bf16.msra.mxu1 %v38273_v52 }
0x338d   :  { %36171 = vmatprep.subr.bf16.mxu1 %v42285_v40 }
0x338e   :  { %36314 = vmatpush3.bf16.msra.mxu0 %v38273_v52 }
0x338f   :  { %36315 = vmatprep.subr.bf16.mxu0 %v42285_v40 }
0x3390   :  { %36173 = vmatpush3.bf16.msra.mxu1 %v38277_v9 }
0x3391   :  { %36174 = vmatprep.subr.bf16.mxu1 %v42285_v40 }
0x3392   :  { %36317 = vmatpush3.bf16.msra.mxu0 %v38277_v9 }
0x3393   :  { %36318 = vmatprep.subr.bf16.mxu0 %v42285_v40 }
0x3394   :  { %36176 = vmatpush3.bf16.msra.mxu1 %v38281_v12 }
0x3395   :  { %36177 = vmatprep.subr.bf16.mxu1 %v42285_v40 }
0x3396   :  { %36320 = vmatpush3.bf16.msra.mxu0 %v38281_v12 }
0x3397   :  { %36321 = vmatprep.subr.bf16.mxu0 %v42285_v40 }
0x3398   :  { %36179 = vmatpush3.bf16.msra.mxu1 %v38285_v13 }
0x3399   :  { %36180 = vmatprep.subr.bf16.mxu1 %v42285_v40 }
0x339a   :  { %36323 = vmatpush3.bf16.msra.mxu0 %v38285_v13 }
0x339b   :  { %31633 = vmatmul.mubr.f32.vlgmr.msra.gmra.mrb[68].mxu1 %v41225_v46  ;;  %36324 = vmatprep.subr.bf16.mxu0 %v42285_v40 }
0x339c   :  { %36182 = vmatpush3.bf16.msra.mxu1 %v37983_v38  ;;  %31667 = vmatprep.mubr.msk.f32.mxu1 %vm37764_vm0, %v42284_v25 }
0x339d   :  { %31843 = vmatmul.mubr.f32.vlgmr.msra.gmra.mrb[70].mxu0 %v41230_v26  ;;  %36183 = vmatprep.subr.bf16.mxu1 %v42285_v40 }
0x339e   :  { %36326 = vmatpush3.bf16.msra.mxu0 %v37983_v38  ;;  %31877 = vmatprep.mubr.msk.f32.mxu0 %vm37764_vm0, %v42284_v25 }
0x339f   :  { %36327 = vmatprep.subr.bf16.mxu0 %v42285_v40 }
0x33a0   :  { %36185 = vmatpush3.bf16.msra.mxu1 %v37999_v43 }
0x33a1   :  { %36186 = vmatprep.subr.bf16.mxu1 %v42285_v40 }
0x33a2   :  { %36329 = vmatpush3.bf16.msra.mxu0 %v37999_v43 }
0x33a3   :  { %36330 = vmatprep.subr.bf16.mxu0 %v42285_v40 }
0x33a4   :  { %36188 = vmatpush3.bf16.msra.mxu1 %v38015_v48 }
0x33a5   :  { %36189 = vmatprep.subr.bf16.mxu1 %v42285_v40 }
0x33a6   :  { %36332 = vmatpush3.bf16.msra.mxu0 %v38015_v48 }
0x33a7   :  { %36333 = vmatprep.subr.bf16.mxu0 %v42285_v40 }
0x33a8   :  { %36191 = vmatpush3.bf16.msra.mxu1 %v38031_v53 }
0x33a9   :  { %36192 = vmatprep.subr.bf16.mxu1 %v42285_v40 }
0x33aa   :  { %36335 = vmatpush3.bf16.msra.mxu0 %v38031_v53 }
0x33ab   :  { %36336 = vmatprep.subr.bf16.mxu0 %v42285_v40 }
0x33ac   :  { %36194 = vmatpush3.bf16.msra.mxu1 %v38047_v58 }
0x33ad   :  { %36195 = vmatprep.subr.bf16.mxu1 %v42285_v40 }
0x33ae   :  { %36338 = vmatpush3.bf16.msra.mxu0 %v38047_v58 }
0x33af   :  { %36339 = vmatprep.subr.bf16.mxu0 %v42285_v40 }
0x33b0   :  { %36197 = vmatpush3.bf16.msra.mxu1 %v38063_v63 }
0x33b1   :  { %36198 = vmatprep.subr.bf16.mxu1 %v42285_v40 }
0x33b2   :  { %36341 = vmatpush3.bf16.msra.mxu0 %v38063_v63 }
0x33b3   :  { %36342 = vmatprep.subr.bf16.mxu0 %v42285_v40 }
0x33b4   :  { %36200 = vmatpush3.bf16.msra.mxu1 %v38079_v6 }
0x33b5   :  { %36201 = vmatprep.subr.bf16.mxu1 %v42285_v40 }
0x33b6   :  { %36344 = vmatpush3.bf16.msra.mxu0 %v38079_v6 }
0x33b7   :  { %36345 = vmatprep.subr.bf16.mxu0 %v42285_v40 }
0x33b8   :  { %36203 = vmatpush3.bf16.msra.mxu1 %v38101_v17 }
0x33b9   :  { %36204 = vmatprep.subr.bf16.mxu1 %v42285_v40 }
0x33ba   :  { %36347 = vmatpush3.bf16.msra.mxu0 %v38101_v17 }
0x33bb   :  { %31668 = vmatmul.mubr.f32.vlgmr.msra.gmra.mrb[68].mxu1 %v17700_v60  ;;  %36348 = vmatprep.subr.bf16.mxu0 %v42285_v40 }
0x33bc   :  { %36206 = vmatpush3.bf16.msra.mxu1 %v38424_v51  ;;  %31702 = vmatprep.mubr.msk.f32.mxu1 %vm37764_vm0, %v42284_v25 }
0x33bd   :  { %31878 = vmatmul.mubr.f32.vlgmr.msra.gmra.mrb[70].mxu0 %v18342_v2  ;;  %36207 = vmatprep.subr.bf16.mxu1 %v42285_v40 }
0x33be   :  { %36350 = vmatpush3.bf16.msra.mxu0 %v38424_v51  ;;  %31912 = vmatprep.mubr.msk.f32.mxu0 %vm37764_vm0, %v42284_v25 }
0x33bf   :  { %36351 = vmatprep.subr.bf16.mxu0 %v42285_v40 }
0x33c0   :  { %36209 = vmatpush3.bf16.msra.mxu1 %v38436_v7 }
0x33c1   :  { %36210 = vmatprep.subr.bf16.mxu1 %v42285_v40 }
0x33c2   :  { %36353 = vmatpush3.bf16.msra.mxu0 %v38436_v7 }
0x33c3   :  { %36354 = vmatprep.subr.bf16.mxu0 %v42285_v40 }
0x33c4   :  { %36212 = vmatpush3.bf16.msra.mxu1 %v38452_v21 }
0x33c5   :  { %36213 = vmatprep.subr.bf16.mxu1 %v42285_v40 }
0x33c6   :  { %36356 = vmatpush3.bf16.msra.mxu0 %v38452_v21 }
0x33c7   :  { %36357 = vmatprep.subr.bf16.mxu0 %v42285_v40 }
0x33c8   :  { %36215 = vmatpush3.bf16.msra.mxu1 %v42315_v0 }
0x33c9   :  { %36216 = vmatprep.subr.bf16.mxu1 %v42285_v40 }
0x33ca   :  { %36359 = vmatpush3.bf16.msra.mxu0 %v42315_v0 }
0x33cb   :  { %36360 = vmatprep.subr.bf16.mxu0 %v42285_v40 }
0x33cc   :  { %36218 = vmatpush3.bf16.msra.mxu1 %v42316_v24 }
0x33cd   :  { %36219 = vmatprep.subr.bf16.mxu1 %v42285_v40 }
0x33ce   :  { %36362 = vmatpush3.bf16.msra.mxu0 %v42316_v24 }
0x33cf   :  { %36363 = vmatprep.subr.bf16.mxu0 %v42285_v40 }
0x33d0   :  { %36221 = vmatpush3.bf16.msra.mxu1 %v42317_v35 }
0x33d1   :  { %36222 = vmatprep.subr.bf16.mxu1 %v42285_v40 }
0x33d2   :  { %36365 = vmatpush3.bf16.msra.mxu0 %v42317_v35 }
0x33d3   :  { %36366 = vmatprep.subr.bf16.mxu0 %v42285_v40 }
0x33d4   :  { %36224 = vmatpush3.bf16.msra.mxu1 %v42318_v39 }
0x33d5   :  { %36225 = vmatprep.subr.bf16.mxu1 %v42285_v40 }
0x33d6   :  { %36368 = vmatpush3.bf16.msra.mxu0 %v42318_v39 }
0x33d7   :  { %36369 = vmatprep.subr.bf16.mxu0 %v42285_v40 }
0x33d8   :  { %36227 = vmatpush3.bf16.msra.mxu1 %v42319_v15 }
0x33d9   :  { %36228 = vmatprep.subr.bf16.mxu1 %v42285_v40 }
0x33da   :  { %36371 = vmatpush3.bf16.msra.mxu0 %v42319_v15 }
0x33db   :  { %31703 = vmatmul.mubr.f32.vlgmr.msra.gmra.mrb[68].mxu1 %v41219_v41  ;;  %36372 = vmatprep.subr.bf16.mxu0 %v42285_v40 }
0x33dc   :  { %36230 = vmatpush3.bf16.msra.mxu1 %v37983_v38  ;;  %31737 = vmatprep.mubr.msk.f32.mxu1 %vm37764_vm0, %v42284_v25 }
0x33dd   :  { %31913 = vmatmul.mubr.f32.vlgmr.msra.gmra.mrb[70].mxu0 %v41227_v3  ;;  %36231 = vmatprep.subr.bf16.mxu1 %v42285_v40 }
0x33de   :  { %36374 = vmatpush3.bf16.msra.mxu0 %v37983_v38  ;;  %31947 = vmatprep.mubr.msk.f32.mxu0 %vm37764_vm0, %v42284_v25 }
0x33df   :  { %36375 = vmatprep.subr.bf16.mxu0 %v42285_v40 }
0x33e0   :  { %36233 = vmatpush3.bf16.msra.mxu1 %v37999_v43 }
0x33e1   :  { %36234 = vmatprep.subr.bf16.mxu1 %v42285_v40 }
0x33e2   :  { %36377 = vmatpush3.bf16.msra.mxu0 %v37999_v43 }
0x33e3   :  { %36378 = vmatprep.subr.bf16.mxu0 %v42285_v40 }
0x33e4   :  { %36236 = vmatpush3.bf16.msra.mxu1 %v38015_v48 }
0x33e5   :  { %36237 = vmatprep.subr.bf16.mxu1 %v42285_v40 }
0x33e6   :  { %36380 = vmatpush3.bf16.msra.mxu0 %v38015_v48 }
0x33e7   :  { %36381 = vmatprep.subr.bf16.mxu0 %v42285_v40 }
0x33e8   :  { %36239 = vmatpush3.bf16.msra.mxu1 %v38031_v53 }
0x33e9   :  { %36240 = vmatprep.subr.bf16.mxu1 %v42285_v40 }
0x33ea   :  { %36383 = vmatpush3.bf16.msra.mxu0 %v38031_v53 }
0x33eb   :  { %36384 = vmatprep.subr.bf16.mxu0 %v42285_v40 }
0x33ec   :  { %36242 = vmatpush3.bf16.msra.mxu1 %v38047_v58 }
0x33ed   :  { %36243 = vmatprep.subr.bf16.mxu1 %v42285_v40 }
0x33ee   :  { %36386 = vmatpush3.bf16.msra.mxu0 %v38047_v58 }
0x33ef   :  { %36387 = vmatprep.subr.bf16.mxu0 %v42285_v40 }
0x33f0   :  { %36245 = vmatpush3.bf16.msra.mxu1 %v38063_v63 }
0x33f1   :  { %36246 = vmatprep.subr.bf16.mxu1 %v42285_v40 }
0x33f2   :  { %36389 = vmatpush3.bf16.msra.mxu0 %v38063_v63 }
0x33f3   :  { %36390 = vmatprep.subr.bf16.mxu0 %v42285_v40 }
0x33f4   :  { %36248 = vmatpush3.bf16.msra.mxu1 %v38079_v6 }
0x33f5   :  { %36249 = vmatprep.subr.bf16.mxu1 %v42285_v40 }
0x33f6   :  { %36392 = vmatpush3.bf16.msra.mxu0 %v38079_v6 }
0x33f7   :  { %36393 = vmatprep.subr.bf16.mxu0 %v42285_v40 }
0x33f8   :  { %36251 = vmatpush3.bf16.msra.mxu1 %v38101_v17 }
0x33f9   :  { %36396 = vmatprep.subr.bf16.mxu1 %v42285_v40 }
0x33fa   :  { %36395 = vmatpush3.bf16.msra.mxu0 %v38101_v17 }
0x33fb   :  { %31738 = vmatmul.mubr.f32.vlgmr.msra.gmra.mrb[68].mxu1 %v41219_v41  ;;  %36432 = vmatprep.subr.bf16.mxu0 %v42285_v40 }
0x33fc   :  { %36398 = vmatpush3.bf16.msra.mxu1 %v41081_v31  ;;  %31958 = vmatprep.mubr.msk.f32.mxu1 %vm37764_vm0, %v42284_v25 }
0x33fd   :  { %31948 = vmatmul.mubr.f32.vlgmr.msra.gmra.mrb[70].mxu0 %v41227_v3  ;;  %36399 = vmatprep.subr.bf16.mxu1 %v42285_v40 }
0x33fe   :  { %36434 = vmatpush3.bf16.msra.mxu0 %v40748_v33  ;;  %32024 = vmatprep.mubr.msk.f32.mxu0 %vm37764_vm0, %v42284_v25 }
0x33ff   :  { %36435 = vmatprep.subr.bf16.mxu0 %v42285_v40 }
0x3400   :  { %36401 = vmatpush3.bf16.msra.mxu1 %v41085_v57 }
0x3401   :  { %36402 = vmatprep.subr.bf16.mxu1 %v42285_v40 }
0x3402   :  { %36437 = vmatpush3.bf16.msra.mxu0 %v40752_v23 }
0x3403   :  { %36438 = vmatprep.subr.bf16.mxu0 %v42285_v40 }
0x34ce   :  { %v18254_v56 = vpop.f32.mrb[68].mxu1 }
0x34cf   :  { %v18901_v41 = vmul.f32 %v18254_v56, %v18254_v56  ;;  %v31739_v62 = vpop.f32.mrb[69].mxu1  ;;  %v18900_v55 = vsub.f32 %v41216_v20, %v18254_v56 }
0x34d0   :  { %v18896_v46 = vpop.f32.mrb[70].mxu0 }
0x34d1   :  { %v18902_v3 = vsub.f32 %v18896_v46, %v18901_v41  ;;  %v31949_v26 = vpop.f32.mrb[71].mxu0  ;;  %v42320_v41 = vld [vmem:[#allocation16_spill] sm:$0xff] }
0x34d3   :  { %v18903_v60 = vadd.f32 1e-05, %v18902_v3 }
0x34d5   :  { %37584 = vrsqrt.f32 %v18903_v60 }
0x34df   :  { %v37585_v2 = vpop.eup %37584 }
0x34e0   :  { %v18905_v32 = vmul.f32 %v37585_v2, %v18900_v55 }
0x34e2   :  { %37586 = vtanh.f32 %v18905_v32  ;;  %v18906_v1 = vmul.f32 0.5, %v18905_v32 }
0x34e4   :  { %37588 = vtanh.f32 %v18906_v1 }
0x34ec   :  { %v37587_v8 = vpop.eup %37586 }
0x34ed   :  { %18913 = vrot.lane.b32.xlu0 %v37587_v8, %s37766_s10 }
0x34ee   :  { %v37589_v15 = vpop.eup %37588 }
0x34ef   :  { %v18908_v39 = vmul.f32 0.5, %v37589_v15 }
0x34f1   :  { %v18909_v35 = vadd.f32 0.5, %v18908_v39 }
0x34f3   :  { %v18911_v46 = vmul.f32 %v18909_v35, %v42320_v41 }
0x355f   :  { %v18914_v24 = vpop.permute.xlu0 %18913 }
0x3560   :  { %v18916_v62 = vmul.f32 %v18914_v24, %v18909_v35 }
0x3562   :  { %18918 = vrot.lane.b32.xlu1 %v18916_v62, %s37766_s10 }
0x35d4   :  { %v18919_v3 = vpop.permute.xlu1 %18918 }
0x35d5   :  { %v41448_v26 = vadd.f32 %v18919_v3, %v18911_v46 }
0x35d7   :  { %18923 = vrot.lane.b32.xlu0 %v41448_v26, %s37767_s22  ;;  %v18930_v20 = vmul.f32 %v41448_v26, %v41448_v26 }
0x35d9   :  { %18932 = vrot.lane.b32.xlu1 %v18930_v20, %s37767_s22  ;;  %v42321_v20 = vld [vmem:[#allocation17_spill] sm:$0xff] }
0x3649   :  { %v18924_v56 = vpop.permute.xlu0 %18923 }
0x364a   :  { %v18926_v39 = vsel %vm174_vm1, %v18924_v56, 0.0  ;;  %v42322_v56 = vld [vmem:[#allocation18_spill] sm:$0xff] }
0x364b   :  { %18927 = vadd.xlane.f32.xlu0 %v18926_v39  ;;  %v18933_v24 = vpop.permute.xlu1 %18932 }
0x364c   :  { %v18935_v15 = vsel %vm174_vm1, %v18933_v24, 0.0 }
0x364d   :  { %18936 = vadd.xlane.f32.xlu1 %v18935_v15 }
0x36d8   :  { %v18928_v60 = vpop.xlane.xlu0 %18927 }
0x36d9   :  { %v18929_v55 = vmul.f32 0.03125, %v18928_v60 }
0x36da   :  { %v18937_v2 = vpop.xlane.xlu1 %18936 }
0x36db   :  { %v18940_v32 = vmul.f32 %v18929_v55, %v18929_v55  ;;  %v18938_v8 = vmul.f32 0.03125, %v18937_v2  ;;  %v18939_v41 = vsub.f32 %v41448_v26, %v18929_v55 }
0x36dd   :  { %v18941_v1 = vsub.f32 %v18938_v8, %v18940_v32 }
0x36df   :  { %v18942_v62 = vadd.f32 1e-05, %v18941_v1 }
0x36e1   :  { %37590 = vrsqrt.f32 %v18942_v62 }
0x36eb   :  { %v37591_v46 = vpop.eup %37590 }
0x36ec   :  { %v18944_v3 = vmul.f32 %v37591_v46, %v18939_v41  ;;  %v41572_v41 = vld [vmem:[%s42218_s5] ss:$0 sm:$0xff] }
0x36ee   :  { %v18945_v0 = vmul.f32 %v18944_v3, %v42321_v20 }
0x36f0   :  { %v18946_v39 = vadd.f32 %v18945_v0, %v42322_v56 }
0x36f2   :  { %37592 = vtanh.f32 %v18946_v39 }
0x36fc   :  { %v37593_v21 = vpop.eup %37592 }
0x36fd   :  { %18949 = vrot.lane.b32.xlu0 %v37593_v21, %s37766_s10 }
0x376f   :  { %v18950_v24 = vpop.permute.xlu0 %18949 }
0x3770   :  { %v18952_v15 = vmul.f32 %v18950_v24, %v18909_v35 }
0x3772   :  { %18954 = vrot.lane.b32.xlu1 %v18952_v15, %s37768_s2 }
0x37e4   :  { %v18955_v60 = vpop.permute.xlu1 %18954 }
0x37e5   :  { %v18956_v2 = vsel %vm174_vm1, %v18955_v60, 0 }
0x37e6   :  { %v41463_v32 = vand.u32 4294901760, %v18956_v2 }
0x37e8   :  { %v19028_v55 = vsub.f32 %v18956_v2, %v41463_v32 }
0x37ea   :  { %v19029_v8 = vand.u32 4294901760, %v19028_v55 }
0x37ec   :  { %v19030_v1 = vsub.f32 %v19028_v55, %v19029_v8 }
0x37ee   :  { %v19031_v62 = vand.u32 4294901760, %v19030_v1 }
0x37f0   :  { %31959 = vmatmul.mubr.f32.vlgmr.msra.gmra.mrb[70].mxu1 %v19031_v62  ;;  %32025 = vmatmul.mubr.f32.vlgmr.msra.gmra.mrb[72].mxu0 %v19031_v62 }
0x37f1   :  { %36440 = vmatpush3.bf16.msra.mxu0 %v40756_v29  ;;  %36404 = vmatpush3.bf16.msra.mxu1 %v41089_v14 }
0x37f2   :  { %36441 = vmatprep.subr.bf16.mxu0 %v42285_v40  ;;  %36405 = vmatprep.subr.bf16.mxu1 %v42285_v40 }
0x37f3   :  { %31969 = vmatprep.mubr.msk.f32.mxu1 %vm37764_vm0, %v42284_v25  ;;  %32035 = vmatprep.mubr.msk.f32.mxu0 %vm37764_vm0, %v42284_v25 }
0x37f5   :  { %36443 = vmatpush3.bf16.msra.mxu0 %v40759_v30  ;;  %36407 = vmatpush3.bf16.msra.mxu1 %v41093_v61 }
0x37f6   :  { %36444 = vmatprep.subr.bf16.mxu0 %v42285_v40  ;;  %36408 = vmatprep.subr.bf16.mxu1 %v42285_v40 }
0x37f8   :  { %31970 = vmatmul.mubr.f32.vlgmr.msra.gmra.mrb[70].mxu1 %v41463_v32  ;;  %32036 = vmatmul.mubr.f32.vlgmr.msra.gmra.mrb[72].mxu0 %v41463_v32 }
0x37f9   :  { %36446 = vmatpush3.bf16.msra.mxu0 %v40761_v45  ;;  %36410 = vmatpush3.bf16.msra.mxu1 %v41095_v50 }
0x37fa   :  { %36447 = vmatprep.subr.bf16.mxu0 %v42285_v40  ;;  %36411 = vmatprep.subr.bf16.mxu1 %v42285_v40 }
0x37fb   :  { %31980 = vmatprep.mubr.msk.f32.mxu1 %vm37764_vm0, %v42284_v25  ;;  %32046 = vmatprep.mubr.msk.f32.mxu0 %vm37764_vm0, %v42284_v25 }
0x37fd   :  { %36449 = vmatpush3.bf16.msra.mxu0 %v40763_v36  ;;  %36413 = vmatpush3.bf16.msra.mxu1 %v41097_v34 }
0x37fe   :  { %36450 = vmatprep.subr.bf16.mxu0 %v42285_v40  ;;  %36414 = vmatprep.subr.bf16.mxu1 %v42285_v40 }
0x3800   :  { %31981 = vmatmul.mubr.f32.vlgmr.msra.gmra.mrb[70].mxu1 %v19028_v55  ;;  %32047 = vmatmul.mubr.f32.vlgmr.msra.gmra.mrb[72].mxu0 %v19028_v55 }
0x3801   :  { %36452 = vmatpush3.bf16.msra.mxu0 %v40748_v33  ;;  %36416 = vmatpush3.bf16.msra.mxu1 %v41081_v31 }
0x3802   :  { %36453 = vmatprep.subr.bf16.mxu0 %v42285_v40  ;;  %36417 = vmatprep.subr.bf16.mxu1 %v42285_v40 }
0x3803   :  { %31991 = vmatprep.mubr.msk.f32.mxu1 %vm37764_vm0, %v42284_v25  ;;  %32057 = vmatprep.mubr.msk.f32.mxu0 %vm37764_vm0, %v42284_v25 }
0x3805   :  { %36455 = vmatpush3.bf16.msra.mxu0 %v40752_v23  ;;  %36419 = vmatpush3.bf16.msra.mxu1 %v41085_v57 }
0x3806   :  { %36456 = vmatprep.subr.bf16.mxu0 %v42285_v40  ;;  %36420 = vmatprep.subr.bf16.mxu1 %v42285_v40 }
0x3808   :  { %31992 = vmatmul.mubr.f32.vlgmr.msra.gmra.mrb[70].mxu1 %v19029_v8  ;;  %32058 = vmatmul.mubr.f32.vlgmr.msra.gmra.mrb[72].mxu0 %v19029_v8 }
0x3809   :  { %36458 = vmatpush3.bf16.msra.mxu0 %v40765_v22  ;;  %36422 = vmatpush3.bf16.msra.mxu1 %v41099_v18 }
0x380a   :  { %36459 = vmatprep.subr.bf16.mxu0 %v42285_v40  ;;  %36423 = vmatprep.subr.bf16.mxu1 %v42285_v40 }
0x380b   :  { %32002 = vmatprep.mubr.msk.f32.mxu1 %vm37764_vm0, %v42284_v25  ;;  %32068 = vmatprep.mubr.msk.f32.mxu0 %vm37764_vm0, %v42284_v25 }
0x380d   :  { %36461 = vmatpush3.bf16.msra.mxu0 %v40767_v49  ;;  %36425 = vmatpush3.bf16.msra.mxu1 %v41101_v10 }
0x380e   :  { %36462 = vmatprep.subr.bf16.mxu0 %v42285_v40  ;;  %36426 = vmatprep.subr.bf16.mxu1 %v42285_v40 }
0x3810   :  { %32003 = vmatmul.mubr.f32.vlgmr.msra.gmra.mrb[70].mxu1 %v41463_v32  ;;  %32069 = vmatmul.mubr.f32.vlgmr.msra.gmra.mrb[72].mxu0 %v41463_v32 }
0x3811   :  { %36464 = vmatpush3.bf16.msra.mxu0 %v40748_v33  ;;  %36428 = vmatpush3.bf16.msra.mxu1 %v41081_v31 }
0x3812   :  { %36465 = vmatprep.subr.bf16.mxu0 %v42285_v40  ;;  %36429 = vmatprep.subr.bf16.mxu1 %v42285_v40 }
0x3813   :  { %32013 = vmatprep.mubr.msk.f32.mxu1 %vm37764_vm0, %v42284_v25  ;;  %32079 = vmatprep.mubr.msk.f32.mxu0 %vm37764_vm0, %v42284_v25 }
0x3815   :  { %36467 = vmatpush3.bf16.msra.mxu0 %v40752_v23  ;;  %36431 = vmatpush3.bf16.msra.mxu1 %v41085_v57 }
0x3816   :  { %36468 = vmatprep.subr.bf16.mxu1 %v42285_v40  ;;  %36612 = vmatprep.subr.bf16.mxu0 %v42285_v40 }
0x3818   :  { %32014 = vmatmul.mubr.f32.vlgmr.msra.gmra.mrb[70].mxu1 %v41463_v32  ;;  %32080 = vmatmul.mubr.f32.vlgmr.msra.gmra.mrb[72].mxu0 %v41463_v32 }
0x3819   :  { %36470 = vmatpush3.bf16.msra.mxu1 %v37983_v38  ;;  %36614 = vmatpush3.bf16.msra.mxu0 %v37983_v38 }
0x381a   :  { %36471 = vmatprep.subr.bf16.mxu1 %v42285_v40  ;;  %36615 = vmatprep.subr.bf16.mxu0 %v42285_v40 }
0x381b   :  { %32114 = vmatprep.mubr.msk.f32.mxu1 %vm37764_vm0, %v42284_v25  ;;  %32324 = vmatprep.mubr.msk.f32.mxu0 %vm37764_vm0, %v42284_v25 }
0x381d   :  { %36473 = vmatpush3.bf16.msra.mxu1 %v37999_v43  ;;  %36617 = vmatpush3.bf16.msra.mxu0 %v37999_v43 }
0x381e   :  { %36474 = vmatprep.subr.bf16.mxu1 %v42285_v40  ;;  %36618 = vmatprep.subr.bf16.mxu0 %v42285_v40 }
0x3821   :  { %36476 = vmatpush3.bf16.msra.mxu1 %v38015_v48  ;;  %36620 = vmatpush3.bf16.msra.mxu0 %v38015_v48 }
0x3822   :  { %36477 = vmatprep.subr.bf16.mxu1 %v42285_v40  ;;  %36621 = vmatprep.subr.bf16.mxu0 %v42285_v40 }
0x3825   :  { %36479 = vmatpush3.bf16.msra.mxu1 %v38031_v53  ;;  %36623 = vmatpush3.bf16.msra.mxu0 %v38031_v53 }
0x3826   :  { %36480 = vmatprep.subr.bf16.mxu1 %v42285_v40  ;;  %36624 = vmatprep.subr.bf16.mxu0 %v42285_v40 }
0x3829   :  { %36482 = vmatpush3.bf16.msra.mxu1 %v38047_v58  ;;  %36626 = vmatpush3.bf16.msra.mxu0 %v38047_v58 }
0x382a   :  { %36483 = vmatprep.subr.bf16.mxu1 %v42285_v40  ;;  %36627 = vmatprep.subr.bf16.mxu0 %v42285_v40 }
0x382d   :  { %36485 = vmatpush3.bf16.msra.mxu1 %v38063_v63  ;;  %36629 = vmatpush3.bf16.msra.mxu0 %v38063_v63 }
0x382e   :  { %36486 = vmatprep.subr.bf16.mxu1 %v42285_v40  ;;  %36630 = vmatprep.subr.bf16.mxu0 %v42285_v40 }
0x3831   :  { %36488 = vmatpush3.bf16.msra.mxu1 %v38079_v6  ;;  %36632 = vmatpush3.bf16.msra.mxu0 %v38079_v6 }
0x3832   :  { %36489 = vmatprep.subr.bf16.mxu1 %v42285_v40  ;;  %36633 = vmatprep.subr.bf16.mxu0 %v42285_v40 }
0x3835   :  { %36491 = vmatpush3.bf16.msra.mxu1 %v38101_v17  ;;  %36635 = vmatpush3.bf16.msra.mxu0 %v38101_v17 }
0x3836   :  { %36492 = vmatprep.subr.bf16.mxu1 %v42285_v40  ;;  %36636 = vmatprep.subr.bf16.mxu0 %v42285_v40 }
0x38eb   :  { %v19439_v21 = vpop.f32.mrb[70].mxu1  ;;  %v19926_v0 = vpop.f32.mrb[72].mxu0 }
0x38ec   :  { %v37155_v35 = vadd.f32 %v41212_v16, %v19439_v21  ;;  %v41575_v46 = vadd.f32 %v41572_v41, %v19926_v0  ;;  %v32015_v3 = vpop.f32.mrb[71].mxu1  ;;  %v32081_v39 = vpop.f32.mrb[73].mxu0  ;;  %v42323_v0 = vld [vmem:[#allocation20_spill] sm:$0xff] }
0x38ed   :  { %v42325_v3 = vld [vmem:[#allocation22_spill] sm:$0xff]  ;;  %v42326_v39 = vld [vmem:[#allocation23_spill] sm:$0xff] }
0x38ee   :  { %19444 = vst [vmem:[#allocation11 + $0x8] sm:$0xff] %v37155_v35  ;;  %v41578_v24 = vand.u32 4294901760, %v41575_v46  ;;  %v20571_v15 = vmul.f32 %v41575_v46, %v41575_v46  ;;  %v42324_v35 = vld [vmem:[#allocation21_spill] sm:$0xff] }
0x38f0   :  { %v41584_v16 = vsub.f32 %v41575_v46, %v41578_v24  ;;  %v41586_v60 = vand.u32 4294901760, %v20571_v15 }
0x38f2   :  { %v41589_v2 = vsub.f32 %v20571_v15, %v41586_v60  ;;  %v20013_v32 = vand.u32 4294901760, %v41584_v16  ;;  %v42327_v15 = vld [vmem:[#allocation24_spill] sm:$0xff] }
0x38f4   :  { %v20014_v55 = vsub.f32 %v41584_v16, %v20013_v32  ;;  %v20655_v8 = vand.u32 4294901760, %v41589_v2 }
0x38f6   :  { %v20015_v1 = vand.u32 4294901760, %v20014_v55  ;;  %v20656_v62 = vsub.f32 %v41589_v2, %v20655_v8 }
0x38f8   :  { %32115 = vmatmul.mubr.f32.vlgmr.msra.gmra.mrb[72].mxu1 %v20015_v1  ;;  %v20657_v21 = vand.u32 4294901760, %v20656_v62 }
0x38f9   :  { %36494 = vmatpush3.bf16.msra.mxu1 %v38125_v27  ;;  %32149 = vmatprep.mubr.msk.f32.mxu1 %vm37764_vm0, %v42284_v25 }
0x38fa   :  { %32325 = vmatmul.mubr.f32.vlgmr.msra.gmra.mrb[74].mxu0 %v20657_v21  ;;  %36495 = vmatprep.subr.bf16.mxu1 %v42285_v40 }
0x38fb   :  { %36638 = vmatpush3.bf16.msra.mxu0 %v38125_v27  ;;  %32359 = vmatprep.mubr.msk.f32.mxu0 %vm37764_vm0, %v42284_v25 }
0x38fc   :  { %36639 = vmatprep.subr.bf16.mxu0 %v42285_v40 }
0x38fd   :  { %36497 = vmatpush3.bf16.msra.mxu1 %v38145_v42 }
0x38fe   :  { %36498 = vmatprep.subr.bf16.mxu1 %v42285_v40 }
0x38ff   :  { %36641 = vmatpush3.bf16.msra.mxu0 %v38145_v42 }
0x3900   :  { %36642 = vmatprep.subr.bf16.mxu0 %v42285_v40 }
0x3901   :  { %36500 = vmatpush3.bf16.msra.mxu1 %v38165_v28 }
0x3902   :  { %36501 = vmatprep.subr.bf16.mxu1 %v42285_v40 }
0x3903   :  { %36644 = vmatpush3.bf16.msra.mxu0 %v38165_v28 }
0x3904   :  { %36645 = vmatprep.subr.bf16.mxu0 %v42285_v40 }
0x3905   :  { %36503 = vmatpush3.bf16.msra.mxu1 %v38201_v44 }
0x3906   :  { %36504 = vmatprep.subr.bf16.mxu1 %v42285_v40 }
0x3907   :  { %36647 = vmatpush3.bf16.msra.mxu0 %v38201_v44 }
0x3908   :  { %36648 = vmatprep.subr.bf16.mxu0 %v42285_v40 }
0x3909   :  { %36506 = vmatpush3.bf16.msra.mxu1 %v38205_v37 }
0x390a   :  { %36507 = vmatprep.subr.bf16.mxu1 %v42285_v40 }
0x390b   :  { %36650 = vmatpush3.bf16.msra.mxu0 %v38205_v37 }
0x390c   :  { %36651 = vmatprep.subr.bf16.mxu0 %v42285_v40 }
0x390d   :  { %36509 = vmatpush3.bf16.msra.mxu1 %v38225_v47 }
0x390e   :  { %36510 = vmatprep.subr.bf16.mxu1 %v42285_v40 }
0x390f   :  { %36653 = vmatpush3.bf16.msra.mxu0 %v38225_v47 }
0x3910   :  { %36654 = vmatprep.subr.bf16.mxu0 %v42285_v40 }
0x3911   :  { %36512 = vmatpush3.bf16.msra.mxu1 %v38251_v11 }
0x3912   :  { %36513 = vmatprep.subr.bf16.mxu1 %v42285_v40 }
0x3913   :  { %36656 = vmatpush3.bf16.msra.mxu0 %v38251_v11 }
0x3914   :  { %36657 = vmatprep.subr.bf16.mxu0 %v42285_v40 }
0x3915   :  { %36515 = vmatpush3.bf16.msra.mxu1 %v38253_v54 }
0x3916   :  { %36516 = vmatprep.subr.bf16.mxu1 %v42285_v40 }
0x3917   :  { %36659 = vmatpush3.bf16.msra.mxu0 %v38253_v54 }
0x3918   :  { %32150 = vmatmul.mubr.f32.vlgmr.msra.gmra.mrb[72].mxu1 %v41578_v24  ;;  %36660 = vmatprep.subr.bf16.mxu0 %v42285_v40 }
0x3919   :  { %36518 = vmatpush3.bf16.msra.mxu1 %v38257_v19  ;;  %32184 = vmatprep.mubr.msk.f32.mxu1 %vm37764_vm0, %v42284_v25 }
0x391a   :  { %32360 = vmatmul.mubr.f32.vlgmr.msra.gmra.mrb[74].mxu0 %v41586_v60  ;;  %36519 = vmatprep.subr.bf16.mxu1 %v42285_v40 }
0x391b   :  { %36662 = vmatpush3.bf16.msra.mxu0 %v38257_v19  ;;  %32394 = vmatprep.mubr.msk.f32.mxu0 %vm37764_vm0, %v42284_v25 }
0x391c   :  { %36663 = vmatprep.subr.bf16.mxu0 %v42285_v40 }
0x391d   :  { %36521 = vmatpush3.bf16.msra.mxu1 %v38261_v4 }
0x391e   :  { %36522 = vmatprep.subr.bf16.mxu1 %v42285_v40 }
0x391f   :  { %36665 = vmatpush3.bf16.msra.mxu0 %v38261_v4 }
0x3920   :  { %36666 = vmatprep.subr.bf16.mxu0 %v42285_v40 }
0x3921   :  { %36524 = vmatpush3.bf16.msra.mxu1 %v38265_v59 }
0x3922   :  { %36525 = vmatprep.subr.bf16.mxu1 %v42285_v40 }
0x3923   :  { %36668 = vmatpush3.bf16.msra.mxu0 %v38265_v59 }
0x3924   :  { %36669 = vmatprep.subr.bf16.mxu0 %v42285_v40 }
0x3925   :  { %36527 = vmatpush3.bf16.msra.mxu1 %v38269_v5 }
0x3926   :  { %36528 = vmatprep.subr.bf16.mxu1 %v42285_v40 }
0x3927   :  { %36671 = vmatpush3.bf16.msra.mxu0 %v38269_v5 }
0x3928   :  { %36672 = vmatprep.subr.bf16.mxu0 %v42285_v40 }
0x3929   :  { %36530 = vmatpush3.bf16.msra.mxu1 %v38273_v52 }
0x392a   :  { %36531 = vmatprep.subr.bf16.mxu1 %v42285_v40 }
0x392b   :  { %36674 = vmatpush3.bf16.msra.mxu0 %v38273_v52 }
0x392c   :  { %36675 = vmatprep.subr.bf16.mxu0 %v42285_v40 }
0x392d   :  { %36533 = vmatpush3.bf16.msra.mxu1 %v38277_v9 }
0x392e   :  { %36534 = vmatprep.subr.bf16.mxu1 %v42285_v40 }
0x392f   :  { %36677 = vmatpush3.bf16.msra.mxu0 %v38277_v9 }
0x3930   :  { %36678 = vmatprep.subr.bf16.mxu0 %v42285_v40 }
0x3931   :  { %36536 = vmatpush3.bf16.msra.mxu1 %v38281_v12 }
0x3932   :  { %36537 = vmatprep.subr.bf16.mxu1 %v42285_v40 }
0x3933   :  { %36680 = vmatpush3.bf16.msra.mxu0 %v38281_v12 }
0x3934   :  { %36681 = vmatprep.subr.bf16.mxu0 %v42285_v40 }
0x3935   :  { %36539 = vmatpush3.bf16.msra.mxu1 %v38285_v13 }
0x3936   :  { %36540 = vmatprep.subr.bf16.mxu1 %v42285_v40 }
0x3937   :  { %36683 = vmatpush3.bf16.msra.mxu0 %v38285_v13 }
0x3938   :  { %32185 = vmatmul.mubr.f32.vlgmr.msra.gmra.mrb[72].mxu1 %v41584_v16  ;;  %36684 = vmatprep.subr.bf16.mxu0 %v42285_v40  ;;  %v42328_v16 = vld [vmem:[#allocation25_spill] sm:$0xff] }
0x3939   :  { %36542 = vmatpush3.bf16.msra.mxu1 %v37983_v38  ;;  %32219 = vmatprep.mubr.msk.f32.mxu1 %vm37764_vm0, %v42284_v25 }
0x393a   :  { %32395 = vmatmul.mubr.f32.vlgmr.msra.gmra.mrb[74].mxu0 %v41589_v2  ;;  %36543 = vmatprep.subr.bf16.mxu1 %v42285_v40 }
0x393b   :  { %36686 = vmatpush3.bf16.msra.mxu0 %v37983_v38  ;;  %32429 = vmatprep.mubr.msk.f32.mxu0 %vm37764_vm0, %v42284_v25 }
0x393c   :  { %36687 = vmatprep.subr.bf16.mxu0 %v42285_v40 }
0x393d   :  { %36545 = vmatpush3.bf16.msra.mxu1 %v37999_v43 }
0x393e   :  { %36546 = vmatprep.subr.bf16.mxu1 %v42285_v40 }
0x393f   :  { %36689 = vmatpush3.bf16.msra.mxu0 %v37999_v43 }
0x3940   :  { %36690 = vmatprep.subr.bf16.mxu0 %v42285_v40 }
0x3941   :  { %36548 = vmatpush3.bf16.msra.mxu1 %v38015_v48 }
0x3942   :  { %36549 = vmatprep.subr.bf16.mxu1 %v42285_v40 }
0x3943   :  { %36692 = vmatpush3.bf16.msra.mxu0 %v38015_v48 }
0x3944   :  { %36693 = vmatprep.subr.bf16.mxu0 %v42285_v40 }
0x3945   :  { %36551 = vmatpush3.bf16.msra.mxu1 %v38031_v53 }
0x3946   :  { %36552 = vmatprep.subr.bf16.mxu1 %v42285_v40 }
0x3947   :  { %36695 = vmatpush3.bf16.msra.mxu0 %v38031_v53 }
0x3948   :  { %36696 = vmatprep.subr.bf16.mxu0 %v42285_v40 }
0x3949   :  { %36554 = vmatpush3.bf16.msra.mxu1 %v38047_v58 }
0x394a   :  { %36555 = vmatprep.subr.bf16.mxu1 %v42285_v40 }
0x394b   :  { %36698 = vmatpush3.bf16.msra.mxu0 %v38047_v58 }
0x394c   :  { %36699 = vmatprep.subr.bf16.mxu0 %v42285_v40 }
0x394d   :  { %36557 = vmatpush3.bf16.msra.mxu1 %v38063_v63 }
0x394e   :  { %36558 = vmatprep.subr.bf16.mxu1 %v42285_v40 }
0x394f   :  { %36701 = vmatpush3.bf16.msra.mxu0 %v38063_v63 }
0x3950   :  { %36702 = vmatprep.subr.bf16.mxu0 %v42285_v40 }
0x3951   :  { %36560 = vmatpush3.bf16.msra.mxu1 %v38079_v6 }
0x3952   :  { %36561 = vmatprep.subr.bf16.mxu1 %v42285_v40 }
0x3953   :  { %36704 = vmatpush3.bf16.msra.mxu0 %v38079_v6 }
0x3954   :  { %36705 = vmatprep.subr.bf16.mxu0 %v42285_v40 }
0x3955   :  { %36563 = vmatpush3.bf16.msra.mxu1 %v38101_v17 }
0x3956   :  { %36564 = vmatprep.subr.bf16.mxu1 %v42285_v40 }
0x3957   :  { %36707 = vmatpush3.bf16.msra.mxu0 %v38101_v17 }
0x3958   :  { %32220 = vmatmul.mubr.f32.vlgmr.msra.gmra.mrb[72].mxu1 %v20013_v32  ;;  %36708 = vmatprep.subr.bf16.mxu0 %v42285_v40 }
0x3959   :  { %36566 = vmatpush3.bf16.msra.mxu1 %v38424_v51  ;;  %32254 = vmatprep.mubr.msk.f32.mxu1 %vm37764_vm0, %v42284_v25 }
0x395a   :  { %32430 = vmatmul.mubr.f32.vlgmr.msra.gmra.mrb[74].mxu0 %v20655_v8  ;;  %36567 = vmatprep.subr.bf16.mxu1 %v42285_v40 }
0x395b   :  { %36710 = vmatpush3.bf16.msra.mxu0 %v38424_v51  ;;  %32464 = vmatprep.mubr.msk.f32.mxu0 %vm37764_vm0, %v42284_v25 }
0x395c   :  { %36711 = vmatprep.subr.bf16.mxu0 %v42285_v40 }
0x395d   :  { %36569 = vmatpush3.bf16.msra.mxu1 %v38436_v7 }
0x395e   :  { %36570 = vmatprep.subr.bf16.mxu1 %v42285_v40 }
0x395f   :  { %36713 = vmatpush3.bf16.msra.mxu0 %v38436_v7 }
0x3960   :  { %36714 = vmatprep.subr.bf16.mxu0 %v42285_v40 }
0x3961   :  { %36572 = vmatpush3.bf16.msra.mxu1 %v42323_v0 }
0x3962   :  { %36573 = vmatprep.subr.bf16.mxu1 %v42285_v40 }
0x3963   :  { %36716 = vmatpush3.bf16.msra.mxu0 %v42323_v0 }
0x3964   :  { %36717 = vmatprep.subr.bf16.mxu0 %v42285_v40 }
0x3965   :  { %36575 = vmatpush3.bf16.msra.mxu1 %v42324_v35 }
0x3966   :  { %36576 = vmatprep.subr.bf16.mxu1 %v42285_v40 }
0x3967   :  { %36719 = vmatpush3.bf16.msra.mxu0 %v42324_v35 }
0x3968   :  { %36720 = vmatprep.subr.bf16.mxu0 %v42285_v40 }
0x3969   :  { %36578 = vmatpush3.bf16.msra.mxu1 %v42325_v3 }
0x396a   :  { %36579 = vmatprep.subr.bf16.mxu1 %v42285_v40 }
0x396b   :  { %36722 = vmatpush3.bf16.msra.mxu0 %v42325_v3 }
0x396c   :  { %36723 = vmatprep.subr.bf16.mxu0 %v42285_v40 }
0x396d   :  { %36581 = vmatpush3.bf16.msra.mxu1 %v42326_v39 }
0x396e   :  { %36582 = vmatprep.subr.bf16.mxu1 %v42285_v40 }
0x396f   :  { %36725 = vmatpush3.bf16.msra.mxu0 %v42326_v39 }
0x3970   :  { %36726 = vmatprep.subr.bf16.mxu0 %v42285_v40 }
0x3971   :  { %36584 = vmatpush3.bf16.msra.mxu1 %v42327_v15 }
0x3972   :  { %36585 = vmatprep.subr.bf16.mxu1 %v42285_v40 }
0x3973   :  { %36728 = vmatpush3.bf16.msra.mxu0 %v42327_v15 }
0x3974   :  { %36729 = vmatprep.subr.bf16.mxu0 %v42285_v40 }
0x3975   :  { %36587 = vmatpush3.bf16.msra.mxu1 %v42328_v16 }
0x3976   :  { %36588 = vmatprep.subr.bf16.mxu1 %v42285_v40 }
0x3977   :  { %36731 = vmatpush3.bf16.msra.mxu0 %v42328_v16 }
0x3978   :  { %32255 = vmatmul.mubr.f32.vlgmr.msra.gmra.mrb[72].mxu1 %v41578_v24  ;;  %36732 = vmatprep.subr.bf16.mxu0 %v42285_v40 }
0x3979   :  { %36590 = vmatpush3.bf16.msra.mxu1 %v37983_v38  ;;  %32289 = vmatprep.mubr.msk.f32.mxu1 %vm37764_vm0, %v42284_v25 }
0x397a   :  { %32465 = vmatmul.mubr.f32.vlgmr.msra.gmra.mrb[74].mxu0 %v41586_v60  ;;  %36591 = vmatprep.subr.bf16.mxu1 %v42285_v40 }
0x397b   :  { %36734 = vmatpush3.bf16.msra.mxu0 %v37983_v38  ;;  %32499 = vmatprep.mubr.msk.f32.mxu0 %vm37764_vm0, %v42284_v25 }
0x397c   :  { %36735 = vmatprep.subr.bf16.mxu0 %v42285_v40 }
0x397d   :  { %36593 = vmatpush3.bf16.msra.mxu1 %v37999_v43 }
0x397e   :  { %36594 = vmatprep.subr.bf16.mxu1 %v42285_v40 }
0x397f   :  { %36737 = vmatpush3.bf16.msra.mxu0 %v37999_v43 }
0x3980   :  { %36738 = vmatprep.subr.bf16.mxu0 %v42285_v40 }
0x3981   :  { %36596 = vmatpush3.bf16.msra.mxu1 %v38015_v48 }
0x3982   :  { %36597 = vmatprep.subr.bf16.mxu1 %v42285_v40 }
0x3983   :  { %36740 = vmatpush3.bf16.msra.mxu0 %v38015_v48 }
0x3984   :  { %36741 = vmatprep.subr.bf16.mxu0 %v42285_v40 }
0x3985   :  { %36599 = vmatpush3.bf16.msra.mxu1 %v38031_v53 }
0x3986   :  { %36600 = vmatprep.subr.bf16.mxu1 %v42285_v40 }
0x3987   :  { %36743 = vmatpush3.bf16.msra.mxu0 %v38031_v53 }
0x3988   :  { %36744 = vmatprep.subr.bf16.mxu0 %v42285_v40 }
0x3989   :  { %36602 = vmatpush3.bf16.msra.mxu1 %v38047_v58 }
0x398a   :  { %36603 = vmatprep.subr.bf16.mxu1 %v42285_v40 }
0x398b   :  { %36746 = vmatpush3.bf16.msra.mxu0 %v38047_v58 }
0x398c   :  { %36747 = vmatprep.subr.bf16.mxu0 %v42285_v40 }
0x398d   :  { %36605 = vmatpush3.bf16.msra.mxu1 %v38063_v63 }
0x398e   :  { %36606 = vmatprep.subr.bf16.mxu1 %v42285_v40 }
0x398f   :  { %36749 = vmatpush3.bf16.msra.mxu0 %v38063_v63 }
0x3990   :  { %36750 = vmatprep.subr.bf16.mxu0 %v42285_v40 }
0x3991   :  { %36608 = vmatpush3.bf16.msra.mxu1 %v38079_v6 }
0x3992   :  { %36609 = vmatprep.subr.bf16.mxu1 %v42285_v40 }
0x3993   :  { %36752 = vmatpush3.bf16.msra.mxu0 %v38079_v6 }
0x3994   :  { %36753 = vmatprep.subr.bf16.mxu0 %v42285_v40 }
0x3995   :  { %36611 = vmatpush3.bf16.msra.mxu1 %v38101_v17 }
0x3996   :  { %36756 = vmatprep.subr.bf16.mxu1 %v42285_v40 }
0x3997   :  { %36755 = vmatpush3.bf16.msra.mxu0 %v38101_v17 }
0x3998   :  { %32290 = vmatmul.mubr.f32.vlgmr.msra.gmra.mrb[72].mxu1 %v41578_v24  ;;  %36792 = vmatprep.subr.bf16.mxu0 %v42285_v40 }
0x3999   :  { %36758 = vmatpush3.bf16.msra.mxu1 %v41081_v31  ;;  %32510 = vmatprep.mubr.msk.f32.mxu1 %vm37764_vm0, %v42284_v25 }
0x399a   :  { %32500 = vmatmul.mubr.f32.vlgmr.msra.gmra.mrb[74].mxu0 %v41586_v60  ;;  %36759 = vmatprep.subr.bf16.mxu1 %v42285_v40 }
0x399b   :  { %36794 = vmatpush3.bf16.msra.mxu0 %v40748_v33  ;;  %32576 = vmatprep.mubr.msk.f32.mxu0 %vm37764_vm0, %v42284_v25 }
0x399c   :  { %36795 = vmatprep.subr.bf16.mxu0 %v42285_v40 }
0x399d   :  { %36761 = vmatpush3.bf16.msra.mxu1 %v41085_v57 }
0x399e   :  { %36762 = vmatprep.subr.bf16.mxu1 %v42285_v40 }
0x399f   :  { %36797 = vmatpush3.bf16.msra.mxu0 %v40752_v23 }
0x39a0   :  { %36798 = vmatprep.subr.bf16.mxu0 %v42285_v40 }
0x3a6b   :  { %v20567_v24 = vpop.f32.mrb[72].mxu1 }
0x3a6c   :  { %v21214_v2 = vmul.f32 %v20567_v24, %v20567_v24  ;;  %v32291_v60 = vpop.f32.mrb[73].mxu1  ;;  %v21213_v62 = vsub.f32 %v41575_v46, %v20567_v24 }
0x3a6d   :  { %v21209_v32 = vpop.f32.mrb[74].mxu0 }
0x3a6e   :  { %v21215_v55 = vsub.f32 %v21209_v32, %v21214_v2  ;;  %v32501_v8 = vpop.f32.mrb[75].mxu0 }
0x3a70   :  { %v21216_v1 = vadd.f32 1e-05, %v21215_v55 }
0x3a72   :  { %37594 = vrsqrt.f32 %v21216_v1 }
0x3a7c   :  { %v37595_v21 = vpop.eup %37594 }
0x3a7d   :  { %v21218_v16 = vmul.f32 %v37595_v21, %v21213_v62 }
0x3a7f   :  { %37596 = vtanh.f32 %v21218_v16  ;;  %v21219_v39 = vmul.f32 0.5, %v21218_v16 }
0x3a81   :  { %37598 = vtanh.f32 %v21219_v39 }
0x3a89   :  { %v37597_v15 = vpop.eup %37596 }
0x3a8a   :  { %21226 = vrot.lane.b32.xlu0 %v37597_v15, %s37766_s10 }
0x3a8b   :  { %v37599_v3 = vpop.eup %37598 }
0x3a8c   :  { %v21221_v35 = vmul.f32 0.5, %v37599_v3 }
0x3a8e   :  { %v21222_v0 = vadd.f32 0.5, %v21221_v35 }
0x3a90   :  { %v21224_v2 = vmul.f32 %v21222_v0, %v41448_v26 }
0x3afc   :  { %v21227_v7 = vpop.permute.xlu0 %21226 }
0x3afd   :  { %v21229_v60 = vmul.f32 %v21227_v7, %v21222_v0 }
0x3aff   :  { %21231 = vrot.lane.b32.xlu1 %v21229_v60, %s37766_s10 }
0x3b71   :  { %v21232_v32 = vpop.permute.xlu1 %21231 }
0x3b72   :  { %v41807_v55 = vadd.f32 %v21232_v32, %v21224_v2 }
0x3b74   :  { %21236 = vrot.lane.b32.xlu0 %v41807_v55, %s37767_s22  ;;  %v21243_v46 = vmul.f32 %v41807_v55, %v41807_v55 }
0x3b76   :  { %21245 = vrot.lane.b32.xlu1 %v21243_v46, %s37767_s22 }
0x3be6   :  { %v21237_v39 = vpop.permute.xlu0 %21236 }
0x3be7   :  { %v21239_v35 = vsel %vm174_vm1, %v21237_v39, 0.0 }
0x3be8   :  { %21240 = vadd.xlane.f32.xlu0 %v21239_v35  ;;  %v21246_v7 = vpop.permute.xlu1 %21245 }
0x3be9   :  { %v21248_v3 = vsel %vm174_vm1, %v21246_v7, 0.0 }
0x3bea   :  { %21249 = vadd.xlane.f32.xlu1 %v21248_v3 }
0x3c75   :  { %v21241_v26 = vpop.xlane.xlu0 %21240 }
0x3c76   :  { %v21242_v15 = vmul.f32 0.03125, %v21241_v26 }
0x3c77   :  { %v21250_v16 = vpop.xlane.xlu1 %21249 }
0x3c78   :  { %v21253_v24 = vmul.f32 %v21242_v15, %v21242_v15  ;;  %v21251_v8 = vmul.f32 0.03125, %v21250_v16  ;;  %v21252_v21 = vsub.f32 %v41807_v55, %v21242_v15 }
0x3c7a   :  { %v21254_v1 = vsub.f32 %v21251_v8, %v21253_v24 }
0x3c7c   :  { %v21255_v62 = vadd.f32 1e-05, %v21254_v1 }
0x3c7e   :  { %37600 = vrsqrt.f32 %v21255_v62 }
0x3c88   :  { %v37601_v60 = vpop.eup %37600 }
0x3c89   :  { %v21257_v2 = vmul.f32 %v37601_v60, %v21252_v21 }
0x3c8b   :  { %v21258_v32 = vmul.f32 %v21257_v2, %v42321_v20 }
0x3c8d   :  { %v21259_v46 = vadd.f32 %v21258_v32, %v42322_v56 }
0x3c8f   :  { %37602 = vtanh.f32 %v21259_v46 }
0x3c99   :  { %v37603_v39 = vpop.eup %37602 }
0x3c9a   :  { %21262 = vrot.lane.b32.xlu0 %v37603_v39, %s37766_s10 }
0x3d0c   :  { %v21263_v35 = vpop.permute.xlu0 %21262 }
0x3d0d   :  { %v21265_v7 = vmul.f32 %v21263_v35, %v21222_v0 }
0x3d0f   :  { %21267 = vrot.lane.b32.xlu1 %v21265_v7, %s37768_s2 }
0x3d81   :  { %v21268_v3 = vpop.permute.xlu1 %21267 }
0x3d82   :  { %v21269_v26 = vsel %vm174_vm1, %v21268_v3, 0 }
0x3d83   :  { %v41822_v16 = vand.u32 4294901760, %v21269_v26 }
0x3d85   :  { %v21341_v15 = vsub.f32 %v21269_v26, %v41822_v16 }
0x3d87   :  { %v21342_v24 = vand.u32 4294901760, %v21341_v15 }
0x3d89   :  { %v21343_v8 = vsub.f32 %v21341_v15, %v21342_v24 }
0x3d8b   :  { %v21344_v1 = vand.u32 4294901760, %v21343_v8 }
0x3d8d   :  { %32511 = vmatmul.mubr.f32.vlgmr.msra.gmra.mrb[74].mxu1 %v21344_v1  ;;  %32577 = vmatmul.mubr.f32.vlgmr.msra.gmra.mrb[76].mxu0 %v21344_v1 }
0x3d8e   :  { %36800 = vmatpush3.bf16.msra.mxu0 %v40756_v29  ;;  %36764 = vmatpush3.bf16.msra.mxu1 %v41089_v14  ;;  %v41930_v29 = vld [vmem:[%s42222_s9] ss:$0 sm:$0xff]  ;;  %s37769_s9 = smov [#allocation11]  }
0x3d8f   :  { %36801 = vmatprep.subr.bf16.mxu0 %v42285_v40  ;;  %36765 = vmatprep.subr.bf16.mxu1 %v42285_v40  ;;  %s24076_s16 = sshll.u32 %s37769_s9, 4  ;;  %s24077_s16 = int_to_ptr.vmem [resolvable:$true] %s24076_s16 }
0x3d90   :  { %32521 = vmatprep.mubr.msk.f32.mxu1 %vm37764_vm0, %v42284_v25  ;;  %32587 = vmatprep.mubr.msk.f32.mxu0 %vm37764_vm0, %v42284_v25  ;;  %s37726_s17 = scalar_lea.vmem %s24077_s16, 512  ;;  %p37731_p13 = scmp.lt.s32.totalorder %s24077_s16, %s24077_s16 }
0x3d91   :  { %p37727_p12 = scmp.ne.s32.totalorder %s24077_s16, %s37726_s17  ;;  %p37732_p0 = scmp.lt.s32.totalorder %s37726_s17, %s37726_s17 }
0x3d92   :  { %36803 = vmatpush3.bf16.msra.mxu0 %v40759_v30  ;;  %36767 = vmatpush3.bf16.msra.mxu1 %v41093_v61 }
0x3d93   :  { %36804 = vmatprep.subr.bf16.mxu0 %v42285_v40  ;;  %36768 = vmatprep.subr.bf16.mxu1 %v42285_v40  ;;  %p37733_p1 = por %p37732_p0, %p37731_p13 }
0x3d95   :  { %32522 = vmatmul.mubr.f32.vlgmr.msra.gmra.mrb[74].mxu1 %v41822_v16  ;;  %32588 = vmatmul.mubr.f32.vlgmr.msra.gmra.mrb[76].mxu0 %v41822_v16  ;;  %p37734_p2 = pnand %p37733_p1, %p37727_p12 }
0x3d96   :  { %36806 = vmatpush3.bf16.msra.mxu0 %v40761_v45  ;;  %36770 = vmatpush3.bf16.msra.mxu1 %v41095_v50 }
0x3d97   :  { %36807 = vmatprep.subr.bf16.mxu0 %v42285_v40  ;;  %36771 = vmatprep.subr.bf16.mxu1 %v42285_v40 }
0x3d98   :  { %32532 = vmatprep.mubr.msk.f32.mxu1 %vm37764_vm0, %v42284_v25  ;;  %32598 = vmatprep.mubr.msk.f32.mxu0 %vm37764_vm0, %v42284_v25 }
0x3d9a   :  { %36809 = vmatpush3.bf16.msra.mxu0 %v40763_v36  ;;  %36773 = vmatpush3.bf16.msra.mxu1 %v41097_v34 }
0x3d9b   :  { %36810 = vmatprep.subr.bf16.mxu0 %v42285_v40  ;;  %36774 = vmatprep.subr.bf16.mxu1 %v42285_v40 }
0x3d9d   :  { %32533 = vmatmul.mubr.f32.vlgmr.msra.gmra.mrb[74].mxu1 %v21341_v15  ;;  %32599 = vmatmul.mubr.f32.vlgmr.msra.gmra.mrb[76].mxu0 %v21341_v15 }
0x3d9e   :  { %36812 = vmatpush3.bf16.msra.mxu0 %v40748_v33  ;;  %36776 = vmatpush3.bf16.msra.mxu1 %v41081_v31 }
0x3d9f   :  { %36813 = vmatprep.subr.bf16.mxu0 %v42285_v40  ;;  %36777 = vmatprep.subr.bf16.mxu1 %v42285_v40 }
0x3da0   :  { %32543 = vmatprep.mubr.msk.f32.mxu1 %vm37764_vm0, %v42284_v25  ;;  %32609 = vmatprep.mubr.msk.f32.mxu0 %vm37764_vm0, %v42284_v25 }
0x3da2   :  { %36815 = vmatpush3.bf16.msra.mxu0 %v40752_v23  ;;  %36779 = vmatpush3.bf16.msra.mxu1 %v41085_v57 }
0x3da3   :  { %36816 = vmatprep.subr.bf16.mxu0 %v42285_v40  ;;  %36780 = vmatprep.subr.bf16.mxu1 %v42285_v40 }
0x3da5   :  { %32544 = vmatmul.mubr.f32.vlgmr.msra.gmra.mrb[74].mxu1 %v21342_v24  ;;  %32610 = vmatmul.mubr.f32.vlgmr.msra.gmra.mrb[76].mxu0 %v21342_v24 }
0x3da6   :  { %36818 = vmatpush3.bf16.msra.mxu0 %v40765_v22  ;;  %36782 = vmatpush3.bf16.msra.mxu1 %v41099_v18 }
0x3da7   :  { %36819 = vmatprep.subr.bf16.mxu0 %v42285_v40  ;;  %36783 = vmatprep.subr.bf16.mxu1 %v42285_v40 }
0x3da8   :  { %32554 = vmatprep.mubr.msk.f32.mxu1 %vm37764_vm0, %v42284_v25  ;;  %32620 = vmatprep.mubr.msk.f32.mxu0 %vm37764_vm0, %v42284_v25 }
0x3daa   :  { %36821 = vmatpush3.bf16.msra.mxu0 %v40767_v49  ;;  %36785 = vmatpush3.bf16.msra.mxu1 %v41101_v10 }
0x3dab   :  { %36822 = vmatprep.subr.bf16.mxu0 %v42285_v40  ;;  %36786 = vmatprep.subr.bf16.mxu1 %v42285_v40 }
0x3dad   :  { %32555 = vmatmul.mubr.f32.vlgmr.msra.gmra.mrb[74].mxu1 %v41822_v16  ;;  %32621 = vmatmul.mubr.f32.vlgmr.msra.gmra.mrb[76].mxu0 %v41822_v16 }
0x3dae   :  { %36824 = vmatpush3.bf16.msra.mxu0 %v40748_v33  ;;  %36788 = vmatpush3.bf16.msra.mxu1 %v41081_v31 }
0x3daf   :  { %36825 = vmatprep.subr.bf16.mxu0 %v42285_v40  ;;  %36789 = vmatprep.subr.bf16.mxu1 %v42285_v40 }
0x3db0   :  { %32565 = vmatprep.mubr.msk.f32.mxu1 %vm37764_vm0, %v42284_v25  ;;  %32631 = vmatprep.mubr.msk.f32.mxu0 %vm37764_vm0, %v42284_v25 }
0x3db2   :  { %36827 = vmatpush3.bf16.msra.mxu0 %v40752_v23  ;;  %36791 = vmatpush3.bf16.msra.mxu1 %v41085_v57 }
0x3db3   :  { %36828 = vmatprep.subr.bf16.mxu1 %v42285_v40  ;;  %36972 = vmatprep.subr.bf16.mxu0 %v42285_v40 }
0x3db5   :  { %32566 = vmatmul.mubr.f32.vlgmr.msra.gmra.mrb[74].mxu1 %v41822_v16  ;;  %32632 = vmatmul.mubr.f32.vlgmr.msra.gmra.mrb[76].mxu0 %v41822_v16 }
0x3db6   :  { %36830 = vmatpush3.bf16.msra.mxu1 %v37983_v38  ;;  %36974 = vmatpush3.bf16.msra.mxu0 %v37983_v38 }
0x3db7   :  { %36831 = vmatprep.subr.bf16.mxu1 %v42285_v40  ;;  %36975 = vmatprep.subr.bf16.mxu0 %v42285_v40 }
0x3db8   :  { %32666 = vmatprep.mubr.msk.f32.mxu1 %vm37764_vm0, %v42284_v25  ;;  %32876 = vmatprep.mubr.msk.f32.mxu0 %vm37764_vm0, %v42284_v25 }
0x3dba   :  { %36833 = vmatpush3.bf16.msra.mxu1 %v37999_v43  ;;  %36977 = vmatpush3.bf16.msra.mxu0 %v37999_v43 }
0x3dbb   :  { %36834 = vmatprep.subr.bf16.mxu1 %v42285_v40  ;;  %36978 = vmatprep.subr.bf16.mxu0 %v42285_v40 }
0x3dbe   :  { %36836 = vmatpush3.bf16.msra.mxu1 %v38015_v48  ;;  %36980 = vmatpush3.bf16.msra.mxu0 %v38015_v48 }
0x3dbf   :  { %36837 = vmatprep.subr.bf16.mxu1 %v42285_v40  ;;  %36981 = vmatprep.subr.bf16.mxu0 %v42285_v40 }
0x3dc2   :  { %36839 = vmatpush3.bf16.msra.mxu1 %v38031_v53  ;;  %36983 = vmatpush3.bf16.msra.mxu0 %v38031_v53 }
0x3dc3   :  { %36840 = vmatprep.subr.bf16.mxu1 %v42285_v40  ;;  %36984 = vmatprep.subr.bf16.mxu0 %v42285_v40 }
0x3dc6   :  { %36842 = vmatpush3.bf16.msra.mxu1 %v38047_v58  ;;  %36986 = vmatpush3.bf16.msra.mxu0 %v38047_v58 }
0x3dc7   :  { %36843 = vmatprep.subr.bf16.mxu1 %v42285_v40  ;;  %36987 = vmatprep.subr.bf16.mxu0 %v42285_v40 }
0x3dca   :  { %36845 = vmatpush3.bf16.msra.mxu1 %v38063_v63  ;;  %36989 = vmatpush3.bf16.msra.mxu0 %v38063_v63 }
0x3dcb   :  { %36846 = vmatprep.subr.bf16.mxu1 %v42285_v40  ;;  %36990 = vmatprep.subr.bf16.mxu0 %v42285_v40 }
0x3dce   :  { %36848 = vmatpush3.bf16.msra.mxu1 %v38079_v6  ;;  %36992 = vmatpush3.bf16.msra.mxu0 %v38079_v6 }
0x3dcf   :  { %36849 = vmatprep.subr.bf16.mxu1 %v42285_v40  ;;  %36993 = vmatprep.subr.bf16.mxu0 %v42285_v40 }
0x3dd2   :  { %36851 = vmatpush3.bf16.msra.mxu1 %v38101_v17  ;;  %36995 = vmatpush3.bf16.msra.mxu0 %v38101_v17 }
0x3dd3   :  { %36852 = vmatprep.subr.bf16.mxu1 %v42285_v40  ;;  %36996 = vmatprep.subr.bf16.mxu0 %v42285_v40 }
0x3e88   :  { %v21752_v33 = vpop.f32.mrb[74].mxu1  ;;  %v22239_v23 = vpop.f32.mrb[76].mxu0 }
0x3e89   :  { %v37157_v30 = vadd.f32 %v41930_v29, %v21752_v33  ;;  %v41934_v45 = vadd.f32 %v41572_v41, %v22239_v23  ;;  %v32567_v36 = vpop.f32.mrb[75].mxu1  ;;  %v32633_v22 = vpop.f32.mrb[77].mxu0 }
0x3e8b   :  { %21757 = vst [vmem:[#allocation11 + $0x10] sm:$0xff] %v37157_v30  ;;  %v41937_v49 = vand.u32 4294901760, %v41934_v45  ;;  %v22884_v0 = vmul.f32 %v41934_v45, %v41934_v45 }
0x3e8d   :  { %v41943_v62 = vsub.f32 %v41934_v45, %v41937_v49  ;;  %v41945_v21 = vand.u32 4294901760, %v22884_v0 }
0x3e8f   :  { %v41948_v60 = vsub.f32 %v22884_v0, %v41945_v21  ;;  %v22326_v41 = vand.u32 4294901760, %v41943_v62 }
0x3e91   :  { %v22327_v2 = vsub.f32 %v41943_v62, %v22326_v41  ;;  %v22968_v32 = vand.u32 4294901760, %v41948_v60 }
0x3e93   :  { %v22328_v46 = vand.u32 4294901760, %v22327_v2  ;;  %v22969_v39 = vsub.f32 %v41948_v60, %v22968_v32 }
0x3e95   :  { %32667 = vmatmul.mubr.f32.vlgmr.msra.gmra.mrb[76].mxu1 %v22328_v46  ;;  %v22970_v35 = vand.u32 4294901760, %v22969_v39 }
0x3e96   :  { %36854 = vmatpush3.bf16.msra.mxu1 %v38125_v27  ;;  %32701 = vmatprep.mubr.msk.f32.mxu1 %vm37764_vm0, %v42284_v25 }
0x3e97   :  { %32877 = vmatmul.mubr.f32.vlgmr.msra.gmra.mrb[78].mxu0 %v22970_v35  ;;  %36855 = vmatprep.subr.bf16.mxu1 %v42285_v40 }
0x3e98   :  { %36998 = vmatpush3.bf16.msra.mxu0 %v38125_v27  ;;  %32911 = vmatprep.mubr.msk.f32.mxu0 %vm37764_vm0, %v42284_v25  ;;  %v42329_v27 = vld [vmem:[#allocation19_spill] sm:$0xff] }
0x3e99   :  { %36999 = vmatprep.subr.bf16.mxu0 %v42285_v40 }
0x3e9a   :  { %36857 = vmatpush3.bf16.msra.mxu1 %v38145_v42 }
0x3e9b   :  { %36858 = vmatprep.subr.bf16.mxu1 %v42285_v40 }
0x3e9c   :  { %37001 = vmatpush3.bf16.msra.mxu0 %v38145_v42  ;;  %v42330_v42 = vld [vmem:[#allocation20_spill] sm:$0xff] }
0x3e9d   :  { %37002 = vmatprep.subr.bf16.mxu0 %v42285_v40 }
0x3e9e   :  { %36860 = vmatpush3.bf16.msra.mxu1 %v38165_v28 }
0x3e9f   :  { %36861 = vmatprep.subr.bf16.mxu1 %v42285_v40 }
0x3ea0   :  { %37004 = vmatpush3.bf16.msra.mxu0 %v38165_v28  ;;  %v42331_v28 = vld [vmem:[#allocation21_spill] sm:$0xff] }
0x3ea1   :  { %37005 = vmatprep.subr.bf16.mxu0 %v42285_v40 }
0x3ea2   :  { %36863 = vmatpush3.bf16.msra.mxu1 %v38201_v44 }
0x3ea3   :  { %36864 = vmatprep.subr.bf16.mxu1 %v42285_v40 }
0x3ea4   :  { %37007 = vmatpush3.bf16.msra.mxu0 %v38201_v44  ;;  %v42333_v44 = vld [vmem:[#allocation23_spill] sm:$0xff] }
0x3ea5   :  { %37008 = vmatprep.subr.bf16.mxu0 %v42285_v40 }
0x3ea6   :  { %36866 = vmatpush3.bf16.msra.mxu1 %v38205_v37 }
0x3ea7   :  { %36867 = vmatprep.subr.bf16.mxu1 %v42285_v40 }
0x3ea8   :  { %37010 = vmatpush3.bf16.msra.mxu0 %v38205_v37  ;;  %v42332_v37 = vld [vmem:[#allocation22_spill] sm:$0xff] }
0x3ea9   :  { %37011 = vmatprep.subr.bf16.mxu0 %v42285_v40 }
0x3eaa   :  { %36869 = vmatpush3.bf16.msra.mxu1 %v38225_v47 }
0x3eab   :  { %36870 = vmatprep.subr.bf16.mxu1 %v42285_v40 }
0x3eac   :  { %37013 = vmatpush3.bf16.msra.mxu0 %v38225_v47  ;;  %v42335_v47 = vld [vmem:[#allocation25_spill] sm:$0xff] }
0x3ead   :  { %37014 = vmatprep.subr.bf16.mxu0 %v42285_v40 }
0x3eae   :  { %36872 = vmatpush3.bf16.msra.mxu1 %v38251_v11 }
0x3eaf   :  { %36873 = vmatprep.subr.bf16.mxu1 %v42285_v40 }
0x3eb0   :  { %37016 = vmatpush3.bf16.msra.mxu0 %v38251_v11 }
0x3eb1   :  { %37017 = vmatprep.subr.bf16.mxu0 %v42285_v40 }
0x3eb2   :  { %36875 = vmatpush3.bf16.msra.mxu1 %v38253_v54 }
0x3eb3   :  { %36876 = vmatprep.subr.bf16.mxu1 %v42285_v40 }
0x3eb4   :  { %37019 = vmatpush3.bf16.msra.mxu0 %v38253_v54  ;;  %v42334_v54 = vld [vmem:[#allocation24_spill] sm:$0xff] }
0x3eb5   :  { %32702 = vmatmul.mubr.f32.vlgmr.msra.gmra.mrb[76].mxu1 %v41937_v49  ;;  %37020 = vmatprep.subr.bf16.mxu0 %v42285_v40 }
0x3eb6   :  { %36878 = vmatpush3.bf16.msra.mxu1 %v38257_v19  ;;  %32736 = vmatprep.mubr.msk.f32.mxu1 %vm37764_vm0, %v42284_v25 }
0x3eb7   :  { %32912 = vmatmul.mubr.f32.vlgmr.msra.gmra.mrb[78].mxu0 %v41945_v21  ;;  %36879 = vmatprep.subr.bf16.mxu1 %v42285_v40 }
0x3eb8   :  { %37022 = vmatpush3.bf16.msra.mxu0 %v38257_v19  ;;  %32946 = vmatprep.mubr.msk.f32.mxu0 %vm37764_vm0, %v42284_v25 }
0x3eb9   :  { %37023 = vmatprep.subr.bf16.mxu0 %v42285_v40 }
0x3eba   :  { %36881 = vmatpush3.bf16.msra.mxu1 %v38261_v4 }
0x3ebb   :  { %36882 = vmatprep.subr.bf16.mxu1 %v42285_v40 }
0x3ebc   :  { %37025 = vmatpush3.bf16.msra.mxu0 %v38261_v4 }
0x3ebd   :  { %37026 = vmatprep.subr.bf16.mxu0 %v42285_v40 }
0x3ebe   :  { %36884 = vmatpush3.bf16.msra.mxu1 %v38265_v59 }
0x3ebf   :  { %36885 = vmatprep.subr.bf16.mxu1 %v42285_v40 }
0x3ec0   :  { %37028 = vmatpush3.bf16.msra.mxu0 %v38265_v59 }
0x3ec1   :  { %37029 = vmatprep.subr.bf16.mxu0 %v42285_v40 }
0x3ec2   :  { %36887 = vmatpush3.bf16.msra.mxu1 %v38269_v5 }
0x3ec3   :  { %36888 = vmatprep.subr.bf16.mxu1 %v42285_v40 }
0x3ec4   :  { %37031 = vmatpush3.bf16.msra.mxu0 %v38269_v5 }
0x3ec5   :  { %37032 = vmatprep.subr.bf16.mxu0 %v42285_v40 }
0x3ec6   :  { %36890 = vmatpush3.bf16.msra.mxu1 %v38273_v52 }
0x3ec7   :  { %36891 = vmatprep.subr.bf16.mxu1 %v42285_v40 }
0x3ec8   :  { %37034 = vmatpush3.bf16.msra.mxu0 %v38273_v52 }
0x3ec9   :  { %37035 = vmatprep.subr.bf16.mxu0 %v42285_v40 }
0x3eca   :  { %36893 = vmatpush3.bf16.msra.mxu1 %v38277_v9 }
0x3ecb   :  { %36894 = vmatprep.subr.bf16.mxu1 %v42285_v40 }
0x3ecc   :  { %37037 = vmatpush3.bf16.msra.mxu0 %v38277_v9 }
0x3ecd   :  { %37038 = vmatprep.subr.bf16.mxu0 %v42285_v40 }
0x3ece   :  { %36896 = vmatpush3.bf16.msra.mxu1 %v38281_v12 }
0x3ecf   :  { %36897 = vmatprep.subr.bf16.mxu1 %v42285_v40 }
0x3ed0   :  { %37040 = vmatpush3.bf16.msra.mxu0 %v38281_v12 }
0x3ed1   :  { %37041 = vmatprep.subr.bf16.mxu0 %v42285_v40 }
0x3ed2   :  { %36899 = vmatpush3.bf16.msra.mxu1 %v38285_v13 }
0x3ed3   :  { %36900 = vmatprep.subr.bf16.mxu1 %v42285_v40 }
0x3ed4   :  { %37043 = vmatpush3.bf16.msra.mxu0 %v38285_v13 }
0x3ed5   :  { %32737 = vmatmul.mubr.f32.vlgmr.msra.gmra.mrb[76].mxu1 %v41943_v62  ;;  %37044 = vmatprep.subr.bf16.mxu0 %v42285_v40 }
0x3ed6   :  { %36902 = vmatpush3.bf16.msra.mxu1 %v37983_v38  ;;  %32771 = vmatprep.mubr.msk.f32.mxu1 %vm37764_vm0, %v42284_v25 }
0x3ed7   :  { %32947 = vmatmul.mubr.f32.vlgmr.msra.gmra.mrb[78].mxu0 %v41948_v60  ;;  %36903 = vmatprep.subr.bf16.mxu1 %v42285_v40 }
0x3ed8   :  { %37046 = vmatpush3.bf16.msra.mxu0 %v37983_v38  ;;  %32981 = vmatprep.mubr.msk.f32.mxu0 %vm37764_vm0, %v42284_v25 }
0x3ed9   :  { %37047 = vmatprep.subr.bf16.mxu0 %v42285_v40 }
0x3eda   :  { %36905 = vmatpush3.bf16.msra.mxu1 %v37999_v43 }
0x3edb   :  { %36906 = vmatprep.subr.bf16.mxu1 %v42285_v40 }
0x3edc   :  { %37049 = vmatpush3.bf16.msra.mxu0 %v37999_v43 }
0x3edd   :  { %37050 = vmatprep.subr.bf16.mxu0 %v42285_v40 }
0x3ede   :  { %36908 = vmatpush3.bf16.msra.mxu1 %v38015_v48 }
0x3edf   :  { %36909 = vmatprep.subr.bf16.mxu1 %v42285_v40 }
0x3ee0   :  { %37052 = vmatpush3.bf16.msra.mxu0 %v38015_v48 }
0x3ee1   :  { %37053 = vmatprep.subr.bf16.mxu0 %v42285_v40 }
0x3ee2   :  { %36911 = vmatpush3.bf16.msra.mxu1 %v38031_v53 }
0x3ee3   :  { %36912 = vmatprep.subr.bf16.mxu1 %v42285_v40 }
0x3ee4   :  { %37055 = vmatpush3.bf16.msra.mxu0 %v38031_v53 }
0x3ee5   :  { %37056 = vmatprep.subr.bf16.mxu0 %v42285_v40 }
0x3ee6   :  { %36914 = vmatpush3.bf16.msra.mxu1 %v38047_v58 }
0x3ee7   :  { %36915 = vmatprep.subr.bf16.mxu1 %v42285_v40 }
0x3ee8   :  { %37058 = vmatpush3.bf16.msra.mxu0 %v38047_v58 }
0x3ee9   :  { %37059 = vmatprep.subr.bf16.mxu0 %v42285_v40 }
0x3eea   :  { %36917 = vmatpush3.bf16.msra.mxu1 %v38063_v63 }
0x3eeb   :  { %36918 = vmatprep.subr.bf16.mxu1 %v42285_v40 }
0x3eec   :  { %37061 = vmatpush3.bf16.msra.mxu0 %v38063_v63 }
0x3eed   :  { %37062 = vmatprep.subr.bf16.mxu0 %v42285_v40 }
0x3eee   :  { %36920 = vmatpush3.bf16.msra.mxu1 %v38079_v6 }
0x3eef   :  { %36921 = vmatprep.subr.bf16.mxu1 %v42285_v40 }
0x3ef0   :  { %37064 = vmatpush3.bf16.msra.mxu0 %v38079_v6 }
0x3ef1   :  { %37065 = vmatprep.subr.bf16.mxu0 %v42285_v40 }
0x3ef2   :  { %36923 = vmatpush3.bf16.msra.mxu1 %v38101_v17 }
0x3ef3   :  { %36924 = vmatprep.subr.bf16.mxu1 %v42285_v40 }
0x3ef4   :  { %37067 = vmatpush3.bf16.msra.mxu0 %v38101_v17 }
0x3ef5   :  { %32772 = vmatmul.mubr.f32.vlgmr.msra.gmra.mrb[76].mxu1 %v22326_v41  ;;  %37068 = vmatprep.subr.bf16.mxu0 %v42285_v40 }
0x3ef6   :  { %36926 = vmatpush3.bf16.msra.mxu1 %v38424_v51  ;;  %32806 = vmatprep.mubr.msk.f32.mxu1 %vm37764_vm0, %v42284_v25 }
0x3ef7   :  { %32982 = vmatmul.mubr.f32.vlgmr.msra.gmra.mrb[78].mxu0 %v22968_v32  ;;  %36927 = vmatprep.subr.bf16.mxu1 %v42285_v40 }
0x3ef8   :  { %37070 = vmatpush3.bf16.msra.mxu0 %v38424_v51  ;;  %33016 = vmatprep.mubr.msk.f32.mxu0 %vm37764_vm0, %v42284_v25 }
0x3ef9   :  { %37071 = vmatprep.subr.bf16.mxu0 %v42285_v40 }
0x3efa   :  { %36929 = vmatpush3.bf16.msra.mxu1 %v42329_v27 }
0x3efb   :  { %36930 = vmatprep.subr.bf16.mxu1 %v42285_v40 }
0x3efc   :  { %37073 = vmatpush3.bf16.msra.mxu0 %v42329_v27 }
0x3efd   :  { %37074 = vmatprep.subr.bf16.mxu0 %v42285_v40 }
0x3efe   :  { %36932 = vmatpush3.bf16.msra.mxu1 %v42330_v42 }
0x3eff   :  { %36933 = vmatprep.subr.bf16.mxu1 %v42285_v40 }
0x3f00   :  { %37076 = vmatpush3.bf16.msra.mxu0 %v42330_v42 }
0x3f01   :  { %37077 = vmatprep.subr.bf16.mxu0 %v42285_v40 }
0x3f02   :  { %36935 = vmatpush3.bf16.msra.mxu1 %v42331_v28 }
0x3f03   :  { %36936 = vmatprep.subr.bf16.mxu1 %v42285_v40 }
0x3f04   :  { %37079 = vmatpush3.bf16.msra.mxu0 %v42331_v28 }
0x3f05   :  { %37080 = vmatprep.subr.bf16.mxu0 %v42285_v40 }
0x3f06   :  { %36938 = vmatpush3.bf16.msra.mxu1 %v42332_v37 }
0x3f07   :  { %36939 = vmatprep.subr.bf16.mxu1 %v42285_v40 }
0x3f08   :  { %37082 = vmatpush3.bf16.msra.mxu0 %v42332_v37 }
0x3f09   :  { %37083 = vmatprep.subr.bf16.mxu0 %v42285_v40 }
0x3f0a   :  { %36941 = vmatpush3.bf16.msra.mxu1 %v42333_v44 }
0x3f0b   :  { %36942 = vmatprep.subr.bf16.mxu1 %v42285_v40 }
0x3f0c   :  { %37085 = vmatpush3.bf16.msra.mxu0 %v42333_v44 }
0x3f0d   :  { %37086 = vmatprep.subr.bf16.mxu0 %v42285_v40 }
0x3f0e   :  { %36944 = vmatpush3.bf16.msra.mxu1 %v42334_v54 }
0x3f0f   :  { %36945 = vmatprep.subr.bf16.mxu1 %v42285_v40 }
0x3f10   :  { %37088 = vmatpush3.bf16.msra.mxu0 %v42334_v54 }
0x3f11   :  { %37089 = vmatprep.subr.bf16.mxu0 %v42285_v40 }
0x3f12   :  { %36947 = vmatpush3.bf16.msra.mxu1 %v42335_v47 }
0x3f13   :  { %36948 = vmatprep.subr.bf16.mxu1 %v42285_v40 }
0x3f14   :  { %37091 = vmatpush3.bf16.msra.mxu0 %v42335_v47 }
0x3f15   :  { %32807 = vmatmul.mubr.f32.vlgmr.msra.gmra.mrb[76].mxu1 %v41937_v49  ;;  %37092 = vmatprep.subr.bf16.mxu0 %v42285_v40 }
0x3f16   :  { %36950 = vmatpush3.bf16.msra.mxu1 %v37983_v38  ;;  %32841 = vmatprep.mubr.msk.f32.mxu1 %vm37764_vm0, %v42284_v25 }
0x3f17   :  { %33017 = vmatmul.mubr.f32.vlgmr.msra.gmra.mrb[78].mxu0 %v41945_v21  ;;  %36951 = vmatprep.subr.bf16.mxu1 %v42285_v40 }
0x3f18   :  { %37094 = vmatpush3.bf16.msra.mxu0 %v37983_v38  ;;  %33051 = vmatprep.mubr.msk.f32.mxu0 %vm37764_vm0, %v42284_v25 }
0x3f19   :  { %37095 = vmatprep.subr.bf16.mxu0 %v42285_v40 }
0x3f1a   :  { %36953 = vmatpush3.bf16.msra.mxu1 %v37999_v43 }
0x3f1b   :  { %36954 = vmatprep.subr.bf16.mxu1 %v42285_v40 }
0x3f1c   :  { %37097 = vmatpush3.bf16.msra.mxu0 %v37999_v43 }
0x3f1d   :  { %37098 = vmatprep.subr.bf16.mxu0 %v42285_v40 }
0x3f1e   :  { %36956 = vmatpush3.bf16.msra.mxu1 %v38015_v48 }
0x3f1f   :  { %36957 = vmatprep.subr.bf16.mxu1 %v42285_v40 }
0x3f20   :  { %37100 = vmatpush3.bf16.msra.mxu0 %v38015_v48 }
0x3f21   :  { %37101 = vmatprep.subr.bf16.mxu0 %v42285_v40 }
0x3f22   :  { %36959 = vmatpush3.bf16.msra.mxu1 %v38031_v53 }
0x3f23   :  { %36960 = vmatprep.subr.bf16.mxu1 %v42285_v40 }
0x3f24   :  { %37103 = vmatpush3.bf16.msra.mxu0 %v38031_v53 }
0x3f25   :  { %37104 = vmatprep.subr.bf16.mxu0 %v42285_v40 }
0x3f26   :  { %36962 = vmatpush3.bf16.msra.mxu1 %v38047_v58 }
0x3f27   :  { %36963 = vmatprep.subr.bf16.mxu1 %v42285_v40 }
0x3f28   :  { %37106 = vmatpush3.bf16.msra.mxu0 %v38047_v58 }
0x3f29   :  { %37107 = vmatprep.subr.bf16.mxu0 %v42285_v40 }
0x3f2a   :  { %36965 = vmatpush3.bf16.msra.mxu1 %v38063_v63 }
0x3f2b   :  { %36966 = vmatprep.subr.bf16.mxu1 %v42285_v40 }
0x3f2c   :  { %37109 = vmatpush3.bf16.msra.mxu0 %v38063_v63 }
0x3f2d   :  { %37110 = vmatprep.subr.bf16.mxu0 %v42285_v40 }
0x3f2e   :  { %36968 = vmatpush3.bf16.msra.mxu1 %v38079_v6 }
0x3f2f   :  { %36969 = vmatprep.subr.bf16.mxu1 %v42285_v40 }
0x3f30   :  { %37112 = vmatpush3.bf16.msra.mxu0 %v38079_v6 }
0x3f31   :  { %37113 = vmatprep.subr.bf16.mxu0 %v42285_v40 }
0x3f32   :  { %36971 = vmatpush3.bf16.msra.mxu1 %v38101_v17 }
0x3f33   :  { %37116 = vmatprep.subr.bf16.mxu1 %v42285_v40 }
0x3f34   :  { %37115 = vmatpush3.bf16.msra.mxu0 %v38101_v17 }
0x3f35   :  { %32842 = vmatmul.mubr.f32.vlgmr.msra.gmra.mrb[76].mxu1 %v41937_v49 }
0x3f36   :  { %37118 = vmatpush3.bf16.msra.mxu1 %v41081_v31  ;;  %33062 = vmatprep.mubr.msk.f32.mxu1 %vm37764_vm0, %v42284_v25 }
0x3f37   :  { %33052 = vmatmul.mubr.f32.vlgmr.msra.gmra.mrb[78].mxu0 %v41945_v21  ;;  %37119 = vmatprep.subr.bf16.mxu1 %v42285_v40 }
0x3f3a   :  { %37121 = vmatpush3.bf16.msra.mxu1 %v41085_v57 }
0x3f3b   :  { %37122 = vmatprep.subr.bf16.mxu1 %v42285_v40 }
0x4008   :  { %v22880_v38 = vpop.f32.mrb[76].mxu1 }
0x4009   :  { %v23527_v43 = vmul.f32 %v22880_v38, %v22880_v38  ;;  %v32843_v48 = vpop.f32.mrb[77].mxu1  ;;  %v23526_v17 = vsub.f32 %v41934_v45, %v22880_v38 }
0x400a   :  { %v23522_v53 = vpop.f32.mrb[78].mxu0 }
0x400b   :  { %v23528_v58 = vsub.f32 %v23522_v53, %v23527_v43  ;;  %v33053_v63 = vpop.f32.mrb[79].mxu0 }
0x400d   :  { %v23529_v6 = vadd.f32 1e-05, %v23528_v58 }
0x400f   :  { %37604 = vrsqrt.f32 %v23529_v6 }
0x4019   :  { %v37605_v59 = vpop.eup %37604 }
0x401a   :  { %v23531_v11 = vmul.f32 %v37605_v59, %v23526_v17 }
0x401c   :  { %37606 = vtanh.f32 %v23531_v11  ;;  %v23532_v4 = vmul.f32 0.5, %v23531_v11 }
0x401e   :  { %37608 = vtanh.f32 %v23532_v4 }
0x4026   :  { %v37607_v19 = vpop.eup %37606 }
0x4027   :  { %23539 = vrot.lane.b32.xlu0 %v37607_v19, %s37766_s10 }
0x4028   :  { %v37609_v5 = vpop.eup %37608 }
0x4029   :  { %v23534_v52 = vmul.f32 0.5, %v37609_v5 }
0x402b   :  { %v23535_v9 = vadd.f32 0.5, %v23534_v52 }
0x402d   :  { %v23537_v51 = vmul.f32 %v23535_v9, %v41807_v55 }
0x4099   :  { %v23540_v12 = vpop.permute.xlu0 %23539 }
0x409a   :  { %v23542_v13 = vmul.f32 %v23540_v12, %v23535_v9 }
0x409c   :  { %23544 = vrot.lane.b32.xlu1 %v23542_v13, %s37766_s10 }
0x410e   :  { %v23545_v7 = vpop.permute.xlu1 %23544 }
0x410f   :  { %v23547_v3 = vadd.f32 %v23545_v7, %v23537_v51 }
0x4111   :  { %23549 = vrot.lane.b32.xlu0 %v23547_v3, %s37767_s22  ;;  %v23556_v26 = vmul.f32 %v23547_v3, %v23547_v3 }
0x4113   :  { %23558 = vrot.lane.b32.xlu1 %v23556_v26, %s37767_s22 }
0x4183   :  { %v23550_v16 = vpop.permute.xlu0 %23549 }
0x4184   :  { %v23552_v15 = vsel %vm174_vm1, %v23550_v16, 0.0 }
0x4185   :  { %23553 = vadd.xlane.f32.xlu0 %v23552_v15  ;;  %v23559_v24 = vpop.permute.xlu1 %23558 }
0x4186   :  { %v23561_v8 = vsel %vm174_vm1, %v23559_v24, 0.0 }
0x4187   :  { %23562 = vadd.xlane.f32.xlu1 %v23561_v8 }
0x4212   :  { %v23554_v1 = vpop.xlane.xlu0 %23553 }
0x4213   :  { %v23555_v33 = vmul.f32 0.03125, %v23554_v1 }
0x4214   :  { %v23563_v23 = vpop.xlane.xlu1 %23562 }
0x4215   :  { %v23566_v30 = vmul.f32 %v23555_v33, %v23555_v33  ;;  %v23564_v55 = vmul.f32 0.03125, %v23563_v23  ;;  %v23565_v22 = vsub.f32 %v23547_v3, %v23555_v33 }
0x4217   :  { %v23567_v45 = vsub.f32 %v23564_v55, %v23566_v30 }
0x4219   :  { %v23568_v36 = vadd.f32 1e-05, %v23567_v45 }
0x421b   :  { %37610 = vrsqrt.f32 %v23568_v36 }
0x4225   :  { %v37611_v49 = vpop.eup %37610 }
0x4226   :  { %v23570_v0 = vmul.f32 %v37611_v49, %v23565_v22 }
0x4228   :  { %v23571_v62 = vmul.f32 %v23570_v0, %v42321_v20 }
0x422a   :  { %v23572_v21 = vadd.f32 %v23571_v62, %v42322_v56 }
0x422c   :  { %37612 = vtanh.f32 %v23572_v21 }
0x4236   :  { %v37613_v60 = vpop.eup %37612 }
0x4237   :  { %23575 = vrot.lane.b32.xlu0 %v37613_v60, %s37766_s10 }
0x42a9   :  { %v23576_v41 = vpop.permute.xlu0 %23575 }
0x42aa   :  { %v23578_v2 = vmul.f32 %v23576_v41, %v23535_v9 }
0x42ac   :  { %23580 = vrot.lane.b32.xlu1 %v23578_v2, %s37768_s2 }
0x431e   :  { %v23581_v32 = vpop.permute.xlu1 %23580 }
0x431f   :  { %v23582_v46 = vsel %vm174_vm1, %v23581_v32, 0 }
0x4320   :  { %v23653_v39 = vand.u32 4294901760, %v23582_v46 }
0x4322   :  { %v23654_v35 = vsub.f32 %v23582_v46, %v23653_v39 }
0x4324   :  { %v23655_v27 = vand.u32 4294901760, %v23654_v35 }
0x4326   :  { %v23656_v42 = vsub.f32 %v23654_v35, %v23655_v27 }
0x4328   :  { %v23657_v28 = vand.u32 4294901760, %v23656_v42 }
0x432a   :  { %33063 = vmatmul.mubr.f32.vlgmr.msra.gmra.mrb[78].mxu1 %v23657_v28 }
0x432b   :  { %37124 = vmatpush3.bf16.msra.mxu1 %v41089_v14  ;;  %33073 = vmatprep.mubr.msk.f32.mxu1 %vm37764_vm0, %v42284_v25 }
0x432c   :  { %37125 = vmatprep.subr.bf16.mxu1 %v42285_v40 }
0x432f   :  { %37127 = vmatpush3.bf16.msra.mxu1 %v41093_v61 }
0x4330   :  { %37128 = vmatprep.subr.bf16.mxu1 %v42285_v40 }
0x4332   :  { %33074 = vmatmul.mubr.f32.vlgmr.msra.gmra.mrb[78].mxu1 %v23653_v39 }
0x4333   :  { %37130 = vmatpush3.bf16.msra.mxu1 %v41095_v50  ;;  %33084 = vmatprep.mubr.msk.f32.mxu1 %vm37764_vm0, %v42284_v25 }
0x4334   :  { %37131 = vmatprep.subr.bf16.mxu1 %v42285_v40 }
0x4337   :  { %37133 = vmatpush3.bf16.msra.mxu1 %v41097_v34 }
0x4338   :  { %37134 = vmatprep.subr.bf16.mxu1 %v42285_v40 }
0x433a   :  { %33085 = vmatmul.mubr.f32.vlgmr.msra.gmra.mrb[78].mxu1 %v23654_v35 }
0x433b   :  { %37136 = vmatpush3.bf16.msra.mxu1 %v41081_v31  ;;  %33095 = vmatprep.mubr.msk.f32.mxu1 %vm37764_vm0, %v42284_v25 }
0x433c   :  { %37137 = vmatprep.subr.bf16.mxu1 %v42285_v40 }
0x433f   :  { %37139 = vmatpush3.bf16.msra.mxu1 %v41085_v57 }
0x4340   :  { %37140 = vmatprep.subr.bf16.mxu1 %v42285_v40 }
0x4342   :  { %33096 = vmatmul.mubr.f32.vlgmr.msra.gmra.mrb[78].mxu1 %v23655_v27 }
0x4343   :  { %37142 = vmatpush3.bf16.msra.mxu1 %v41099_v18  ;;  %33106 = vmatprep.mubr.msk.f32.mxu1 %vm37764_vm0, %v42284_v25 }
0x4344   :  { %37143 = vmatprep.subr.bf16.mxu1 %v42285_v40 }
0x4347   :  { %37145 = vmatpush3.bf16.msra.mxu1 %v41101_v10 }
0x4348   :  { %37146 = vmatprep.subr.bf16.mxu1 %v42285_v40 }
0x434a   :  { %33107 = vmatmul.mubr.f32.vlgmr.msra.gmra.mrb[78].mxu1 %v23653_v39 }
0x434b   :  { %37148 = vmatpush3.bf16.msra.mxu1 %v41081_v31  ;;  %33117 = vmatprep.mubr.msk.f32.mxu1 %vm37764_vm0, %v42284_v25 }
0x434c   :  { %37149 = vmatprep.subr.bf16.mxu1 %v42285_v40 }
0x434f   :  { %37151 = vmatpush3.bf16.msra.mxu1 %v41085_v57 }
0x4352   :  { %33118 = vmatmul.mubr.f32.vlgmr.msra.gmra.mrb[78].mxu1 %v23653_v39 }
0x4425   :  { %v24065_v14 = vpop.f32.mrb[78].mxu1 }
0x4426   :  { %v37159_v61 = vadd.f32 %v41930_v29, %v24065_v14  ;;  %v33119_v50 = vpop.f32.mrb[79].mxu1 }
0x4428   :  { %24070 = vst [vmem:[#allocation11 + $0x18] sm:$0xff] %v37159_v61 }
0x4429   :  { %37737 = shalt.err (!%p37734_p2)
}
0x442a   :  { %s37738_s19 = scalar_lea.hbm %s42224_s11, 512 }
0x442b   :  { %p37739_p3 = scmp.ne.s32.totalorder %s42224_s11, %s37738_s19  ;;  %p37742_p4 = scmp.lt.u32.totalorder %s37738_s19, %s42224_s11 }
0x442d   :  { %p37744_p5 = pnand %p37742_p4, %p37739_p3 }
0x442f   :  { %37747 = shalt.err (!%p37744_p5)
}
0x4430   :  { %24082 = dma.vmem_to_hbm [thread:$0]  %s24077_s16, 512, %s42224_s11, [#allocation4], %s37758_s29, %s37758_s29, %s37759_s30  }
0x4431   :  { %37754 = dma.done.wait [#allocation4], 512  }
0x4432   :  { %37755 = vsyncadd [#allocation4], 4294966784 }
0x4433   :  { %24086 = vsyncpa [#allocation3], 1 }
0x4434   :  { %24087 = vsyncpa [#allocation6], 1 }
0x4435   :  { %24088 = vsyncpa [#allocation9], 1 }
0x4436   :  { %24089 = vsyncpa [#allocation4], 1 }

</bundles_post_ra>
